<compile_context>
chip_gen: v5e
topology: v5e:2x2
jax: 0.10.0
libtpu: 0.0.40
codegen_flags: <defaults>
</compile_context>

<pallas_src>
import functools
import math

import jax
import jax.numpy as jnp
import numpy as np
from jax.experimental import pallas as pl
from jax.experimental.pallas import tpu as pltpu


# ------------------------------ static layer plan -----------------------------
# (name, cin, cout, cin_pad, cout_pad, pool_after)
_LAYERS = (
    ("conv1",   3,  32,   3, 128, True),
    ("conv2",  32,  64, 128, 128, True),
    ("conv3",  64, 128, 128, 128, True),
    ("conv4", 128, 256, 128, 256, False),
    ("conv5", 256, 256, 256, 256, False),
)


def _round_up(x, m):
    return (x + m - 1) // m * m


def _pad_rows(h, w):
    # Rows of the flat zero-padded activation buffer.  (h+2)*(w+2)+2 rows
    # guarantee every 3x3 tap window is an in-bounds contiguous row slice.
    return _round_up((h + 2) * (w + 2) + 2, 8)


def _scatter_matrix(h, w, pool, p_next):
    """Constant 0/1 matrix mapping flat conv-output rows of the current layer
    to the next layer's flat zero-padded activation buffer.  One MXU matmul
    with it fuses: strided pool-result gather, scatter into the padded
    interior, and zeroing of the halo border."""
    wp = w + 2
    if pool:
        ho, wo = h // 2, w // 2
        src = lambda yo, xo: (2 * yo) * wp + (2 * xo)
    else:
        ho, wo = h, w
        src = lambda yo, xo: yo * wp + xo
    wp_next = wo + 2
    s = np.zeros((p_next, h * wp), np.float32)
    for yo in range(ho):
        for xo in range(wo):
            s[(yo + 1) * wp_next + (xo + 1), src(yo, xo)] = 1.0
    return jnp.asarray(s, dtype=jnp.bfloat16)


# --------------------------------- the kernel ---------------------------------

def _vgg_kernel(x_ref,
                w1, b1, s1,
                w2, b2, s2,
                w3, b3, s3,
                w4, b4, s4,
                w5, b5,
                o_ref,
                pad1, patch1, pad2, patch2, pad3, patch3,
                pad4, patch4, pad5, patch5,
                *, dims):
    """Whole compactVGG16 forward for one image, activations VMEM-resident."""
    (H1, W1), (H2, W2), (H3, W3), (H4, W4), (H5, W5) = dims

    def conv(pad_ref, patch_ref, w_ref, b_ref, h, w, cin):
        # Fused im2col: every 3x3 tap is one contiguous row-block of the flat
        # padded buffer.  A single copy+cast pass fills the bf16 patch matrix,
        # then ONE MXU dot does the whole layer.
        wp, m = w + 2, h * (w + 2)
        for k in range(9):
            dy, dx = divmod(k, 3)
            patch_ref[:, k * cin:(k + 1) * cin] = (
                pad_ref[pl.ds(dy * wp + dx, m), :].astype(jnp.bfloat16))
        raw = jnp.dot(patch_ref[...], w_ref[...],
                      preferred_element_type=jnp.float32)        # (m, cout) f32
        # rows y*(w+2)+x with x < w are the real conv outputs; the rest are
        # don't-care rows that the scatter matmul below never picks up.
        return jnp.maximum(raw + b_ref[...], 0.0)                # bias + ReLU

    def shift_rows(v, n):
        # row i <- row i + n (wrapped tail rows only land in don't-care rows)
        return jnp.concatenate([v[n:], v[:n]], axis=0)

    def pool2x2(v, w):
        # 2x2 max-pool on the flat conv output; the pooled value for output
        # pixel (yo, xo) ends up at row 2*yo*(w+2) + 2*xo.
        hmax = jnp.maximum(v, shift_rows(v, 1))
        return jnp.maximum(hmax, shift_rows(hmax, w + 2))

    def scatter(s_ref, v, pad_next_ref):
        # One small MXU matmul: gather pooled rows, scatter them into the next
        # layer's padded interior, and zero the halo border -- all at once.
        pad_next_ref[...] = jnp.dot(s_ref[...], v.astype(jnp.bfloat16),
                                    preferred_element_type=jnp.float32)

    # ---- pack the input image into the flat zero-padded layer-1 buffer ----
    wp1 = W1 + 2
    pad1[...] = jnp.zeros_like(pad1)
    for y in range(H1):
        pad1[pl.ds((y + 1) * wp1 + 1, W1), :] = x_ref[0, y, :, :]

    # ---- conv1..conv3: conv + bias + ReLU + fused 2x2 max-pool ----
    a = conv(pad1, patch1, w1, b1, H1, W1, 3)
    scatter(s1, pool2x2(a, W1), pad2)

    a = conv(pad2, patch2, w2, b2, H2, W2, 128)
    scatter(s2, pool2x2(a, W2), pad3)

    a = conv(pad3, patch3, w3, b3, H3, W3, 128)
    scatter(s3, pool2x2(a, W3), pad4)

    # ---- conv4, conv5: conv + bias + ReLU (no pool) ----
    a = conv(pad4, patch4, w4, b4, H4, W4, 128)
    scatter(s4, a, pad5)

    a = conv(pad5, patch5, w5, b5, H5, W5, 256)

    # ---- gather the valid rows -> single lane-dense (H5*W5, 256) store ----
    wp5 = W5 + 2
    rows = [a[y * wp5: y * wp5 + W5] for y in range(H5)]
    o_ref[0] = jnp.concatenate(rows, axis=0).astype(o_ref.dtype)


# ------------------------------ parameter plumbing ----------------------------

def init_params(key):
    params = {}
    for name, cin, cout, *_ in _LAYERS:
        key, kw, kb = jax.random.split(key, 3)
        bound = 1.0 / math.sqrt(cin * 9)       # PyTorch default conv init bound
        w = jax.random.uniform(kw, (cout, cin, 3, 3), jnp.float32, -bound, bound)
        b = jax.random.uniform(kb, (cout,), jnp.float32, -bound, bound)
        params[name] = (w, b)
    return params


def prepare_params(params):
    """One-time (outside jit) conversion of OIHW conv weights to kernel layout:
    (9*cin_pad, cout_pad) bf16 patch weights + (1, cout_pad) f32 bias.
    Padded channels are exactly zero and flow through every layer as zeros."""
    prepped = {}
    for name, cin, cout, cin_pad, cout_pad, _ in _LAYERS:
        w, b = params[name]
        w4 = jnp.transpose(w, (2, 3, 1, 0))                    # (ky, kx, ci, co)
        w4 = jnp.pad(w4, ((0, 0), (0, 0),
                          (0, cin_pad - cin), (0, cout_pad - cout)))
        wk = w4.reshape(9 * cin_pad, cout_pad).astype(jnp.bfloat16)
        bk = jnp.pad(b, (0, cout_pad - cout)).reshape(1, cout_pad)
        prepped[name] = (wk, bk.astype(jnp.float32))
    return prepped


# ---------------------------------- forward -----------------------------------

def compact_vgg16_forward(x_nchw, prepped):
    """x_nchw: (N, 3, H, W) f32, H and W multiples of 8 (small images, as the
    module intends).  Returns (N, 256, H//8, W//8) f32."""
    N, C, H0, W0 = x_nchw.shape
    # TODO(synk): odd spatial dims would need PyTorch MaxPool2d floor-truncation
    # (masked pooling); this fused kernel requires H, W multiples of 8.
    assert C == 3 and H0 % 8 == 0 and W0 % 8 == 0

    dims = ((H0, W0), (H0 // 2, W0 // 2), (H0 // 4, W0 // 4),
            (H0 // 8, W0 // 8), (H0 // 8, W0 // 8))
    names = [l[0] for l in _LAYERS]
    cin_pads = [l[3] for l in _LAYERS]
    cout_pads = [l[4] for l in _LAYERS]
    pools = [l[5] for l in _LAYERS]
    pad_rows = [_pad_rows(h, w) for (h, w) in dims]

    # Constant 0/1 pool-gather / halo-scatter matrices (trace-time constants).
    smats = [_scatter_matrix(dims[i][0], dims[i][1], pools[i], pad_rows[i + 1])
             for i in range(4)]

    x = jnp.transpose(x_nchw.astype(jnp.float32), (0, 2, 3, 1))   # NCHW -> NHWC

    H5, W5 = dims[4]
    out_rows = H5 * W5
    cout_final = cout_pads[4]

    operands = [x]
    in_specs = [pl.BlockSpec((1, H0, W0, 3), lambda n: (n, 0, 0, 0))]
    for i, name in enumerate(names):
        wk, bk = prepped[name]
        operands += [wk, bk]
        in_specs += [pl.BlockSpec(wk.shape, lambda n: (0, 0)),
                     pl.BlockSpec(bk.shape, lambda n: (0, 0))]
        if i < 4:
            operands.append(smats[i])
            in_specs.append(pl.BlockSpec(smats[i].shape, lambda n: (0, 0)))

    scratch = []
    for i in range(5):
        h, w = dims[i]
        cin = cin_pads[i]
        scratch.append(pltpu.VMEM((pad_rows[i], cin), jnp.float32))       # pad_i
        scratch.append(pltpu.VMEM((h * (w + 2), 9 * cin), jnp.bfloat16))  # patch_i

    out = pl.pallas_call(
        functools.partial(_vgg_kernel, dims=dims),
        out_shape=jax.ShapeDtypeStruct((N, out_rows, cout_final), jnp.float32),
        grid=(N,),
        in_specs=in_specs,
        out_specs=pl.BlockSpec((1, out_rows, cout_final), lambda n: (n, 0, 0)),
        scratch_shapes=scratch,
        compiler_params=pltpu.CompilerParams(
            dimension_semantics=("parallel",)),
    )(*operands)

    out = out.reshape(N, H5, W5, cout_final)
    return jnp.transpose(out, (0, 3, 1, 2))                      # NHWC -> NCHW


# ------------------------------ pure-JAX reference ----------------------------

def reference_forward(x_nchw, params):
    def conv(x, w, b):
        y = jax.lax.conv_general_dilated(
            x, w, window_strides=(1, 1), padding="SAME",
            dimension_numbers=("NCHW", "OIHW", "NCHW"))
        return jax.nn.relu(y + b[None, :, None, None])

    def pool(x):
        return jax.lax.reduce_window(x, -jnp.inf, jax.lax.max,
                                     (1, 1, 2, 2), (1, 1, 2, 2), "VALID")

    x = pool(conv(x_nchw, *params["conv1"]))
    x = pool(conv(x, *params["conv2"]))
    x = pool(conv(x, *params["conv3"]))
    x = conv(x, *params["conv4"])
    x = conv(x, *params["conv5"])
    return x


if __name__ == "__main__":
    key = jax.random.PRNGKey(0)
    kx, kp = jax.random.split(key)
    x = jax.random.normal(kx, (2, 3, 16, 16), jnp.float32)   # NCHW like PyTorch
    params = init_params(kp)
    prepped = prepare_params(params)                         # once, outside jit

    fwd = jax.jit(compact_vgg16_forward)
    out = jax.block_until_ready(fwd(x, prepped))
    assert out.shape == (2, 256, 2, 2), out.shape            # B x 256 x H/8 x W/8

    ref = jax.block_until_ready(reference_forward(x, params))
    err = float(jnp.max(jnp.abs(out - ref)))
    assert jnp.allclose(out, ref, rtol=5e-2, atol=5e-2), err

    print("KERNEL_OK")
</pallas_src>

<mosaic_0001>
module attributes {stable_mosaic.version = 11 : i64} {
  func.func @_vgg_kernel(%arg0: i32, %arg1: memref<1x16x16x3xf32, #tpu.memory_space<vmem>>, %arg2: memref<27x128xbf16, #tpu.memory_space<vmem>>, %arg3: memref<1x128xf32, #tpu.memory_space<vmem>>, %arg4: memref<104x288xbf16, #tpu.memory_space<vmem>>, %arg5: memref<1152x128xbf16, #tpu.memory_space<vmem>>, %arg6: memref<1x128xf32, #tpu.memory_space<vmem>>, %arg7: memref<40x80xbf16, #tpu.memory_space<vmem>>, %arg8: memref<1152x128xbf16, #tpu.memory_space<vmem>>, %arg9: memref<1x128xf32, #tpu.memory_space<vmem>>, %arg10: memref<24x24xbf16, #tpu.memory_space<vmem>>, %arg11: memref<1152x256xbf16, #tpu.memory_space<vmem>>, %arg12: memref<1x256xf32, #tpu.memory_space<vmem>>, %arg13: memref<24x8xbf16, #tpu.memory_space<vmem>>, %arg14: memref<2304x256xbf16, #tpu.memory_space<vmem>>, %arg15: memref<1x256xf32, #tpu.memory_space<vmem>>, %arg16: memref<1x4x256xf32, #tpu.memory_space<vmem>>, %arg17: memref<328x3xf32, #tpu.memory_space<vmem>>, %arg18: memref<288x27xbf16, #tpu.memory_space<vmem>>, %arg19: memref<104x128xf32, #tpu.memory_space<vmem>>, %arg20: memref<80x1152xbf16, #tpu.memory_space<vmem>>, %arg21: memref<40x128xf32, #tpu.memory_space<vmem>>, %arg22: memref<24x1152xbf16, #tpu.memory_space<vmem>>, %arg23: memref<24x128xf32, #tpu.memory_space<vmem>>, %arg24: memref<8x1152xbf16, #tpu.memory_space<vmem>>, %arg25: memref<24x256xf32, #tpu.memory_space<vmem>>, %arg26: memref<8x2304xbf16, #tpu.memory_space<vmem>>) attributes {dimension_semantics = [#tpu.dimension_semantics<parallel>], iteration_bounds = array<i64: 2>, scalar_prefetch = 0 : i64, scratch_operands = 10 : i64, tpu.core_type = #tpu.core_type<tc>, window_params = [{transform_indices = @transform_0, window_bounds = array<i64: 1, 16, 16, 3>}, {pipeline_mode = #tpu.pipeline_mode<synchronous>, transform_indices = @transform_1, window_bounds = array<i64: 27, 128>}, {pipeline_mode = #tpu.pipeline_mode<synchronous>, transform_indices = @transform_2, window_bounds = array<i64: 1, 128>}, {pipeline_mode = #tpu.pipeline_mode<synchronous>, transform_indices = @transform_3, window_bounds = array<i64: 104, 288>}, {pipeline_mode = #tpu.pipeline_mode<synchronous>, transform_indices = @transform_4, window_bounds = array<i64: 1152, 128>}, {pipeline_mode = #tpu.pipeline_mode<synchronous>, transform_indices = @transform_5, window_bounds = array<i64: 1, 128>}, {pipeline_mode = #tpu.pipeline_mode<synchronous>, transform_indices = @transform_6, window_bounds = array<i64: 40, 80>}, {pipeline_mode = #tpu.pipeline_mode<synchronous>, transform_indices = @transform_7, window_bounds = array<i64: 1152, 128>}, {pipeline_mode = #tpu.pipeline_mode<synchronous>, transform_indices = @transform_8, window_bounds = array<i64: 1, 128>}, {pipeline_mode = #tpu.pipeline_mode<synchronous>, transform_indices = @transform_9, window_bounds = array<i64: 24, 24>}, {pipeline_mode = #tpu.pipeline_mode<synchronous>, transform_indices = @transform_10, window_bounds = array<i64: 1152, 256>}, {pipeline_mode = #tpu.pipeline_mode<synchronous>, transform_indices = @transform_11, window_bounds = array<i64: 1, 256>}, {pipeline_mode = #tpu.pipeline_mode<synchronous>, transform_indices = @transform_12, window_bounds = array<i64: 24, 8>}, {pipeline_mode = #tpu.pipeline_mode<synchronous>, transform_indices = @transform_13, window_bounds = array<i64: 2304, 256>}, {pipeline_mode = #tpu.pipeline_mode<synchronous>, transform_indices = @transform_14, window_bounds = array<i64: 1, 256>}, {transform_indices = @transform_15, window_bounds = array<i64: 1, 4, 256>}]} {
    %cst = arith.constant 0.000000e+00 : f32
    %0 = vector.broadcast %cst : f32 to vector<328x3xf32>
    %c0 = arith.constant 0 : index
    %c0_0 = arith.constant 0 : index
    %1 = vector.load %arg17[%c0, %c0_0] : memref<328x3xf32, #tpu.memory_space<vmem>>, vector<328x3xf32>
    tpu.vector_store %arg17[%c0, %c0_0], %0 {strides = array<i32>} : memref<328x3xf32, #tpu.memory_space<vmem>>, vector<328x3xf32>,
    %c0_1 = arith.constant 0 : index
    %c0_2 = arith.constant 0 : index
    %c0_3 = arith.constant 0 : index
    %c0_4 = arith.constant 0 : index
    %2 = vector.load %arg1[%c0_1, %c0_2, %c0_3, %c0_4] : memref<1x16x16x3xf32, #tpu.memory_space<vmem>>, vector<1x1x16x3xf32>
    %3 = vector.shape_cast %2 : vector<1x1x16x3xf32> to vector<16x3xf32>
    %c19 = arith.constant 19 : index
    %c0_5 = arith.constant 0 : index
    %4 = vector.load %arg17[%c19, %c0_5] : memref<328x3xf32, #tpu.memory_space<vmem>>, vector<16x3xf32>
    tpu.vector_store %arg17[%c19, %c0_5], %3 {strides = array<i32>} : memref<328x3xf32, #tpu.memory_space<vmem>>, vector<16x3xf32>,
    %c0_6 = arith.constant 0 : index
    %c1 = arith.constant 1 : index
    %c0_7 = arith.constant 0 : index
    %c0_8 = arith.constant 0 : index
    %5 = vector.load %arg1[%c0_6, %c1, %c0_7, %c0_8] : memref<1x16x16x3xf32, #tpu.memory_space<vmem>>, vector<1x1x16x3xf32>
    %6 = vector.shape_cast %5 : vector<1x1x16x3xf32> to vector<16x3xf32>
    %c37 = arith.constant 37 : index
    %c0_9 = arith.constant 0 : index
    %7 = vector.load %arg17[%c37, %c0_9] : memref<328x3xf32, #tpu.memory_space<vmem>>, vector<16x3xf32>
    tpu.vector_store %arg17[%c37, %c0_9], %6 {strides = array<i32>} : memref<328x3xf32, #tpu.memory_space<vmem>>, vector<16x3xf32>,
    %c0_10 = arith.constant 0 : index
    %c2 = arith.constant 2 : index
    %c0_11 = arith.constant 0 : index
    %c0_12 = arith.constant 0 : index
    %8 = vector.load %arg1[%c0_10, %c2, %c0_11, %c0_12] : memref<1x16x16x3xf32, #tpu.memory_space<vmem>>, vector<1x1x16x3xf32>
    %9 = vector.shape_cast %8 : vector<1x1x16x3xf32> to vector<16x3xf32>
    %c55 = arith.constant 55 : index
    %c0_13 = arith.constant 0 : index
    %10 = vector.load %arg17[%c55, %c0_13] : memref<328x3xf32, #tpu.memory_space<vmem>>, vector<16x3xf32>
    tpu.vector_store %arg17[%c55, %c0_13], %9 {strides = array<i32>} : memref<328x3xf32, #tpu.memory_space<vmem>>, vector<16x3xf32>,
    %c0_14 = arith.constant 0 : index
    %c3 = arith.constant 3 : index
    %c0_15 = arith.constant 0 : index
    %c0_16 = arith.constant 0 : index
    %11 = vector.load %arg1[%c0_14, %c3, %c0_15, %c0_16] : memref<1x16x16x3xf32, #tpu.memory_space<vmem>>, vector<1x1x16x3xf32>
    %12 = vector.shape_cast %11 : vector<1x1x16x3xf32> to vector<16x3xf32>
    %c73 = arith.constant 73 : index
    %c0_17 = arith.constant 0 : index
    %13 = vector.load %arg17[%c73, %c0_17] : memref<328x3xf32, #tpu.memory_space<vmem>>, vector<16x3xf32>
    tpu.vector_store %arg17[%c73, %c0_17], %12 {strides = array<i32>} : memref<328x3xf32, #tpu.memory_space<vmem>>, vector<16x3xf32>,
    %c0_18 = arith.constant 0 : index
    %c4 = arith.constant 4 : index
    %c0_19 = arith.constant 0 : index
    %c0_20 = arith.constant 0 : index
    %14 = vector.load %arg1[%c0_18, %c4, %c0_19, %c0_20] : memref<1x16x16x3xf32, #tpu.memory_space<vmem>>, vector<1x1x16x3xf32>
    %15 = vector.shape_cast %14 : vector<1x1x16x3xf32> to vector<16x3xf32>
    %c91 = arith.constant 91 : index
    %c0_21 = arith.constant 0 : index
    %16 = vector.load %arg17[%c91, %c0_21] : memref<328x3xf32, #tpu.memory_space<vmem>>, vector<16x3xf32>
    tpu.vector_store %arg17[%c91, %c0_21], %15 {strides = array<i32>} : memref<328x3xf32, #tpu.memory_space<vmem>>, vector<16x3xf32>,
    %c0_22 = arith.constant 0 : index
    %c5 = arith.constant 5 : index
    %c0_23 = arith.constant 0 : index
    %c0_24 = arith.constant 0 : index
    %17 = vector.load %arg1[%c0_22, %c5, %c0_23, %c0_24] : memref<1x16x16x3xf32, #tpu.memory_space<vmem>>, vector<1x1x16x3xf32>
    %18 = vector.shape_cast %17 : vector<1x1x16x3xf32> to vector<16x3xf32>
    %c109 = arith.constant 109 : index
    %c0_25 = arith.constant 0 : index
    %19 = vector.load %arg17[%c109, %c0_25] : memref<328x3xf32, #tpu.memory_space<vmem>>, vector<16x3xf32>
    tpu.vector_store %arg17[%c109, %c0_25], %18 {strides = array<i32>} : memref<328x3xf32, #tpu.memory_space<vmem>>, vector<16x3xf32>,
    %c0_26 = arith.constant 0 : index
    %c6 = arith.constant 6 : index
    %c0_27 = arith.constant 0 : index
    %c0_28 = arith.constant 0 : index
    %20 = vector.load %arg1[%c0_26, %c6, %c0_27, %c0_28] : memref<1x16x16x3xf32, #tpu.memory_space<vmem>>, vector<1x1x16x3xf32>
    %21 = vector.shape_cast %20 : vector<1x1x16x3xf32> to vector<16x3xf32>
    %c127 = arith.constant 127 : index
    %c0_29 = arith.constant 0 : index
    %22 = vector.load %arg17[%c127, %c0_29] : memref<328x3xf32, #tpu.memory_space<vmem>>, vector<16x3xf32>
    tpu.vector_store %arg17[%c127, %c0_29], %21 {strides = array<i32>} : memref<328x3xf32, #tpu.memory_space<vmem>>, vector<16x3xf32>,
    %c0_30 = arith.constant 0 : index
    %c7 = arith.constant 7 : index
    %c0_31 = arith.constant 0 : index
    %c0_32 = arith.constant 0 : index
    %23 = vector.load %arg1[%c0_30, %c7, %c0_31, %c0_32] : memref<1x16x16x3xf32, #tpu.memory_space<vmem>>, vector<1x1x16x3xf32>
    %24 = vector.shape_cast %23 : vector<1x1x16x3xf32> to vector<16x3xf32>
    %c145 = arith.constant 145 : index
    %c0_33 = arith.constant 0 : index
    %25 = vector.load %arg17[%c145, %c0_33] : memref<328x3xf32, #tpu.memory_space<vmem>>, vector<16x3xf32>
    tpu.vector_store %arg17[%c145, %c0_33], %24 {strides = array<i32>} : memref<328x3xf32, #tpu.memory_space<vmem>>, vector<16x3xf32>,
    %c0_34 = arith.constant 0 : index
    %c8 = arith.constant 8 : index
    %c0_35 = arith.constant 0 : index
    %c0_36 = arith.constant 0 : index
    %26 = vector.load %arg1[%c0_34, %c8, %c0_35, %c0_36] : memref<1x16x16x3xf32, #tpu.memory_space<vmem>>, vector<1x1x16x3xf32>
    %27 = vector.shape_cast %26 : vector<1x1x16x3xf32> to vector<16x3xf32>
    %c163 = arith.constant 163 : index
    %c0_37 = arith.constant 0 : index
    %28 = vector.load %arg17[%c163, %c0_37] : memref<328x3xf32, #tpu.memory_space<vmem>>, vector<16x3xf32>
    tpu.vector_store %arg17[%c163, %c0_37], %27 {strides = array<i32>} : memref<328x3xf32, #tpu.memory_space<vmem>>, vector<16x3xf32>,
    %c0_38 = arith.constant 0 : index
    %c9 = arith.constant 9 : index
    %c0_39 = arith.constant 0 : index
    %c0_40 = arith.constant 0 : index
    %29 = vector.load %arg1[%c0_38, %c9, %c0_39, %c0_40] : memref<1x16x16x3xf32, #tpu.memory_space<vmem>>, vector<1x1x16x3xf32>
    %30 = vector.shape_cast %29 : vector<1x1x16x3xf32> to vector<16x3xf32>
    %c181 = arith.constant 181 : index
    %c0_41 = arith.constant 0 : index
    %31 = vector.load %arg17[%c181, %c0_41] : memref<328x3xf32, #tpu.memory_space<vmem>>, vector<16x3xf32>
    tpu.vector_store %arg17[%c181, %c0_41], %30 {strides = array<i32>} : memref<328x3xf32, #tpu.memory_space<vmem>>, vector<16x3xf32>,
    %c0_42 = arith.constant 0 : index
    %c10 = arith.constant 10 : index
    %c0_43 = arith.constant 0 : index
    %c0_44 = arith.constant 0 : index
    %32 = vector.load %arg1[%c0_42, %c10, %c0_43, %c0_44] : memref<1x16x16x3xf32, #tpu.memory_space<vmem>>, vector<1x1x16x3xf32>
    %33 = vector.shape_cast %32 : vector<1x1x16x3xf32> to vector<16x3xf32>
    %c199 = arith.constant 199 : index
    %c0_45 = arith.constant 0 : index
    %34 = vector.load %arg17[%c199, %c0_45] : memref<328x3xf32, #tpu.memory_space<vmem>>, vector<16x3xf32>
    tpu.vector_store %arg17[%c199, %c0_45], %33 {strides = array<i32>} : memref<328x3xf32, #tpu.memory_space<vmem>>, vector<16x3xf32>,
    %c0_46 = arith.constant 0 : index
    %c11 = arith.constant 11 : index
    %c0_47 = arith.constant 0 : index
    %c0_48 = arith.constant 0 : index
    %35 = vector.load %arg1[%c0_46, %c11, %c0_47, %c0_48] : memref<1x16x16x3xf32, #tpu.memory_space<vmem>>, vector<1x1x16x3xf32>
    %36 = vector.shape_cast %35 : vector<1x1x16x3xf32> to vector<16x3xf32>
    %c217 = arith.constant 217 : index
    %c0_49 = arith.constant 0 : index
    %37 = vector.load %arg17[%c217, %c0_49] : memref<328x3xf32, #tpu.memory_space<vmem>>, vector<16x3xf32>
    tpu.vector_store %arg17[%c217, %c0_49], %36 {strides = array<i32>} : memref<328x3xf32, #tpu.memory_space<vmem>>, vector<16x3xf32>,
    %c0_50 = arith.constant 0 : index
    %c12 = arith.constant 12 : index
    %c0_51 = arith.constant 0 : index
    %c0_52 = arith.constant 0 : index
    %38 = vector.load %arg1[%c0_50, %c12, %c0_51, %c0_52] : memref<1x16x16x3xf32, #tpu.memory_space<vmem>>, vector<1x1x16x3xf32>
    %39 = vector.shape_cast %38 : vector<1x1x16x3xf32> to vector<16x3xf32>
    %c235 = arith.constant 235 : index
    %c0_53 = arith.constant 0 : index
    %40 = vector.load %arg17[%c235, %c0_53] : memref<328x3xf32, #tpu.memory_space<vmem>>, vector<16x3xf32>
    tpu.vector_store %arg17[%c235, %c0_53], %39 {strides = array<i32>} : memref<328x3xf32, #tpu.memory_space<vmem>>, vector<16x3xf32>,
    %c0_54 = arith.constant 0 : index
    %c13 = arith.constant 13 : index
    %c0_55 = arith.constant 0 : index
    %c0_56 = arith.constant 0 : index
    %41 = vector.load %arg1[%c0_54, %c13, %c0_55, %c0_56] : memref<1x16x16x3xf32, #tpu.memory_space<vmem>>, vector<1x1x16x3xf32>
    %42 = vector.shape_cast %41 : vector<1x1x16x3xf32> to vector<16x3xf32>
    %c253 = arith.constant 253 : index
    %c0_57 = arith.constant 0 : index
    %43 = vector.load %arg17[%c253, %c0_57] : memref<328x3xf32, #tpu.memory_space<vmem>>, vector<16x3xf32>
    tpu.vector_store %arg17[%c253, %c0_57], %42 {strides = array<i32>} : memref<328x3xf32, #tpu.memory_space<vmem>>, vector<16x3xf32>,
    %c0_58 = arith.constant 0 : index
    %c14 = arith.constant 14 : index
    %c0_59 = arith.constant 0 : index
    %c0_60 = arith.constant 0 : index
    %44 = vector.load %arg1[%c0_58, %c14, %c0_59, %c0_60] : memref<1x16x16x3xf32, #tpu.memory_space<vmem>>, vector<1x1x16x3xf32>
    %45 = vector.shape_cast %44 : vector<1x1x16x3xf32> to vector<16x3xf32>
    %c271 = arith.constant 271 : index
    %c0_61 = arith.constant 0 : index
    %46 = vector.load %arg17[%c271, %c0_61] : memref<328x3xf32, #tpu.memory_space<vmem>>, vector<16x3xf32>
    tpu.vector_store %arg17[%c271, %c0_61], %45 {strides = array<i32>} : memref<328x3xf32, #tpu.memory_space<vmem>>, vector<16x3xf32>,
    %c0_62 = arith.constant 0 : index
    %c15 = arith.constant 15 : index
    %c0_63 = arith.constant 0 : index
    %c0_64 = arith.constant 0 : index
    %47 = vector.load %arg1[%c0_62, %c15, %c0_63, %c0_64] : memref<1x16x16x3xf32, #tpu.memory_space<vmem>>, vector<1x1x16x3xf32>
    %48 = vector.shape_cast %47 : vector<1x1x16x3xf32> to vector<16x3xf32>
    %c289 = arith.constant 289 : index
    %c0_65 = arith.constant 0 : index
    %49 = vector.load %arg17[%c289, %c0_65] : memref<328x3xf32, #tpu.memory_space<vmem>>, vector<16x3xf32>
    tpu.vector_store %arg17[%c289, %c0_65], %48 {strides = array<i32>} : memref<328x3xf32, #tpu.memory_space<vmem>>, vector<16x3xf32>,
    %c0_66 = arith.constant 0 : index
    %c0_67 = arith.constant 0 : index
    %50 = vector.load %arg17[%c0_66, %c0_67] : memref<328x3xf32, #tpu.memory_space<vmem>>, vector<288x3xf32>
    %51 = arith.truncf %50 : vector<288x3xf32> to vector<288x3xbf16>
    %c0_68 = arith.constant 0 : index
    %c0_69 = arith.constant 0 : index
    %52 = vector.load %arg18[%c0_68, %c0_69] : memref<288x27xbf16, #tpu.memory_space<vmem>>, vector<288x3xbf16>
    tpu.vector_store %arg18[%c0_68, %c0_69], %51 {strides = array<i32>} : memref<288x27xbf16, #tpu.memory_space<vmem>>, vector<288x3xbf16>,
    %c1_70 = arith.constant 1 : index
    %c0_71 = arith.constant 0 : index
    %53 = vector.load %arg17[%c1_70, %c0_71] : memref<328x3xf32, #tpu.memory_space<vmem>>, vector<288x3xf32>
    %54 = arith.truncf %53 : vector<288x3xf32> to vector<288x3xbf16>
    %c0_72 = arith.constant 0 : index
    %c3_73 = arith.constant 3 : index
    %55 = vector.load %arg18[%c0_72, %c3_73] : memref<288x27xbf16, #tpu.memory_space<vmem>>, vector<288x3xbf16>
    tpu.vector_store %arg18[%c0_72, %c3_73], %54 {strides = array<i32>} : memref<288x27xbf16, #tpu.memory_space<vmem>>, vector<288x3xbf16>,
    %c2_74 = arith.constant 2 : index
    %c0_75 = arith.constant 0 : index
    %56 = vector.load %arg17[%c2_74, %c0_75] : memref<328x3xf32, #tpu.memory_space<vmem>>, vector<288x3xf32>
    %57 = arith.truncf %56 : vector<288x3xf32> to vector<288x3xbf16>
    %c0_76 = arith.constant 0 : index
    %c6_77 = arith.constant 6 : index
    %58 = vector.load %arg18[%c0_76, %c6_77] : memref<288x27xbf16, #tpu.memory_space<vmem>>, vector<288x3xbf16>
    tpu.vector_store %arg18[%c0_76, %c6_77], %57 {strides = array<i32>} : memref<288x27xbf16, #tpu.memory_space<vmem>>, vector<288x3xbf16>,
    %c18 = arith.constant 18 : index
    %c0_78 = arith.constant 0 : index
    %59 = vector.load %arg17[%c18, %c0_78] : memref<328x3xf32, #tpu.memory_space<vmem>>, vector<288x3xf32>
    %60 = arith.truncf %59 : vector<288x3xf32> to vector<288x3xbf16>
    %c0_79 = arith.constant 0 : index
    %c9_80 = arith.constant 9 : index
    %61 = vector.load %arg18[%c0_79, %c9_80] : memref<288x27xbf16, #tpu.memory_space<vmem>>, vector<288x3xbf16>
    tpu.vector_store %arg18[%c0_79, %c9_80], %60 {strides = array<i32>} : memref<288x27xbf16, #tpu.memory_space<vmem>>, vector<288x3xbf16>,
    %c19_81 = arith.constant 19 : index
    %c0_82 = arith.constant 0 : index
    %62 = vector.load %arg17[%c19_81, %c0_82] : memref<328x3xf32, #tpu.memory_space<vmem>>, vector<288x3xf32>
    %63 = arith.truncf %62 : vector<288x3xf32> to vector<288x3xbf16>
    %c0_83 = arith.constant 0 : index
    %c12_84 = arith.constant 12 : index
    %64 = vector.load %arg18[%c0_83, %c12_84] : memref<288x27xbf16, #tpu.memory_space<vmem>>, vector<288x3xbf16>
    tpu.vector_store %arg18[%c0_83, %c12_84], %63 {strides = array<i32>} : memref<288x27xbf16, #tpu.memory_space<vmem>>, vector<288x3xbf16>,
    %c20 = arith.constant 20 : index
    %c0_85 = arith.constant 0 : index
    %65 = vector.load %arg17[%c20, %c0_85] : memref<328x3xf32, #tpu.memory_space<vmem>>, vector<288x3xf32>
    %66 = arith.truncf %65 : vector<288x3xf32> to vector<288x3xbf16>
    %c0_86 = arith.constant 0 : index
    %c15_87 = arith.constant 15 : index
    %67 = vector.load %arg18[%c0_86, %c15_87] : memref<288x27xbf16, #tpu.memory_space<vmem>>, vector<288x3xbf16>
    tpu.vector_store %arg18[%c0_86, %c15_87], %66 {strides = array<i32>} : memref<288x27xbf16, #tpu.memory_space<vmem>>, vector<288x3xbf16>,
    %c36 = arith.constant 36 : index
    %c0_88 = arith.constant 0 : index
    %68 = vector.load %arg17[%c36, %c0_88] : memref<328x3xf32, #tpu.memory_space<vmem>>, vector<288x3xf32>
    %69 = arith.truncf %68 : vector<288x3xf32> to vector<288x3xbf16>
    %c0_89 = arith.constant 0 : index
    %c18_90 = arith.constant 18 : index
    %70 = vector.load %arg18[%c0_89, %c18_90] : memref<288x27xbf16, #tpu.memory_space<vmem>>, vector<288x3xbf16>
    tpu.vector_store %arg18[%c0_89, %c18_90], %69 {strides = array<i32>} : memref<288x27xbf16, #tpu.memory_space<vmem>>, vector<288x3xbf16>,
    %c37_91 = arith.constant 37 : index
    %c0_92 = arith.constant 0 : index
    %71 = vector.load %arg17[%c37_91, %c0_92] : memref<328x3xf32, #tpu.memory_space<vmem>>, vector<288x3xf32>
    %72 = arith.truncf %71 : vector<288x3xf32> to vector<288x3xbf16>
    %c0_93 = arith.constant 0 : index
    %c21 = arith.constant 21 : index
    %73 = vector.load %arg18[%c0_93, %c21] : memref<288x27xbf16, #tpu.memory_space<vmem>>, vector<288x3xbf16>
    tpu.vector_store %arg18[%c0_93, %c21], %72 {strides = array<i32>} : memref<288x27xbf16, #tpu.memory_space<vmem>>, vector<288x3xbf16>,
    %c38 = arith.constant 38 : index
    %c0_94 = arith.constant 0 : index
    %74 = vector.load %arg17[%c38, %c0_94] : memref<328x3xf32, #tpu.memory_space<vmem>>, vector<288x3xf32>
    %75 = arith.truncf %74 : vector<288x3xf32> to vector<288x3xbf16>
    %c0_95 = arith.constant 0 : index
    %c24 = arith.constant 24 : index
    %76 = vector.load %arg18[%c0_95, %c24] : memref<288x27xbf16, #tpu.memory_space<vmem>>, vector<288x3xbf16>
    tpu.vector_store %arg18[%c0_95, %c24], %75 {strides = array<i32>} : memref<288x27xbf16, #tpu.memory_space<vmem>>, vector<288x3xbf16>,
    %c0_96 = arith.constant 0 : index
    %c0_97 = arith.constant 0 : index
    %77 = vector.load %arg18[%c0_96, %c0_97] : memref<288x27xbf16, #tpu.memory_space<vmem>>, vector<288x27xbf16>
    %c0_98 = arith.constant 0 : index
    %c0_99 = arith.constant 0 : index
    %78 = vector.load %arg2[%c0_98, %c0_99] : memref<27x128xbf16, #tpu.memory_space<vmem>>, vector<27x128xbf16>
    %cst_100 = arith.constant dense<0.000000e+00> : vector<288x128xf32>
    %79 = tpu.matmul %77, %78, %cst_100 {dimension_numbers = #tpu.dot_dimension_numbers<[1], [0], [0], [1], [0, 0, 1, 1], [], []>} : vector<288x27xbf16>, vector<27x128xbf16>, vector<288x128xf32> -> vector<288x128xf32>
    %c0_101 = arith.constant 0 : index
    %c0_102 = arith.constant 0 : index
    %80 = vector.load %arg3[%c0_101, %c0_102] : memref<1x128xf32, #tpu.memory_space<vmem>>, vector<1x128xf32>
    %81 = vector.broadcast %80 : vector<1x128xf32> to vector<288x128xf32>
    %82 = arith.addf %79, %81 : vector<288x128xf32>
    %cst_103 = arith.constant 0.000000e+00 : f32
    %83 = vector.broadcast %cst_103 : f32 to vector<288x128xf32>
    %84 = arith.maximumf %82, %83 : vector<288x128xf32>
    %85 = vector.extract_strided_slice %84 {offsets = [1, 0], sizes = [287, 128], strides = [1, 1]} : vector<288x128xf32> to vector<287x128xf32>
    %86 = vector.extract_strided_slice %84 {offsets = [0, 0], sizes = [1, 128], strides = [1, 1]} : vector<288x128xf32> to vector<1x128xf32>
    %87 = tpu.concatenate %85, %86 in 0 : vector<287x128xf32>, vector<1x128xf32> -> vector<288x128xf32>
    %88 = arith.maximumf %84, %87 : vector<288x128xf32>
    %89 = vector.extract_strided_slice %88 {offsets = [18, 0], sizes = [270, 128], strides = [1, 1]} : vector<288x128xf32> to vector<270x128xf32>
    %90 = vector.extract_strided_slice %88 {offsets = [0, 0], sizes = [18, 128], strides = [1, 1]} : vector<288x128xf32> to vector<18x128xf32>
    %91 = tpu.concatenate %89, %90 in 0 : vector<270x128xf32>, vector<18x128xf32> -> vector<288x128xf32>
    %92 = arith.maximumf %88, %91 : vector<288x128xf32>
    %c0_104 = arith.constant 0 : index
    %c0_105 = arith.constant 0 : index
    %93 = vector.load %arg4[%c0_104, %c0_105] : memref<104x288xbf16, #tpu.memory_space<vmem>>, vector<104x288xbf16>
    %94 = arith.truncf %92 : vector<288x128xf32> to vector<288x128xbf16>
    %cst_106 = arith.constant dense<0.000000e+00> : vector<104x128xf32>
    %95 = tpu.matmul %93, %94, %cst_106 {dimension_numbers = #tpu.dot_dimension_numbers<[1], [0], [0], [1], [0, 0, 1, 1], [], []>} : vector<104x288xbf16>, vector<288x128xbf16>, vector<104x128xf32> -> vector<104x128xf32>
    %c0_107 = arith.constant 0 : index
    %c0_108 = arith.constant 0 : index
    %96 = vector.load %arg19[%c0_107, %c0_108] : memref<104x128xf32, #tpu.memory_space<vmem>>, vector<104x128xf32>
    tpu.vector_store %arg19[%c0_107, %c0_108], %95 {strides = array<i32>} : memref<104x128xf32, #tpu.memory_space<vmem>>, vector<104x128xf32>,
    %c0_109 = arith.constant 0 : index
    %c0_110 = arith.constant 0 : index
    %97 = vector.load %arg19[%c0_109, %c0_110] : memref<104x128xf32, #tpu.memory_space<vmem>>, vector<80x128xf32>
    %98 = arith.truncf %97 : vector<80x128xf32> to vector<80x128xbf16>
    %c0_111 = arith.constant 0 : index
    %c0_112 = arith.constant 0 : index
    %99 = vector.load %arg20[%c0_111, %c0_112] : memref<80x1152xbf16, #tpu.memory_space<vmem>>, vector<80x128xbf16>
    tpu.vector_store %arg20[%c0_111, %c0_112], %98 {strides = array<i32>} : memref<80x1152xbf16, #tpu.memory_space<vmem>>, vector<80x128xbf16>,
    %c1_113 = arith.constant 1 : index
    %c0_114 = arith.constant 0 : index
    %100 = vector.load %arg19[%c1_113, %c0_114] : memref<104x128xf32, #tpu.memory_space<vmem>>, vector<80x128xf32>
    %101 = arith.truncf %100 : vector<80x128xf32> to vector<80x128xbf16>
    %c0_115 = arith.constant 0 : index
    %c128 = arith.constant 128 : index
    %102 = vector.load %arg20[%c0_115, %c128] : memref<80x1152xbf16, #tpu.memory_space<vmem>>, vector<80x128xbf16>
    tpu.vector_store %arg20[%c0_115, %c128], %101 {strides = array<i32>} : memref<80x1152xbf16, #tpu.memory_space<vmem>>, vector<80x128xbf16>,
    %c2_116 = arith.constant 2 : index
    %c0_117 = arith.constant 0 : index
    %103 = vector.load %arg19[%c2_116, %c0_117] : memref<104x128xf32, #tpu.memory_space<vmem>>, vector<80x128xf32>
    %104 = arith.truncf %103 : vector<80x128xf32> to vector<80x128xbf16>
    %c0_118 = arith.constant 0 : index
    %c256 = arith.constant 256 : index
    %105 = vector.load %arg20[%c0_118, %c256] : memref<80x1152xbf16, #tpu.memory_space<vmem>>, vector<80x128xbf16>
    tpu.vector_store %arg20[%c0_118, %c256], %104 {strides = array<i32>} : memref<80x1152xbf16, #tpu.memory_space<vmem>>, vector<80x128xbf16>,
    %c10_119 = arith.constant 10 : index
    %c0_120 = arith.constant 0 : index
    %106 = vector.load %arg19[%c10_119, %c0_120] : memref<104x128xf32, #tpu.memory_space<vmem>>, vector<80x128xf32>
    %107 = arith.truncf %106 : vector<80x128xf32> to vector<80x128xbf16>
    %c0_121 = arith.constant 0 : index
    %c384 = arith.constant 384 : index
    %108 = vector.load %arg20[%c0_121, %c384] : memref<80x1152xbf16, #tpu.memory_space<vmem>>, vector<80x128xbf16>
    tpu.vector_store %arg20[%c0_121, %c384], %107 {strides = array<i32>} : memref<80x1152xbf16, #tpu.memory_space<vmem>>, vector<80x128xbf16>,
    %c11_122 = arith.constant 11 : index
    %c0_123 = arith.constant 0 : index
    %109 = vector.load %arg19[%c11_122, %c0_123] : memref<104x128xf32, #tpu.memory_space<vmem>>, vector<80x128xf32>
    %110 = arith.truncf %109 : vector<80x128xf32> to vector<80x128xbf16>
    %c0_124 = arith.constant 0 : index
    %c512 = arith.constant 512 : index
    %111 = vector.load %arg20[%c0_124, %c512] : memref<80x1152xbf16, #tpu.memory_space<vmem>>, vector<80x128xbf16>
    tpu.vector_store %arg20[%c0_124, %c512], %110 {strides = array<i32>} : memref<80x1152xbf16, #tpu.memory_space<vmem>>, vector<80x128xbf16>,
    %c12_125 = arith.constant 12 : index
    %c0_126 = arith.constant 0 : index
    %112 = vector.load %arg19[%c12_125, %c0_126] : memref<104x128xf32, #tpu.memory_space<vmem>>, vector<80x128xf32>
    %113 = arith.truncf %112 : vector<80x128xf32> to vector<80x128xbf16>
    %c0_127 = arith.constant 0 : index
    %c640 = arith.constant 640 : index
    %114 = vector.load %arg20[%c0_127, %c640] : memref<80x1152xbf16, #tpu.memory_space<vmem>>, vector<80x128xbf16>
    tpu.vector_store %arg20[%c0_127, %c640], %113 {strides = array<i32>} : memref<80x1152xbf16, #tpu.memory_space<vmem>>, vector<80x128xbf16>,
    %c20_128 = arith.constant 20 : index
    %c0_129 = arith.constant 0 : index
    %115 = vector.load %arg19[%c20_128, %c0_129] : memref<104x128xf32, #tpu.memory_space<vmem>>, vector<80x128xf32>
    %116 = arith.truncf %115 : vector<80x128xf32> to vector<80x128xbf16>
    %c0_130 = arith.constant 0 : index
    %c768 = arith.constant 768 : index
    %117 = vector.load %arg20[%c0_130, %c768] : memref<80x1152xbf16, #tpu.memory_space<vmem>>, vector<80x128xbf16>
    tpu.vector_store %arg20[%c0_130, %c768], %116 {strides = array<i32>} : memref<80x1152xbf16, #tpu.memory_space<vmem>>, vector<80x128xbf16>,
    %c21_131 = arith.constant 21 : index
    %c0_132 = arith.constant 0 : index
    %118 = vector.load %arg19[%c21_131, %c0_132] : memref<104x128xf32, #tpu.memory_space<vmem>>, vector<80x128xf32>
    %119 = arith.truncf %118 : vector<80x128xf32> to vector<80x128xbf16>
    %c0_133 = arith.constant 0 : index
    %c896 = arith.constant 896 : index
    %120 = vector.load %arg20[%c0_133, %c896] : memref<80x1152xbf16, #tpu.memory_space<vmem>>, vector<80x128xbf16>
    tpu.vector_store %arg20[%c0_133, %c896], %119 {strides = array<i32>} : memref<80x1152xbf16, #tpu.memory_space<vmem>>, vector<80x128xbf16>,
    %c22 = arith.constant 22 : index
    %c0_134 = arith.constant 0 : index
    %121 = vector.load %arg19[%c22, %c0_134] : memref<104x128xf32, #tpu.memory_space<vmem>>, vector<80x128xf32>
    %122 = arith.truncf %121 : vector<80x128xf32> to vector<80x128xbf16>
    %c0_135 = arith.constant 0 : index
    %c1024 = arith.constant 1024 : index
    %123 = vector.load %arg20[%c0_135, %c1024] : memref<80x1152xbf16, #tpu.memory_space<vmem>>, vector<80x128xbf16>
    tpu.vector_store %arg20[%c0_135, %c1024], %122 {strides = array<i32>} : memref<80x1152xbf16, #tpu.memory_space<vmem>>, vector<80x128xbf16>,
    %c0_136 = arith.constant 0 : index
    %c0_137 = arith.constant 0 : index
    %124 = vector.load %arg20[%c0_136, %c0_137] : memref<80x1152xbf16, #tpu.memory_space<vmem>>, vector<80x1152xbf16>
    %c0_138 = arith.constant 0 : index
    %c0_139 = arith.constant 0 : index
    %125 = vector.load %arg5[%c0_138, %c0_139] : memref<1152x128xbf16, #tpu.memory_space<vmem>>, vector<1152x128xbf16>
    %cst_140 = arith.constant dense<0.000000e+00> : vector<80x128xf32>
    %126 = tpu.matmul %124, %125, %cst_140 {dimension_numbers = #tpu.dot_dimension_numbers<[1], [0], [0], [1], [0, 0, 1, 1], [], []>} : vector<80x1152xbf16>, vector<1152x128xbf16>, vector<80x128xf32> -> vector<80x128xf32>
    %c0_141 = arith.constant 0 : index
    %c0_142 = arith.constant 0 : index
    %127 = vector.load %arg6[%c0_141, %c0_142] : memref<1x128xf32, #tpu.memory_space<vmem>>, vector<1x128xf32>
    %128 = vector.broadcast %127 : vector<1x128xf32> to vector<80x128xf32>
    %129 = arith.addf %126, %128 : vector<80x128xf32>
    %cst_143 = arith.constant 0.000000e+00 : f32
    %130 = vector.broadcast %cst_143 : f32 to vector<80x128xf32>
    %131 = arith.maximumf %129, %130 : vector<80x128xf32>
    %132 = vector.extract_strided_slice %131 {offsets = [1, 0], sizes = [79, 128], strides = [1, 1]} : vector<80x128xf32> to vector<79x128xf32>
    %133 = vector.extract_strided_slice %131 {offsets = [0, 0], sizes = [1, 128], strides = [1, 1]} : vector<80x128xf32> to vector<1x128xf32>
    %134 = tpu.concatenate %132, %133 in 0 : vector<79x128xf32>, vector<1x128xf32> -> vector<80x128xf32>
    %135 = arith.maximumf %131, %134 : vector<80x128xf32>
    %136 = vector.extract_strided_slice %135 {offsets = [10, 0], sizes = [70, 128], strides = [1, 1]} : vector<80x128xf32> to vector<70x128xf32>
    %137 = vector.extract_strided_slice %135 {offsets = [0, 0], sizes = [10, 128], strides = [1, 1]} : vector<80x128xf32> to vector<10x128xf32>
    %138 = tpu.concatenate %136, %137 in 0 : vector<70x128xf32>, vector<10x128xf32> -> vector<80x128xf32>
    %139 = arith.maximumf %135, %138 : vector<80x128xf32>
    %c0_144 = arith.constant 0 : index
    %c0_145 = arith.constant 0 : index
    %140 = vector.load %arg7[%c0_144, %c0_145] : memref<40x80xbf16, #tpu.memory_space<vmem>>, vector<40x80xbf16>
    %141 = arith.truncf %139 : vector<80x128xf32> to vector<80x128xbf16>
    %cst_146 = arith.constant dense<0.000000e+00> : vector<40x128xf32>
    %142 = tpu.matmul %140, %141, %cst_146 {dimension_numbers = #tpu.dot_dimension_numbers<[1], [0], [0], [1], [0, 0, 1, 1], [], []>} : vector<40x80xbf16>, vector<80x128xbf16>, vector<40x128xf32> -> vector<40x128xf32>
    %c0_147 = arith.constant 0 : index
    %c0_148 = arith.constant 0 : index
    %143 = vector.load %arg21[%c0_147, %c0_148] : memref<40x128xf32, #tpu.memory_space<vmem>>, vector<40x128xf32>
    tpu.vector_store %arg21[%c0_147, %c0_148], %142 {strides = array<i32>} : memref<40x128xf32, #tpu.memory_space<vmem>>, vector<40x128xf32>,
    %c0_149 = arith.constant 0 : index
    %c0_150 = arith.constant 0 : index
    %144 = vector.load %arg21[%c0_149, %c0_150] : memref<40x128xf32, #tpu.memory_space<vmem>>, vector<24x128xf32>
    %145 = arith.truncf %144 : vector<24x128xf32> to vector<24x128xbf16>
    %c0_151 = arith.constant 0 : index
    %c0_152 = arith.constant 0 : index
    %146 = vector.load %arg22[%c0_151, %c0_152] : memref<24x1152xbf16, #tpu.memory_space<vmem>>, vector<24x128xbf16>
    tpu.vector_store %arg22[%c0_151, %c0_152], %145 {strides = array<i32>} : memref<24x1152xbf16, #tpu.memory_space<vmem>>, vector<24x128xbf16>,
    %c1_153 = arith.constant 1 : index
    %c0_154 = arith.constant 0 : index
    %147 = vector.load %arg21[%c1_153, %c0_154] : memref<40x128xf32, #tpu.memory_space<vmem>>, vector<24x128xf32>
    %148 = arith.truncf %147 : vector<24x128xf32> to vector<24x128xbf16>
    %c0_155 = arith.constant 0 : index
    %c128_156 = arith.constant 128 : index
    %149 = vector.load %arg22[%c0_155, %c128_156] : memref<24x1152xbf16, #tpu.memory_space<vmem>>, vector<24x128xbf16>
    tpu.vector_store %arg22[%c0_155, %c128_156], %148 {strides = array<i32>} : memref<24x1152xbf16, #tpu.memory_space<vmem>>, vector<24x128xbf16>,
    %c2_157 = arith.constant 2 : index
    %c0_158 = arith.constant 0 : index
    %150 = vector.load %arg21[%c2_157, %c0_158] : memref<40x128xf32, #tpu.memory_space<vmem>>, vector<24x128xf32>
    %151 = arith.truncf %150 : vector<24x128xf32> to vector<24x128xbf16>
    %c0_159 = arith.constant 0 : index
    %c256_160 = arith.constant 256 : index
    %152 = vector.load %arg22[%c0_159, %c256_160] : memref<24x1152xbf16, #tpu.memory_space<vmem>>, vector<24x128xbf16>
    tpu.vector_store %arg22[%c0_159, %c256_160], %151 {strides = array<i32>} : memref<24x1152xbf16, #tpu.memory_space<vmem>>, vector<24x128xbf16>,
    %c6_161 = arith.constant 6 : index
    %c0_162 = arith.constant 0 : index
    %153 = vector.load %arg21[%c6_161, %c0_162] : memref<40x128xf32, #tpu.memory_space<vmem>>, vector<24x128xf32>
    %154 = arith.truncf %153 : vector<24x128xf32> to vector<24x128xbf16>
    %c0_163 = arith.constant 0 : index
    %c384_164 = arith.constant 384 : index
    %155 = vector.load %arg22[%c0_163, %c384_164] : memref<24x1152xbf16, #tpu.memory_space<vmem>>, vector<24x128xbf16>
    tpu.vector_store %arg22[%c0_163, %c384_164], %154 {strides = array<i32>} : memref<24x1152xbf16, #tpu.memory_space<vmem>>, vector<24x128xbf16>,
    %c7_165 = arith.constant 7 : index
    %c0_166 = arith.constant 0 : index
    %156 = vector.load %arg21[%c7_165, %c0_166] : memref<40x128xf32, #tpu.memory_space<vmem>>, vector<24x128xf32>
    %157 = arith.truncf %156 : vector<24x128xf32> to vector<24x128xbf16>
    %c0_167 = arith.constant 0 : index
    %c512_168 = arith.constant 512 : index
    %158 = vector.load %arg22[%c0_167, %c512_168] : memref<24x1152xbf16, #tpu.memory_space<vmem>>, vector<24x128xbf16>
    tpu.vector_store %arg22[%c0_167, %c512_168], %157 {strides = array<i32>} : memref<24x1152xbf16, #tpu.memory_space<vmem>>, vector<24x128xbf16>,
    %c8_169 = arith.constant 8 : index
    %c0_170 = arith.constant 0 : index
    %159 = vector.load %arg21[%c8_169, %c0_170] : memref<40x128xf32, #tpu.memory_space<vmem>>, vector<24x128xf32>
    %160 = arith.truncf %159 : vector<24x128xf32> to vector<24x128xbf16>
    %c0_171 = arith.constant 0 : index
    %c640_172 = arith.constant 640 : index
    %161 = vector.load %arg22[%c0_171, %c640_172] : memref<24x1152xbf16, #tpu.memory_space<vmem>>, vector<24x128xbf16>
    tpu.vector_store %arg22[%c0_171, %c640_172], %160 {strides = array<i32>} : memref<24x1152xbf16, #tpu.memory_space<vmem>>, vector<24x128xbf16>,
    %c12_173 = arith.constant 12 : index
    %c0_174 = arith.constant 0 : index
    %162 = vector.load %arg21[%c12_173, %c0_174] : memref<40x128xf32, #tpu.memory_space<vmem>>, vector<24x128xf32>
    %163 = arith.truncf %162 : vector<24x128xf32> to vector<24x128xbf16>
    %c0_175 = arith.constant 0 : index
    %c768_176 = arith.constant 768 : index
    %164 = vector.load %arg22[%c0_175, %c768_176] : memref<24x1152xbf16, #tpu.memory_space<vmem>>, vector<24x128xbf16>
    tpu.vector_store %arg22[%c0_175, %c768_176], %163 {strides = array<i32>} : memref<24x1152xbf16, #tpu.memory_space<vmem>>, vector<24x128xbf16>,
    %c13_177 = arith.constant 13 : index
    %c0_178 = arith.constant 0 : index
    %165 = vector.load %arg21[%c13_177, %c0_178] : memref<40x128xf32, #tpu.memory_space<vmem>>, vector<24x128xf32>
    %166 = arith.truncf %165 : vector<24x128xf32> to vector<24x128xbf16>
    %c0_179 = arith.constant 0 : index
    %c896_180 = arith.constant 896 : index
    %167 = vector.load %arg22[%c0_179, %c896_180] : memref<24x1152xbf16, #tpu.memory_space<vmem>>, vector<24x128xbf16>
    tpu.vector_store %arg22[%c0_179, %c896_180], %166 {strides = array<i32>} : memref<24x1152xbf16, #tpu.memory_space<vmem>>, vector<24x128xbf16>,
    %c14_181 = arith.constant 14 : index
    %c0_182 = arith.constant 0 : index
    %168 = vector.load %arg21[%c14_181, %c0_182] : memref<40x128xf32, #tpu.memory_space<vmem>>, vector<24x128xf32>
    %169 = arith.truncf %168 : vector<24x128xf32> to vector<24x128xbf16>
    %c0_183 = arith.constant 0 : index
    %c1024_184 = arith.constant 1024 : index
    %170 = vector.load %arg22[%c0_183, %c1024_184] : memref<24x1152xbf16, #tpu.memory_space<vmem>>, vector<24x128xbf16>
    tpu.vector_store %arg22[%c0_183, %c1024_184], %169 {strides = array<i32>} : memref<24x1152xbf16, #tpu.memory_space<vmem>>, vector<24x128xbf16>,
    %c0_185 = arith.constant 0 : index
    %c0_186 = arith.constant 0 : index
    %171 = vector.load %arg22[%c0_185, %c0_186] : memref<24x1152xbf16, #tpu.memory_space<vmem>>, vector<24x1152xbf16>
    %c0_187 = arith.constant 0 : index
    %c0_188 = arith.constant 0 : index
    %172 = vector.load %arg8[%c0_187, %c0_188] : memref<1152x128xbf16, #tpu.memory_space<vmem>>, vector<1152x128xbf16>
    %cst_189 = arith.constant dense<0.000000e+00> : vector<24x128xf32>
    %173 = tpu.matmul %171, %172, %cst_189 {dimension_numbers = #tpu.dot_dimension_numbers<[1], [0], [0], [1], [0, 0, 1, 1], [], []>} : vector<24x1152xbf16>, vector<1152x128xbf16>, vector<24x128xf32> -> vector<24x128xf32>
    %c0_190 = arith.constant 0 : index
    %c0_191 = arith.constant 0 : index
    %174 = vector.load %arg9[%c0_190, %c0_191] : memref<1x128xf32, #tpu.memory_space<vmem>>, vector<1x128xf32>
    %175 = vector.broadcast %174 : vector<1x128xf32> to vector<24x128xf32>
    %176 = arith.addf %173, %175 : vector<24x128xf32>
    %cst_192 = arith.constant 0.000000e+00 : f32
    %177 = vector.broadcast %cst_192 : f32 to vector<24x128xf32>
    %178 = arith.maximumf %176, %177 : vector<24x128xf32>
    %179 = vector.extract_strided_slice %178 {offsets = [1, 0], sizes = [23, 128], strides = [1, 1]} : vector<24x128xf32> to vector<23x128xf32>
    %180 = vector.extract_strided_slice %178 {offsets = [0, 0], sizes = [1, 128], strides = [1, 1]} : vector<24x128xf32> to vector<1x128xf32>
    %181 = tpu.concatenate %179, %180 in 0 : vector<23x128xf32>, vector<1x128xf32> -> vector<24x128xf32>
    %182 = arith.maximumf %178, %181 : vector<24x128xf32>
    %183 = vector.extract_strided_slice %182 {offsets = [6, 0], sizes = [18, 128], strides = [1, 1]} : vector<24x128xf32> to vector<18x128xf32>
    %184 = vector.extract_strided_slice %182 {offsets = [0, 0], sizes = [6, 128], strides = [1, 1]} : vector<24x128xf32> to vector<6x128xf32>
    %185 = tpu.concatenate %183, %184 in 0 : vector<18x128xf32>, vector<6x128xf32> -> vector<24x128xf32>
    %186 = arith.maximumf %182, %185 : vector<24x128xf32>
    %c0_193 = arith.constant 0 : index
    %c0_194 = arith.constant 0 : index
    %187 = vector.load %arg10[%c0_193, %c0_194] : memref<24x24xbf16, #tpu.memory_space<vmem>>, vector<24x24xbf16>
    %188 = arith.truncf %186 : vector<24x128xf32> to vector<24x128xbf16>
    %cst_195 = arith.constant dense<0.000000e+00> : vector<24x128xf32>
    %189 = tpu.matmul %187, %188, %cst_195 {dimension_numbers = #tpu.dot_dimension_numbers<[1], [0], [0], [1], [0, 0, 1, 1], [], []>} : vector<24x24xbf16>, vector<24x128xbf16>, vector<24x128xf32> -> vector<24x128xf32>
    %c0_196 = arith.constant 0 : index
    %c0_197 = arith.constant 0 : index
    %190 = vector.load %arg23[%c0_196, %c0_197] : memref<24x128xf32, #tpu.memory_space<vmem>>, vector<24x128xf32>
    tpu.vector_store %arg23[%c0_196, %c0_197], %189 {strides = array<i32>} : memref<24x128xf32, #tpu.memory_space<vmem>>, vector<24x128xf32>,
    %c0_198 = arith.constant 0 : index
    %c0_199 = arith.constant 0 : index
    %191 = vector.load %arg23[%c0_198, %c0_199] : memref<24x128xf32, #tpu.memory_space<vmem>>, vector<8x128xf32>
    %192 = arith.truncf %191 : vector<8x128xf32> to vector<8x128xbf16>
    %c0_200 = arith.constant 0 : index
    %c0_201 = arith.constant 0 : index
    %193 = vector.load %arg24[%c0_200, %c0_201] : memref<8x1152xbf16, #tpu.memory_space<vmem>>, vector<8x128xbf16>
    tpu.vector_store %arg24[%c0_200, %c0_201], %192 {strides = array<i32>} : memref<8x1152xbf16, #tpu.memory_space<vmem>>, vector<8x128xbf16>,
    %c1_202 = arith.constant 1 : index
    %c0_203 = arith.constant 0 : index
    %194 = vector.load %arg23[%c1_202, %c0_203] : memref<24x128xf32, #tpu.memory_space<vmem>>, vector<8x128xf32>
    %195 = arith.truncf %194 : vector<8x128xf32> to vector<8x128xbf16>
    %c0_204 = arith.constant 0 : index
    %c128_205 = arith.constant 128 : index
    %196 = vector.load %arg24[%c0_204, %c128_205] : memref<8x1152xbf16, #tpu.memory_space<vmem>>, vector<8x128xbf16>
    tpu.vector_store %arg24[%c0_204, %c128_205], %195 {strides = array<i32>} : memref<8x1152xbf16, #tpu.memory_space<vmem>>, vector<8x128xbf16>,
    %c2_206 = arith.constant 2 : index
    %c0_207 = arith.constant 0 : index
    %197 = vector.load %arg23[%c2_206, %c0_207] : memref<24x128xf32, #tpu.memory_space<vmem>>, vector<8x128xf32>
    %198 = arith.truncf %197 : vector<8x128xf32> to vector<8x128xbf16>
    %c0_208 = arith.constant 0 : index
    %c256_209 = arith.constant 256 : index
    %199 = vector.load %arg24[%c0_208, %c256_209] : memref<8x1152xbf16, #tpu.memory_space<vmem>>, vector<8x128xbf16>
    tpu.vector_store %arg24[%c0_208, %c256_209], %198 {strides = array<i32>} : memref<8x1152xbf16, #tpu.memory_space<vmem>>, vector<8x128xbf16>,
    %c4_210 = arith.constant 4 : index
    %c0_211 = arith.constant 0 : index
    %200 = vector.load %arg23[%c4_210, %c0_211] : memref<24x128xf32, #tpu.memory_space<vmem>>, vector<8x128xf32>
    %201 = arith.truncf %200 : vector<8x128xf32> to vector<8x128xbf16>
    %c0_212 = arith.constant 0 : index
    %c384_213 = arith.constant 384 : index
    %202 = vector.load %arg24[%c0_212, %c384_213] : memref<8x1152xbf16, #tpu.memory_space<vmem>>, vector<8x128xbf16>
    tpu.vector_store %arg24[%c0_212, %c384_213], %201 {strides = array<i32>} : memref<8x1152xbf16, #tpu.memory_space<vmem>>, vector<8x128xbf16>,
    %c5_214 = arith.constant 5 : index
    %c0_215 = arith.constant 0 : index
    %203 = vector.load %arg23[%c5_214, %c0_215] : memref<24x128xf32, #tpu.memory_space<vmem>>, vector<8x128xf32>
    %204 = arith.truncf %203 : vector<8x128xf32> to vector<8x128xbf16>
    %c0_216 = arith.constant 0 : index
    %c512_217 = arith.constant 512 : index
    %205 = vector.load %arg24[%c0_216, %c512_217] : memref<8x1152xbf16, #tpu.memory_space<vmem>>, vector<8x128xbf16>
    tpu.vector_store %arg24[%c0_216, %c512_217], %204 {strides = array<i32>} : memref<8x1152xbf16, #tpu.memory_space<vmem>>, vector<8x128xbf16>,
    %c6_218 = arith.constant 6 : index
    %c0_219 = arith.constant 0 : index
    %206 = vector.load %arg23[%c6_218, %c0_219] : memref<24x128xf32, #tpu.memory_space<vmem>>, vector<8x128xf32>
    %207 = arith.truncf %206 : vector<8x128xf32> to vector<8x128xbf16>
    %c0_220 = arith.constant 0 : index
    %c640_221 = arith.constant 640 : index
    %208 = vector.load %arg24[%c0_220, %c640_221] : memref<8x1152xbf16, #tpu.memory_space<vmem>>, vector<8x128xbf16>
    tpu.vector_store %arg24[%c0_220, %c640_221], %207 {strides = array<i32>} : memref<8x1152xbf16, #tpu.memory_space<vmem>>, vector<8x128xbf16>,
    %c8_222 = arith.constant 8 : index
    %c0_223 = arith.constant 0 : index
    %209 = vector.load %arg23[%c8_222, %c0_223] : memref<24x128xf32, #tpu.memory_space<vmem>>, vector<8x128xf32>
    %210 = arith.truncf %209 : vector<8x128xf32> to vector<8x128xbf16>
    %c0_224 = arith.constant 0 : index
    %c768_225 = arith.constant 768 : index
    %211 = vector.load %arg24[%c0_224, %c768_225] : memref<8x1152xbf16, #tpu.memory_space<vmem>>, vector<8x128xbf16>
    tpu.vector_store %arg24[%c0_224, %c768_225], %210 {strides = array<i32>} : memref<8x1152xbf16, #tpu.memory_space<vmem>>, vector<8x128xbf16>,
    %c9_226 = arith.constant 9 : index
    %c0_227 = arith.constant 0 : index
    %212 = vector.load %arg23[%c9_226, %c0_227] : memref<24x128xf32, #tpu.memory_space<vmem>>, vector<8x128xf32>
    %213 = arith.truncf %212 : vector<8x128xf32> to vector<8x128xbf16>
    %c0_228 = arith.constant 0 : index
    %c896_229 = arith.constant 896 : index
    %214 = vector.load %arg24[%c0_228, %c896_229] : memref<8x1152xbf16, #tpu.memory_space<vmem>>, vector<8x128xbf16>
    tpu.vector_store %arg24[%c0_228, %c896_229], %213 {strides = array<i32>} : memref<8x1152xbf16, #tpu.memory_space<vmem>>, vector<8x128xbf16>,
    %c10_230 = arith.constant 10 : index
    %c0_231 = arith.constant 0 : index
    %215 = vector.load %arg23[%c10_230, %c0_231] : memref<24x128xf32, #tpu.memory_space<vmem>>, vector<8x128xf32>
    %216 = arith.truncf %215 : vector<8x128xf32> to vector<8x128xbf16>
    %c0_232 = arith.constant 0 : index
    %c1024_233 = arith.constant 1024 : index
    %217 = vector.load %arg24[%c0_232, %c1024_233] : memref<8x1152xbf16, #tpu.memory_space<vmem>>, vector<8x128xbf16>
    tpu.vector_store %arg24[%c0_232, %c1024_233], %216 {strides = array<i32>} : memref<8x1152xbf16, #tpu.memory_space<vmem>>, vector<8x128xbf16>,
    %c0_234 = arith.constant 0 : index
    %c0_235 = arith.constant 0 : index
    %218 = vector.load %arg24[%c0_234, %c0_235] : memref<8x1152xbf16, #tpu.memory_space<vmem>>, vector<8x1152xbf16>
    %c0_236 = arith.constant 0 : index
    %c0_237 = arith.constant 0 : index
    %219 = vector.load %arg11[%c0_236, %c0_237] : memref<1152x256xbf16, #tpu.memory_space<vmem>>, vector<1152x256xbf16>
    %cst_238 = arith.constant dense<0.000000e+00> : vector<8x256xf32>
    %220 = tpu.matmul %218, %219, %cst_238 {dimension_numbers = #tpu.dot_dimension_numbers<[1], [0], [0], [1], [0, 0, 1, 1], [], []>} : vector<8x1152xbf16>, vector<1152x256xbf16>, vector<8x256xf32> -> vector<8x256xf32>
    %c0_239 = arith.constant 0 : index
    %c0_240 = arith.constant 0 : index
    %221 = vector.load %arg12[%c0_239, %c0_240] : memref<1x256xf32, #tpu.memory_space<vmem>>, vector<1x256xf32>
    %222 = vector.broadcast %221 : vector<1x256xf32> to vector<8x256xf32>
    %223 = arith.addf %220, %222 : vector<8x256xf32>
    %cst_241 = arith.constant 0.000000e+00 : f32
    %224 = vector.broadcast %cst_241 : f32 to vector<8x256xf32>
    %225 = arith.maximumf %223, %224 : vector<8x256xf32>
    %c0_242 = arith.constant 0 : index
    %c0_243 = arith.constant 0 : index
    %226 = vector.load %arg13[%c0_242, %c0_243] : memref<24x8xbf16, #tpu.memory_space<vmem>>, vector<24x8xbf16>
    %227 = arith.truncf %225 : vector<8x256xf32> to vector<8x256xbf16>
    %cst_244 = arith.constant dense<0.000000e+00> : vector<24x256xf32>
    %228 = tpu.matmul %226, %227, %cst_244 {dimension_numbers = #tpu.dot_dimension_numbers<[1], [0], [0], [1], [0, 0, 1, 1], [], []>} : vector<24x8xbf16>, vector<8x256xbf16>, vector<24x256xf32> -> vector<24x256xf32>
    %c0_245 = arith.constant 0 : index
    %c0_246 = arith.constant 0 : index
    %229 = vector.load %arg25[%c0_245, %c0_246] : memref<24x256xf32, #tpu.memory_space<vmem>>, vector<24x256xf32>
    tpu.vector_store %arg25[%c0_245, %c0_246], %228 {strides = array<i32>} : memref<24x256xf32, #tpu.memory_space<vmem>>, vector<24x256xf32>,
    %c0_247 = arith.constant 0 : index
    %c0_248 = arith.constant 0 : index
    %230 = vector.load %arg25[%c0_247, %c0_248] : memref<24x256xf32, #tpu.memory_space<vmem>>, vector<8x256xf32>
    %231 = arith.truncf %230 : vector<8x256xf32> to vector<8x256xbf16>
    %c0_249 = arith.constant 0 : index
    %c0_250 = arith.constant 0 : index
    %232 = vector.load %arg26[%c0_249, %c0_250] : memref<8x2304xbf16, #tpu.memory_space<vmem>>, vector<8x256xbf16>
    tpu.vector_store %arg26[%c0_249, %c0_250], %231 {strides = array<i32>} : memref<8x2304xbf16, #tpu.memory_space<vmem>>, vector<8x256xbf16>,
    %c1_251 = arith.constant 1 : index
    %c0_252 = arith.constant 0 : index
    %233 = vector.load %arg25[%c1_251, %c0_252] : memref<24x256xf32, #tpu.memory_space<vmem>>, vector<8x256xf32>
    %234 = arith.truncf %233 : vector<8x256xf32> to vector<8x256xbf16>
    %c0_253 = arith.constant 0 : index
    %c256_254 = arith.constant 256 : index
    %235 = vector.load %arg26[%c0_253, %c256_254] : memref<8x2304xbf16, #tpu.memory_space<vmem>>, vector<8x256xbf16>
    tpu.vector_store %arg26[%c0_253, %c256_254], %234 {strides = array<i32>} : memref<8x2304xbf16, #tpu.memory_space<vmem>>, vector<8x256xbf16>,
    %c2_255 = arith.constant 2 : index
    %c0_256 = arith.constant 0 : index
    %236 = vector.load %arg25[%c2_255, %c0_256] : memref<24x256xf32, #tpu.memory_space<vmem>>, vector<8x256xf32>
    %237 = arith.truncf %236 : vector<8x256xf32> to vector<8x256xbf16>
    %c0_257 = arith.constant 0 : index
    %c512_258 = arith.constant 512 : index
    %238 = vector.load %arg26[%c0_257, %c512_258] : memref<8x2304xbf16, #tpu.memory_space<vmem>>, vector<8x256xbf16>
    tpu.vector_store %arg26[%c0_257, %c512_258], %237 {strides = array<i32>} : memref<8x2304xbf16, #tpu.memory_space<vmem>>, vector<8x256xbf16>,
    %c4_259 = arith.constant 4 : index
    %c0_260 = arith.constant 0 : index
    %239 = vector.load %arg25[%c4_259, %c0_260] : memref<24x256xf32, #tpu.memory_space<vmem>>, vector<8x256xf32>
    %240 = arith.truncf %239 : vector<8x256xf32> to vector<8x256xbf16>
    %c0_261 = arith.constant 0 : index
    %c768_262 = arith.constant 768 : index
    %241 = vector.load %arg26[%c0_261, %c768_262] : memref<8x2304xbf16, #tpu.memory_space<vmem>>, vector<8x256xbf16>
    tpu.vector_store %arg26[%c0_261, %c768_262], %240 {strides = array<i32>} : memref<8x2304xbf16, #tpu.memory_space<vmem>>, vector<8x256xbf16>,
    %c5_263 = arith.constant 5 : index
    %c0_264 = arith.constant 0 : index
    %242 = vector.load %arg25[%c5_263, %c0_264] : memref<24x256xf32, #tpu.memory_space<vmem>>, vector<8x256xf32>
    %243 = arith.truncf %242 : vector<8x256xf32> to vector<8x256xbf16>
    %c0_265 = arith.constant 0 : index
    %c1024_266 = arith.constant 1024 : index
    %244 = vector.load %arg26[%c0_265, %c1024_266] : memref<8x2304xbf16, #tpu.memory_space<vmem>>, vector<8x256xbf16>
    tpu.vector_store %arg26[%c0_265, %c1024_266], %243 {strides = array<i32>} : memref<8x2304xbf16, #tpu.memory_space<vmem>>, vector<8x256xbf16>,
    %c6_267 = arith.constant 6 : index
    %c0_268 = arith.constant 0 : index
    %245 = vector.load %arg25[%c6_267, %c0_268] : memref<24x256xf32, #tpu.memory_space<vmem>>, vector<8x256xf32>
    %246 = arith.truncf %245 : vector<8x256xf32> to vector<8x256xbf16>
    %c0_269 = arith.constant 0 : index
    %c1280 = arith.constant 1280 : index
    %247 = vector.load %arg26[%c0_269, %c1280] : memref<8x2304xbf16, #tpu.memory_space<vmem>>, vector<8x256xbf16>
    tpu.vector_store %arg26[%c0_269, %c1280], %246 {strides = array<i32>} : memref<8x2304xbf16, #tpu.memory_space<vmem>>, vector<8x256xbf16>,
    %c8_270 = arith.constant 8 : index
    %c0_271 = arith.constant 0 : index
    %248 = vector.load %arg25[%c8_270, %c0_271] : memref<24x256xf32, #tpu.memory_space<vmem>>, vector<8x256xf32>
    %249 = arith.truncf %248 : vector<8x256xf32> to vector<8x256xbf16>
    %c0_272 = arith.constant 0 : index
    %c1536 = arith.constant 1536 : index
    %250 = vector.load %arg26[%c0_272, %c1536] : memref<8x2304xbf16, #tpu.memory_space<vmem>>, vector<8x256xbf16>
    tpu.vector_store %arg26[%c0_272, %c1536], %249 {strides = array<i32>} : memref<8x2304xbf16, #tpu.memory_space<vmem>>, vector<8x256xbf16>,
    %c9_273 = arith.constant 9 : index
    %c0_274 = arith.constant 0 : index
    %251 = vector.load %arg25[%c9_273, %c0_274] : memref<24x256xf32, #tpu.memory_space<vmem>>, vector<8x256xf32>
    %252 = arith.truncf %251 : vector<8x256xf32> to vector<8x256xbf16>
    %c0_275 = arith.constant 0 : index
    %c1792 = arith.constant 1792 : index
    %253 = vector.load %arg26[%c0_275, %c1792] : memref<8x2304xbf16, #tpu.memory_space<vmem>>, vector<8x256xbf16>
    tpu.vector_store %arg26[%c0_275, %c1792], %252 {strides = array<i32>} : memref<8x2304xbf16, #tpu.memory_space<vmem>>, vector<8x256xbf16>,
    %c10_276 = arith.constant 10 : index
    %c0_277 = arith.constant 0 : index
    %254 = vector.load %arg25[%c10_276, %c0_277] : memref<24x256xf32, #tpu.memory_space<vmem>>, vector<8x256xf32>
    %255 = arith.truncf %254 : vector<8x256xf32> to vector<8x256xbf16>
    %c0_278 = arith.constant 0 : index
    %c2048 = arith.constant 2048 : index
    %256 = vector.load %arg26[%c0_278, %c2048] : memref<8x2304xbf16, #tpu.memory_space<vmem>>, vector<8x256xbf16>
    tpu.vector_store %arg26[%c0_278, %c2048], %255 {strides = array<i32>} : memref<8x2304xbf16, #tpu.memory_space<vmem>>, vector<8x256xbf16>,
    %c0_279 = arith.constant 0 : index
    %c0_280 = arith.constant 0 : index
    %257 = vector.load %arg26[%c0_279, %c0_280] : memref<8x2304xbf16, #tpu.memory_space<vmem>>, vector<8x2304xbf16>
    %c0_281 = arith.constant 0 : index
    %c0_282 = arith.constant 0 : index
    %258 = vector.load %arg14[%c0_281, %c0_282] : memref<2304x256xbf16, #tpu.memory_space<vmem>>, vector<2304x256xbf16>
    %cst_283 = arith.constant dense<0.000000e+00> : vector<8x256xf32>
    %259 = tpu.matmul %257, %258, %cst_283 {dimension_numbers = #tpu.dot_dimension_numbers<[1], [0], [0], [1], [0, 0, 1, 1], [], []>} : vector<8x2304xbf16>, vector<2304x256xbf16>, vector<8x256xf32> -> vector<8x256xf32>
    %c0_284 = arith.constant 0 : index
    %c0_285 = arith.constant 0 : index
    %260 = vector.load %arg15[%c0_284, %c0_285] : memref<1x256xf32, #tpu.memory_space<vmem>>, vector<1x256xf32>
    %261 = vector.broadcast %260 : vector<1x256xf32> to vector<8x256xf32>
    %262 = arith.addf %259, %261 : vector<8x256xf32>
    %cst_286 = arith.constant 0.000000e+00 : f32
    %263 = vector.broadcast %cst_286 : f32 to vector<8x256xf32>
    %264 = arith.maximumf %262, %263 : vector<8x256xf32>
    %265 = vector.extract_strided_slice %264 {offsets = [0, 0], sizes = [2, 256], strides = [1, 1]} : vector<8x256xf32> to vector<2x256xf32>
    %266 = vector.extract_strided_slice %264 {offsets = [4, 0], sizes = [2, 256], strides = [1, 1]} : vector<8x256xf32> to vector<2x256xf32>
    %267 = tpu.concatenate %265, %266 in 0 : vector<2x256xf32>, vector<2x256xf32> -> vector<4x256xf32>
    %c0_287 = arith.constant 0 : index
    %c0_288 = arith.constant 0 : index
    %c0_289 = arith.constant 0 : index
    %268 = vector.load %arg16[%c0_287, %c0_288, %c0_289] : memref<1x4x256xf32, #tpu.memory_space<vmem>>, vector<1x4x256xf32>
    %269 = vector.shape_cast %268 : vector<1x4x256xf32> to vector<4x256xf32>
    %270 = vector.shape_cast %267 : vector<4x256xf32> to vector<1x4x256xf32>
    tpu.vector_store %arg16[%c0_287, %c0_288, %c0_289], %270 {strides = array<i32>} : memref<1x4x256xf32, #tpu.memory_space<vmem>>, vector<1x4x256xf32>,
    return
  }
  func.func @transform_0(%arg0: i32) -> (i32, i32, i32, i32) {
    %c0_i32 = arith.constant 0 : i32
    %c0_i32_0 = arith.constant 0 : i32
    %c0_i32_1 = arith.constant 0 : i32
    %c0_i32_2 = arith.constant 0 : i32
    return %arg0, %c0_i32, %c0_i32_0, %c0_i32_1 : i32, i32, i32, i32
  }
  func.func @transform_1(%arg0: i32) -> (i32, i32) {
    %c0_i32 = arith.constant 0 : i32
    %c0_i32_0 = arith.constant 0 : i32
    %c0_i32_1 = arith.constant 0 : i32
    return %c0_i32, %c0_i32_0 : i32, i32
  }
  func.func @transform_2(%arg0: i32) -> (i32, i32) {
    %c0_i32 = arith.constant 0 : i32
    %c0_i32_0 = arith.constant 0 : i32
    %c0_i32_1 = arith.constant 0 : i32
    return %c0_i32, %c0_i32_0 : i32, i32
  }
  func.func @transform_3(%arg0: i32) -> (i32, i32) {
    %c0_i32 = arith.constant 0 : i32
    %c0_i32_0 = arith.constant 0 : i32
    %c0_i32_1 = arith.constant 0 : i32
    return %c0_i32, %c0_i32_0 : i32, i32
  }
  func.func @transform_4(%arg0: i32) -> (i32, i32) {
    %c0_i32 = arith.constant 0 : i32
    %c0_i32_0 = arith.constant 0 : i32
    %c0_i32_1 = arith.constant 0 : i32
    return %c0_i32, %c0_i32_0 : i32, i32
  }
  func.func @transform_5(%arg0: i32) -> (i32, i32) {
    %c0_i32 = arith.constant 0 : i32
    %c0_i32_0 = arith.constant 0 : i32
    %c0_i32_1 = arith.constant 0 : i32
    return %c0_i32, %c0_i32_0 : i32, i32
  }
  func.func @transform_6(%arg0: i32) -> (i32, i32) {
    %c0_i32 = arith.constant 0 : i32
    %c0_i32_0 = arith.constant 0 : i32
    %c0_i32_1 = arith.constant 0 : i32
    return %c0_i32, %c0_i32_0 : i32, i32
  }
  func.func @transform_7(%arg0: i32) -> (i32, i32) {
    %c0_i32 = arith.constant 0 : i32
    %c0_i32_0 = arith.constant 0 : i32
    %c0_i32_1 = arith.constant 0 : i32
    return %c0_i32, %c0_i32_0 : i32, i32
  }
  func.func @transform_8(%arg0: i32) -> (i32, i32) {
    %c0_i32 = arith.constant 0 : i32
    %c0_i32_0 = arith.constant 0 : i32
    %c0_i32_1 = arith.constant 0 : i32
    return %c0_i32, %c0_i32_0 : i32, i32
  }
  func.func @transform_9(%arg0: i32) -> (i32, i32) {
    %c0_i32 = arith.constant 0 : i32
    %c0_i32_0 = arith.constant 0 : i32
    %c0_i32_1 = arith.constant 0 : i32
    return %c0_i32, %c0_i32_0 : i32, i32
  }
  func.func @transform_10(%arg0: i32) -> (i32, i32) {
    %c0_i32 = arith.constant 0 : i32
    %c0_i32_0 = arith.constant 0 : i32
    %c0_i32_1 = arith.constant 0 : i32
    return %c0_i32, %c0_i32_0 : i32, i32
  }
  func.func @transform_11(%arg0: i32) -> (i32, i32) {
    %c0_i32 = arith.constant 0 : i32
    %c0_i32_0 = arith.constant 0 : i32
    %c0_i32_1 = arith.constant 0 : i32
    return %c0_i32, %c0_i32_0 : i32, i32
  }
  func.func @transform_12(%arg0: i32) -> (i32, i32) {
    %c0_i32 = arith.constant 0 : i32
    %c0_i32_0 = arith.constant 0 : i32
    %c0_i32_1 = arith.constant 0 : i32
    return %c0_i32, %c0_i32_0 : i32, i32
  }
  func.func @transform_13(%arg0: i32) -> (i32, i32) {
    %c0_i32 = arith.constant 0 : i32
    %c0_i32_0 = arith.constant 0 : i32
    %c0_i32_1 = arith.constant 0 : i32
    return %c0_i32, %c0_i32_0 : i32, i32
  }
  func.func @transform_14(%arg0: i32) -> (i32, i32) {
    %c0_i32 = arith.constant 0 : i32
    %c0_i32_0 = arith.constant 0 : i32
    %c0_i32_1 = arith.constant 0 : i32
    return %c0_i32, %c0_i32_0 : i32, i32
  }
  func.func @transform_15(%arg0: i32) -> (i32, i32, i32) {
    %c0_i32 = arith.constant 0 : i32
    %c0_i32_0 = arith.constant 0 : i32
    %c0_i32_1 = arith.constant 0 : i32
    return %arg0, %c0_i32, %c0_i32_0 : i32, i32, i32
  }
}

</mosaic_0001>

<bundles_post_ra>
// kernel: compact_vgg16_forward.1
= control target key start
LH: loop header
LB: loop body
LE: loop exit
PB: predicated region body
PF: predicated region fallthrough
CT: control target
= control target key end

     0   :  { %s16627_s0 = inlined_call_operand.vmem [shape: f32[2,16,16,3], index: 0, kind: input, shape index: {}]   ;;  %s16628_s1 = inlined_call_operand.hbm [shape: bf16[27,128], index: 1, kind: input, shape index: {}]   ;;  %s16629_s2 = inlined_call_operand.hbm [shape: f32[1,128], index: 2, kind: input, shape index: {}]   ;;  %s16630_s3 = inlined_call_operand.hbm [shape: bf16[104,288], index: 3, kind: input, shape index: {}]   ;;  %s16631_s4 = inlined_call_operand.hbm [shape: bf16[1152,128], index: 4, kind: input, shape index: {}]   ;;  %s16632_s5 = inlined_call_operand.hbm [shape: f32[1,128], index: 5, kind: input, shape index: {}]   ;;  %s16633_s6 = inlined_call_operand.hbm [shape: bf16[40,80], index: 6, kind: input, shape index: {}]   ;;  %s16634_s7 = inlined_call_operand.hbm [shape: bf16[1152,128], index: 7, kind: input, shape index: {}]   ;;  %s16635_s8 = inlined_call_operand.hbm [shape: f32[1,128], index: 8, kind: input, shape index: {}]   ;;  %s16636_s9 = inlined_call_operand.hbm [shape: bf16[24,24], index: 9, kind: input, shape index: {}]   ;;  %s16637_s10 = inlined_call_operand.hbm [shape: bf16[1152,256], index: 10, kind: input, shape index: {}]   ;;  %s16638_s11 = inlined_call_operand.hbm [shape: f32[1,256], index: 11, kind: input, shape index: {}]   ;;  %s16639_s12 = inlined_call_operand.hbm [shape: bf16[24,8], index: 12, kind: input, shape index: {}]   ;;  %s16640_s13 = inlined_call_operand.hbm [shape: bf16[2304,256], index: 13, kind: input, shape index: {}]   ;;  %s16641_s14 = inlined_call_operand.hbm [shape: f32[1,256], index: 14, kind: input, shape index: {}]   ;;  %s16642_s15 = inlined_call_operand.vmem [shape: f32[2,4,256], index: 15, kind: output, shape index: {}]  }
   0x1   :  { %16647 = sst [smem:[#allocation42_spill]] %s16628_s1 }
   0x2   :  { %16648 = sst [smem:[#allocation43_spill]] %s16629_s2 }
   0x3   :  { %16649 = sst [smem:[#allocation44_spill]] %s16630_s3 }
   0x4   :  { %16650 = sst [smem:[#allocation45_spill]] %s16631_s4 }
   0x5   :  { %16651 = sst [smem:[#allocation46_spill]] %s16633_s6 }
   0x6   :  { %20 = vsyncpa [#allocation13], 0 }
   0x7   :  { %21 = vsyncpa [#allocation15], 0 }
   0x8   :  { %22 = vsyncpa [#allocation18], 0 }
   0x9   :  { %23 = vsyncpa [#allocation21], 0 }
   0xa   :  { %24 = vsyncpa [#allocation24], 0 }
   0xb   :  { %25 = vsyncpa [#allocation27], 0 }
   0xc   :  { %26 = vsyncpa [#allocation30], 0 }
   0xd   :  { %27 = vsyncpa [#allocation33], 0  ;;  %s14691_s18 = smov 0  }
   0xe LB: > { %s16652_s2 = sld [smem:[#allocation43_spill]]  ;;  %s14700_s22 = sadd.s32 4294967295, %s14579_s18   ;;  %s14579_s18 = sphi %s14691_s18, %s33_s18  }
   0xf   : > { %p10461_p0 = scmp.ge.s32.totalorder %s14579_s18, 1  ;;  %p384_p1 = scmp.lt.s32.totalorder %s14579_s18, 3 }
  0x10   : > { %p14050_p2 = scmp.eq.s32.totalorder %s14700_s22, 0  ;;  %s14581_s24 = smov [#allocation14]  }
  0x11   : > { %p14705_p3 = pnand %p10461_p0, %p384_p1  ;;  %s412_s25 = sshll.u32 %s14581_s24, 4  ;;  %s413_s25 = int_to_ptr.vmem [resolvable:$true] %s412_s25 }
  0x12   : > { %s16654_s4 = sld [smem:[#allocation45_spill]]  ;;  %s14582_s30 = smov [#allocation17]  }
  0x13   : > { %p14007_p4 = pneg %p14705_p3  ;;  %s437_s16 = sshll.u32 %s14582_s30, 4  ;;  %s438_s16 = int_to_ptr.vmem [resolvable:$true] %s437_s16 }
  0x14   : > { %s410_s21 = sshll.u32 %s16652_s2, 4  ;;  %s16656_s6 = sld [smem:[#allocation46_spill]]  ;;  %s411_s21 = int_to_ptr.hbm [resolvable:$true] %s410_s21 }
  0x15   : > { %p14716_p5 = pnand %p14050_p2, %p14007_p4  ;;  %s16645_s24 = smov 64  }
  0x16   : > { %s14584_s26 = smov 4   ;;  %s14585_s27 = smov [#allocation20]  }
  0x17   : > { %14013 = dma.hbm_to_vmem [thread:$0]  (!%p14716_p5), %s411_s21, 16, %s413_s25, [#allocation15]  }
  0x18   : > { %s435_s28 = sshll.u32 %s16654_s4, 4  ;;  %s463_s2 = sshll.u32 %s14585_s27, 4  ;;  %s436_s28 = int_to_ptr.hbm [resolvable:$true] %s435_s28  ;;  %s464_s2 = int_to_ptr.vmem [resolvable:$true] %s463_s2 }
  0x19   : > { %14019 = dma.hbm_to_vmem [thread:$0]  (!%p14716_p5), %s436_s28, 9216, %s438_s16, [#allocation18], %s16645_s24, %s16645_s24, %s14584_s26  }
  0x1a   : > { %s461_s20 = sshll.u32 %s16656_s6, 4  ;;  %s490_s17 = sshll.u32 %s16635_s8, 4  ;;  %s462_s20 = int_to_ptr.hbm [resolvable:$true] %s461_s20  ;;  %s491_s17 = int_to_ptr.hbm [resolvable:$true] %s490_s17 }
  0x1b   : > { %14025 = dma.hbm_to_vmem [thread:$0]  (!%p14716_p5), %s462_s20, 320, %s464_s2, [#allocation21], %s16645_s24, %s16645_s24, %s14584_s26  }
  0x1c   : > { %s515_s19 = sshll.u32 %s16637_s10, 4  ;;  %s14586_s28 = smov [#allocation23]   ;;  %s516_s19 = int_to_ptr.hbm [resolvable:$true] %s515_s19 }
  0x1d   : > { %s492_s16 = sshll.u32 %s14586_s28, 4  ;;  %s14587_s4 = smov [#allocation26]   ;;  %s493_s16 = int_to_ptr.vmem [resolvable:$true] %s492_s16 }
  0x1e   : > { %14031 = dma.hbm_to_vmem [thread:$0]  (!%p14716_p5), %s491_s17, 16, %s493_s16, [#allocation24]  }
  0x1f   : > { %s517_s27 = sshll.u32 %s14587_s4, 4  ;;  %s16643_s30 = smov 128   ;;  %s518_s27 = int_to_ptr.vmem [resolvable:$true] %s517_s27 }
  0x20   : > { %s16644_s6 = smov 8   ;;  %s541_s21 = sshll.u32 %s16639_s12, 4  ;;  %s542_s21 = int_to_ptr.hbm [resolvable:$true] %s541_s21 }
  0x21   : > { %14037 = dma.hbm_to_vmem [thread:$0]  (!%p14716_p5), %s516_s19, 18432, %s518_s27, [#allocation27], %s16643_s30, %s16643_s30, %s16644_s6  }
  0x22   : > { %s14590_s25 = smov [#allocation29]   ;;  %s16657_s1 = sld [smem:[#allocation42_spill]] }
  0x23   : > { %s543_s28 = sshll.u32 %s14590_s25, 4  ;;  %s14591_s19 = smov [#allocation12]   ;;  %s544_s28 = int_to_ptr.vmem [resolvable:$true] %s543_s28 }
  0x24   : > { %14043 = dma.hbm_to_vmem [thread:$0]  (!%p14716_p5), %s542_s21, 192, %s544_s28, [#allocation30], %s16645_s24, %s16645_s24, %s14584_s26  }
  0x25   : > { %s397_s27 = sshll.u32 %s14591_s19, 4  ;;  %s16658_s3 = sld [smem:[#allocation44_spill]]  ;;  %s398_s27 = int_to_ptr.vmem [resolvable:$true] %s397_s27 }
  0x26   : > { %s14592_s25 = smov [#allocation16]   ;;  %s450_s28 = sshll.u32 %s16632_s5, 4  ;;  %s451_s28 = int_to_ptr.hbm [resolvable:$true] %s450_s28 }
  0x27   : > { %s423_s17 = sshll.u32 %s14592_s25, 4  ;;  %s14593_s19 = smov 192   ;;  %s424_s17 = int_to_ptr.vmem [resolvable:$true] %s423_s17 }
  0x28   : > { %s395_s4 = sshll.u32 %s16657_s1, 4  ;;  %s14594_s6 = smov 12   ;;  %s396_s4 = int_to_ptr.hbm [resolvable:$true] %s395_s4 }
  0x29   : > { %14010 = dma.hbm_to_vmem [thread:$0]  (!%p14716_p5), %s396_s4, 256, %s398_s27, [#allocation13], %s16645_s24, %s16645_s24, %s14584_s26  }
  0x2a   : > { %s14595_s30 = smov [#allocation19]   ;;  %s475_s4 = sshll.u32 %s16634_s7, 4  ;;  %s476_s4 = int_to_ptr.hbm [resolvable:$true] %s475_s4 }
  0x2b   : > { %s421_s20 = sshll.u32 %s16658_s3, 4  ;;  %s452_s2 = sshll.u32 %s14595_s30, 4  ;;  %s422_s20 = int_to_ptr.hbm [resolvable:$true] %s421_s20  ;;  %s453_s2 = int_to_ptr.vmem [resolvable:$true] %s452_s2 }
  0x2c   : > { %14016 = dma.hbm_to_vmem [thread:$0]  (!%p14716_p5), %s422_s20, 2496, %s424_s17, [#allocation15], %s14593_s19, %s14593_s19, %s14594_s6  }
  0x2d   : > { %14022 = dma.hbm_to_vmem [thread:$0]  (!%p14716_p5), %s451_s28, 16, %s453_s2, [#allocation18]  }
  0x2e   : > { %s501_s16 = sshll.u32 %s16636_s9, 4  ;;  %s14596_s21 = smov [#allocation22]   ;;  %s502_s16 = int_to_ptr.hbm [resolvable:$true] %s501_s16 }
  0x2f   : > { %s477_s24 = sshll.u32 %s14596_s21, 4  ;;  %s16659_s6 = smov 64   ;;  %s478_s24 = int_to_ptr.vmem [resolvable:$true] %s477_s24 }
  0x30   : > { %14028 = dma.hbm_to_vmem [thread:$0]  (!%p14716_p5), %s476_s4, 9216, %s478_s24, [#allocation21], %s16659_s6, %s16659_s6, %s14584_s26  }
  0x31   : > { %s14597_s1 = smov [#allocation25]   ;;  %s530_s28 = sshll.u32 %s16638_s11, 4  ;;  %s531_s28 = int_to_ptr.hbm [resolvable:$true] %s530_s28 }
  0x32   : > { %s503_s3 = sshll.u32 %s14597_s1, 4  ;;  %s555_s2 = sshll.u32 %s16640_s13, 4  ;;  %s504_s3 = int_to_ptr.vmem [resolvable:$true] %s503_s3  ;;  %s556_s2 = int_to_ptr.hbm [resolvable:$true] %s555_s2 }
  0x33   : > { %14034 = dma.hbm_to_vmem [thread:$0]  (!%p14716_p5), %s502_s16, 192, %s504_s3, [#allocation24], %s16659_s6, %s16659_s6, %s14584_s26  }
  0x34   : > { %s14598_s24 = smov [#allocation28]   ;;  %s14599_s27 = smov [#allocation31]  }
  0x35   : > { %s532_s4 = sshll.u32 %s14598_s24, 4  ;;  %s557_s25 = sshll.u32 %s14599_s27, 4  ;;  %s533_s4 = int_to_ptr.vmem [resolvable:$true] %s532_s4  ;;  %s558_s25 = int_to_ptr.vmem [resolvable:$true] %s557_s25 }
  0x36   : > { %14040 = dma.hbm_to_vmem [thread:$0]  (!%p14716_p5), %s531_s28, 32, %s533_s4, [#allocation27]  }
  0x37   : > { %s570_s20 = sshll.u32 %s16641_s14, 4  ;;  %s16660_s26 = smov 8   ;;  %s571_s20 = int_to_ptr.hbm [resolvable:$true] %s570_s20 }
  0x38   : > { %s16661_s16 = smov 128   ;;  %s14600_s6 = smov [#allocation32]  }
  0x39   : > { %14046 = dma.hbm_to_vmem [thread:$0]  (!%p14716_p5), %s556_s2, 36864, %s558_s25, [#allocation30], %s16661_s16, %s16661_s16, %s16660_s26  }
  0x3a   : > { %s572_s3 = sshll.u32 %s14600_s6, 4  ;;  %593 = sbr.rel (%p14705_p3) target bundleno = 3088 (0xc10), region = 80  ;;  %s573_s3 = int_to_ptr.vmem [resolvable:$true] %s572_s3 }
  0x3b   : > { %14049 = dma.hbm_to_vmem [thread:$0]  (!%p14716_p5), %s571_s20, 32, %s573_s3, [#allocation33]  }
  0x3f   : > { %14546 = dma.done.wait (%p14050_p2), [#allocation13], 256  }
  0x40   : > { %14548 = vsyncadd (%p14050_p2), [#allocation13], 4294967040 }
  0x41   : > { %14550 = dma.done.wait (%p14050_p2), [#allocation15], 2512  }
  0x42   : > { %14552 = vsyncadd (%p14050_p2), [#allocation15], 4294964784 }
  0x43   : > { %14554 = dma.done.wait (%p14050_p2), [#allocation18], 9232  }
  0x44   : > { %14556 = vsyncadd (%p14050_p2), [#allocation18], 4294958064 }
  0x45   : > { %14558 = dma.done.wait (%p14050_p2), [#allocation21], 9536  }
  0x46   : > { %14560 = vsyncadd (%p14050_p2), [#allocation21], 4294957760 }
  0x47   : > { %14562 = dma.done.wait (%p14050_p2), [#allocation24], 208  }
  0x48   : > { %14564 = vsyncadd (%p14050_p2), [#allocation24], 4294967088 }
  0x49   : > { %14566 = dma.done.wait (%p14050_p2), [#allocation27], 18464  }
  0x4a   : > { %14568 = vsyncadd (%p14050_p2), [#allocation27], 4294948832 }
  0x4b   : > { %14570 = dma.done.wait (%p14050_p2), [#allocation30], 37056  }
  0x4c   : > { %14572 = vsyncadd (%p14050_p2), [#allocation30], 4294930240 }
  0x4d   : > { %14574 = dma.done.wait (%p14050_p2), [#allocation33], 32  }
  0x4e   : > { %14576 = vsyncadd (%p14050_p2), [#allocation33], 4294967264  ;;  %vm718_vm0 = vcmask 23552   ;;  %v14601_v0 = vmov 0.0   ;;  %s14602_s23 = smov 6   ;;  %s14603_s29 = smov 3  }
  0x4f   : > { %719 = vst.msk [vmem:[#allocation2] sm:$0xff] %vm718_vm0, %v14601_v0  ;;  %p707_p6 = scmp.lt.s32.totalorder %s14700_s22, 1  ;;  %s14604_s2 = smov 12   ;;  %vm911_vm1 = vcmask 19456   ;;  %vm1164_vm2 = vcmask 44056   ;;  %vm1417_vm3 = vcmask 68656  }
  0x50   : > { %720 = vst.msk [vmem:[#allocation2 + $0x8] sm:$0xff] %vm718_vm0, %v14601_v0  ;;  %s14605_s24 = smov 9   ;;  %s14606_s4 = smov 18   ;;  %vm1670_vm4 = vcmask 93256   ;;  %vm3172_vm5 = vcmask 1044480   ;;  %vm3173_vm6 = vcmask 1045504  }
  0x51   : > { %721 = vst.msk [vmem:[#allocation2 + $0x10] sm:$0xff] %vm718_vm0, %v14601_v0  ;;  %s16673_s22 = smov (!%p707_p6, %s14700_s22), 1  ;;  %s14607_s27 = smov 15   ;;  %vm1923_vm7 = vcmask 117856   ;;  %vm2176_vm8 = vcmask 142456   ;;  %vm2429_vm9 = vcmask 167056  }
  0x52   : > { %722 = vst.msk [vmem:[#allocation2 + $0x18] sm:$0xff] %vm718_vm0, %v14601_v0  ;;  %s13254_s17 = sshll.u32 %s16673_s22, 8  ;;  %s14608_s25 = smov 21   ;;  %vm2682_vm10 = vcmask 191656   ;;  %vm2935_vm11 = vcmask 216256   ;;  %vm3117_vm12 = vcmask 220160  }
  0x53   : > { %723 = vst.msk [vmem:[#allocation2 + $0x20] sm:$0xff] %vm718_vm0, %v14601_v0  ;;  %s14890_s30 = scalar_lea.vmem %s16627_s0, %s13254_s17  ;;  %s14609_s21 = smov 24   ;;  %vm3350_vm13 = vcmask 1046528   ;;  %vm3821_vm14 = vcmask 261120   ;;  %vm5556_vm15 = vcmask 654336  }
  0x54   : > { %724 = vst.msk [vmem:[#allocation2 + $0x28] sm:$0xff] %vm718_vm0, %v14601_v0  ;;  %v761_v9 = vld [vmem:[%s14890_s30 + $0x8] sm:$0xff]  ;;  %v760_v10 = vld [vmem:[%s14890_s30] sm:$0xff]  ;;  %v10496_v11 = vld [vmem:[%s14890_s30 + $0x10] sm:$0xff]  ;;  %s13255_s1 = sshll.u32 %s16673_s22, 3 }
  0x55   : > { %725 = vst.msk [vmem:[#allocation2 + $0x30] sm:$0xff] %vm718_vm0, %v14601_v0  ;;  %v10497_v12 = vld [vmem:[%s14890_s30 + $0x18] sm:$0xff]  ;;  %v10498_v31 = vld [vmem:[%s14890_s30 + $0x20] sm:$0xff]  ;;  %v10499_v32 = vld [vmem:[%s14890_s30 + $0x28] sm:$0xff]  ;;  %s716_s16 = scalar_lea.vmem %s16642_s15, %s13255_s1 }
  0x56   : > { %726 = vst.msk [vmem:[#allocation2 + $0x38] sm:$0xff] %vm718_vm0, %v14601_v0  ;;  %v10500_v55 = vld [vmem:[%s14890_s30 + $0x30] sm:$0xff]  ;;  %v10501_v56 = vld [vmem:[%s14890_s30 + $0x38] sm:$0xff]  ;;  %v839_v63 = vld [vmem:[#allocation2] sm:$0xff] }
  0x57   : > { %v1201_v1 = vld [vmem:[#allocation2 + $0x2] sm:$0xff]  ;;  %727 = vst.msk [vmem:[#allocation2 + $0x40] sm:$0xff] %vm718_vm0, %v14601_v0 }
  0x58   : > { %v948_v2 = vld [vmem:[#allocation2 + $0x1] sm:$0xff]  ;;  %v1237_v3 = vpack.c.bf16 %v1201_v1, %v1201_v1  ;;  %728 = vst.msk [vmem:[#allocation2 + $0x48] sm:$0xff] %vm718_vm0, %v14601_v0  ;;  %v1202_v5 = vld [vmem:[#allocation2 + $0xa] sm:$0xff] }
  0x59   : > { %v984_v4 = vpack.c.bf16 %v948_v2, %v948_v2  ;;  %729 = vst.msk [vmem:[#allocation2 + $0x50] sm:$0xff] %vm718_vm0, %v14601_v0  ;;  %v949_v6 = vld [vmem:[#allocation2 + $0x9] sm:$0xff]  ;;  %v1238_v7 = vpack.c.bf16 %v1202_v5, %v1202_v5 }
  0x5a   : > { %1309 = vrot.lane.b32.xlu1 %v1237_v3, %s14602_s23  ;;  %730 = vst.msk [vmem:[#allocation2 + $0x58] sm:$0xff] %vm718_vm0, %v14601_v0  ;;  %v985_v8 = vpack.c.bf16 %v949_v6, %v949_v6  ;;  %v840_v5 = vld [vmem:[#allocation2 + $0x8] sm:$0xff] }
  0x5b   : > { %1056 = vrot.lane.b32.xlu0 %v984_v4, %s14603_s29  ;;  %731 = vst.msk [vmem:[#allocation2 + $0x60] sm:$0xff] %vm718_vm0, %v14601_v0 }
  0x5c   : > { %732 = vst.msk [vmem:[#allocation2 + $0x68] sm:$0xff] %vm718_vm0, %v14601_v0 }
  0x5d   : > { %733 = vst.msk [vmem:[#allocation2 + $0x70] sm:$0xff] %vm718_vm0, %v14601_v0 }
  0x5e   : > { %734 = vst.msk [vmem:[#allocation2 + $0x78] sm:$0xff] %vm718_vm0, %v14601_v0 }
  0x5f   : > { %735 = vst.msk [vmem:[#allocation2 + $0x80] sm:$0xff] %vm718_vm0, %v14601_v0 }
  0x60   : > { %736 = vst.msk [vmem:[#allocation2 + $0x88] sm:$0xff] %vm718_vm0, %v14601_v0 }
  0x61   : > { %737 = vst.msk [vmem:[#allocation2 + $0x90] sm:$0xff] %vm718_vm0, %v14601_v0 }
  0x62   : > { %738 = vst.msk [vmem:[#allocation2 + $0x98] sm:$0xff] %vm718_vm0, %v14601_v0  ;;  %1311 = vrot.lane.b32.xlu1 %v1238_v7, %s14602_s23  ;;  %v876_v7 = vpack.c.bf16 %v840_v5, %v840_v5 }
  0x63   : > { %1058 = vrot.lane.b32.xlu0 %v985_v8, %s14603_s29  ;;  %739 = vst.msk [vmem:[#allocation2 + $0xa0] sm:$0xff] %vm718_vm0, %v14601_v0 }
  0x64   : > { %740 = vst.msk [vmem:[#allocation2 + $0xa8] sm:$0xff] %vm718_vm0, %v14601_v0 }
  0x65   : > { %741 = vst.msk [vmem:[#allocation2 + $0xb0] sm:$0xff] %vm718_vm0, %v14601_v0 }
  0x66   : > { %742 = vst.msk [vmem:[#allocation2 + $0xb8] sm:$0xff] %vm718_vm0, %v14601_v0 }
  0x67   : > { %743 = vst.msk [vmem:[#allocation2 + $0xc0] sm:$0xff] %vm718_vm0, %v14601_v0 }
  0x68   : > { %744 = vst.msk [vmem:[#allocation2 + $0xc8] sm:$0xff] %vm718_vm0, %v14601_v0 }
  0x69   : > { %745 = vst.msk [vmem:[#allocation2 + $0xd0] sm:$0xff] %vm718_vm0, %v14601_v0 }
  0x6a   : > { %746 = vst.msk [vmem:[#allocation2 + $0xd8] sm:$0xff] %vm718_vm0, %v14601_v0 }
  0x6b   : > { %747 = vst.msk [vmem:[#allocation2 + $0xe0] sm:$0xff] %vm718_vm0, %v14601_v0 }
  0x6c   : > { %748 = vst.msk [vmem:[#allocation2 + $0xe8] sm:$0xff] %vm718_vm0, %v14601_v0 }
  0x6d   : > { %749 = vst.msk [vmem:[#allocation2 + $0xf0] sm:$0xff] %vm718_vm0, %v14601_v0 }
  0x6e   : > { %750 = vst.msk [vmem:[#allocation2 + $0xf8] sm:$0xff] %vm718_vm0, %v14601_v0 }
  0x6f   : > { %751 = vst.msk [vmem:[#allocation2 + $0x100] sm:$0xff] %vm718_vm0, %v14601_v0 }
  0x70   : > { %752 = vst.msk [vmem:[#allocation2 + $0x108] sm:$0xff] %vm718_vm0, %v14601_v0 }
  0x71   : > { %753 = vst.msk [vmem:[#allocation2 + $0x110] sm:$0xff] %vm718_vm0, %v14601_v0 }
  0x72   : > { %754 = vst.msk [vmem:[#allocation2 + $0x118] sm:$0xff] %vm718_vm0, %v14601_v0 }
  0x73   : > { %755 = vst.msk [vmem:[#allocation2 + $0x120] sm:$0xff] %vm718_vm0, %v14601_v0 }
  0x74   : > { %756 = vst.msk [vmem:[#allocation2 + $0x128] sm:$0xff] %vm718_vm0, %v14601_v0 }
  0x75   : > { %757 = vst.msk [vmem:[#allocation2 + $0x130] sm:$0xff] %vm718_vm0, %v14601_v0 }
  0x76   : > { %758 = vst.msk [vmem:[#allocation2 + $0x138] sm:$0xff] %vm718_vm0, %v14601_v0 }
  0x77   : > { %759 = vst.msk [vmem:[#allocation2 + $0x140] sm:$0xff] %vm718_vm0, %v14601_v0  ;;  %v875_v0 = vpack.c.bf16 %v839_v63, %v839_v63 }
  0x78   : > { %763 = vst.msk [vmem:[#allocation2 + $0x1b] sm:$0xff] %vm718_vm0, %v761_v9 }
  0x79   : > { %762 = vst.msk [vmem:[#allocation2 + $0x13] sm:$0xff] %vm718_vm0, %v760_v10 }
  0x7a   : > { %767 = vst.msk [vmem:[#allocation2 + $0x25] sm:$0xff] %vm718_vm0, %v10496_v11 }
  0x7b   : > { %768 = vst.msk [vmem:[#allocation2 + $0x2d] sm:$0xff] %vm718_vm0, %v10497_v12 }
  0x7c   : > { %772 = vst.msk [vmem:[#allocation2 + $0x37] sm:$0xff] %vm718_vm0, %v10498_v31 }
  0x7d   : > { %773 = vst.msk [vmem:[#allocation2 + $0x3f] sm:$0xff] %vm718_vm0, %v10499_v32  ;;  %v10503_v32 = vld [vmem:[%s14890_s30 + $0x48] sm:$0xff] }
  0x7e   : > { %777 = vst.msk [vmem:[#allocation2 + $0x49] sm:$0xff] %vm718_vm0, %v10500_v55 }
  0x7f   : > { %v1708_v13 = vld [vmem:[#allocation2 + $0x1b] sm:$0xff]  ;;  %778 = vst.msk [vmem:[#allocation2 + $0x51] sm:$0xff] %vm718_vm0, %v10501_v56 }
  0x80   : > { %v1744_v14 = vpack.c.bf16 %v1708_v13, %v1708_v13  ;;  %v1707_v15 = vld [vmem:[#allocation2 + $0x13] sm:$0xff]  ;;  %v1961_v20 = vld [vmem:[#allocation2 + $0x1c] sm:$0xff]  ;;  %912 = vst.msk [vmem:[#allocation3] sm:$0xf] %vm911_vm1, %v875_v0 }
  0x81   : > { %v1454_v16 = vld [vmem:[#allocation2 + $0x12] sm:$0xff]  ;;  %v1743_v17 = vpack.c.bf16 %v1707_v15, %v1707_v15  ;;  %v2213_v19 = vld [vmem:[#allocation2 + $0x24] sm:$0xff]  ;;  %v1455_v21 = vld [vmem:[#allocation2 + $0x1a] sm:$0xff]  ;;  %v1997_v23 = vpack.c.bf16 %v1961_v20, %v1961_v20  ;;  %913 = vst.msk [vmem:[#allocation3 + $0x4] sm:$0xf] %vm911_vm1, %v876_v7 }
  0x82   : > { %v1490_v18 = vpack.c.bf16 %v1454_v16, %v1454_v16  ;;  %1817 = vrot.lane.b32.xlu1 %v1744_v14, %s14604_s2  ;;  %v2249_v22 = vpack.c.bf16 %v2213_v19, %v2213_v19  ;;  %v1491_v24 = vpack.c.bf16 %v1455_v21, %v1455_v21  ;;  %v2467_v25 = vld [vmem:[#allocation2 + $0x2d] sm:$0xff]  ;;  %v2466_v26 = vld [vmem:[#allocation2 + $0x25] sm:$0xff]  ;;  %v951_v43 = vld [vmem:[#allocation2 + $0x19] sm:$0xff]  ;;  %783 = vst.msk [vmem:[#allocation2 + $0x63] sm:$0xff] %vm718_vm0, %v10503_v32 }
  0x83   : > { %1815 = vrot.lane.b32.xlu0 %v1743_v17, %s14604_s2  ;;  %v1960_v27 = vld [vmem:[#allocation2 + $0x14] sm:$0xff]  ;;  %v2503_v28 = vpack.c.bf16 %v2467_v25, %v2467_v25  ;;  %v2502_v29 = vpack.c.bf16 %v2466_v26, %v2466_v26  ;;  %v2214_v35 = vld [vmem:[#allocation2 + $0x2c] sm:$0xff]  ;;  %v1709_v41 = vld [vmem:[#allocation2 + $0x23] sm:$0xff]  ;;  %v987_v46 = vpack.c.bf16 %v951_v43, %v951_v43 }
  0x84   : > { %1562 = vrot.lane.b32.xlu2 %v1490_v18, %s14605_s24  ;;  %v1996_v30 = vpack.c.bf16 %v1960_v27, %v1960_v27  ;;  %v950_v33 = vld [vmem:[#allocation2 + $0x11] sm:$0xff]  ;;  %v2250_v38 = vpack.c.bf16 %v2214_v35, %v2214_v35  ;;  %v2719_v39 = vld [vmem:[#allocation2 + $0x26] sm:$0xff]  ;;  %v1745_v44 = vpack.c.bf16 %v1709_v41, %v1709_v41  ;;  %v2216_v50 = vld [vmem:[#allocation2 + $0x3c] sm:$0xff] }
  0x85   : > { %v2720_v34 = vld [vmem:[#allocation2 + $0x2e] sm:$0xff]  ;;  %v986_v36 = vpack.c.bf16 %v950_v33, %v950_v33  ;;  %v2755_v40 = vpack.c.bf16 %v2719_v39, %v2719_v39  ;;  %v1456_v47 = vld [vmem:[#allocation2 + $0x22] sm:$0xff]  ;;  %v14933_v53 = vpack.c.bf16 %v2216_v50, %v2216_v50  ;;  %v2721_v58 = vld [vmem:[#allocation2 + $0x36] sm:$0xff] }
  0x86   : > { %v2756_v37 = vpack.c.bf16 %v2720_v34, %v2720_v34  ;;  %v1457_v42 = vld [vmem:[#allocation2 + $0x2a] sm:$0xff]  ;;  %v1492_v48 = vpack.c.bf16 %v1456_v47, %v1456_v47  ;;  %v2468_v49 = vld [vmem:[#allocation2 + $0x35] sm:$0xff]  ;;  %v2722_v57 = vld [vmem:[#allocation2 + $0x3e] sm:$0xff]  ;;  %v2757_v61 = vpack.c.bf16 %v2721_v58, %v2721_v58 }
  0x87   : > { %v14924_v45 = vpack.c.bf16 %v1457_v42, %v1457_v42  ;;  %v1710_v51 = vld [vmem:[#allocation2 + $0x2b] sm:$0xff]  ;;  %v2504_v52 = vpack.c.bf16 %v2468_v49, %v2468_v49  ;;  %v2215_v59 = vld [vmem:[#allocation2 + $0x34] sm:$0xff]  ;;  %v2758_v60 = vpack.c.bf16 %v2722_v57, %v2722_v57  ;;  %v2469_v2 = vld [vmem:[#allocation2 + $0x3d] sm:$0xff]  ;;  %v14610_v42 = vmov 65535  }
  0x88   : > { %v1746_v54 = vpack.c.bf16 %v1710_v51, %v1710_v51  ;;  %v2251_v62 = vpack.c.bf16 %v2215_v59, %v2215_v59  ;;  %v953_v1 = vld [vmem:[#allocation2 + $0x29] sm:$0xff]  ;;  %v2505_v4 = vpack.c.bf16 %v2469_v2, %v2469_v2  ;;  %v1459_v6 = vld [vmem:[#allocation2 + $0x3a] sm:$0xff]  ;;  %v1458_v8 = vld [vmem:[#allocation2 + $0x32] sm:$0xff]  ;;  %v3174_v43 = vsel %vm3172_vm5, 4294967295, %v14610_v42 }
  0x89   : > { %v989_v3 = vpack.c.bf16 %v953_v1, %v953_v1  ;;  %v952_v9 = vld [vmem:[#allocation2 + $0x21] sm:$0xff]  ;;  %v14951_v12 = vpack.c.bf16 %v1459_v6, %v1459_v6  ;;  %v14954_v13 = vpack.c.bf16 %v1458_v8, %v1458_v8  ;;  %v2218_v19 = vld [vmem:[#allocation2 + $0x4c] sm:$0xff]  ;;  %v955_v33 = vld [vmem:[#allocation2 + $0x39] sm:$0xff]  ;;  %vm7840_vm5 = vsmask.f32 7440 }
  0x8a   : > { %2321 = vrot.lane.b32.xlu1 %v2249_v22, %s14606_s4  ;;  %v988_v14 = vpack.c.bf16 %v952_v9, %v952_v9  ;;  %v1712_v15 = vld [vmem:[#allocation2 + $0x3b] sm:$0xff]  ;;  %v2217_v20 = vld [vmem:[#allocation2 + $0x44] sm:$0xff]  ;;  %v1711_v21 = vld [vmem:[#allocation2 + $0x33] sm:$0xff]  ;;  %v991_v47 = vpack.c.bf16 %v955_v33, %v955_v33 }
  0x8b   : > { %2070 = vrot.lane.b32.xlu0 %v1997_v23, %s14607_s27  ;;  %v14968_v23 = vpack.c.bf16 %v2218_v19, %v2218_v19  ;;  %v1747_v25 = vpack.c.bf16 %v1711_v21, %v1711_v21  ;;  %v10502_v26 = vld [vmem:[%s14890_s30 + $0x40] sm:$0xff]  ;;  %v841_v34 = vld [vmem:[#allocation2 + $0x10] sm:$0xff]  ;;  %v842_v35 = vld [vmem:[#allocation2 + $0x18] sm:$0xff] }
  0x8c   : > { %1564 = vrot.lane.b32.xlu2 %v1491_v24, %s14605_s24  ;;  %782 = vst.msk [vmem:[#allocation2 + $0x5b] sm:$0xff] %vm718_vm0, %v10502_v26  ;;  %v2723_v27 = vld [vmem:[#allocation2 + $0x46] sm:$0xff]  ;;  %v877_v39 = vpack.c.bf16 %v841_v34, %v841_v34  ;;  %v13275_v41 = vld [vmem:[#allocation12 + $0x8] sm:$0x30] }
  0x8d   : > { %v13274_v51 = vld [vmem:[#allocation12] sm:$0xff] }
  0x8e   : > { %914 = vst.msk [vmem:[#allocation3 + $0x8] sm:$0xf] %vm911_vm1, %v877_v39  ;;  %v1714_v59 = vld [vmem:[#allocation2 + $0x4b] sm:$0xff] }
  0x8f   : > { %v1750_v0 = vpack.c.bf16 %v1714_v59, %v1714_v59 }
  0x92   : > { %2576 = vrot.lane.b32.xlu1 %v2503_v28, %s14608_s25  ;;  %v2471_v28 = vld [vmem:[#allocation2 + $0x4d] sm:$0xff] }
  0x93   : > { %2574 = vrot.lane.b32.xlu0 %v2502_v29, %s14608_s25  ;;  %v2507_v31 = vpack.c.bf16 %v2471_v28, %v2471_v28  ;;  %v2219_v2 = vld [vmem:[#allocation2 + $0x54] sm:$0xff]  ;;  %v2473_v9 = vld [vmem:[#allocation2 + $0x5d] sm:$0xff] }
  0x94   : > { %2068 = vrot.lane.b32.xlu2 %v1996_v30, %s14607_s27  ;;  %v2759_v30 = vpack.c.bf16 %v2723_v27, %v2723_v27  ;;  %v15012_v7 = vpack.c.bf16 %v2219_v2, %v2219_v2  ;;  %v2220_v21 = vld [vmem:[#allocation2 + $0x5c] sm:$0xff] }
  0x95   : > { %v2256_v28 = vpack.c.bf16 %v2220_v21, %v2220_v21  ;;  %v2725_v32 = vld [vmem:[#allocation2 + $0x56] sm:$0xff] }
  0x96   : > { %v1463_v39 = vld [vmem:[#allocation2 + $0x5a] sm:$0xff]  ;;  %v958_v21 = vld [vmem:[#allocation2 + $0x51] sm:$0xff] }
  0x9a   : > { %1060 = vrot.lane.b32.xlu1 %v986_v36, %s14603_s29  ;;  %v10604_v36 = vld [vmem:[#allocation12 + $0x8] sm:$0xf] }
  0x9b   : > { %2829 = vrot.lane.b32.xlu0 %v2756_v37, %s14609_s21  ;;  %v954_v37 = vld [vmem:[#allocation2 + $0x31] sm:$0xff] }
  0x9c   : > { %2323 = vrot.lane.b32.xlu2 %v2250_v38, %s14606_s4 }
  0xa2   : > { %1315 = vrot.lane.b32.xlu1 %v1491_v24, %s14602_s23  ;;  %v14971_v24 = vpack.c.bf16 %v2217_v20, %v2217_v20  ;;  %v2726_v20 = vld [vmem:[#allocation2 + $0x5e] sm:$0xff] }
  0xa3   : > { %1313 = vrot.lane.b32.xlu0 %v1490_v18, %s14602_s23  ;;  %v1748_v18 = vpack.c.bf16 %v1712_v15, %v1712_v15 }
  0xa4   : > { %2827 = vrot.lane.b32.xlu2 %v2755_v40, %s14609_s21  ;;  %v878_v40 = vpack.c.bf16 %v842_v35, %v842_v35 }
  0xa6   : > { %915 = vst.msk [vmem:[#allocation3 + $0xc] sm:$0xf] %vm911_vm1, %v878_v40  ;;  %v957_v40 = vld [vmem:[#allocation2 + $0x49] sm:$0xff] }
  0xaa   : > { %1819 = vrot.lane.b32.xlu1 %v1745_v44, %s14604_s2 }
  0xab   : > { %1568 = vrot.lane.b32.xlu0 %v14924_v45, %s14605_s24 }
  0xac   : > { %1062 = vrot.lane.b32.xlu2 %v987_v46, %s14603_s29  ;;  %v3175_v46 = vsel %vm3173_vm6, %v3174_v43, 0 }
  0xb2   : > { %2074 = vrot.lane.b32.xlu1 %v2250_v38, %s14607_s27  ;;  %v2470_v38 = vld [vmem:[#allocation2 + $0x45] sm:$0xff] }
  0xb3   : > { %2072 = vrot.lane.b32.xlu0 %v2249_v22, %s14607_s27  ;;  %v2506_v49 = vpack.c.bf16 %v2470_v38, %v2470_v38 }
  0xb4   : > { %1566 = vrot.lane.b32.xlu2 %v1492_v48, %s14605_s24 }
  0xba   : > { %2578 = vrot.lane.b32.xlu1 %v2504_v52, %s14608_s25  ;;  %v1460_v52 = vld [vmem:[#allocation2 + $0x42] sm:$0xff] }
  0xbb   : > { %2327 = vrot.lane.b32.xlu0 %v14933_v53, %s14606_s4  ;;  %v14995_v57 = vpack.c.bf16 %v1460_v52, %v1460_v52 }
  0xbc   : > { %1821 = vrot.lane.b32.xlu2 %v1746_v54, %s14604_s2  ;;  %v2724_v54 = vld [vmem:[#allocation2 + $0x4e] sm:$0xff] }
  0xbd   : > { %v2760_v58 = vpack.c.bf16 %v2724_v54, %v2724_v54  ;;  %v1716_v54 = vld [vmem:[#allocation2 + $0x5b] sm:$0xff] }
  0xbe   : > { %v1752_v59 = vpack.c.bf16 %v1716_v54, %v1716_v54 }
  0xc2   : > { %2833 = vrot.lane.b32.xlu1 %v2758_v60, %s14609_s21 }
  0xc3   : > { %2831 = vrot.lane.b32.xlu0 %v2757_v61, %s14609_s21  ;;  %v1713_v61 = vld [vmem:[#allocation2 + $0x43] sm:$0xff] }
  0xc4   : > { %2325 = vrot.lane.b32.xlu2 %v2251_v62, %s14606_s4  ;;  %v1749_v1 = vpack.c.bf16 %v1713_v61, %v1713_v61 }
  0xca   : > { %1317 = vrot.lane.b32.xlu1 %v1492_v48, %s14602_s23  ;;  %v990_v48 = vpack.c.bf16 %v954_v37, %v954_v37  ;;  %v1715_v37 = vld [vmem:[#allocation2 + $0x53] sm:$0xff] }
  0xcb   : > { %1066 = vrot.lane.b32.xlu0 %v989_v3, %s14603_s29  ;;  %v1751_v43 = vpack.c.bf16 %v1715_v37, %v1715_v37 }
  0xcc   : > { %2580 = vrot.lane.b32.xlu2 %v2505_v4, %s14608_s25  ;;  %v1310_v10 = vpop.permute.xlu1 %1309  ;;  %v1461_v4 = vld [vmem:[#allocation2 + $0x4a] sm:$0xff] }
  0xcd   : > { %v1057_v11 = vpop.permute.xlu0 %1056  ;;  %v1497_v8 = vpack.c.bf16 %v1461_v4, %v1461_v4 }
  0xce   : > { %1165 = vst.msk [vmem:[#allocation3] sm:$0xf] %vm1164_vm2, %v1057_v11  ;;  %v2472_v11 = vld [vmem:[#allocation2 + $0x55] sm:$0xff] }
  0xcf   : > { %1418 = vst.msk [vmem:[#allocation3] sm:$0xf] %vm1417_vm3, %v1310_v10  ;;  %v2508_v15 = vpack.c.bf16 %v2472_v11, %v2472_v11 }
  0xd2   : > { %1572 = vrot.lane.b32.xlu1 %v14951_v12, %s14605_s24 }
  0xd3   : > { %1570 = vrot.lane.b32.xlu0 %v14954_v13, %s14605_s24 }
  0xd4   : > { %1064 = vrot.lane.b32.xlu2 %v988_v14, %s14603_s29  ;;  %v1312_v16 = vpop.permute.xlu1 %1311  ;;  %v2509_v14 = vpack.c.bf16 %v2473_v9, %v2473_v9 }
  0xd5   : > { %v1059_v17 = vpop.permute.xlu0 %1058 }
  0xd6   : > { %1166 = vst.msk [vmem:[#allocation3 + $0x4] sm:$0xf] %vm1164_vm2, %v1059_v17  ;;  %v956_v17 = vld [vmem:[#allocation2 + $0x41] sm:$0xff] }
  0xd7   : > { %1419 = vst.msk [vmem:[#allocation3 + $0x4] sm:$0xf] %vm1417_vm3, %v1312_v16  ;;  %v10504_v16 = vld [vmem:[%s14890_s30 + $0x50] sm:$0xff]  ;;  %v992_v27 = vpack.c.bf16 %v956_v17, %v956_v17 }
  0xd8   : > { %787 = vst.msk [vmem:[#allocation2 + $0x6d] sm:$0xff] %vm718_vm0, %v10504_v16 }
  0xda   : > { %2076 = vrot.lane.b32.xlu1 %v2251_v62, %s14607_s27 }
  0xdb   : > { %1825 = vrot.lane.b32.xlu0 %v1748_v18, %s14604_s2  ;;  %v843_v18 = vld [vmem:[#allocation2 + $0x20] sm:$0xff] }
  0xdc   : > { %1319 = vrot.lane.b32.xlu2 %v14924_v45, %s14602_s23  ;;  %v10605_v45 = vor.u32 %v13275_v41, %v10604_v36  ;;  %v2761_v36 = vpack.c.bf16 %v2725_v32, %v2725_v32 }
  0xde   : > { %v1563_v22 = vpop.permute.xlu2 %1562  ;;  %v3177_v50 = vand.u32 %v10605_v45, %v3175_v46  ;;  %v993_v45 = vpack.c.bf16 %v957_v40, %v957_v40 }
  0xdf   : > { %1671 = vst.msk [vmem:[#allocation3] sm:$0xf] %vm1670_vm4, %v1563_v22  ;;  %v879_v22 = vpack.c.bf16 %v843_v18, %v843_v18  ;;  %v2475_v11 = vld [vmem:[#allocation2 + $0x6d] sm:$0xff] }
  0xe0   : > { %3185 = vmatpush.bf16.msra.mxu0 %v3177_v50  ;;  %v2511_v17 = vpack.c.bf16 %v2475_v11, %v2475_v11  ;;  %v1465_v18 = vld [vmem:[#allocation2 + $0x6a] sm:$0xff] }
  0xe1   : > { %916 = vst.msk [vmem:[#allocation3 + $0x10] sm:$0xf] %vm911_vm1, %v879_v22 }
  0xe2   : > { %2331 = vrot.lane.b32.xlu1 %v14968_v23, %s14606_s4 }
  0xe3   : > { %2329 = vrot.lane.b32.xlu0 %v14971_v24, %s14606_s4 }
  0xe4   : > { %1823 = vrot.lane.b32.xlu2 %v1747_v25, %s14604_s2  ;;  %3186 = vmatpush.bf16.msra.mxu0 %v13274_v51  ;;  %v2474_v51 = vld [vmem:[#allocation2 + $0x65] sm:$0xff] }
  0xe6   : > { %v1565_v29 = vpop.permute.xlu2 %1564 }
  0xe7   : > { %1672 = vst.msk [vmem:[#allocation3 + $0x4] sm:$0xf] %vm1670_vm4, %v1565_v29  ;;  %v10505_v29 = vld [vmem:[%s14890_s30 + $0x58] sm:$0xff] }
  0xe8   : > { %788 = vst.msk [vmem:[#allocation2 + $0x75] sm:$0xff] %vm718_vm0, %v10505_v29 }
  0xea   : > { %2835 = vrot.lane.b32.xlu1 %v2759_v30, %s14609_s21  ;;  %v844_v30 = vld [vmem:[#allocation2 + $0x28] sm:$0xff] }
  0xeb   : > { %2584 = vrot.lane.b32.xlu0 %v2507_v31, %s14608_s25  ;;  %v880_v33 = vpack.c.bf16 %v844_v30, %v844_v30 }
  0xec   : > { %2078 = vrot.lane.b32.xlu2 %v14933_v53, %s14607_s27 }
  0xed   : > { %917 = vst.msk [vmem:[#allocation3 + $0x14] sm:$0xf] %vm911_vm1, %v880_v33 }
  0xee   : > { %v2069_v44 = vpop.permute.xlu2 %2068 }
  0xef   : > { %v2728_v61 = vld [vmem:[#allocation2 + $0x6e] sm:$0xff] }
  0xf0   : > { %v2764_v4 = vpack.c.bf16 %v2728_v61, %v2728_v61 }
  0xf2   : > { %1070 = vrot.lane.b32.xlu1 %v991_v47, %s14603_s29  ;;  %v1462_v47 = vld [vmem:[#allocation2 + $0x52] sm:$0xff] }
  0xf3   : > { %1068 = vrot.lane.b32.xlu0 %v990_v48, %s14603_s29  ;;  %v1498_v50 = vpack.c.bf16 %v1462_v47, %v1462_v47 }
  0xf4   : > { %2582 = vrot.lane.b32.xlu2 %v2506_v49, %s14608_s25  ;;  %v1818_v53 = vpop.permute.xlu1 %1817 }
  0xf5   : > { %1925 = vst.msk [vmem:[#allocation3 + $0x4] sm:$0xf] %vm1923_vm7, %v1818_v53  ;;  %v1816_v55 = vpop.permute.xlu0 %1815  ;;  %v2222_v53 = vld [vmem:[#allocation2 + $0x6c] sm:$0xff] }
  0xf6   : > { %v2324_v56 = vpop.permute.xlu2 %2323  ;;  %1924 = vst.msk [vmem:[#allocation3] sm:$0xf] %vm1923_vm7, %v1816_v55 }
  0xf7   : > { %2177 = vst.msk [vmem:[#allocation3] sm:$0xf] %vm2176_vm8, %v2069_v44  ;;  %v15050_v44 = vpack.c.bf16 %v1463_v39, %v1463_v39 }
  0xfa   : > { %1574 = vrot.lane.b32.xlu1 %v14995_v57, %s14605_s24 }
  0xfb   : > { %1323 = vrot.lane.b32.xlu0 %v14951_v12, %s14602_s23 }
  0xfc   : > { %2837 = vrot.lane.b32.xlu2 %v2760_v58, %s14609_s21  ;;  %v2322_v60 = vpop.permute.xlu1 %2321  ;;  %v15066_v58 = vpack.c.bf16 %v2222_v53, %v2222_v53  ;;  %v848_v53 = vld [vmem:[#allocation2 + $0x48] sm:$0xff] }
  0xfd   : > { %2430 = vst.msk [vmem:[#allocation3] sm:$0xf] %vm2429_vm9, %v2322_v60  ;;  %v2071_v62 = vpop.permute.xlu0 %2070  ;;  %v10506_v60 = vld [vmem:[%s14890_s30 + $0x60] sm:$0xff]  ;;  %v884_v61 = vpack.c.bf16 %v848_v53, %v848_v53 }
  0xfe   : > { %v2828_v63 = vpop.permute.xlu2 %2827  ;;  %2178 = vst.msk [vmem:[#allocation3 + $0x4] sm:$0xf] %vm2176_vm8, %v2071_v62 }
  0xff   : > { %2431 = vst.msk [vmem:[#allocation3 + $0x4] sm:$0xf] %vm2429_vm9, %v2324_v56 }
 0x100   : > { %792 = vst.msk [vmem:[#allocation2 + $0x7f] sm:$0xff] %vm718_vm0, %v10506_v60 }
 0x101   : > { %921 = vst.msk [vmem:[#allocation3 + $0x24] sm:$0xf] %vm911_vm1, %v884_v61 }
 0x102   : > { %1829 = vrot.lane.b32.xlu1 %v1750_v0, %s14604_s2  ;;  %v2221_v0 = vld [vmem:[#allocation2 + $0x64] sm:$0xff] }
 0x103   : > { %1827 = vrot.lane.b32.xlu0 %v1749_v1, %s14604_s2 }
 0x104   : > { %1321 = vrot.lane.b32.xlu2 %v14954_v13, %s14602_s23  ;;  %v2577_v3 = vpop.permute.xlu1 %2576 }
 0x105   : > { %2684 = vst.msk [vmem:[#allocation3 + $0x4] sm:$0xf] %vm2682_vm10, %v2577_v3  ;;  %v2575_v5 = vpop.permute.xlu0 %2574 }
 0x106   : > { %v1063_v6 = vpop.permute.xlu2 %1062  ;;  %2683 = vst.msk [vmem:[#allocation3] sm:$0xf] %vm2682_vm10, %v2575_v5 }
 0x107   : > { %2936 = vst.msk [vmem:[#allocation3] sm:$0xf] %vm2935_vm11, %v2828_v63  ;;  %v2727_v63 = vld [vmem:[#allocation2 + $0x66] sm:$0xff]  ;;  %v2224_v32 = vld [vmem:[#allocation2 + $0x7c] sm:$0xff] }
 0x108   : > { %1168 = vst.msk [vmem:[#allocation3 + $0xc] sm:$0xf] %vm1164_vm2, %v1063_v6  ;;  %v2763_v5 = vpack.c.bf16 %v2727_v63, %v2727_v63  ;;  %v2257_v6 = vpack.c.bf16 %v2221_v0, %v2221_v0 }
 0x10a   : > { %2333 = vrot.lane.b32.xlu1 %v15012_v7, %s14606_s4 }
 0x10b   : > { %2082 = vrot.lane.b32.xlu0 %v14968_v23, %s14607_s27 }
 0x10c   : > { %1576 = vrot.lane.b32.xlu2 %v1497_v8, %s14605_s24  ;;  %v1061_v10 = vpop.permute.xlu1 %1060 }
 0x10d   : > { %1167 = vst.msk [vmem:[#allocation3 + $0x8] sm:$0xf] %vm1164_vm2, %v1061_v10  ;;  %v2830_v12 = vpop.permute.xlu0 %2829  ;;  %v959_v10 = vld [vmem:[#allocation2 + $0x59] sm:$0xff] }
 0x10e   : > { %v1567_v13 = vpop.permute.xlu2 %1566  ;;  %2937 = vst.msk [vmem:[#allocation3 + $0x4] sm:$0xf] %vm2935_vm11, %v2830_v12  ;;  %v995_v16 = vpack.c.bf16 %v959_v10, %v959_v10 }
 0x112   : > { %2588 = vrot.lane.b32.xlu1 %v2509_v14, %s14608_s25 }
 0x113   : > { %2586 = vrot.lane.b32.xlu0 %v2508_v15, %s14608_s25 }
 0x114   : > { %2080 = vrot.lane.b32.xlu2 %v14971_v24, %s14607_s27  ;;  %v1316_v19 = vpop.permute.xlu1 %1315  ;;  %v2762_v24 = vpack.c.bf16 %v2726_v20, %v2726_v20  ;;  %v1464_v20 = vld [vmem:[#allocation2 + $0x62] sm:$0xff] }
 0x115   : > { %1421 = vst.msk [vmem:[#allocation3 + $0xc] sm:$0xf] %vm1417_vm3, %v1316_v19  ;;  %v1314_v23 = vpop.permute.xlu0 %1313  ;;  %v13256_v25 = vld [vmem:[#allocation3] sm:$0xff] }
 0x116   : > { %v1822_v26 = vpop.permute.xlu2 %1821  ;;  %1420 = vst.msk [vmem:[#allocation3 + $0x8] sm:$0xf] %vm1417_vm3, %v1314_v23  ;;  %10606 = vmatmul.msk.bf16.vlgmr.msra.gmra.mxu0 %vm3117_vm12, %v13256_v25  ;;  %v15091_v25 = vpack.c.bf16 %v1465_v18, %v1465_v18 }
 0x117   : > { %1673 = vst.msk [vmem:[#allocation3 + $0x8] sm:$0xf] %vm1670_vm4, %v1567_v13 }
 0x11a   : > { %1072 = vrot.lane.b32.xlu1 %v992_v27, %s14603_s29  ;;  %v994_v27 = vpack.c.bf16 %v958_v21, %v958_v21 }
 0x11b   : > { %2841 = vrot.lane.b32.xlu0 %v2762_v24, %s14609_s21 }
 0x11c   : > { %2335 = vrot.lane.b32.xlu2 %v2256_v28, %s14606_s4  ;;  %v1820_v31 = vpop.permute.xlu1 %1819 }
 0x11d   : > { %1926 = vst.msk [vmem:[#allocation3 + $0x8] sm:$0xf] %vm1923_vm7, %v1820_v31  ;;  %v1569_v34 = vpop.permute.xlu0 %1568 }
 0x11e   : > { %v2326_v35 = vpop.permute.xlu2 %2325  ;;  %1674 = vst.msk [vmem:[#allocation3 + $0xc] sm:$0xf] %vm1670_vm4, %v1569_v34  ;;  %v2223_v34 = vld [vmem:[#allocation2 + $0x74] sm:$0xff] }
 0x11f   : > { %1927 = vst.msk [vmem:[#allocation3 + $0xc] sm:$0xf] %vm1923_vm7, %v1822_v26  ;;  %v15094_v26 = vpack.c.bf16 %v1464_v20, %v1464_v20  ;;  %v15113_v39 = vpack.c.bf16 %v2223_v34, %v2223_v34 }
 0x122   : > { %1327 = vrot.lane.b32.xlu1 %v1497_v8, %s14602_s23  ;;  %v846_v8 = vld [vmem:[#allocation2 + $0x38] sm:$0xff] }
 0x123   : > { %1325 = vrot.lane.b32.xlu0 %v14995_v57, %s14602_s23  ;;  %v2510_v57 = vpack.c.bf16 %v2474_v51, %v2474_v51  ;;  %v882_v12 = vpack.c.bf16 %v846_v8, %v846_v8  ;;  %v961_v51 = vld [vmem:[#allocation2 + $0x69] sm:$0xff] }
 0x124   : > { %2839 = vrot.lane.b32.xlu2 %v2761_v36, %s14609_s21  ;;  %v2075_v38 = vpop.permute.xlu1 %2074 }
 0x125   : > { %2180 = vst.msk [vmem:[#allocation3 + $0xc] sm:$0xf] %vm2176_vm8, %v2075_v38  ;;  %v2073_v41 = vpop.permute.xlu0 %2072  ;;  %v15110_v38 = vpack.c.bf16 %v2224_v32, %v2224_v32 }
 0x126   : > { %v2581_v42 = vpop.permute.xlu2 %2580  ;;  %2179 = vst.msk [vmem:[#allocation3 + $0x8] sm:$0xf] %vm2176_vm8, %v2073_v41  ;;  %v10507_v41 = vld [vmem:[%s14890_s30 + $0x68] sm:$0xff] }
 0x127   : > { %2432 = vst.msk [vmem:[#allocation3 + $0x8] sm:$0xf] %vm2429_vm9, %v2326_v35  ;;  %v1717_v35 = vld [vmem:[#allocation2 + $0x63] sm:$0xff] }
 0x128   : > { %919 = vst.msk [vmem:[#allocation3 + $0x1c] sm:$0xf] %vm911_vm1, %v882_v12  ;;  %v1753_v40 = vpack.c.bf16 %v1717_v35, %v1717_v35 }
 0x129   : > { %793 = vst.msk [vmem:[#allocation2 + $0x87] sm:$0xff] %vm718_vm0, %v10507_v41 }
 0x12a   : > { %1831 = vrot.lane.b32.xlu1 %v1751_v43, %s14604_s2 }
 0x12b   : > { %1580 = vrot.lane.b32.xlu0 %v15050_v44, %s14605_s24 }
 0x12c   : > { %1074 = vrot.lane.b32.xlu2 %v993_v45, %s14603_s29  ;;  %v2579_v46 = vpop.permute.xlu1 %2578 }
 0x12d   : > { %2685 = vst.msk [vmem:[#allocation3 + $0x8] sm:$0xf] %vm2682_vm10, %v2579_v46  ;;  %v2328_v48 = vpop.permute.xlu0 %2327 }
 0x12e   : > { %v1065_v49 = vpop.permute.xlu2 %1064  ;;  %2433 = vst.msk [vmem:[#allocation3 + $0xc] sm:$0xf] %vm2429_vm9, %v2328_v48 }
 0x12f   : > { %2686 = vst.msk [vmem:[#allocation3 + $0xc] sm:$0xf] %vm2682_vm10, %v2581_v42  ;;  %v2729_v42 = vld [vmem:[#allocation2 + $0x76] sm:$0xff] }
 0x130   : > { %1169 = vst.msk [vmem:[#allocation3 + $0x10] sm:$0xf] %vm1164_vm2, %v1065_v49  ;;  %v2765_v48 = vpack.c.bf16 %v2729_v42, %v2729_v42  ;;  %v1468_v61 = vld [vmem:[#allocation2 + $0x82] sm:$0xff] }
 0x132   : > { %2086 = vrot.lane.b32.xlu1 %v2256_v28, %s14607_s27  ;;  %v1718_v28 = vld [vmem:[#allocation2 + $0x6b] sm:$0xff] }
 0x133   : > { %2084 = vrot.lane.b32.xlu0 %v15012_v7, %s14607_s27  ;;  %v845_v7 = vld [vmem:[#allocation2 + $0x30] sm:$0xff]  ;;  %v1754_v31 = vpack.c.bf16 %v1718_v28, %v1718_v28  ;;  %v10509_v28 = vld [vmem:[%s14890_s30 + $0x78] sm:$0xff] }
 0x134   : > { %1578 = vrot.lane.b32.xlu2 %v1498_v50, %s14605_s24  ;;  %v2834_v52 = vpop.permute.xlu1 %2833  ;;  %v881_v15 = vpack.c.bf16 %v845_v7, %v845_v7  ;;  %v1720_v7 = vld [vmem:[#allocation2 + $0x7b] sm:$0xff]  ;;  %798 = vst.msk [vmem:[#allocation2 + $0x99] sm:$0xff] %vm718_vm0, %v10509_v28 }
 0x135   : > { %2939 = vst.msk [vmem:[#allocation3 + $0xc] sm:$0xf] %vm2935_vm11, %v2834_v52  ;;  %v2832_v55 = vpop.permute.xlu0 %2831  ;;  %v847_v52 = vld [vmem:[#allocation2 + $0x40] sm:$0xff]  ;;  %v1756_v12 = vpack.c.bf16 %v1720_v7, %v1720_v7 }
 0x136   : > { %v1320_v56 = vpop.permute.xlu2 %1319  ;;  %2938 = vst.msk [vmem:[#allocation3 + $0x8] sm:$0xf] %vm2935_vm11, %v2832_v55  ;;  %v960_v55 = vld [vmem:[#allocation2 + $0x61] sm:$0xff] }
 0x137   : > { %918 = vst.msk [vmem:[#allocation3 + $0x18] sm:$0xf] %vm911_vm1, %v881_v15  ;;  %v996_v63 = vpack.c.bf16 %v960_v55, %v960_v55 }
 0x13a   : > { %2590 = vrot.lane.b32.xlu1 %v2510_v57, %s14608_s25  ;;  %v883_v57 = vpack.c.bf16 %v847_v52, %v847_v52  ;;  %v963_v52 = vld [vmem:[#allocation2 + $0x79] sm:$0xff] }
 0x13b   : > { %2339 = vrot.lane.b32.xlu0 %v15066_v58, %s14606_s4 }
 0x13c   : > { %1833 = vrot.lane.b32.xlu2 %v1752_v59, %s14604_s2  ;;  %v1318_v62 = vpop.permute.xlu1 %1317  ;;  %920 = vst.msk [vmem:[#allocation3 + $0x20] sm:$0xf] %vm911_vm1, %v883_v57  ;;  %v999_v57 = vpack.c.bf16 %v963_v52, %v963_v52 }
 0x13d   : > { %1422 = vst.msk [vmem:[#allocation3 + $0x10] sm:$0xf] %vm1417_vm3, %v1318_v62  ;;  %v1067_v1 = vpop.permute.xlu0 %1066  ;;  %v13257_v2 = vld [vmem:[#allocation3 + $0x8] sm:$0xff]  ;;  %v997_v62 = vpack.c.bf16 %v961_v51, %v961_v51 }
 0x13e   : > { %v1824_v3 = vpop.permute.xlu2 %1823  ;;  %1170 = vst.msk [vmem:[#allocation3 + $0x14] sm:$0xf] %vm1164_vm2, %v1067_v1  ;;  %10607 = vmatmul.msk.bf16.gmra.mxu0 %vm3117_vm12, %v13257_v2  ;;  %v2730_v2 = vld [vmem:[#allocation2 + $0x7e] sm:$0xff] }
 0x13f   : > { %1423 = vst.msk [vmem:[#allocation3 + $0x14] sm:$0xf] %vm1417_vm3, %v1320_v56  ;;  %v2476_v56 = vld [vmem:[#allocation2 + $0x75] sm:$0xff] }
 0x140   : > { %v2512_v0 = vpack.c.bf16 %v2476_v56, %v2476_v56 }
 0x142   : > { %2845 = vrot.lane.b32.xlu1 %v2764_v4, %s14609_s21 }
 0x143   : > { %2843 = vrot.lane.b32.xlu0 %v2763_v5, %s14609_s21 }
 0x144   : > { %2337 = vrot.lane.b32.xlu2 %v2257_v6, %s14606_s4  ;;  %v1573_v9 = vpop.permute.xlu1 %1572 }
 0x145   : > { %1676 = vst.msk [vmem:[#allocation3 + $0x14] sm:$0xf] %vm1670_vm4, %v1573_v9  ;;  %v1571_v13 = vpop.permute.xlu0 %1570  ;;  %v1719_v9 = vld [vmem:[#allocation2 + $0x73] sm:$0xff] }
 0x146   : > { %v2079_v14 = vpop.permute.xlu2 %2078  ;;  %1675 = vst.msk [vmem:[#allocation3 + $0x10] sm:$0xf] %vm1670_vm4, %v1571_v13  ;;  %v1755_v13 = vpack.c.bf16 %v1719_v9, %v1719_v9 }
 0x147   : > { %1928 = vst.msk [vmem:[#allocation3 + $0x10] sm:$0xf] %vm1923_vm7, %v1824_v3 }
 0x14a   : > { %1329 = vrot.lane.b32.xlu1 %v1498_v50, %s14602_s23  ;;  %v10508_v50 = vld [vmem:[%s14890_s30 + $0x70] sm:$0xff] }
 0x14b   : > { %1078 = vrot.lane.b32.xlu0 %v995_v16, %s14603_s29  ;;  %797 = vst.msk [vmem:[#allocation2 + $0x91] sm:$0xff] %vm718_vm0, %v10508_v50  ;;  %v1467_v16 = vld [vmem:[#allocation2 + $0x7a] sm:$0xff] }
 0x14c   : > { %2592 = vrot.lane.b32.xlu2 %v2511_v17, %s14608_s25  ;;  %v2077_v19 = vpop.permute.xlu1 %2076  ;;  %v1503_v20 = vpack.c.bf16 %v1467_v16, %v1467_v16 }
 0x14d   : > { %2181 = vst.msk [vmem:[#allocation3 + $0x10] sm:$0xf] %vm2176_vm8, %v2077_v19  ;;  %v1826_v22 = vpop.permute.xlu0 %1825 }
 0x14e   : > { %v2583_v23 = vpop.permute.xlu2 %2582  ;;  %1929 = vst.msk [vmem:[#allocation3 + $0x14] sm:$0xf] %vm1923_vm7, %v1826_v22 }
 0x14f   : > { %2182 = vst.msk [vmem:[#allocation3 + $0x14] sm:$0xf] %vm2176_vm8, %v2079_v14  ;;  %v2225_v14 = vld [vmem:[#allocation2 + $0x84] sm:$0xff] }
 0x150   : > { %v15159_v19 = vpack.c.bf16 %v2225_v14, %v2225_v14 }
 0x152   : > { %1584 = vrot.lane.b32.xlu1 %v15091_v25, %s14605_s24  ;;  %v2479_v21 = vld [vmem:[#allocation2 + $0x8d] sm:$0xff] }
 0x153   : > { %1582 = vrot.lane.b32.xlu0 %v15094_v26, %s14605_s24  ;;  %v2226_v34 = vld [vmem:[#allocation2 + $0x8c] sm:$0xff]  ;;  %v2227_v16 = vld [vmem:[#allocation2 + $0x94] sm:$0xff] }
 0x154   : > { %1076 = vrot.lane.b32.xlu2 %v994_v27, %s14603_s29  ;;  %v2332_v24 = vpop.permute.xlu1 %2331  ;;  %v2515_v27 = vpack.c.bf16 %v2479_v21, %v2479_v21  ;;  %v2262_v42 = vpack.c.bf16 %v2226_v34, %v2226_v34  ;;  %v1469_v51 = vld [vmem:[#allocation2 + $0x8a] sm:$0xff] }
 0x155   : > { %2435 = vst.msk [vmem:[#allocation3 + $0x14] sm:$0xf] %vm2429_vm9, %v2332_v24  ;;  %v2330_v29 = vpop.permute.xlu0 %2329  ;;  %v15197_v56 = vpack.c.bf16 %v1469_v51, %v1469_v51 }
 0x156   : > { %v2838_v30 = vpop.permute.xlu2 %2837  ;;  %2434 = vst.msk [vmem:[#allocation3 + $0x10] sm:$0xf] %vm2429_vm9, %v2330_v29  ;;  %v10510_v29 = vld [vmem:[%s14890_s30 + $0x80] sm:$0xff] }
 0x157   : > { %2687 = vst.msk [vmem:[#allocation3 + $0x10] sm:$0xf] %vm2682_vm10, %v2583_v23  ;;  %v2478_v23 = vld [vmem:[#allocation2 + $0x85] sm:$0xff] }
 0x158   : > { %v2514_v24 = vpack.c.bf16 %v2478_v23, %v2478_v23  ;;  %802 = vst.msk [vmem:[#allocation2 + $0xa3] sm:$0xff] %vm718_vm0, %v10510_v29  ;;  %v852_v29 = vld [vmem:[#allocation2 + $0x68] sm:$0xff] }
 0x159   : > { %v888_v34 = vpack.c.bf16 %v852_v29, %v852_v29  ;;  %v853_v29 = vld [vmem:[#allocation2 + $0x70] sm:$0xff] }
 0x15a   : > { %2088 = vrot.lane.b32.xlu1 %v2257_v6, %s14607_s27  ;;  %v2766_v6 = vpack.c.bf16 %v2730_v2, %v2730_v2 }
 0x15b   : > { %1837 = vrot.lane.b32.xlu0 %v1754_v31, %s14604_s2  ;;  %v849_v31 = vld [vmem:[#allocation2 + $0x50] sm:$0xff]  ;;  %925 = vst.msk [vmem:[#allocation3 + $0x34] sm:$0xf] %vm911_vm1, %v888_v34  ;;  %v889_v34 = vpack.c.bf16 %v853_v29, %v853_v29 }
 0x15c   : > { %1331 = vrot.lane.b32.xlu2 %v15050_v44, %s14602_s23  ;;  %v2836_v33 = vpop.permute.xlu1 %2835  ;;  %v2477_v44 = vld [vmem:[#allocation2 + $0x7d] sm:$0xff]  ;;  %v885_v35 = vpack.c.bf16 %v849_v31, %v849_v31 }
 0x15d   : > { %2940 = vst.msk [vmem:[#allocation3 + $0x10] sm:$0xf] %vm2935_vm11, %v2836_v33  ;;  %v2585_v36 = vpop.permute.xlu0 %2584  ;;  %v2513_v49 = vpack.c.bf16 %v2477_v44, %v2477_v44  ;;  %v2732_v33 = vld [vmem:[#allocation2 + $0x8e] sm:$0xff]  ;;  %v2731_v44 = vld [vmem:[#allocation2 + $0x86] sm:$0xff] }
 0x15e   : > { %v1322_v37 = vpop.permute.xlu2 %1321  ;;  %2688 = vst.msk [vmem:[#allocation3 + $0x14] sm:$0xf] %vm2682_vm10, %v2585_v36  ;;  %v2768_v41 = vpack.c.bf16 %v2732_v33, %v2732_v33 }
 0x15f   : > { %2941 = vst.msk [vmem:[#allocation3 + $0x14] sm:$0xf] %vm2935_vm11, %v2838_v30  ;;  %v962_v30 = vld [vmem:[#allocation2 + $0x71] sm:$0xff]  ;;  %v2481_v33 = vld [vmem:[#allocation2 + $0x9d] sm:$0xff] }
 0x160   : > { %922 = vst.msk [vmem:[#allocation3 + $0x28] sm:$0xf] %vm911_vm1, %v885_v35 }
 0x161   : > { %926 = vst.msk [vmem:[#allocation3 + $0x38] sm:$0xf] %vm911_vm1, %v889_v34 }
 0x162   : > { %2343 = vrot.lane.b32.xlu1 %v15110_v38, %s14606_s4 }
 0x163   : > { %2341 = vrot.lane.b32.xlu0 %v15113_v39, %s14606_s4 }
 0x164   : > { %1835 = vrot.lane.b32.xlu2 %v1753_v40, %s14604_s2  ;;  %v1071_v43 = vpop.permute.xlu1 %1070  ;;  %v998_v40 = vpack.c.bf16 %v962_v30, %v962_v30 }
 0x165   : > { %1172 = vst.msk [vmem:[#allocation3 + $0x1c] sm:$0xf] %vm1164_vm2, %v1071_v43  ;;  %v1069_v45 = vpop.permute.xlu0 %1068 }
 0x166   : > { %v1577_v46 = vpop.permute.xlu2 %1576  ;;  %1171 = vst.msk [vmem:[#allocation3 + $0x18] sm:$0xf] %vm1164_vm2, %v1069_v45  ;;  %v13258_v47 = vld [vmem:[#allocation3 + $0x10] sm:$0xff] }
 0x167   : > { %1424 = vst.msk [vmem:[#allocation3 + $0x18] sm:$0xf] %vm1417_vm3, %v1322_v37  ;;  %10608 = vmatmul.msk.bf16.gmra.mxu0 %vm3117_vm12, %v13258_v47 }
 0x16a   : > { %2847 = vrot.lane.b32.xlu1 %v2765_v48, %s14609_s21  ;;  %v2767_v48 = vpack.c.bf16 %v2731_v44, %v2731_v44 }
 0x16b   : > { %2596 = vrot.lane.b32.xlu0 %v2513_v49, %s14608_s25  ;;  %v1721_v49 = vld [vmem:[#allocation2 + $0x83] sm:$0xff] }
 0x16c   : > { %2090 = vrot.lane.b32.xlu2 %v15066_v58, %s14607_s27  ;;  %v1575_v54 = vpop.permute.xlu1 %1574  ;;  %v1466_v58 = vld [vmem:[#allocation2 + $0x72] sm:$0xff]  ;;  %v1757_v55 = vpack.c.bf16 %v1721_v49, %v1721_v49 }
 0x16d   : > { %1677 = vst.msk [vmem:[#allocation3 + $0x18] sm:$0xf] %vm1670_vm4, %v1575_v54  ;;  %v1324_v59 = vpop.permute.xlu0 %1323  ;;  %v15142_v5 = vpack.c.bf16 %v1466_v58, %v1466_v58  ;;  %v2480_v58 = vld [vmem:[#allocation2 + $0x95] sm:$0xff] }
 0x16e   : > { %v2081_v60 = vpop.permute.xlu2 %2080  ;;  %1425 = vst.msk [vmem:[#allocation3 + $0x1c] sm:$0xf] %vm1417_vm3, %v1324_v59  ;;  %v2516_v7 = vpack.c.bf16 %v2480_v58, %v2480_v58  ;;  %v1470_v49 = vld [vmem:[#allocation2 + $0x92] sm:$0xff] }
 0x16f   : > { %1678 = vst.msk [vmem:[#allocation3 + $0x1c] sm:$0xf] %vm1670_vm4, %v1577_v46 }
 0x172   : > { %1082 = vrot.lane.b32.xlu1 %v997_v62, %s14603_s29 }
 0x173   : > { %1080 = vrot.lane.b32.xlu0 %v996_v63, %s14603_s29 }
 0x174   : > { %2594 = vrot.lane.b32.xlu2 %v2512_v0, %s14608_s25  ;;  %v1830_v1 = vpop.permute.xlu1 %1829  ;;  %v15208_v0 = vpack.c.bf16 %v1468_v61, %v1468_v61 }
 0x175   : > { %1931 = vst.msk [vmem:[#allocation3 + $0x1c] sm:$0xf] %vm1923_vm7, %v1830_v1  ;;  %v1828_v3 = vpop.permute.xlu0 %1827 }
 0x176   : > { %v2336_v4 = vpop.permute.xlu2 %2335  ;;  %1930 = vst.msk [vmem:[#allocation3 + $0x18] sm:$0xf] %vm1923_vm7, %v1828_v3  ;;  %v2228_v3 = vld [vmem:[#allocation2 + $0x9c] sm:$0xff] }
 0x177   : > { %2183 = vst.msk [vmem:[#allocation3 + $0x18] sm:$0xf] %vm2176_vm8, %v2081_v60 }
 0x17a   : > { %1586 = vrot.lane.b32.xlu1 %v15142_v5, %s14605_s24 }
 0x17b   : > { %1335 = vrot.lane.b32.xlu0 %v15091_v25, %s14602_s23 }
 0x17c   : > { %2849 = vrot.lane.b32.xlu2 %v2766_v6, %s14609_s21  ;;  %v2334_v8 = vpop.permute.xlu1 %2333 }
 0x17d   : > { %2436 = vst.msk [vmem:[#allocation3 + $0x18] sm:$0xf] %vm2429_vm9, %v2334_v8  ;;  %v2083_v10 = vpop.permute.xlu0 %2082  ;;  %v15218_v8 = vpack.c.bf16 %v2228_v3, %v2228_v3  ;;  %v10512_v3 = vld [vmem:[%s14890_s30 + $0x90] sm:$0xff] }
 0x17e   : > { %v2840_v11 = vpop.permute.xlu2 %2839  ;;  %2184 = vst.msk [vmem:[#allocation3 + $0x1c] sm:$0xf] %vm2176_vm8, %v2083_v10  ;;  %v10511_v10 = vld [vmem:[%s14890_s30 + $0x88] sm:$0xff] }
 0x17f   : > { %2437 = vst.msk [vmem:[#allocation3 + $0x1c] sm:$0xf] %vm2429_vm9, %v2336_v4  ;;  %v1722_v4 = vld [vmem:[#allocation2 + $0x8b] sm:$0xff] }
 0x180   : > { %v1758_v9 = vpack.c.bf16 %v1722_v4, %v1722_v4  ;;  %803 = vst.msk [vmem:[#allocation2 + $0xab] sm:$0xff] %vm718_vm0, %v10511_v10 }
 0x181   : > { %807 = vst.msk [vmem:[#allocation2 + $0xb5] sm:$0xff] %vm718_vm0, %v10512_v3 }
 0x182   : > { %1841 = vrot.lane.b32.xlu1 %v1756_v12, %s14604_s2  ;;  %v2734_v12 = vld [vmem:[#allocation2 + $0x9e] sm:$0xff] }
 0x183   : > { %1839 = vrot.lane.b32.xlu0 %v1755_v13, %s14604_s2 }
 0x184   : > { %1333 = vrot.lane.b32.xlu2 %v15094_v26, %s14602_s23  ;;  %v2589_v15 = vpop.permute.xlu1 %2588 }
 0x185   : > { %2690 = vst.msk [vmem:[#allocation3 + $0x1c] sm:$0xf] %vm2682_vm10, %v2589_v15  ;;  %v2587_v17 = vpop.permute.xlu0 %2586  ;;  %v2733_v15 = vld [vmem:[#allocation2 + $0x96] sm:$0xff] }
 0x186   : > { %v1075_v18 = vpop.permute.xlu2 %1074  ;;  %2689 = vst.msk [vmem:[#allocation3 + $0x18] sm:$0xf] %vm2682_vm10, %v2587_v17 }
 0x187   : > { %2942 = vst.msk [vmem:[#allocation3 + $0x18] sm:$0xf] %vm2935_vm11, %v2840_v11  ;;  %v15223_v11 = vld [vmem:[#allocation14] ss:$0 sm:$0xff]  ;;  %v2230_v4 = vld [vmem:[#allocation2 + $0xac] sm:$0xff] }
 0x188   : > { %1174 = vst.msk [vmem:[#allocation3 + $0x24] sm:$0xf] %vm1164_vm2, %v1075_v18 }
 0x18a   : > { %2345 = vrot.lane.b32.xlu1 %v15159_v19, %s14606_s4 }
 0x18b   : > { %2094 = vrot.lane.b32.xlu0 %v15110_v38, %s14607_s27 }
 0x18c   : > { %1588 = vrot.lane.b32.xlu2 %v1503_v20, %s14605_s24  ;;  %v1073_v22 = vpop.permute.xlu1 %1072 }
 0x18d   : > { %1173 = vst.msk [vmem:[#allocation3 + $0x20] sm:$0xf] %vm1164_vm2, %v1073_v22  ;;  %v2842_v25 = vpop.permute.xlu0 %2841  ;;  %v2770_v22 = vpack.c.bf16 %v2734_v12, %v2734_v12  ;;  %v15296_v12 = vpack.c.bf16 %v2230_v4, %v2230_v4 }
 0x18e   : > { %v1579_v26 = vpop.permute.xlu2 %1578  ;;  %2943 = vst.msk [vmem:[#allocation3 + $0x1c] sm:$0xf] %vm2935_vm11, %v2842_v25  ;;  %v2769_v25 = vpack.c.bf16 %v2733_v15, %v2733_v15 }
 0x192   : > { %2600 = vrot.lane.b32.xlu1 %v2515_v27, %s14608_s25 }
 0x193   : > { %2598 = vrot.lane.b32.xlu0 %v2514_v24, %s14608_s25  ;;  %v15199_v59 = vpop.f32.mrf.mxu0  ;;  %v851_v24 = vld [vmem:[#allocation2 + $0x60] sm:$0xff] }
 0x194   : > { %2092 = vrot.lane.b32.xlu2 %v15113_v39, %s14607_s27  ;;  %v1328_v32 = vpop.permute.xlu1 %1327  ;;  %v850_v39 = vld [vmem:[#allocation2 + $0x58] sm:$0xff] }
 0x195   : > { %1427 = vst.msk [vmem:[#allocation3 + $0x24] sm:$0xf] %vm1417_vm3, %v1328_v32  ;;  %v1326_v36 = vpop.permute.xlu0 %1325  ;;  %v13259_v37 = vld [vmem:[#allocation3 + $0x18] sm:$0xff]  ;;  %v886_v45 = vpack.c.bf16 %v850_v39, %v850_v39  ;;  %v965_v32 = vld [vmem:[#allocation2 + $0x89] sm:$0xff]  ;;  %v2517_v39 = vpack.c.bf16 %v2481_v33, %v2481_v33 }
 0x196   : > { %v1834_v38 = vpop.permute.xlu2 %1833  ;;  %1426 = vst.msk [vmem:[#allocation3 + $0x20] sm:$0xf] %vm1417_vm3, %v1326_v36  ;;  %10609 = vmatmul.msk.bf16.gmra.mxu0 %vm3117_vm12, %v13259_v37  ;;  %v2482_v33 = vld [vmem:[#allocation2 + $0xa5] sm:$0xff] }
 0x197   : > { %1679 = vst.msk [vmem:[#allocation3 + $0x20] sm:$0xf] %vm1670_vm4, %v1579_v26  ;;  %v2263_v26 = vpack.c.bf16 %v2227_v16, %v2227_v16  ;;  %v2483_v16 = vld [vmem:[#allocation2 + $0xad] sm:$0xff] }
 0x198   : > { %923 = vst.msk [vmem:[#allocation3 + $0x2c] sm:$0xf] %vm911_vm1, %v886_v45 }
 0x19a   : > { %1084 = vrot.lane.b32.xlu1 %v998_v40, %s14603_s29  ;;  %v887_v40 = vpack.c.bf16 %v851_v24, %v851_v24  ;;  %v3189_v24 = vadd.f32 %v15223_v11, %v15199_v59 }
 0x19b   : > { %2853 = vrot.lane.b32.xlu0 %v2768_v41, %s14609_s21  ;;  %v3190_v1 = vpop.f32.mrf.mxu0 }
 0x19c   : > { %2347 = vrot.lane.b32.xlu2 %v2262_v42, %s14606_s4  ;;  %v1832_v43 = vpop.permute.xlu1 %1831  ;;  %v3191_v17 = vadd.f32 %v15223_v11, %v3190_v1  ;;  %924 = vst.msk [vmem:[#allocation3 + $0x30] sm:$0xf] %vm911_vm1, %v887_v40 }
 0x19d   : > { %1932 = vst.msk [vmem:[#allocation3 + $0x20] sm:$0xf] %vm1923_vm7, %v1832_v43  ;;  %v1581_v46 = vpop.permute.xlu0 %1580 }
 0x19e   : > { %v2338_v47 = vpop.permute.xlu2 %2337  ;;  %1680 = vst.msk [vmem:[#allocation3 + $0x24] sm:$0xf] %vm1670_vm4, %v1581_v46  ;;  %v3279_v27 = vmax.f32 %v3191_v17, 0.0  ;;  %v1471_v46 = vld [vmem:[#allocation2 + $0x9a] sm:$0xff] }
 0x19f   : > { %1933 = vst.msk [vmem:[#allocation3 + $0x24] sm:$0xf] %vm1923_vm7, %v1834_v38 }
 0x1a0   : > { %v15237_v35 = vrot.slane %v3279_v27, 1 }
 0x1a2   : > { %1339 = vrot.lane.b32.xlu1 %v1503_v20, %s14602_s23 }
 0x1a3   : > { %1337 = vrot.lane.b32.xlu0 %v15142_v5, %s14602_s23 }
 0x1a4   : > { %2851 = vrot.lane.b32.xlu2 %v2767_v48, %s14609_s21  ;;  %v2087_v50 = vpop.permute.xlu1 %2086 }
 0x1a5   : > { %2186 = vst.msk [vmem:[#allocation3 + $0x24] sm:$0xf] %vm2176_vm8, %v2087_v50  ;;  %v2085_v53 = vpop.permute.xlu0 %2084  ;;  %v964_v50 = vld [vmem:[#allocation2 + $0x81] sm:$0xff] }
 0x1a6   : > { %v2593_v54 = vpop.permute.xlu2 %2592  ;;  %2185 = vst.msk [vmem:[#allocation3 + $0x20] sm:$0xf] %vm2176_vm8, %v2085_v53  ;;  %v1000_v61 = vpack.c.bf16 %v964_v50, %v964_v50 }
 0x1a7   : > { %2438 = vst.msk [vmem:[#allocation3 + $0x20] sm:$0xf] %vm2429_vm9, %v2338_v47 }
 0x1aa   : > { %1843 = vrot.lane.b32.xlu1 %v1757_v55, %s14604_s2 }
 0x1ab   : > { %1592 = vrot.lane.b32.xlu0 %v15197_v56, %s14605_s24 }
 0x1ac   : > { %1086 = vrot.lane.b32.xlu2 %v999_v57, %s14603_s29  ;;  %v2591_v60 = vpop.permute.xlu1 %2590 }
 0x1ad   : > { %2691 = vst.msk [vmem:[#allocation3 + $0x20] sm:$0xf] %vm2682_vm10, %v2591_v60  ;;  %v2340_v62 = vpop.permute.xlu0 %2339  ;;  %v15271_v60 = vpack.c.bf16 %v1470_v49, %v1470_v49 }
 0x1ae   : > { %v1077_v63 = vpop.permute.xlu2 %1076  ;;  %2439 = vst.msk [vmem:[#allocation3 + $0x24] sm:$0xf] %vm2429_vm9, %v2340_v62 }
 0x1af   : > { %2692 = vst.msk [vmem:[#allocation3 + $0x24] sm:$0xf] %vm2682_vm10, %v2593_v54  ;;  %v15266_v54 = vpack.c.bf16 %v1471_v46, %v1471_v46  ;;  %v3278_v46 = vmax.f32 %v3189_v24, 0.0 }
 0x1b0   : > { %1175 = vst.msk [vmem:[#allocation3 + $0x28] sm:$0xf] %vm1164_vm2, %v1077_v63 }
 0x1b1   : > { %v15343_v50 = vrot.slane %v3278_v46, 1 }
 0x1b2   : > { %2098 = vrot.lane.b32.xlu1 %v2262_v42, %s14607_s27  ;;  %v1001_v42 = vpack.c.bf16 %v965_v32, %v965_v32  ;;  %v966_v32 = vld [vmem:[#allocation2 + $0x91] sm:$0xff] }
 0x1b3   : > { %2096 = vrot.lane.b32.xlu0 %v15159_v19, %s14607_s27 }
 0x1b4   : > { %1590 = vrot.lane.b32.xlu2 %v15208_v0, %s14605_s24  ;;  %v2846_v2 = vpop.permute.xlu1 %2845 }
 0x1b5   : > { %2945 = vst.msk [vmem:[#allocation3 + $0x24] sm:$0xf] %vm2935_vm11, %v2846_v2  ;;  %v2844_v5 = vpop.permute.xlu0 %2843 }
 0x1b6   : > { %v1332_v6 = vpop.permute.xlu2 %1331  ;;  %2944 = vst.msk [vmem:[#allocation3 + $0x20] sm:$0xf] %vm2935_vm11, %v2844_v5 }
 0x1ba   : > { %2602 = vrot.lane.b32.xlu1 %v2516_v7, %s14608_s25  ;;  %v1723_v7 = vld [vmem:[#allocation2 + $0x93] sm:$0xff] }
 0x1bb   : > { %2351 = vrot.lane.b32.xlu0 %v15218_v8, %s14606_s4  ;;  %v3193_v14 = vpop.f32.mrf.mxu0 }
 0x1bc   : > { %1845 = vrot.lane.b32.xlu2 %v1758_v9, %s14604_s2  ;;  %v1330_v13 = vpop.permute.xlu1 %1329  ;;  %v3194_v19 = vadd.f32 %v15223_v11, %v3193_v14  ;;  %v1759_v14 = vpack.c.bf16 %v1723_v7, %v1723_v7 }
 0x1bd   : > { %1428 = vst.msk [vmem:[#allocation3 + $0x28] sm:$0xf] %vm1417_vm3, %v1330_v13  ;;  %v1079_v18 = vpop.permute.xlu0 %1078  ;;  %v13260_v20 = vld [vmem:[#allocation3 + $0x20] sm:$0xff] }
 0x1be   : > { %v1836_v21 = vpop.permute.xlu2 %1835  ;;  %1176 = vst.msk [vmem:[#allocation3 + $0x2c] sm:$0xf] %vm1164_vm2, %v1079_v18  ;;  %v3280_v23 = vmax.f32 %v3194_v19, 0.0  ;;  %10610 = vmatmul.msk.bf16.gmra.mxu0 %vm3117_vm12, %v13260_v20 }
 0x1bf   : > { %1429 = vst.msk [vmem:[#allocation3 + $0x2c] sm:$0xf] %vm1417_vm3, %v1332_v6  ;;  %v2229_v6 = vld [vmem:[#allocation2 + $0xa4] sm:$0xff] }
 0x1c0   : > { %v3354_v28 = vrot.slane %v3280_v23, 1  ;;  %v15299_v13 = vpack.c.bf16 %v2229_v6, %v2229_v6 }
 0x1c2   : > { %2857 = vrot.lane.b32.xlu1 %v2770_v22, %s14609_s21  ;;  %v3355_v43 = vsel %vm3350_vm13, %v15237_v35, %v3354_v28 }
 0x1c3   : > { %2855 = vrot.lane.b32.xlu0 %v2769_v25, %s14609_s21  ;;  %v3195_v31 = vpop.f32.mrf.mxu0  ;;  %v15256_v45 = vmax.f32 %v3279_v27, %v3355_v43 }
 0x1c4   : > { %2349 = vrot.lane.b32.xlu2 %v2263_v26, %s14606_s4  ;;  %v1585_v30 = vpop.permute.xlu1 %1584  ;;  %v15241_v37 = vadd.f32 %v15223_v11, %v3195_v31 }
 0x1c5   : > { %1682 = vst.msk [vmem:[#allocation3 + $0x2c] sm:$0xf] %vm1670_vm4, %v1585_v30  ;;  %v1583_v36 = vpop.permute.xlu0 %1582  ;;  %v3634_v57 = vrot.slane %v15256_v45, 2  ;;  %v854_v30 = vld [vmem:[#allocation2 + $0x78] sm:$0xff] }
 0x1c6   : > { %v2091_v38 = vpop.permute.xlu2 %2090  ;;  %1681 = vst.msk [vmem:[#allocation3 + $0x28] sm:$0xf] %vm1670_vm4, %v1583_v36  ;;  %v3281_v41 = vmax.f32 %v15241_v37, 0.0  ;;  %v890_v59 = vpack.c.bf16 %v854_v30, %v854_v30 }
 0x1c7   : > { %1934 = vst.msk [vmem:[#allocation3 + $0x28] sm:$0xf] %vm1923_vm7, %v1836_v21 }
 0x1c8   : > { %v15251_v44 = vrot.slane %v3281_v41, 1  ;;  %927 = vst.msk [vmem:[#allocation3 + $0x3c] sm:$0xf] %vm911_vm1, %v890_v59 }
 0x1ca   : > { %1341 = vrot.lane.b32.xlu1 %v15208_v0, %s14602_s23  ;;  %v3357_v47 = vsel %vm3350_vm13, %v3354_v28, %v15251_v44  ;;  %v1724_v0 = vld [vmem:[#allocation2 + $0x9b] sm:$0xff] }
 0x1cb   : > { %1090 = vrot.lane.b32.xlu0 %v1001_v42, %s14603_s29  ;;  %v15262_v51 = vmax.f32 %v3280_v23, %v3357_v47  ;;  %v1760_v2 = vpack.c.bf16 %v1724_v0, %v1724_v0  ;;  %v2519_v23 = vpack.c.bf16 %v2483_v16, %v2483_v16  ;;  %v967_v28 = vld [vmem:[#allocation2 + $0x99] sm:$0xff]  ;;  %v2518_v47 = vpack.c.bf16 %v2482_v33, %v2482_v33 }
 0x1cc   : > { %2604 = vrot.lane.b32.xlu2 %v2517_v39, %s14608_s25  ;;  %v2089_v48 = vpop.permute.xlu1 %2088  ;;  %v1003_v39 = vpack.c.bf16 %v967_v28, %v967_v28  ;;  %v855_v33 = vld [vmem:[#allocation2 + $0x80] sm:$0xff] }
 0x1cd   : > { %2187 = vst.msk [vmem:[#allocation3 + $0x28] sm:$0xf] %vm2176_vm8, %v2089_v48  ;;  %v1838_v52 = vpop.permute.xlu0 %1837  ;;  %v3530_v55 = vrot.slane %v15262_v51, 2  ;;  %v891_v59 = vpack.c.bf16 %v855_v33, %v855_v33 }
 0x1ce   : > { %v2595_v53 = vpop.permute.xlu2 %2594  ;;  %1935 = vst.msk [vmem:[#allocation3 + $0x2c] sm:$0xf] %vm1923_vm7, %v1838_v52  ;;  %v1472_v52 = vld [vmem:[#allocation2 + $0xa2] sm:$0xff] }
 0x1cf   : > { %2188 = vst.msk [vmem:[#allocation3 + $0x2c] sm:$0xf] %vm2176_vm8, %v2091_v38  ;;  %v15278_v62 = vsel %vm3173_vm6, %v3634_v57, %v3530_v55 }
 0x1d0   : > { %928 = vst.msk [vmem:[#allocation3 + $0x40] sm:$0xf] %vm911_vm1, %v891_v59  ;;  %v10516_v59 = vld [vmem:[%s14890_s30 + $0xb0] sm:$0xff] }
 0x1d1   : > { %817 = vst.msk [vmem:[#allocation2 + $0xd9] sm:$0xff] %vm718_vm0, %v10516_v59 }
 0x1d2   : > { %1596 = vrot.lane.b32.xlu1 %v15266_v54, %s14605_s24 }
 0x1d3   : > { %1594 = vrot.lane.b32.xlu0 %v15271_v60, %s14605_s24 }
 0x1d4   : > { %1088 = vrot.lane.b32.xlu2 %v1000_v61, %s14603_s29  ;;  %v2344_v63 = vpop.permute.xlu1 %2343  ;;  %v2736_v61 = vld [vmem:[#allocation2 + $0xae] sm:$0xff] }
 0x1d5   : > { %2441 = vst.msk [vmem:[#allocation3 + $0x2c] sm:$0xf] %vm2429_vm9, %v2344_v63  ;;  %v2342_v58 = vpop.permute.xlu0 %2341  ;;  %v2772_v3 = vpack.c.bf16 %v2736_v61, %v2736_v61 }
 0x1d6   : > { %v2850_v1 = vpop.permute.xlu2 %2849  ;;  %2440 = vst.msk [vmem:[#allocation3 + $0x28] sm:$0xf] %vm2429_vm9, %v2342_v58  ;;  %v3353_v58 = vsel %vm3350_vm13, %v15343_v50, %v15237_v35 }
 0x1d7   : > { %2693 = vst.msk [vmem:[#allocation3 + $0x28] sm:$0xf] %vm2682_vm10, %v2595_v53 }
 0x1da   : > { %2100 = vrot.lane.b32.xlu1 %v2263_v26, %s14607_s27  ;;  %v10513_v26 = vld [vmem:[%s14890_s30 + $0x98] sm:$0xff] }
 0x1db   : > { %1849 = vrot.lane.b32.xlu0 %v1760_v2, %s14604_s2  ;;  %808 = vst.msk [vmem:[#allocation2 + $0xbd] sm:$0xff] %vm718_vm0, %v10513_v26 }
 0x1dc   : > { %1343 = vrot.lane.b32.xlu2 %v15197_v56, %s14602_s23  ;;  %v2848_v5 = vpop.permute.xlu1 %2847  ;;  %v2735_v56 = vld [vmem:[#allocation2 + $0xa6] sm:$0xff] }
 0x1dd   : > { %2946 = vst.msk [vmem:[#allocation3 + $0x28] sm:$0xf] %vm2935_vm11, %v2848_v5  ;;  %v2597_v9 = vpop.permute.xlu0 %2596  ;;  %v2771_v21 = vpack.c.bf16 %v2735_v56, %v2735_v56  ;;  %v15360_v5 = vmax.f32 %v3278_v46, %v3353_v58 }
 0x1de   : > { %v1334_v10 = vpop.permute.xlu2 %1333  ;;  %2694 = vst.msk [vmem:[#allocation3 + $0x2c] sm:$0xf] %vm2682_vm10, %v2597_v9  ;;  %v1726_v9 = vld [vmem:[#allocation2 + $0xab] sm:$0xff] }
 0x1df   : > { %2947 = vst.msk [vmem:[#allocation3 + $0x2c] sm:$0xf] %vm2935_vm11, %v2850_v1  ;;  %v15356_v1 = vpack.c.bf16 %v1472_v52, %v1472_v52  ;;  %v1762_v16 = vpack.c.bf16 %v1726_v9, %v1726_v9 }
 0x1e2   : > { %2355 = vrot.lane.b32.xlu1 %v15296_v12, %s14606_s4  ;;  %v2737_v58 = vld [vmem:[#allocation2 + $0xb6] sm:$0xff] }
 0x1e3   : > { %2353 = vrot.lane.b32.xlu0 %v15299_v13, %s14606_s4 }
 0x1e4   : > { %1847 = vrot.lane.b32.xlu2 %v1759_v14, %s14604_s2  ;;  %v1083_v15 = vpop.permute.xlu1 %1082  ;;  %v3198_v18 = vpop.f32.mrf.mxu0  ;;  %v1725_v14 = vld [vmem:[#allocation2 + $0xa3] sm:$0xff] }
 0x1e5   : > { %1178 = vst.msk [vmem:[#allocation3 + $0x34] sm:$0xf] %vm1164_vm2, %v1083_v15  ;;  %v1081_v17 = vpop.permute.xlu0 %1080  ;;  %v3199_v19 = vadd.f32 %v15223_v11, %v3198_v18  ;;  %v1761_v18 = vpack.c.bf16 %v1725_v14, %v1725_v14 }
 0x1e6   : > { %1177 = vst.msk [vmem:[#allocation3 + $0x30] sm:$0xf] %vm1164_vm2, %v1081_v17  ;;  %v13261_v20 = vld [vmem:[#allocation3 + $0x28] sm:$0xff]  ;;  %v1589_v22 = vpop.permute.xlu2 %1588 }
 0x1e7   : > { %1430 = vst.msk [vmem:[#allocation3 + $0x30] sm:$0xf] %vm1417_vm3, %v1334_v10  ;;  %v3282_v25 = vmax.f32 %v3199_v19, 0.0  ;;  %10611 = vmatmul.msk.bf16.gmra.mxu0 %vm3117_vm12, %v13261_v20  ;;  %v1473_v20 = vld [vmem:[#allocation2 + $0xaa] sm:$0xff] }
 0x1e9   : > { %v3358_v27 = vrot.slane %v3282_v25, 1 }
 0x1ea   : > { %2859 = vrot.lane.b32.xlu1 %v2771_v21, %s14609_s21 }
 0x1eb   : > { %2608 = vrot.lane.b32.xlu0 %v2519_v23, %s14608_s25  ;;  %v3359_v36 = vsel %vm3350_vm13, %v15251_v44, %v3358_v27  ;;  %v1002_v44 = vpack.c.bf16 %v966_v32, %v966_v32  ;;  %v10515_v32 = vld [vmem:[%s14890_s30 + $0xa8] sm:$0xff] }
 0x1ec   : > { %2102 = vrot.lane.b32.xlu2 %v15218_v8, %s14607_s27  ;;  %v1587_v31 = vpop.permute.xlu1 %1586  ;;  %v3200_v40 = vpop.f32.mrf.mxu0  ;;  %v15324_v42 = vmax.f32 %v3281_v41, %v3359_v36  ;;  %813 = vst.msk [vmem:[#allocation2 + $0xcf] sm:$0xff] %vm718_vm0, %v10515_v32 }
 0x1ed   : > { %1683 = vst.msk [vmem:[#allocation3 + $0x30] sm:$0xf] %vm1670_vm4, %v1587_v31  ;;  %v1336_v38 = vpop.permute.xlu0 %1335  ;;  %v15328_v8 = vadd.f32 %v15223_v11, %v3200_v40  ;;  %v10514_v31 = vld [vmem:[%s14890_s30 + $0xa0] sm:$0xff] }
 0x1ee   : > { %1431 = vst.msk [vmem:[#allocation3 + $0x34] sm:$0xf] %vm1417_vm3, %v1336_v38  ;;  %v2093_v43 = vpop.permute.xlu2 %2092  ;;  %v3531_v48 = vrot.slane %v15324_v42, 2  ;;  %v2738_v38 = vld [vmem:[#allocation2 + $0xbe] sm:$0xff] }
 0x1ef   : > { %1684 = vst.msk [vmem:[#allocation3 + $0x34] sm:$0xf] %vm1670_vm4, %v1589_v22  ;;  %v3283_v49 = vmax.f32 %v15328_v8, 0.0  ;;  %v2232_v40 = vld [vmem:[#allocation2 + $0xbc] sm:$0xff] }
 0x1f0   : > { %v3532_v37 = vsel %vm3173_vm6, %v3530_v55, %v3531_v48  ;;  %812 = vst.msk [vmem:[#allocation2 + $0xc7] sm:$0xff] %vm718_vm0, %v10514_v31 }
 0x1f1   : > { %v15340_v41 = vrot.slane %v3283_v49, 1  ;;  %v3641_v35 = vmax.f32 %v15360_v5, %v3532_v37  ;;  %v2268_v37 = vpack.c.bf16 %v2232_v40, %v2232_v40 }
 0x1f2   : > { %1094 = vrot.lane.b32.xlu1 %v1003_v39, %s14603_s29 }
 0x1f3   : > { %1092 = vrot.lane.b32.xlu0 %v1002_v44, %s14603_s29  ;;  %v3361_v63 = vsel %vm3350_vm13, %v3358_v27, %v15340_v41  ;;  %v2484_v27 = vld [vmem:[#allocation2 + $0xb5] sm:$0xff] }
 0x1f4   : > { %2606 = vrot.lane.b32.xlu2 %v2518_v47, %s14608_s25  ;;  %v1842_v53 = vpop.permute.xlu1 %1841  ;;  %v15350_v0 = vmax.f32 %v3282_v25, %v3361_v63  ;;  %v15386_v25 = vpack.c.bf16 %v1473_v20, %v1473_v20  ;;  %v2520_v30 = vpack.c.bf16 %v2484_v27, %v2484_v27 }
 0x1f5   : > { %1937 = vst.msk [vmem:[#allocation3 + $0x34] sm:$0xf] %vm1923_vm7, %v1842_v53  ;;  %v1840_v55 = vpop.permute.xlu0 %1839  ;;  %v856_v53 = vld [vmem:[#allocation2 + $0x88] sm:$0xff] }
 0x1f6   : > { %1936 = vst.msk [vmem:[#allocation3 + $0x30] sm:$0xf] %vm1923_vm7, %v1840_v55  ;;  %v2348_v2 = vpop.permute.xlu2 %2347  ;;  %v3533_v4 = vrot.slane %v15350_v0, 2 }
 0x1f7   : > { %2189 = vst.msk [vmem:[#allocation3 + $0x30] sm:$0xf] %vm2176_vm8, %v2093_v43  ;;  %v2234_v32 = vld [vmem:[#allocation2 + $0xcc] sm:$0xff] }
 0x1f8   : > { %v3534_v6 = vsel %vm3173_vm6, %v3531_v48, %v3533_v4  ;;  %v1730_v59 = vld [vmem:[#allocation2 + $0xcb] sm:$0xff] }
 0x1f9   : > { %v3642_v7 = vmax.f32 %v15256_v45, %v3534_v6 }
 0x1fa   : > { %1598 = vrot.lane.b32.xlu1 %v15356_v1, %s14605_s24 }
 0x1fb   : > { %1347 = vrot.lane.b32.xlu0 %v15266_v54, %s14602_s23  ;;  %v15372_v56 = vpack.c.bf16 %v3642_v7, %v3641_v35  ;;  %v2231_v54 = vld [vmem:[#allocation2 + $0xb4] sm:$0xff] }
 0x1fc   : > { %2861 = vrot.lane.b32.xlu2 %v2772_v3, %s14609_s21  ;;  %v2346_v10 = vpop.permute.xlu1 %2345  ;;  %v15383_v22 = vpack.c.bf16 %v2231_v54, %v2231_v54 }
 0x1fd   : > { %2442 = vst.msk [vmem:[#allocation3 + $0x30] sm:$0xf] %vm2429_vm9, %v2346_v10  ;;  %v2095_v15 = vpop.permute.xlu0 %2094  ;;  %v2773_v10 = vpack.c.bf16 %v2737_v58, %v2737_v58 }
 0x1fe   : > { %2190 = vst.msk [vmem:[#allocation3 + $0x34] sm:$0xf] %vm2176_vm8, %v2095_v15  ;;  %v2852_v17 = vpop.permute.xlu2 %2851  ;;  %v1727_v15 = vld [vmem:[#allocation2 + $0xb3] sm:$0xff] }
 0x1ff   : > { %2443 = vst.msk [vmem:[#allocation3 + $0x34] sm:$0xf] %vm2429_vm9, %v2348_v2  ;;  %v892_v2 = vpack.c.bf16 %v856_v53, %v856_v53 }
 0x201   : > { %929 = vst.msk [vmem:[#allocation3 + $0x44] sm:$0xf] %vm911_vm1, %v892_v2  ;;  %v857_v2 = vld [vmem:[#allocation2 + $0x90] sm:$0xff] }
 0x202   : > { %1853 = vrot.lane.b32.xlu1 %v1762_v16, %s14604_s2 }
 0x203   : > { %1851 = vrot.lane.b32.xlu0 %v1761_v18, %s14604_s2  ;;  %v969_v18 = vld [vmem:[#allocation2 + $0xa9] sm:$0xff] }
 0x204   : > { %1345 = vrot.lane.b32.xlu2 %v15271_v60, %s14602_s23  ;;  %v2601_v19 = vpop.permute.xlu1 %2600  ;;  %v2485_v60 = vld [vmem:[#allocation2 + $0xbd] sm:$0xff] }
 0x205   : > { %2696 = vst.msk [vmem:[#allocation3 + $0x34] sm:$0xf] %vm2682_vm10, %v2601_v19  ;;  %v2599_v21 = vpop.permute.xlu0 %2598  ;;  %v2521_v28 = vpack.c.bf16 %v2485_v60, %v2485_v60  ;;  %v1763_v19 = vpack.c.bf16 %v1727_v15, %v1727_v15 }
 0x206   : > { %2695 = vst.msk [vmem:[#allocation3 + $0x30] sm:$0xf] %vm2682_vm10, %v2599_v21  ;;  %v1087_v23 = vpop.permute.xlu2 %1086 }
 0x207   : > { %2948 = vst.msk [vmem:[#allocation3 + $0x30] sm:$0xf] %vm2935_vm11, %v2852_v17 }
 0x208   : > { %1180 = vst.msk [vmem:[#allocation3 + $0x3c] sm:$0xf] %vm1164_vm2, %v1087_v23  ;;  %v1005_v23 = vpack.c.bf16 %v969_v18, %v969_v18  ;;  %v893_v18 = vpack.c.bf16 %v857_v2, %v857_v2 }
 0x20a   : > { %2357 = vrot.lane.b32.xlu1 %v15383_v22, %s14606_s4  ;;  %930 = vst.msk [vmem:[#allocation3 + $0x48] sm:$0xf] %vm911_vm1, %v893_v18  ;;  %v973_v18 = vld [vmem:[#allocation2 + $0xc9] sm:$0xff] }
 0x20b   : > { %2106 = vrot.lane.b32.xlu0 %v15296_v12, %s14607_s27  ;;  %v968_v12 = vld [vmem:[#allocation2 + $0xa1] sm:$0xff] }
 0x20c   : > { %1600 = vrot.lane.b32.xlu2 %v15386_v25, %s14605_s24  ;;  %v1085_v26 = vpop.permute.xlu1 %1084  ;;  %v1004_v44 = vpack.c.bf16 %v968_v12, %v968_v12  ;;  %v1728_v12 = vld [vmem:[#allocation2 + $0xbb] sm:$0xff] }
 0x20d   : > { %1179 = vst.msk [vmem:[#allocation3 + $0x38] sm:$0xf] %vm1164_vm2, %v1085_v26  ;;  %v2854_v24 = vpop.permute.xlu0 %2853  ;;  %v1764_v40 = vpack.c.bf16 %v1728_v12, %v1728_v12 }
 0x20e   : > { %2949 = vst.msk [vmem:[#allocation3 + $0x34] sm:$0xf] %vm2935_vm11, %v2854_v24  ;;  %v1591_v29 = vpop.permute.xlu2 %1590  ;;  %v1474_v24 = vld [vmem:[#allocation2 + $0xb2] sm:$0xff] }
 0x212   : > { %2612 = vrot.lane.b32.xlu1 %v2521_v28, %s14608_s25 }
 0x213   : > { %2610 = vrot.lane.b32.xlu0 %v2520_v30, %s14608_s25  ;;  %v3203_v36 = vpop.f32.mrf.mxu0  ;;  %v2486_v30 = vld [vmem:[#allocation2 + $0xc5] sm:$0xff] }
 0x214   : > { %2104 = vrot.lane.b32.xlu2 %v15299_v13, %s14607_s27  ;;  %v1340_v34 = vpop.permute.xlu1 %1339  ;;  %v3204_v43 = vadd.f32 %v15223_v11, %v3203_v36  ;;  %v2774_v13 = vpack.c.bf16 %v2738_v38, %v2738_v38  ;;  %v15475_v38 = vpack.c.bf16 %v2234_v32, %v2234_v32 }
 0x215   : > { %1433 = vst.msk [vmem:[#allocation3 + $0x3c] sm:$0xf] %vm1417_vm3, %v1340_v34  ;;  %v1338_v39 = vpop.permute.xlu0 %1337  ;;  %v13262_v46 = vld [vmem:[#allocation3 + $0x30] sm:$0xff]  ;;  %v2522_v34 = vpack.c.bf16 %v2486_v30, %v2486_v30 }
 0x216   : > { %1432 = vst.msk [vmem:[#allocation3 + $0x38] sm:$0xf] %vm1417_vm3, %v1338_v39  ;;  %v1846_v47 = vpop.permute.xlu2 %1845  ;;  %v3284_v48 = vmax.f32 %v3204_v43, 0.0  ;;  %10612 = vmatmul.msk.bf16.gmra.mxu0 %vm3117_vm12, %v13262_v46  ;;  %v10517_v39 = vld [vmem:[%s14890_s30 + $0xb8] sm:$0xff] }
 0x217   : > { %1685 = vst.msk [vmem:[#allocation3 + $0x38] sm:$0xf] %vm1670_vm4, %v1591_v29 }
 0x218   : > { %v3362_v52 = vrot.slane %v3284_v48, 1  ;;  %818 = vst.msk [vmem:[#allocation2 + $0xe1] sm:$0xff] %vm718_vm0, %v10517_v39 }
 0x21a   : > { %1096 = vrot.lane.b32.xlu1 %v1004_v44, %s14603_s29  ;;  %v3363_v61 = vsel %vm3350_vm13, %v15340_v41, %v3362_v52  ;;  %v2739_v44 = vld [vmem:[#allocation2 + $0xc6] sm:$0xff] }
 0x21b   : > { %2865 = vrot.lane.b32.xlu0 %v2774_v13, %s14609_s21  ;;  %v3205_v55 = vpop.f32.mrf.mxu0  ;;  %v15418_v3 = vmax.f32 %v3283_v49, %v3363_v61 }
 0x21c   : > { %2359 = vrot.lane.b32.xlu2 %v2268_v37, %s14606_s4  ;;  %v1844_v63 = vpop.permute.xlu1 %1843  ;;  %v15422_v35 = vadd.f32 %v15223_v11, %v3205_v55 }
 0x21d   : > { %1938 = vst.msk [vmem:[#allocation3 + $0x38] sm:$0xf] %vm1923_vm7, %v1844_v63  ;;  %v1593_v6 = vpop.permute.xlu0 %1592  ;;  %v3535_v9 = vrot.slane %v15418_v3, 2  ;;  %v2775_v63 = vpack.c.bf16 %v2739_v44, %v2739_v44  ;;  %v2235_v44 = vld [vmem:[#allocation2 + $0xd4] sm:$0xff] }
 0x21e   : > { %1686 = vst.msk [vmem:[#allocation3 + $0x3c] sm:$0xf] %vm1670_vm4, %v1593_v6  ;;  %v2350_v7 = vpop.permute.xlu2 %2349  ;;  %v3285_v41 = vmax.f32 %v15422_v35, 0.0  ;;  %v858_v6 = vld [vmem:[#allocation2 + $0x98] sm:$0xff] }
 0x21f   : > { %1939 = vst.msk [vmem:[#allocation3 + $0x3c] sm:$0xf] %vm1923_vm7, %v1846_v47  ;;  %v3536_v8 = vsel %vm3173_vm6, %v3533_v4, %v3535_v9  ;;  %v1475_v4 = vld [vmem:[#allocation2 + $0xba] sm:$0xff]  ;;  %v2233_v47 = vld [vmem:[#allocation2 + $0xc4] sm:$0xff]  ;;  %v894_v15 = vpack.c.bf16 %v858_v6, %v858_v6 }
 0x220   : > { %v15434_v49 = vrot.slane %v3285_v41, 1  ;;  %v3643_v14 = vmax.f32 %v15262_v51, %v3536_v8  ;;  %v15450_v21 = vpack.c.bf16 %v1475_v4, %v1475_v4  ;;  %v2269_v55 = vpack.c.bf16 %v2233_v47, %v2233_v47  ;;  %v971_v8 = vld [vmem:[#allocation2 + $0xb9] sm:$0xff]  ;;  %v1729_v47 = vld [vmem:[#allocation2 + $0xc3] sm:$0xff] }
 0x221   : > { %931 = vst.msk [vmem:[#allocation3 + $0x4c] sm:$0xf] %vm911_vm1, %v894_v15  ;;  %v10519_v15 = vld [vmem:[%s14890_s30 + $0xc8] sm:$0xff] }
 0x222   : > { %1351 = vrot.lane.b32.xlu1 %v15386_v25, %s14602_s23  ;;  %v3365_v16 = vsel %vm3350_vm13, %v3362_v52, %v15434_v49  ;;  %823 = vst.msk [vmem:[#allocation2 + $0xf3] sm:$0xff] %vm718_vm0, %v10519_v15 }
 0x223   : > { %1349 = vrot.lane.b32.xlu0 %v15356_v1, %s14602_s23  ;;  %v15444_v54 = vmax.f32 %v3284_v48, %v3365_v16 }
 0x224   : > { %2863 = vrot.lane.b32.xlu2 %v2773_v10, %s14609_s21  ;;  %v2099_v17 = vpop.permute.xlu1 %2098 }
 0x225   : > { %2192 = vst.msk [vmem:[#allocation3 + $0x3c] sm:$0xf] %vm2176_vm8, %v2099_v17  ;;  %v2097_v51 = vpop.permute.xlu0 %2096  ;;  %v3537_v1 = vrot.slane %v15444_v54, 2 }
 0x226   : > { %2191 = vst.msk [vmem:[#allocation3 + $0x38] sm:$0xf] %vm2176_vm8, %v2097_v51  ;;  %v2605_v20 = vpop.permute.xlu2 %2604 }
 0x227   : > { %2444 = vst.msk [vmem:[#allocation3 + $0x38] sm:$0xf] %vm2429_vm9, %v2350_v7  ;;  %v3538_v25 = vsel %vm3173_vm6, %v3535_v9, %v3537_v1 }
 0x228   : > { %v3644_v60 = vmax.f32 %v15324_v42, %v3538_v25  ;;  %v15465_v42 = vpack.c.bf16 %v1474_v24, %v1474_v24  ;;  %v1476_v24 = vld [vmem:[#allocation2 + $0xc2] sm:$0xff] }
 0x229   : > { %v15531_v32 = vpack.c.bf16 %v1476_v24, %v1476_v24 }
 0x22a   : > { %1855 = vrot.lane.b32.xlu1 %v1763_v19, %s14604_s2  ;;  %v15460_v26 = vpack.c.bf16 %v3644_v60, %v3643_v14  ;;  %v2487_v14 = vld [vmem:[#allocation2 + $0xcd] sm:$0xff] }
 0x22b   : > { %1604 = vrot.lane.b32.xlu0 %v15450_v21, %s14605_s24  ;;  %v2523_v35 = vpack.c.bf16 %v2487_v14, %v2487_v14  ;;  %v1477_v60 = vld [vmem:[#allocation2 + $0xca] sm:$0xff] }
 0x22c   : > { %1098 = vrot.lane.b32.xlu2 %v1005_v23, %s14603_s29  ;;  %v2603_v27 = vpop.permute.xlu1 %2602 }
 0x22d   : > { %2697 = vst.msk [vmem:[#allocation3 + $0x38] sm:$0xf] %vm2682_vm10, %v2603_v27  ;;  %v2352_v28 = vpop.permute.xlu0 %2351 }
 0x22e   : > { %2445 = vst.msk [vmem:[#allocation3 + $0x3c] sm:$0xf] %vm2429_vm9, %v2352_v28  ;;  %v1089_v29 = vpop.permute.xlu2 %1088  ;;  %v970_v28 = vld [vmem:[#allocation2 + $0xb1] sm:$0xff] }
 0x22f   : > { %2698 = vst.msk [vmem:[#allocation3 + $0x3c] sm:$0xf] %vm2682_vm10, %v2605_v20  ;;  %v1007_v20 = vpack.c.bf16 %v971_v8, %v971_v8  ;;  %v1006_v12 = vpack.c.bf16 %v970_v28, %v970_v28 }
 0x230   : > { %1181 = vst.msk [vmem:[#allocation3 + $0x40] sm:$0xf] %vm1164_vm2, %v1089_v29 }
 0x232   : > { %2110 = vrot.lane.b32.xlu1 %v2268_v37, %s14607_s27 }
 0x233   : > { %2108 = vrot.lane.b32.xlu0 %v15383_v22, %s14607_s27  ;;  %v2740_v22 = vld [vmem:[#allocation2 + $0xce] sm:$0xff] }
 0x234   : > { %1602 = vrot.lane.b32.xlu2 %v15465_v42, %s14605_s24  ;;  %v2858_v31 = vpop.permute.xlu1 %2857  ;;  %v2776_v52 = vpack.c.bf16 %v2740_v22, %v2740_v22 }
 0x235   : > { %2951 = vst.msk [vmem:[#allocation3 + $0x3c] sm:$0xf] %vm2935_vm11, %v2858_v31  ;;  %v2856_v33 = vpop.permute.xlu0 %2855 }
 0x236   : > { %2950 = vst.msk [vmem:[#allocation3 + $0x38] sm:$0xf] %vm2935_vm11, %v2856_v33  ;;  %v1344_v36 = vpop.permute.xlu2 %1343 }
 0x23a   : > { %2614 = vrot.lane.b32.xlu1 %v2522_v34, %s14608_s25 }
 0x23b   : > { %2363 = vrot.lane.b32.xlu0 %v15475_v38, %s14606_s4  ;;  %v3208_v46 = vpop.f32.mrf.mxu0 }
 0x23c   : > { %1857 = vrot.lane.b32.xlu2 %v1764_v40, %s14604_s2  ;;  %v1342_v43 = vpop.permute.xlu1 %1341  ;;  %v3209_v13 = vadd.f32 %v15223_v11, %v3208_v46 }
 0x23d   : > { %1434 = vst.msk [vmem:[#allocation3 + $0x40] sm:$0xf] %vm1417_vm3, %v1342_v43  ;;  %v1091_v48 = vpop.permute.xlu0 %1090  ;;  %v13263_v37 = vld [vmem:[#allocation3 + $0x38] sm:$0xff] }
 0x23e   : > { %1182 = vst.msk [vmem:[#allocation3 + $0x44] sm:$0xf] %vm1164_vm2, %v1091_v48  ;;  %v1848_v53 = vpop.permute.xlu2 %1847  ;;  %v3286_v61 = vmax.f32 %v3209_v13, 0.0  ;;  %10613 = vmatmul.msk.bf16.gmra.mxu0 %vm3117_vm12, %v13263_v37  ;;  %v2236_v43 = vld [vmem:[#allocation2 + $0xdc] sm:$0xff] }
 0x23f   : > { %1435 = vst.msk [vmem:[#allocation3 + $0x44] sm:$0xf] %vm1417_vm3, %v1344_v36  ;;  %v15553_v13 = vpack.c.bf16 %v2236_v43, %v2236_v43 }
 0x240   : > { %v3366_v58 = vrot.slane %v3286_v61, 1 }
 0x242   : > { %2869 = vrot.lane.b32.xlu1 %v2776_v52, %s14609_s21  ;;  %v3367_v7 = vsel %vm3350_vm13, %v15434_v49, %v3366_v58  ;;  %v15556_v52 = vpack.c.bf16 %v2235_v44, %v2235_v44 }
 0x243   : > { %2867 = vrot.lane.b32.xlu0 %v2775_v63, %s14609_s21  ;;  %v3210_v10 = vpop.f32.mrf.mxu0  ;;  %v15497_v16 = vmax.f32 %v3285_v41, %v3367_v7 }
 0x244   : > { %2361 = vrot.lane.b32.xlu2 %v2269_v55, %s14606_s4  ;;  %v1597_v9 = vpop.permute.xlu1 %1596  ;;  %v15501_v4 = vadd.f32 %v15223_v11, %v3210_v10 }
 0x245   : > { %1688 = vst.msk [vmem:[#allocation3 + $0x44] sm:$0xf] %vm1670_vm4, %v1597_v9  ;;  %v1595_v17 = vpop.permute.xlu0 %1594  ;;  %v3539_v49 = vrot.slane %v15497_v16, 2 }
 0x246   : > { %1687 = vst.msk [vmem:[#allocation3 + $0x40] sm:$0xf] %vm1670_vm4, %v1595_v17  ;;  %v2103_v51 = vpop.permute.xlu2 %2102  ;;  %v3287_v19 = vmax.f32 %v15501_v4, 0.0 }
 0x247   : > { %1940 = vst.msk [vmem:[#allocation3 + $0x40] sm:$0xf] %vm1923_vm7, %v1848_v53  ;;  %v3540_v41 = vsel %vm3173_vm6, %v3537_v1, %v3539_v49  ;;  %v1765_v53 = vpack.c.bf16 %v1729_v47, %v1729_v47 }
 0x248   : > { %v15513_v23 = vrot.slane %v3287_v19, 1  ;;  %v3645_v25 = vmax.f32 %v15350_v0, %v3540_v41  ;;  %v15527_v0 = vpack.c.bf16 %v1477_v60, %v1477_v60  ;;  %v2488_v41 = vld [vmem:[#allocation2 + $0xd5] sm:$0xff] }
 0x24a   : > { %1353 = vrot.lane.b32.xlu1 %v15465_v42, %s14602_s23  ;;  %v3369_v27 = vsel %vm3350_vm13, %v3366_v58, %v15513_v23 }
 0x24b   : > { %1102 = vrot.lane.b32.xlu0 %v1007_v20, %s14603_s29  ;;  %v15523_v29 = vmax.f32 %v3286_v61, %v3369_v27  ;;  %v10518_v61 = vld [vmem:[%s14890_s30 + $0xc0] sm:$0xff] }
 0x24c   : > { %2616 = vrot.lane.b32.xlu2 %v2523_v35, %s14608_s25  ;;  %v2101_v1 = vpop.permute.xlu1 %2100  ;;  %822 = vst.msk [vmem:[#allocation2 + $0xeb] sm:$0xff] %vm718_vm0, %v10518_v61  ;;  %v972_v35 = vld [vmem:[#allocation2 + $0xc1] sm:$0xff]  ;;  %v1731_v61 = vld [vmem:[#allocation2 + $0xd3] sm:$0xff] }
 0x24d   : > { %2193 = vst.msk [vmem:[#allocation3 + $0x40] sm:$0xf] %vm2176_vm8, %v2101_v1  ;;  %v1850_v30 = vpop.permute.xlu0 %1849  ;;  %v3541_v31 = vrot.slane %v15523_v29, 2 }
 0x24e   : > { %1941 = vst.msk [vmem:[#allocation3 + $0x44] sm:$0xf] %vm1923_vm7, %v1850_v30  ;;  %v2607_v42 = vpop.permute.xlu2 %2606  ;;  %v1009_v30 = vpack.c.bf16 %v973_v18, %v973_v18 }
 0x24f   : > { %2194 = vst.msk [vmem:[#allocation3 + $0x44] sm:$0xf] %vm2176_vm8, %v2103_v51  ;;  %v3542_v33 = vsel %vm3173_vm6, %v3539_v49, %v3541_v31  ;;  %v859_v51 = vld [vmem:[#allocation2 + $0xa0] sm:$0xff]  ;;  %v860_v49 = vld [vmem:[#allocation2 + $0xa8] sm:$0xff] }
 0x250   : > { %v3646_v34 = vmax.f32 %v15418_v3, %v3542_v33  ;;  %v1766_v3 = vpack.c.bf16 %v1730_v59, %v1730_v59  ;;  %v896_v24 = vpack.c.bf16 %v860_v49, %v860_v49 }
 0x252   : > { %1608 = vrot.lane.b32.xlu1 %v15527_v0, %s14605_s24  ;;  %v15542_v36 = vpack.c.bf16 %v3646_v34, %v3645_v25  ;;  %v895_v25 = vpack.c.bf16 %v859_v51, %v859_v51  ;;  %933 = vst.msk [vmem:[#allocation3 + $0x54] sm:$0xf] %vm911_vm1, %v896_v24 }
 0x253   : > { %1606 = vrot.lane.b32.xlu0 %v15531_v32, %s14605_s24  ;;  %v2490_v15 = vld [vmem:[#allocation2 + $0xe5] sm:$0xff] }
 0x254   : > { %1100 = vrot.lane.b32.xlu2 %v1006_v12, %s14603_s29  ;;  %v2356_v40 = vpop.permute.xlu1 %2355  ;;  %v1008_v12 = vpack.c.bf16 %v972_v35, %v972_v35  ;;  %932 = vst.msk [vmem:[#allocation3 + $0x50] sm:$0xf] %vm911_vm1, %v895_v25  ;;  %v2526_v49 = vpack.c.bf16 %v2490_v15, %v2490_v15  ;;  %v861_v35 = vld [vmem:[#allocation2 + $0xb0] sm:$0xff] }
 0x255   : > { %2447 = vst.msk [vmem:[#allocation3 + $0x44] sm:$0xf] %vm2429_vm9, %v2356_v40  ;;  %v2354_v39 = vpop.permute.xlu0 %2353  ;;  %v1478_v40 = vld [vmem:[#allocation2 + $0xd2] sm:$0xff] }
 0x256   : > { %2446 = vst.msk [vmem:[#allocation3 + $0x40] sm:$0xf] %vm2429_vm9, %v2354_v39  ;;  %v2862_v22 = vpop.permute.xlu2 %2861  ;;  %v2742_v39 = vld [vmem:[#allocation2 + $0xde] sm:$0xff]  ;;  %v15609_v43 = vpack.c.bf16 %v1478_v40, %v1478_v40 }
 0x257   : > { %2699 = vst.msk [vmem:[#allocation3 + $0x40] sm:$0xf] %vm2682_vm10, %v2607_v42  ;;  %v10521_v40 = vld [vmem:[%s14890_s30 + $0xd8] sm:$0xff] }
 0x258   : > { %828 = vst.msk [vmem:[#allocation2 + $0x105] sm:$0xff] %vm718_vm0, %v10521_v40 }
 0x25a   : > { %2112 = vrot.lane.b32.xlu1 %v2269_v55, %s14607_s27  ;;  %v2489_v55 = vld [vmem:[#allocation2 + $0xdd] sm:$0xff] }
 0x25b   : > { %1861 = vrot.lane.b32.xlu0 %v1766_v3, %s14604_s2  ;;  %v2525_v8 = vpack.c.bf16 %v2489_v55, %v2489_v55 }
 0x25c   : > { %1355 = vrot.lane.b32.xlu2 %v15450_v21, %s14602_s23  ;;  %v2860_v46 = vpop.permute.xlu1 %2859  ;;  %v2741_v21 = vld [vmem:[#allocation2 + $0xd6] sm:$0xff] }
 0x25d   : > { %2952 = vst.msk [vmem:[#allocation3 + $0x40] sm:$0xf] %vm2935_vm11, %v2860_v46  ;;  %v2609_v48 = vpop.permute.xlu0 %2608  ;;  %v2777_v9 = vpack.c.bf16 %v2741_v21, %v2741_v21  ;;  %v2778_v46 = vpack.c.bf16 %v2742_v39, %v2742_v39  ;;  %v862_v39 = vld [vmem:[#allocation2 + $0xb8] sm:$0xff] }
 0x25e   : > { %2700 = vst.msk [vmem:[#allocation3 + $0x44] sm:$0xf] %vm2682_vm10, %v2609_v48  ;;  %v1346_v37 = vpop.permute.xlu2 %1345 }
 0x25f   : > { %2953 = vst.msk [vmem:[#allocation3 + $0x44] sm:$0xf] %vm2935_vm11, %v2862_v22 }
 0x262   : > { %2367 = vrot.lane.b32.xlu1 %v15553_v13, %s14606_s4 }
 0x263   : > { %2365 = vrot.lane.b32.xlu0 %v15556_v52, %s14606_s4 }
 0x264   : > { %1859 = vrot.lane.b32.xlu2 %v1765_v53, %s14604_s2  ;;  %v1095_v63 = vpop.permute.xlu1 %1094  ;;  %v3213_v2 = vpop.f32.mrf.mxu0 }
 0x265   : > { %1184 = vst.msk [vmem:[#allocation3 + $0x4c] sm:$0xf] %vm1164_vm2, %v1095_v63  ;;  %v1093_v58 = vpop.permute.xlu0 %1092  ;;  %v3214_v6 = vadd.f32 %v15223_v11, %v3213_v2 }
 0x266   : > { %1183 = vst.msk [vmem:[#allocation3 + $0x48] sm:$0xf] %vm1164_vm2, %v1093_v58  ;;  %v13264_v7 = vld [vmem:[#allocation3 + $0x40] sm:$0xff]  ;;  %v1601_v10 = vpop.permute.xlu2 %1600 }
 0x267   : > { %1436 = vst.msk [vmem:[#allocation3 + $0x48] sm:$0xf] %vm1417_vm3, %v1346_v37  ;;  %v3288_v14 = vmax.f32 %v3214_v6, 0.0  ;;  %10614 = vmatmul.msk.bf16.gmra.mxu0 %vm3117_vm12, %v13264_v7  ;;  %v1732_v37 = vld [vmem:[#allocation2 + $0xdb] sm:$0xff] }
 0x268   : > { %v1768_v55 = vpack.c.bf16 %v1732_v37, %v1732_v37  ;;  %v1479_v6 = vld [vmem:[#allocation2 + $0xda] sm:$0xff] }
 0x269   : > { %v3370_v17 = vrot.slane %v3288_v14, 1 }
 0x26a   : > { %2871 = vrot.lane.b32.xlu1 %v2777_v9, %s14609_s21 }
 0x26b   : > { %2620 = vrot.lane.b32.xlu0 %v2525_v8, %s14608_s25  ;;  %v3371_v60 = vsel %vm3350_vm13, %v15513_v23, %v3370_v17  ;;  %v2524_v23 = vpack.c.bf16 %v2488_v41, %v2488_v41  ;;  %v15636_v8 = vpack.c.bf16 %v1479_v6, %v1479_v6  ;;  %v975_v6 = vld [vmem:[#allocation2 + $0xd9] sm:$0xff] }
 0x26c   : > { %2114 = vrot.lane.b32.xlu2 %v15475_v38, %s14607_s27  ;;  %v1599_v20 = vpop.permute.xlu1 %1598  ;;  %v3215_v1 = vpop.f32.mrf.mxu0  ;;  %v15581_v28 = vmax.f32 %v3287_v19, %v3371_v60  ;;  %v2744_v60 = vld [vmem:[#allocation2 + $0xee] sm:$0xff] }
 0x26d   : > { %1689 = vst.msk [vmem:[#allocation3 + $0x48] sm:$0xf] %vm1670_vm4, %v1599_v20  ;;  %v1348_v27 = vpop.permute.xlu0 %1347  ;;  %v15585_v38 = vadd.f32 %v15223_v11, %v3215_v1  ;;  %v10520_v20 = vld [vmem:[%s14890_s30 + $0xd0] sm:$0xff]  ;;  %v897_v1 = vpack.c.bf16 %v861_v35, %v861_v35 }
 0x26e   : > { %1437 = vst.msk [vmem:[#allocation3 + $0x4c] sm:$0xf] %vm1417_vm3, %v1348_v27  ;;  %v2105_v42 = vpop.permute.xlu2 %2104  ;;  %v3543_v33 = vrot.slane %v15581_v28, 2  ;;  %v2238_v27 = vld [vmem:[#allocation2 + $0xec] sm:$0xff]  ;;  %v2492_v35 = vld [vmem:[#allocation2 + $0xf5] sm:$0xff] }
 0x26f   : > { %1690 = vst.msk [vmem:[#allocation3 + $0x4c] sm:$0xf] %vm1670_vm4, %v1601_v10  ;;  %v3289_v34 = vmax.f32 %v15585_v38, 0.0 }
 0x270   : > { %v3544_v4 = vsel %vm3173_vm6, %v3541_v31, %v3543_v33  ;;  %827 = vst.msk [vmem:[#allocation2 + $0xfd] sm:$0xff] %vm718_vm0, %v10520_v20 }
 0x271   : > { %v15597_v11 = vrot.slane %v3289_v34, 1  ;;  %v3647_v19 = vmax.f32 %v15444_v54, %v3544_v4  ;;  %v2780_v4 = vpack.c.bf16 %v2744_v60, %v2744_v60  ;;  %934 = vst.msk [vmem:[#allocation3 + $0x58] sm:$0xf] %vm911_vm1, %v897_v1  ;;  %v1734_v60 = vld [vmem:[#allocation2 + $0xeb] sm:$0xff]  ;;  %v2528_v1 = vpack.c.bf16 %v2492_v35, %v2492_v35 }
 0x272   : > { %1106 = vrot.lane.b32.xlu1 %v1009_v30, %s14603_s29  ;;  %v15654_v30 = vld [vmem:[#allocation14] ss:$0 sm:$0xff] }
 0x273   : > { %1104 = vrot.lane.b32.xlu0 %v1008_v12, %s14603_s29  ;;  %v3373_v22 = vsel %vm3350_vm13, %v3370_v17, %v15597_v11 }
 0x274   : > { %2618 = vrot.lane.b32.xlu2 %v2524_v23, %s14608_s25  ;;  %v1854_v59 = vpop.permute.xlu1 %1853  ;;  %v15606_v3 = vmax.f32 %v3288_v14, %v3373_v22 }
 0x275   : > { %1943 = vst.msk [vmem:[#allocation3 + $0x4c] sm:$0xf] %vm1923_vm7, %v1854_v59  ;;  %v1852_v31 = vpop.permute.xlu0 %1851 }
 0x276   : > { %1942 = vst.msk [vmem:[#allocation3 + $0x48] sm:$0xf] %vm1923_vm7, %v1852_v31  ;;  %v2360_v54 = vpop.permute.xlu2 %2359  ;;  %v3545_v44 = vrot.slane %v15606_v3, 2 }
 0x277   : > { %2195 = vst.msk [vmem:[#allocation3 + $0x48] sm:$0xf] %vm2176_vm8, %v2105_v42 }
 0x278   : > { %v3546_v47 = vsel %vm3173_vm6, %v3543_v33, %v3545_v44 }
 0x279   : > { %v3648_v48 = vmax.f32 %v15497_v16, %v3546_v47  ;;  %v1767_v16 = vpack.c.bf16 %v1731_v61, %v1731_v61  ;;  %v898_v47 = vpack.c.bf16 %v862_v39, %v862_v39 }
 0x27a   : > { %1610 = vrot.lane.b32.xlu1 %v15609_v43, %s14605_s24 }
 0x27b   : > { %1359 = vrot.lane.b32.xlu0 %v15527_v0, %s14602_s23  ;;  %v15622_v21 = vpack.c.bf16 %v3648_v48, %v3647_v19  ;;  %v2237_v0 = vld [vmem:[#allocation2 + $0xe4] sm:$0xff]  ;;  %v2274_v19 = vpack.c.bf16 %v2238_v27, %v2238_v27  ;;  %935 = vst.msk [vmem:[#allocation3 + $0x5c] sm:$0xf] %vm911_vm1, %v898_v47 }
 0x27c   : > { %2873 = vrot.lane.b32.xlu2 %v2778_v46, %s14609_s21  ;;  %v2358_v53 = vpop.permute.xlu1 %2357  ;;  %v15633_v9 = vpack.c.bf16 %v2237_v0, %v2237_v0  ;;  %v2743_v46 = vld [vmem:[#allocation2 + $0xe6] sm:$0xff] }
 0x27d   : > { %2448 = vst.msk [vmem:[#allocation3 + $0x48] sm:$0xf] %vm2429_vm9, %v2358_v53  ;;  %v2107_v63 = vpop.permute.xlu0 %2106 }
 0x27e   : > { %2196 = vst.msk [vmem:[#allocation3 + $0x4c] sm:$0xf] %vm2176_vm8, %v2107_v63  ;;  %v2864_v58 = vpop.permute.xlu2 %2863 }
 0x27f   : > { %2449 = vst.msk [vmem:[#allocation3 + $0x4c] sm:$0xf] %vm2429_vm9, %v2360_v54 }
 0x282   : > { %1865 = vrot.lane.b32.xlu1 %v1768_v55, %s14604_s2  ;;  %v2779_v55 = vpack.c.bf16 %v2743_v46, %v2743_v46  ;;  %v864_v46 = vld [vmem:[#allocation2 + $0xc8] sm:$0xff] }
 0x283   : > { %1863 = vrot.lane.b32.xlu0 %v1767_v16, %s14604_s2  ;;  %v1733_v16 = vld [vmem:[#allocation2 + $0xe3] sm:$0xff] }
 0x284   : > { %1357 = vrot.lane.b32.xlu2 %v15531_v32, %s14602_s23  ;;  %v2613_v2 = vpop.permute.xlu1 %2612  ;;  %v2491_v32 = vld [vmem:[#allocation2 + $0xed] sm:$0xff] }
 0x285   : > { %2702 = vst.msk [vmem:[#allocation3 + $0x4c] sm:$0xf] %vm2682_vm10, %v2613_v2  ;;  %v2611_v7 = vpop.permute.xlu0 %2610  ;;  %v2527_v18 = vpack.c.bf16 %v2491_v32, %v2491_v32 }
 0x286   : > { %2701 = vst.msk [vmem:[#allocation3 + $0x48] sm:$0xf] %vm2682_vm10, %v2611_v7  ;;  %v1099_v10 = vpop.permute.xlu2 %1098 }
 0x287   : > { %2954 = vst.msk [vmem:[#allocation3 + $0x48] sm:$0xf] %vm2935_vm11, %v2864_v58 }
 0x288   : > { %1186 = vst.msk [vmem:[#allocation3 + $0x54] sm:$0xf] %vm1164_vm2, %v1099_v10  ;;  %v1769_v10 = vpack.c.bf16 %v1733_v16, %v1733_v16 }
 0x28a   : > { %2369 = vrot.lane.b32.xlu1 %v15633_v9, %s14606_s4 }
 0x28b   : > { %2118 = vrot.lane.b32.xlu0 %v15553_v13, %s14607_s27  ;;  %v974_v13 = vld [vmem:[#allocation2 + $0xd1] sm:$0xff] }
 0x28c   : > { %1612 = vrot.lane.b32.xlu2 %v15636_v8, %s14605_s24  ;;  %v1097_v14 = vpop.permute.xlu1 %1096  ;;  %v1010_v23 = vpack.c.bf16 %v974_v13, %v974_v13 }
 0x28d   : > { %1185 = vst.msk [vmem:[#allocation3 + $0x50] sm:$0xf] %vm1164_vm2, %v1097_v14  ;;  %v2866_v17 = vpop.permute.xlu0 %2865  ;;  %v1011_v14 = vpack.c.bf16 %v975_v6, %v975_v6  ;;  %v1482_v6 = vld [vmem:[#allocation2 + $0xf2] sm:$0xff] }
 0x28e   : > { %2955 = vst.msk [vmem:[#allocation3 + $0x4c] sm:$0xf] %vm2935_vm11, %v2866_v17  ;;  %v1603_v51 = vpop.permute.xlu2 %1602 }
 0x292   : > { %2624 = vrot.lane.b32.xlu1 %v2527_v18, %s14608_s25 }
 0x293   : > { %2622 = vrot.lane.b32.xlu0 %v2526_v49, %s14608_s25  ;;  %v3218_v25 = vpop.f32.mrf.mxu0  ;;  %v1480_v49 = vld [vmem:[#allocation2 + $0xe2] sm:$0xff] }
 0x294   : > { %2116 = vrot.lane.b32.xlu2 %v15556_v52, %s14607_s27  ;;  %v1352_v41 = vpop.permute.xlu1 %1351  ;;  %v3219_v42 = vadd.f32 %v15654_v30, %v3218_v25  ;;  %v2240_v25 = vld [vmem:[#allocation2 + $0xfc] sm:$0xff] }
 0x295   : > { %1439 = vst.msk [vmem:[#allocation3 + $0x54] sm:$0xf] %vm1417_vm3, %v1352_v41  ;;  %v1350_v24 = vpop.permute.xlu0 %1349  ;;  %v13265_v12 = vld [vmem:[#allocation3 + $0x48] sm:$0xff] }
 0x296   : > { %1438 = vst.msk [vmem:[#allocation3 + $0x50] sm:$0xf] %vm1417_vm3, %v1350_v24  ;;  %v1858_v33 = vpop.permute.xlu2 %1857  ;;  %v3290_v52 = vmax.f32 %v3219_v42, 0.0  ;;  %10615 = vmatmul.msk.bf16.gmra.mxu0 %vm3117_vm12, %v13265_v12  ;;  %v15724_v42 = vpack.c.bf16 %v2240_v25, %v2240_v25  ;;  %v1770_v12 = vpack.c.bf16 %v1734_v60, %v1734_v60  ;;  %v2241_v25 = vld [vmem:[#allocation2 + $0x104] sm:$0xff]  ;;  %v1735_v60 = vld [vmem:[#allocation2 + $0xf3] sm:$0xff] }
 0x297   : > { %1691 = vst.msk [vmem:[#allocation3 + $0x50] sm:$0xf] %vm1670_vm4, %v1603_v51 }
 0x298   : > { %v3374_v59 = vrot.slane %v3290_v52, 1 }
 0x29a   : > { %1108 = vrot.lane.b32.xlu1 %v1010_v23, %s14603_s29  ;;  %v3375_v22 = vsel %vm3350_vm13, %v15597_v11, %v3374_v59  ;;  %v10522_v23 = vld [vmem:[%s14890_s30 + $0xe0] sm:$0xff] }
 0x29b   : > { %2877 = vrot.lane.b32.xlu0 %v2780_v4, %s14609_s21  ;;  %v3220_v54 = vpop.f32.mrf.mxu0  ;;  %v15670_v48 = vmax.f32 %v3289_v34, %v3375_v22  ;;  %832 = vst.msk [vmem:[#allocation2 + $0x10f] sm:$0xff] %vm718_vm0, %v10522_v23  ;;  %v2239_v4 = vld [vmem:[#allocation2 + $0xf4] sm:$0xff]  ;;  %v1771_v23 = vpack.c.bf16 %v1735_v60, %v1735_v60 }
 0x29c   : > { %2371 = vrot.lane.b32.xlu2 %v2274_v19, %s14606_s4  ;;  %v1856_v31 = vpop.permute.xlu1 %1855  ;;  %v15674_v53 = vadd.f32 %v15654_v30, %v3220_v54  ;;  %v863_v54 = vld [vmem:[#allocation2 + $0xc0] sm:$0xff] }
 0x29d   : > { %1944 = vst.msk [vmem:[#allocation3 + $0x50] sm:$0xf] %vm1923_vm7, %v1856_v31  ;;  %v1605_v37 = vpop.permute.xlu0 %1604  ;;  %v3547_v63 = vrot.slane %v15670_v48, 2  ;;  %v2275_v31 = vpack.c.bf16 %v2239_v4, %v2239_v4 }
 0x29e   : > { %1692 = vst.msk [vmem:[#allocation3 + $0x54] sm:$0xf] %vm1670_vm4, %v1605_v37  ;;  %v2362_v61 = vpop.permute.xlu2 %2361  ;;  %v3291_v11 = vmax.f32 %v15674_v53, 0.0  ;;  %v977_v37 = vld [vmem:[#allocation2 + $0xe9] sm:$0xff] }
 0x29f   : > { %1945 = vst.msk [vmem:[#allocation3 + $0x54] sm:$0xf] %vm1923_vm7, %v1858_v33  ;;  %v3548_v38 = vsel %vm3173_vm6, %v3545_v44, %v3547_v63  ;;  %v1481_v44 = vld [vmem:[#allocation2 + $0xea] sm:$0xff]  ;;  %v1013_v16 = vpack.c.bf16 %v977_v37, %v977_v37 }
 0x2a0   : > { %v15686_v34 = vrot.slane %v3291_v11, 1  ;;  %v3649_v58 = vmax.f32 %v15523_v29, %v3548_v38  ;;  %v15702_v32 = vpack.c.bf16 %v1481_v44, %v1481_v44  ;;  %v899_v38 = vpack.c.bf16 %v863_v54, %v863_v54  ;;  %v865_v54 = vld [vmem:[#allocation2 + $0xd0] sm:$0xff] }
 0x2a1   : > { %v978_v37 = vld [vmem:[#allocation2 + $0xf1] sm:$0xff] }
 0x2a2   : > { %1363 = vrot.lane.b32.xlu1 %v15636_v8, %s14602_s23  ;;  %v3377_v0 = vsel %vm3350_vm13, %v3374_v59, %v15686_v34  ;;  %936 = vst.msk [vmem:[#allocation3 + $0x60] sm:$0xf] %vm911_vm1, %v899_v38  ;;  %v2242_v35 = vld [vmem:[#allocation2 + $0x10c] sm:$0xff] }
 0x2a3   : > { %1361 = vrot.lane.b32.xlu0 %v15609_v43, %s14602_s23  ;;  %v15696_v7 = vmax.f32 %v3290_v52, %v3377_v0  ;;  %v2745_v52 = vld [vmem:[#allocation2 + $0xf6] sm:$0xff] }
 0x2a4   : > { %2875 = vrot.lane.b32.xlu2 %v2779_v55, %s14609_s21  ;;  %v2111_v2 = vpop.permute.xlu1 %2110  ;;  %v2781_v22 = vpack.c.bf16 %v2745_v52, %v2745_v52  ;;  %v2495_v52 = vld [vmem:[#allocation2 + $0x10d] sm:$0xff] }
 0x2a5   : > { %2198 = vst.msk [vmem:[#allocation3 + $0x54] sm:$0xf] %vm2176_vm8, %v2111_v2  ;;  %v2109_v29 = vpop.permute.xlu0 %2108  ;;  %v3549_v43 = vrot.slane %v15696_v7, 2  ;;  %v1483_v2 = vld [vmem:[#allocation2 + $0xfa] sm:$0xff] }
 0x2a6   : > { %2197 = vst.msk [vmem:[#allocation3 + $0x50] sm:$0xf] %vm2176_vm8, %v2109_v29  ;;  %v2617_v8 = vpop.permute.xlu2 %2616  ;;  %v976_v29 = vld [vmem:[#allocation2 + $0xe1] sm:$0xff] }
 0x2a7   : > { %2450 = vst.msk [vmem:[#allocation3 + $0x50] sm:$0xf] %vm2429_vm9, %v2362_v61  ;;  %v3550_v15 = vsel %vm3173_vm6, %v3547_v63, %v3549_v43  ;;  %v2493_v61 = vld [vmem:[#allocation2 + $0xfd] sm:$0xff]  ;;  %v900_v63 = vpack.c.bf16 %v864_v46, %v864_v46 }
 0x2a8   : > { %v3650_v17 = vmax.f32 %v15581_v28, %v3550_v15  ;;  %v1516_v28 = vpack.c.bf16 %v1480_v49, %v1480_v49  ;;  %v2529_v0 = vpack.c.bf16 %v2493_v61, %v2493_v61  ;;  %v15752_v15 = vpack.c.bf16 %v1482_v6, %v1482_v6  ;;  %v1736_v49 = vld [vmem:[#allocation2 + $0xfb] sm:$0xff]  ;;  %v2494_v61 = vld [vmem:[#allocation2 + $0x105] sm:$0xff] }
 0x2a9   : > { %937 = vst.msk [vmem:[#allocation3 + $0x64] sm:$0xf] %vm911_vm1, %v900_v63  ;;  %v866_v46 = vld [vmem:[#allocation2 + $0xd8] sm:$0xff]  ;;  %v901_v63 = vpack.c.bf16 %v865_v54, %v865_v54 }
 0x2aa   : > { %1867 = vrot.lane.b32.xlu1 %v1769_v10, %s14604_s2  ;;  %v15712_v18 = vpack.c.bf16 %v3650_v17, %v3649_v58  ;;  %v1012_v17 = vpack.c.bf16 %v976_v29, %v976_v29  ;;  %v902_v38 = vpack.c.bf16 %v866_v46, %v866_v46  ;;  %v2748_v29 = vld [vmem:[#allocation2 + $0x10e] sm:$0xff]  ;;  %v10525_v54 = vld [vmem:[%s14890_s30 + $0xf8] sm:$0xff] }
 0x2ab   : > { %1616 = vrot.lane.b32.xlu0 %v15702_v32, %s14605_s24  ;;  %938 = vst.msk [vmem:[#allocation3 + $0x68] sm:$0xf] %vm911_vm1, %v901_v63 }
 0x2ac   : > { %1110 = vrot.lane.b32.xlu2 %v1011_v14, %s14603_s29  ;;  %v2615_v51 = vpop.permute.xlu1 %2614  ;;  %939 = vst.msk [vmem:[#allocation3 + $0x6c] sm:$0xf] %vm911_vm1, %v902_v38 }
 0x2ad   : > { %2703 = vst.msk [vmem:[#allocation3 + $0x50] sm:$0xf] %vm2682_vm10, %v2615_v51  ;;  %v2364_v20 = vpop.permute.xlu0 %2363 }
 0x2ae   : > { %2451 = vst.msk [vmem:[#allocation3 + $0x54] sm:$0xf] %vm2429_vm9, %v2364_v20  ;;  %v1101_v13 = vpop.permute.xlu2 %1100 }
 0x2af   : > { %2704 = vst.msk [vmem:[#allocation3 + $0x54] sm:$0xf] %vm2682_vm10, %v2617_v8  ;;  %v15749_v8 = vpack.c.bf16 %v1483_v2, %v1483_v2  ;;  %v2530_v2 = vpack.c.bf16 %v2494_v61, %v2494_v61 }
 0x2b0   : > { %1187 = vst.msk [vmem:[#allocation3 + $0x58] sm:$0xf] %vm1164_vm2, %v1101_v13 }
 0x2b1   : > { %838 = vst.msk [vmem:[#allocation2 + $0x129] sm:$0xff] %vm718_vm0, %v10525_v54 }
 0x2b2   : > { %2122 = vrot.lane.b32.xlu1 %v2274_v19, %s14607_s27 }
 0x2b3   : > { %2120 = vrot.lane.b32.xlu0 %v15633_v9, %s14607_s27  ;;  %v2746_v9 = vld [vmem:[#allocation2 + $0xfe] sm:$0xff] }
 0x2b4   : > { %1614 = vrot.lane.b32.xlu2 %v1516_v28, %s14605_s24  ;;  %v2870_v41 = vpop.permute.xlu1 %2869  ;;  %v2782_v59 = vpack.c.bf16 %v2746_v9, %v2746_v9  ;;  %v10523_v9 = vld [vmem:[%s14890_s30 + $0xe8] sm:$0xff] }
 0x2b5   : > { %2957 = vst.msk [vmem:[#allocation3 + $0x54] sm:$0xf] %vm2935_vm11, %v2870_v41  ;;  %v2868_v27 = vpop.permute.xlu0 %2867 }
 0x2b6   : > { %2956 = vst.msk [vmem:[#allocation3 + $0x50] sm:$0xf] %vm2935_vm11, %v2868_v27  ;;  %v1356_v24 = vpop.permute.xlu2 %1355 }
 0x2b7   : > { %833 = vst.msk [vmem:[#allocation2 + $0x117] sm:$0xff] %vm718_vm0, %v10523_v9 }
 0x2ba   : > { %2626 = vrot.lane.b32.xlu1 %v2528_v1, %s14608_s25  ;;  %v15768_v1 = vpack.c.bf16 %v2242_v35, %v2242_v35 }
 0x2bb   : > { %2375 = vrot.lane.b32.xlu0 %v15724_v42, %s14606_s4 }
 0x2bc   : > { %1869 = vrot.lane.b32.xlu2 %v1770_v12, %s14604_s2  ;;  %v1354_v33 = vpop.permute.xlu1 %1353  ;;  %v15771_v12 = vpack.c.bf16 %v2241_v25, %v2241_v25 }
 0x2bd   : > { %1440 = vst.msk [vmem:[#allocation3 + $0x58] sm:$0xf] %vm1417_vm3, %v1354_v33  ;;  %v1103_v19 = vpop.permute.xlu0 %1102  ;;  %v13266_v40 = vld [vmem:[#allocation3 + $0x50] sm:$0xff] }
 0x2be   : > { %1188 = vst.msk [vmem:[#allocation3 + $0x5c] sm:$0xf] %vm1164_vm2, %v1103_v19  ;;  %v1860_v39 = vpop.permute.xlu2 %1859  ;;  %10616 = vmatmul.msk.bf16.gmra.mxu0 %vm3117_vm12, %v13266_v40 }
 0x2bf   : > { %1441 = vst.msk [vmem:[#allocation3 + $0x5c] sm:$0xf] %vm1417_vm3, %v1356_v24 }
 0x2c2   : > { %2881 = vrot.lane.b32.xlu1 %v2782_v59, %s14609_s21 }
 0x2c3   : > { %2879 = vrot.lane.b32.xlu0 %v2781_v22, %s14609_s21  ;;  %v10524_v22 = vld [vmem:[%s14890_s30 + $0xf0] sm:$0xff] }
 0x2c4   : > { %2373 = vrot.lane.b32.xlu2 %v2275_v31, %s14606_s4  ;;  %v1609_v47 = vpop.permute.xlu1 %1608  ;;  %837 = vst.msk [vmem:[#allocation2 + $0x121] sm:$0xff] %vm718_vm0, %v10524_v22  ;;  %vm6532_vm0 = vcmask 1041408  }
 0x2c5   : > { %1694 = vst.msk [vmem:[#allocation3 + $0x5c] sm:$0xf] %vm1670_vm4, %v1609_v47  ;;  %v1607_v55 = vpop.permute.xlu0 %1606 }
 0x2c6   : > { %1693 = vst.msk [vmem:[#allocation3 + $0x58] sm:$0xf] %vm1670_vm4, %v1607_v55  ;;  %v2115_v58 = vpop.permute.xlu2 %2114 }
 0x2c7   : > { %1946 = vst.msk [vmem:[#allocation3 + $0x58] sm:$0xf] %vm1923_vm7, %v1860_v39  ;;  %v2531_v39 = vpack.c.bf16 %v2495_v52, %v2495_v52 }
 0x2ca   : > { %1365 = vrot.lane.b32.xlu1 %v1516_v28, %s14602_s23  ;;  %v1772_v28 = vpack.c.bf16 %v1736_v49, %v1736_v49 }
 0x2cb   : > { %1114 = vrot.lane.b32.xlu0 %v1013_v16, %s14603_s29  ;;  %v2244_v38 = vld [vmem:[#allocation2 + $0x11c] sm:$0xff] }
 0x2cc   : > { %2628 = vrot.lane.b32.xlu2 %v2529_v0, %s14608_s25  ;;  %v2113_v44 = vpop.permute.xlu1 %2112  ;;  %v1014_v0 = vpack.c.bf16 %v978_v37, %v978_v37  ;;  %v867_v37 = vld [vmem:[#allocation2 + $0xe0] sm:$0xff] }
 0x2cd   : > { %2199 = vst.msk [vmem:[#allocation3 + $0x58] sm:$0xf] %vm2176_vm8, %v2113_v44  ;;  %v1862_v10 = vpop.permute.xlu0 %1861  ;;  %v15793_v44 = vpop.f32.mrf.mxu0 }
 0x2ce   : > { %1947 = vst.msk [vmem:[#allocation3 + $0x5c] sm:$0xf] %vm1923_vm7, %v1862_v10  ;;  %v2619_v14 = vpop.permute.xlu2 %2618 }
 0x2cf   : > { %2200 = vst.msk [vmem:[#allocation3 + $0x5c] sm:$0xf] %vm2176_vm8, %v2115_v58 }
 0x2d2   : > { %1620 = vrot.lane.b32.xlu1 %v15749_v8, %s14605_s24 }
 0x2d3   : > { %1618 = vrot.lane.b32.xlu0 %v15752_v15, %s14605_s24 }
 0x2d4   : > { %1112 = vrot.lane.b32.xlu2 %v1012_v17, %s14603_s29  ;;  %v2368_v51 = vpop.permute.xlu1 %2367 }
 0x2d5   : > { %2453 = vst.msk [vmem:[#allocation3 + $0x5c] sm:$0xf] %vm2429_vm9, %v2368_v51  ;;  %v2366_v20 = vpop.permute.xlu0 %2365  ;;  %v2784_v51 = vpack.c.bf16 %v2748_v29, %v2748_v29  ;;  %v3225_v49 = vpop.f32.mrf.mxu0  ;;  %v3224_v29 = vadd.f32 %v15654_v30, %v15793_v44  ;;  %v868_v44 = vld [vmem:[#allocation2 + $0xe8] sm:$0xff] }
 0x2d6   : > { %2452 = vst.msk [vmem:[#allocation3 + $0x58] sm:$0xf] %vm2429_vm9, %v2366_v20  ;;  %v2874_v13 = vpop.permute.xlu2 %2873  ;;  %v1738_v20 = vld [vmem:[#allocation2 + $0x10b] sm:$0xff] }
 0x2d7   : > { %2705 = vst.msk [vmem:[#allocation3 + $0x58] sm:$0xf] %vm2682_vm10, %v2619_v14 }
 0x2da   : > { %2124 = vrot.lane.b32.xlu1 %v2275_v31, %s14607_s27  ;;  %v979_v31 = vld [vmem:[#allocation2 + $0xf9] sm:$0xff] }
 0x2db   : > { %1873 = vrot.lane.b32.xlu0 %v1772_v28, %s14604_s2  ;;  %v1015_v58 = vpack.c.bf16 %v979_v31, %v979_v31  ;;  %v1737_v28 = vld [vmem:[#allocation2 + $0x103] sm:$0xff] }
 0x2dc   : > { %1367 = vrot.lane.b32.xlu2 %v15702_v32, %s14602_s23  ;;  %v2872_v41 = vpop.permute.xlu1 %2871  ;;  %v2747_v32 = vld [vmem:[#allocation2 + $0x106] sm:$0xff]  ;;  %v1773_v60 = vpack.c.bf16 %v1737_v28, %v1737_v28 }
 0x2dd   : > { %2958 = vst.msk [vmem:[#allocation3 + $0x58] sm:$0xf] %vm2935_vm11, %v2872_v41  ;;  %v2621_v27 = vpop.permute.xlu0 %2620  ;;  %v2783_v40 = vpack.c.bf16 %v2747_v32, %v2747_v32  ;;  %v1774_v41 = vpack.c.bf16 %v1738_v20, %v1738_v20  ;;  %v15849_v20 = vpack.c.bf16 %v2244_v38, %v2244_v38 }
 0x2de   : > { %2706 = vst.msk [vmem:[#allocation3 + $0x5c] sm:$0xf] %vm2682_vm10, %v2621_v27  ;;  %v1358_v24 = vpop.permute.xlu2 %1357 }
 0x2df   : > { %2959 = vst.msk [vmem:[#allocation3 + $0x5c] sm:$0xf] %vm2935_vm11, %v2874_v13 }
 0x2e2   : > { %2379 = vrot.lane.b32.xlu1 %v15768_v1, %s14606_s4 }
 0x2e3   : > { %2377 = vrot.lane.b32.xlu0 %v15771_v12, %s14606_s4 }
 0x2e4   : > { %1871 = vrot.lane.b32.xlu2 %v1771_v23, %s14604_s2  ;;  %v1107_v33 = vpop.permute.xlu1 %1106  ;;  %v3228_v27 = vpop.f32.mrf.mxu0  ;;  %v1485_v23 = vld [vmem:[#allocation2 + $0x10a] sm:$0xff] }
 0x2e5   : > { %1190 = vst.msk [vmem:[#allocation3 + $0x64] sm:$0xf] %vm1164_vm2, %v1107_v33  ;;  %v1105_v4 = vpop.permute.xlu0 %1104  ;;  %v15822_v52 = vpack.c.bf16 %v1485_v23, %v1485_v23  ;;  %v904_v23 = vpack.c.bf16 %v868_v44, %v868_v44 }
 0x2e6   : > { %1189 = vst.msk [vmem:[#allocation3 + $0x60] sm:$0xf] %vm1164_vm2, %v1105_v4  ;;  %v13267_v19 = vld [vmem:[#allocation3 + $0x58] sm:$0xff]  ;;  %v1613_v59 = vpop.permute.xlu2 %1612 }
 0x2e7   : > { %1442 = vst.msk [vmem:[#allocation3 + $0x60] sm:$0xf] %vm1417_vm3, %v1358_v24  ;;  %10617 = vmatmul.msk.bf16.gmra.mxu0 %vm3117_vm12, %v13267_v19 }
 0x2e8   : > { %941 = vst.msk [vmem:[#allocation3 + $0x74] sm:$0xf] %vm911_vm1, %v904_v23 }
 0x2ea   : > { %2883 = vrot.lane.b32.xlu1 %v2783_v40, %s14609_s21  ;;  %v2496_v40 = vld [vmem:[#allocation2 + $0x115] sm:$0xff] }
 0x2eb   : > { %2632 = vrot.lane.b32.xlu0 %v2531_v39, %s14608_s25  ;;  %v2532_v31 = vpack.c.bf16 %v2496_v40, %v2496_v40 }
 0x2ec   : > { %2126 = vrot.lane.b32.xlu2 %v15724_v42, %s14607_s27  ;;  %v1611_v47 = vpop.permute.xlu1 %1610  ;;  %v1484_v42 = vld [vmem:[#allocation2 + $0x102] sm:$0xff]  ;;  %v3230_v4 = vpop.f32.mrf.mxu0 }
 0x2ed   : > { %1695 = vst.msk [vmem:[#allocation3 + $0x60] sm:$0xf] %vm1670_vm4, %v1611_v47  ;;  %v1360_v55 = vpop.permute.xlu0 %1359  ;;  %v15802_v14 = vpack.c.bf16 %v1484_v42, %v1484_v42  ;;  %v3231_v46 = vadd.f32 %v15654_v30, %v3230_v4  ;;  %v980_v47 = vld [vmem:[#allocation2 + $0x101] sm:$0xff] }
 0x2ee   : > { %1443 = vst.msk [vmem:[#allocation3 + $0x64] sm:$0xf] %vm1417_vm3, %v1360_v55  ;;  %v2117_v16 = vpop.permute.xlu2 %2116  ;;  %v2750_v55 = vld [vmem:[#allocation2 + $0x11e] sm:$0xff] }
 0x2ef   : > { %1696 = vst.msk [vmem:[#allocation3 + $0x64] sm:$0xf] %vm1670_vm4, %v1613_v59 }
 0x2f2   : > { %1118 = vrot.lane.b32.xlu1 %v1015_v58, %s14603_s29  ;;  %v903_v58 = vpack.c.bf16 %v867_v37, %v867_v37 }
 0x2f3   : > { %1116 = vrot.lane.b32.xlu0 %v1014_v0, %s14603_s29  ;;  %v3295_v0 = vmax.f32 %v3231_v46, 0.0 }
 0x2f4   : > { %2630 = vrot.lane.b32.xlu2 %v2530_v2, %s14608_s25  ;;  %v1866_v6 = vpop.permute.xlu1 %1865  ;;  %940 = vst.msk [vmem:[#allocation3 + $0x70] sm:$0xf] %vm911_vm1, %v903_v58  ;;  %v1487_v58 = vld [vmem:[#allocation2 + $0x11a] sm:$0xff] }
 0x2f5   : > { %1949 = vst.msk [vmem:[#allocation3 + $0x64] sm:$0xf] %vm1923_vm7, %v1866_v6  ;;  %v1864_v10 = vpop.permute.xlu0 %1863  ;;  %v3384_v28 = vrot.slane %v3295_v0, 1 }
 0x2f6   : > { %1948 = vst.msk [vmem:[#allocation3 + $0x60] sm:$0xf] %vm1923_vm7, %v1864_v10  ;;  %v2372_v17 = vpop.permute.xlu2 %2371 }
 0x2f7   : > { %2201 = vst.msk [vmem:[#allocation3 + $0x60] sm:$0xf] %vm2176_vm8, %v2117_v16  ;;  %v3226_v16 = vadd.f32 %v15654_v30, %v3225_v49  ;;  %v2786_v49 = vpack.c.bf16 %v2750_v55, %v2750_v55  ;;  %v1739_v55 = vld [vmem:[#allocation2 + $0x113] sm:$0xff] }
 0x2fa   : > { %1622 = vrot.lane.b32.xlu1 %v15802_v14, %s14605_s24 }
 0x2fb   : > { %1371 = vrot.lane.b32.xlu0 %v15749_v8, %s14602_s23  ;;  %v2243_v8 = vld [vmem:[#allocation2 + $0x114] sm:$0xff] }
 0x2fc   : > { %2885 = vrot.lane.b32.xlu2 %v2784_v51, %s14609_s21  ;;  %v2370_v13 = vpop.permute.xlu1 %2369  ;;  %v15819_v32 = vpack.c.bf16 %v2243_v8, %v2243_v8 }
 0x2fd   : > { %2454 = vst.msk [vmem:[#allocation3 + $0x60] sm:$0xf] %vm2429_vm9, %v2370_v13  ;;  %v2119_v35 = vpop.permute.xlu0 %2118  ;;  %v3293_v13 = vmax.f32 %v3226_v16, 0.0 }
 0x2fe   : > { %2202 = vst.msk [vmem:[#allocation3 + $0x64] sm:$0xf] %vm2176_vm8, %v2119_v35  ;;  %v2876_v25 = vpop.permute.xlu2 %2875 }
 0x2ff   : > { %2455 = vst.msk [vmem:[#allocation3 + $0x64] sm:$0xf] %vm2429_vm9, %v2372_v17 }
 0x302   : > { %1877 = vrot.lane.b32.xlu1 %v1774_v41, %s14604_s2  ;;  %v3292_v41 = vmax.f32 %v3224_v29, 0.0 }
 0x303   : > { %1875 = vrot.lane.b32.xlu0 %v1773_v60, %s14604_s2 }
 0x304   : > { %1369 = vrot.lane.b32.xlu2 %v15752_v15, %s14602_s23  ;;  %v2625_v24 = vpop.permute.xlu1 %2624  ;;  %v2497_v15 = vld [vmem:[#allocation2 + $0x11d] sm:$0xff] }
 0x305   : > { %2708 = vst.msk [vmem:[#allocation3 + $0x64] sm:$0xf] %vm2682_vm10, %v2625_v24  ;;  %v2623_v9 = vpop.permute.xlu0 %2622  ;;  %v2533_v39 = vpack.c.bf16 %v2497_v15, %v2497_v15  ;;  %v2749_v24 = vld [vmem:[#allocation2 + $0x116] sm:$0xff] }
 0x306   : > { %2707 = vst.msk [vmem:[#allocation3 + $0x60] sm:$0xf] %vm2682_vm10, %v2623_v9  ;;  %v1111_v33 = vpop.permute.xlu2 %1110  ;;  %v3380_v9 = vrot.slane %v3293_v13, 1 }
 0x307   : > { %2960 = vst.msk [vmem:[#allocation3 + $0x60] sm:$0xf] %vm2935_vm11, %v2876_v25 }
 0x308   : > { %1192 = vst.msk [vmem:[#allocation3 + $0x6c] sm:$0xf] %vm1164_vm2, %v1111_v33 }
 0x30a   : > { %2381 = vrot.lane.b32.xlu1 %v15819_v32, %s14606_s4 }
 0x30b   : > { %2130 = vrot.lane.b32.xlu0 %v15768_v1, %s14607_s27  ;;  %v3229_v1 = vadd.f32 %v15654_v30, %v3228_v27 }
 0x30c   : > { %1624 = vrot.lane.b32.xlu2 %v15822_v52, %s14605_s24  ;;  %v1109_v19 = vpop.permute.xlu1 %1108 }
 0x30d   : > { %1191 = vst.msk [vmem:[#allocation3 + $0x68] sm:$0xf] %vm1164_vm2, %v1109_v19  ;;  %v2878_v59 = vpop.permute.xlu0 %2877  ;;  %v3294_v17 = vmax.f32 %v3229_v1, 0.0  ;;  %v3378_v19 = vrot.slane %v3292_v41, 1 }
 0x30e   : > { %2961 = vst.msk [vmem:[#allocation3 + $0x64] sm:$0xf] %vm2935_vm11, %v2878_v59  ;;  %v1615_v22 = vpop.permute.xlu2 %1614 }
 0x30f   : > { %v3382_v25 = vrot.slane %v3294_v17, 1  ;;  %v3381_v1 = vsel %vm3350_vm13, %v3378_v19, %v3380_v9 }
 0x310   : > { %v3474_v16 = vmax.f32 %v3292_v41, %v3381_v1  ;;  %v1740_v1 = vld [vmem:[#allocation2 + $0x11b] sm:$0xff] }
 0x311   : > { %v3385_v33 = vsel %vm3350_vm13, %v3382_v25, %v3384_v28 }
 0x312   : > { %2636 = vrot.lane.b32.xlu1 %v2533_v39, %s14608_s25  ;;  %v15868_v54 = vmax.f32 %v3294_v17, %v3385_v33  ;;  %v15896_v17 = vpack.c.bf16 %v1487_v58, %v1487_v58  ;;  %v2245_v58 = vld [vmem:[#allocation2 + $0x124] sm:$0xff] }
 0x313   : > { %2634 = vrot.lane.b32.xlu0 %v2532_v31, %s14608_s25  ;;  %v3233_v63 = vpop.f32.mrf.mxu0  ;;  %v3383_v31 = vsel %vm3350_vm13, %v3380_v9, %v3382_v25 }
 0x314   : > { %2128 = vrot.lane.b32.xlu2 %v15771_v12, %s14607_s27  ;;  %v1364_v61 = vpop.permute.xlu1 %1363  ;;  %v3234_v42 = vadd.f32 %v15654_v30, %v3233_v63  ;;  %v1016_v12 = vpack.c.bf16 %v980_v47, %v980_v47  ;;  %v3475_v47 = vmax.f32 %v3293_v13, %v3383_v31 }
 0x315   : > { %1445 = vst.msk [vmem:[#allocation3 + $0x6c] sm:$0xf] %vm1417_vm3, %v1364_v61  ;;  %v1362_v2 = vpop.permute.xlu0 %1361  ;;  %v13268_v6 = vld [vmem:[#allocation3 + $0x60] sm:$0xff]  ;;  %v3379_v61 = vsel %vm3350_vm13, %v15686_v34, %v3378_v19 }
 0x316   : > { %1444 = vst.msk [vmem:[#allocation3 + $0x68] sm:$0xf] %vm1417_vm3, %v1362_v2  ;;  %v1870_v10 = vpop.permute.xlu2 %1869  ;;  %v3296_v51 = vmax.f32 %v3234_v42, 0.0  ;;  %10618 = vmatmul.msk.bf16.gmra.mxu0 %vm3117_vm12, %v13268_v6  ;;  %v981_v2 = vld [vmem:[#allocation2 + $0x109] sm:$0xff]  ;;  %v3473_v42 = vmax.f32 %v3291_v11, %v3379_v61  ;;  %v3555_v29 = vrot.slane %v3475_v47, 2  ;;  %v1776_v61 = vpack.c.bf16 %v1740_v1, %v1740_v1 }
 0x317   : > { %1697 = vst.msk [vmem:[#allocation3 + $0x68] sm:$0xf] %vm1670_vm4, %v1615_v22  ;;  %v2785_v22 = vpack.c.bf16 %v2749_v24, %v2749_v24 }
 0x318   : > { %v3386_v35 = vrot.slane %v3296_v51, 1 }
 0x31a   : > { %1120 = vrot.lane.b32.xlu1 %v1016_v12, %s14603_s29  ;;  %v3387_v60 = vsel %vm3350_vm13, %v3384_v28, %v3386_v35 }
 0x31b   : > { %2889 = vrot.lane.b32.xlu0 %v2786_v49, %s14609_s21  ;;  %v3235_v8 = vpop.f32.mrf.mxu0  ;;  %v15862_v40 = vmax.f32 %v3295_v0, %v3387_v60  ;;  %v3553_v49 = vrot.slane %v3474_v16, 2 }
 0x31c   : > { %2383 = vrot.lane.b32.xlu2 %v15849_v20, %s14606_s4  ;;  %v1868_v27 = vpop.permute.xlu1 %1867  ;;  %v15860_v4 = vadd.f32 %v15654_v30, %v3235_v8  ;;  %v1486_v8 = vld [vmem:[#allocation2 + $0x112] sm:$0xff] }
 0x31d   : > { %1950 = vst.msk [vmem:[#allocation3 + $0x68] sm:$0xf] %vm1923_vm7, %v1868_v27  ;;  %v1617_v15 = vpop.permute.xlu0 %1616  ;;  %v3559_v37 = vrot.slane %v15862_v40, 2  ;;  %v3556_v41 = vsel %vm3173_vm6, %v3553_v49, %v3555_v29 }
 0x31e   : > { %1698 = vst.msk [vmem:[#allocation3 + $0x6c] sm:$0xf] %vm1670_vm4, %v1617_v15  ;;  %v2374_v59 = vpop.permute.xlu2 %2373  ;;  %v3297_v39 = vmax.f32 %v15860_v4, 0.0  ;;  %v3653_v23 = vmax.f32 %v15696_v7, %v3556_v41 }
 0x31f   : > { %1951 = vst.msk [vmem:[#allocation3 + $0x6c] sm:$0xf] %vm1923_vm7, %v1870_v10 }
 0x320   : > { %v15873_v46 = vrot.slane %v3297_v39, 1 }
 0x322   : > { %1375 = vrot.lane.b32.xlu1 %v15822_v52, %s14602_s23  ;;  %v3389_v63 = vsel %vm3350_vm13, %v3386_v35, %v15873_v46  ;;  %v3557_v52 = vrot.slane %v15868_v54, 2  ;;  %v3551_v35 = vrot.slane %v3473_v42, 2 }
 0x323   : > { %1373 = vrot.lane.b32.xlu0 %v15802_v14, %s14602_s23  ;;  %v15886_v0 = vmax.f32 %v3296_v51, %v3389_v63  ;;  %v1775_v14 = vpack.c.bf16 %v1739_v55, %v1739_v55  ;;  %v1017_v51 = vpack.c.bf16 %v981_v2, %v981_v2 }
 0x324   : > { %2887 = vrot.lane.b32.xlu2 %v2785_v22, %s14609_s21  ;;  %v2123_v38 = vpop.permute.xlu1 %2122  ;;  %v3560_v12 = vsel %vm3173_vm6, %v3557_v52, %v3559_v37  ;;  %v3558_v11 = vsel %vm3173_vm6, %v3555_v29, %v3557_v52  ;;  %v3554_v27 = vsel %vm3173_vm6, %v3551_v35, %v3553_v49  ;;  %v3552_v33 = vsel %vm3173_vm6, %v3549_v43, %v3551_v35  ;;  %v2498_v43 = vld [vmem:[#allocation2 + $0x125] sm:$0xff] }
 0x325   : > { %2204 = vst.msk [vmem:[#allocation3 + $0x6c] sm:$0xf] %vm2176_vm8, %v2123_v38  ;;  %v2121_v34 = vpop.permute.xlu0 %2120  ;;  %v3561_v10 = vrot.slane %v15886_v0, 2  ;;  %v3655_v13 = vmax.f32 %v3474_v16, %v3560_v12  ;;  %v3654_v25 = vmax.f32 %v3473_v42, %v3558_v11  ;;  %v3652_v19 = vmax.f32 %v15670_v48, %v3554_v27  ;;  %v2246_v48 = vld [vmem:[#allocation2 + $0x12c] sm:$0xff]  ;;  %v983_v11 = vld [vmem:[#allocation2 + $0x119] sm:$0xff] }
 0x326   : > { %2203 = vst.msk [vmem:[#allocation3 + $0x68] sm:$0xf] %vm2176_vm8, %v2121_v34  ;;  %v2629_v6 = vpop.permute.xlu2 %2628  ;;  %v3651_v22 = vmax.f32 %v15606_v3, %v3552_v33  ;;  %v2534_v3 = vpack.c.bf16 %v2498_v43, %v2498_v43  ;;  %v2751_v38 = vld [vmem:[#allocation2 + $0x126] sm:$0xff]  ;;  %v869_v12 = vld [vmem:[#allocation2 + $0xf0] sm:$0xff]  ;;  %v1019_v4 = vpack.c.bf16 %v983_v11, %v983_v11 }
 0x327   : > { %2456 = vst.msk [vmem:[#allocation3 + $0x68] sm:$0xf] %vm2429_vm9, %v2374_v59  ;;  %v3562_v53 = vsel %vm3173_vm6, %v3559_v37, %v3561_v10  ;;  %v3709_v15 = vpack.c.bf16 %v3654_v25, %v3653_v23  ;;  %v15916_v59 = vpack.c.bf16 %v1486_v8, %v1486_v8  ;;  %v1489_v8 = vld [vmem:[#allocation2 + $0x12a] sm:$0xff]  ;;  %v1488_v23 = vld [vmem:[#allocation2 + $0x122] sm:$0xff] }
 0x328   : > { %v3656_v28 = vmax.f32 %v3475_v47, %v3562_v53  ;;  %v3708_v7 = vpack.c.bf16 %v3652_v19, %v3651_v22  ;;  %v1524_v22 = vpack.c.bf16 %v1488_v23, %v1488_v23 }
 0x32a   : > { %1879 = vrot.lane.b32.xlu1 %v1775_v14, %s14604_s2  ;;  %v3710_v44 = vpack.c.bf16 %v3656_v28, %v3655_v13  ;;  %v2787_v14 = vpack.c.bf16 %v2751_v38, %v2751_v38  ;;  %v2499_v13 = vld [vmem:[#allocation2 + $0x12d] sm:$0xff] }
 0x32b   : > { %1628 = vrot.lane.b32.xlu0 %v15896_v17, %s14605_s24 }
 0x32c   : > { %1122 = vrot.lane.b32.xlu2 %v1017_v51, %s14603_s29  ;;  %v2627_v60 = vpop.permute.xlu1 %2626  ;;  %3843 = vmatpush.bf16.msra.mxu1 %v3710_v44  ;;  %v905_v44 = vpack.c.bf16 %v869_v12, %v869_v12 }
 0x32d   : > { %2709 = vst.msk [vmem:[#allocation3 + $0x68] sm:$0xf] %vm2682_vm10, %v2627_v60  ;;  %v2376_v24 = vpop.permute.xlu0 %2375 }
 0x32e   : > { %2457 = vst.msk [vmem:[#allocation3 + $0x6c] sm:$0xf] %vm2429_vm9, %v2376_v24  ;;  %v1113_v9 = vpop.permute.xlu2 %1112 }
 0x32f   : > { %2710 = vst.msk [vmem:[#allocation3 + $0x6c] sm:$0xf] %vm2682_vm10, %v2629_v6  ;;  %v15941_v6 = vpack.c.bf16 %v2245_v58, %v2245_v58 }
 0x330   : > { %1193 = vst.msk [vmem:[#allocation3 + $0x70] sm:$0xf] %vm1164_vm2, %v1113_v9  ;;  %3844 = vmatpush.bf16.msra.mxu1 %v3709_v15  ;;  %v982_v9 = vld [vmem:[#allocation2 + $0x111] sm:$0xff]  ;;  %v1525_v15 = vpack.c.bf16 %v1489_v8, %v1489_v8 }
 0x331   : > { %942 = vst.msk [vmem:[#allocation3 + $0x78] sm:$0xf] %vm911_vm1, %v905_v44 }
 0x332   : > { %2134 = vrot.lane.b32.xlu1 %v15849_v20, %s14607_s27  ;;  %v15928_v20 = vpack.c.bf16 %v2246_v48, %v2246_v48 }
 0x333   : > { %2132 = vrot.lane.b32.xlu0 %v15819_v32, %s14607_s27  ;;  %v2752_v32 = vld [vmem:[#allocation2 + $0x12e] sm:$0xff] }
 0x334   : > { %1626 = vrot.lane.b32.xlu2 %v15916_v59, %s14605_s24  ;;  %v2882_v31 = vpop.permute.xlu1 %2881  ;;  %3845 = vmatpush.bf16.msra.mxu1 %v3708_v7  ;;  %v2788_v2 = vpack.c.bf16 %v2752_v32, %v2752_v32  ;;  %v1018_v7 = vpack.c.bf16 %v982_v9, %v982_v9  ;;  %v2754_v9 = vld [vmem:[#allocation2 + $0x13e] sm:$0xff] }
 0x335   : > { %2963 = vst.msk [vmem:[#allocation3 + $0x6c] sm:$0xf] %vm2935_vm11, %v2882_v31  ;;  %v2880_v47 = vpop.permute.xlu0 %2879 }
 0x336   : > { %2962 = vst.msk [vmem:[#allocation3 + $0x68] sm:$0xf] %vm2935_vm11, %v2880_v47  ;;  %v1368_v37 = vpop.permute.xlu2 %1367 }
 0x338   : > { %3846 = vmatpush.bf16.msra.mxu1 %v15712_v18 }
 0x33a   : > { %2638 = vrot.lane.b32.xlu1 %v2534_v3, %s14608_s25  ;;  %v1742_v3 = vld [vmem:[#allocation2 + $0x12b] sm:$0xff] }
 0x33b   : > { %2387 = vrot.lane.b32.xlu0 %v15928_v20, %s14606_s4  ;;  %v3238_v55 = vpop.f32.mrf.mxu0 }
 0x33c   : > { %1881 = vrot.lane.b32.xlu2 %v1776_v61, %s14604_s2  ;;  %v1366_v63 = vpop.permute.xlu1 %1365  ;;  %v3239_v52 = vadd.f32 %v15654_v30, %v3238_v55  ;;  %3847 = vmatpush.bf16.msra.mxu1 %v15622_v21  ;;  %v870_v21 = vld [vmem:[#allocation2 + $0xf8] sm:$0xff]  ;;  %v1741_v55 = vld [vmem:[#allocation2 + $0x123] sm:$0xff] }
 0x33d   : > { %1446 = vst.msk [vmem:[#allocation3 + $0x70] sm:$0xf] %vm1417_vm3, %v1366_v63  ;;  %v1115_v16 = vpop.permute.xlu0 %1114  ;;  %v13269_v18 = vld [vmem:[#allocation3 + $0x68] sm:$0xff]  ;;  %v906_v28 = vpack.c.bf16 %v870_v21, %v870_v21 }
 0x33e   : > { %1194 = vst.msk [vmem:[#allocation3 + $0x74] sm:$0xf] %vm1164_vm2, %v1115_v16  ;;  %v1872_v34 = vpop.permute.xlu2 %1871  ;;  %v3298_v42 = vmax.f32 %v3239_v52, 0.0  ;;  %10619 = vmatmul.msk.bf16.gmra.mxu0 %vm3117_vm12, %v13269_v18  ;;  %v2247_v63 = vld [vmem:[#allocation2 + $0x134] sm:$0xff]  ;;  %v1777_v18 = vpack.c.bf16 %v1741_v55, %v1741_v55 }
 0x33f   : > { %1447 = vst.msk [vmem:[#allocation3 + $0x74] sm:$0xf] %vm1417_vm3, %v1368_v37  ;;  %v2283_v52 = vpack.c.bf16 %v2247_v63, %v2247_v63  ;;  %v873_v55 = vld [vmem:[#allocation2 + $0x110] sm:$0xff] }
 0x340   : > { %v3390_v29 = vrot.slane %v3298_v42, 1  ;;  %3848 = vmatpush.bf16.msra.mxu1 %v15542_v36  ;;  %943 = vst.msk [vmem:[#allocation3 + $0x7c] sm:$0xf] %vm911_vm1, %v906_v28 }
 0x342   : > { %2893 = vrot.lane.b32.xlu1 %v2788_v2, %s14609_s21  ;;  %v3391_v51 = vsel %vm3350_vm13, %v15873_v46, %v3390_v29 }
 0x343   : > { %2891 = vrot.lane.b32.xlu0 %v2787_v14, %s14609_s21  ;;  %v3240_v53 = vpop.f32.mrf.mxu0  ;;  %v15952_v36 = vmax.f32 %v3297_v39, %v3391_v51  ;;  %v2535_v39 = vpack.c.bf16 %v2499_v13, %v2499_v13 }
 0x344   : > { %2385 = vrot.lane.b32.xlu2 %v15941_v6, %s14606_s4  ;;  %v1621_v49 = vpop.permute.xlu1 %1620  ;;  %v15956_v41 = vadd.f32 %v15654_v30, %v3240_v53  ;;  %3849 = vmatpush.bf16.msra.mxu1 %v15460_v26 }
 0x345   : > { %1700 = vst.msk [vmem:[#allocation3 + $0x74] sm:$0xf] %vm1670_vm4, %v1621_v49  ;;  %v1619_v35 = vpop.permute.xlu0 %1618  ;;  %v3563_v25 = vrot.slane %v15952_v36, 2  ;;  %v871_v49 = vld [vmem:[#allocation2 + $0x100] sm:$0xff] }
 0x346   : > { %1699 = vst.msk [vmem:[#allocation3 + $0x70] sm:$0xf] %vm1670_vm4, %v1619_v35  ;;  %v2127_v46 = vpop.permute.xlu2 %2126  ;;  %v3299_v60 = vmax.f32 %v15956_v41, 0.0  ;;  %v907_v11 = vpack.c.bf16 %v871_v49, %v871_v49  ;;  %v2500_v35 = vld [vmem:[#allocation2 + $0x135] sm:$0xff] }
 0x347   : > { %1952 = vst.msk [vmem:[#allocation3 + $0x70] sm:$0xf] %vm1923_vm7, %v1872_v34  ;;  %v3564_v27 = vsel %vm3173_vm6, %v3561_v10, %v3563_v25  ;;  %v2501_v34 = vld [vmem:[#allocation2 + $0x13d] sm:$0xff] }
 0x348   : > { %v15969_v26 = vrot.slane %v3299_v60, 1  ;;  %3850 = vmatpush.bf16.msra.mxu1 %v15372_v56  ;;  %v3657_v31 = vmax.f32 %v15868_v54, %v3564_v27  ;;  %v1778_v54 = vpack.c.bf16 %v1742_v3, %v1742_v3  ;;  %v2537_v51 = vpack.c.bf16 %v2501_v34, %v2501_v34  ;;  %944 = vst.msk [vmem:[#allocation3 + $0x80] sm:$0xf] %vm911_vm1, %v907_v11  ;;  %v16027_v27 = vld [vmem:[#allocation14] ss:$0 sm:$0xff] }
 0x349   : > { %v874_v34 = vld [vmem:[#allocation2 + $0x118] sm:$0xff] }
 0x34a   : > { %1377 = vrot.lane.b32.xlu1 %v15916_v59, %s14602_s23  ;;  %v3393_v24 = vsel %vm3350_vm13, %v3390_v29, %v15969_v26 }
 0x34b   : > { %1126 = vrot.lane.b32.xlu0 %v1019_v4, %s14603_s29  ;;  %v15979_v33 = vmax.f32 %v3298_v42, %v3393_v24  ;;  %v2536_v24 = vpack.c.bf16 %v2500_v35, %v2500_v35 }
 0x34c   : > { %2640 = vrot.lane.b32.xlu2 %v2535_v39, %s14608_s25  ;;  %v2125_v10 = vpop.permute.xlu1 %2124 }
 0x34d   : > { %2205 = vst.msk [vmem:[#allocation3 + $0x70] sm:$0xf] %vm2176_vm8, %v2125_v10  ;;  %v1874_v56 = vpop.permute.xlu0 %1873  ;;  %v3565_v59 = vrot.slane %v15979_v33, 2 }
 0x34e   : > { %1953 = vst.msk [vmem:[#allocation3 + $0x74] sm:$0xf] %vm1923_vm7, %v1874_v56  ;;  %v2631_v19 = vpop.permute.xlu2 %2630 }
 0x34f   : > { %2206 = vst.msk [vmem:[#allocation3 + $0x74] sm:$0xf] %vm2176_vm8, %v2127_v46  ;;  %v3566_v43 = vsel %vm3173_vm6, %v3563_v25, %v3565_v59 }
 0x350   : > { %v3658_v48 = vmax.f32 %v15862_v40, %v3566_v43  ;;  %v2248_v40 = vld [vmem:[#allocation2 + $0x13c] sm:$0xff] }
 0x351   : > { %v2284_v58 = vpack.c.bf16 %v2248_v40, %v2248_v40 }
 0x352   : > { %1632 = vrot.lane.b32.xlu1 %v1525_v15, %s14605_s24  ;;  %v15993_v1 = vpack.c.bf16 %v3658_v48, %v3657_v31 }
 0x353   : > { %1630 = vrot.lane.b32.xlu0 %v1524_v22, %s14605_s24 }
 0x354   : > { %1124 = vrot.lane.b32.xlu2 %v1018_v7, %s14603_s29  ;;  %v2380_v47 = vpop.permute.xlu1 %2379  ;;  %v2790_v7 = vpack.c.bf16 %v2754_v9, %v2754_v9 }
 0x355   : > { %2459 = vst.msk [vmem:[#allocation3 + $0x74] sm:$0xf] %vm2429_vm9, %v2380_v47  ;;  %v2378_v37 = vpop.permute.xlu0 %2377 }
 0x356   : > { %2458 = vst.msk [vmem:[#allocation3 + $0x70] sm:$0xf] %vm2429_vm9, %v2378_v37  ;;  %v2886_v61 = vpop.permute.xlu2 %2885 }
 0x357   : > { %2711 = vst.msk [vmem:[#allocation3 + $0x70] sm:$0xf] %vm2682_vm10, %v2631_v19 }
 0x35a   : > { %2136 = vrot.lane.b32.xlu1 %v15941_v6, %s14607_s27 }
 0x35b   : > { %1885 = vrot.lane.b32.xlu0 %v1778_v54, %s14604_s2 }
 0x35c   : > { %1379 = vrot.lane.b32.xlu2 %v15896_v17, %s14602_s23  ;;  %v2884_v32 = vpop.permute.xlu1 %2883  ;;  %v2753_v17 = vld [vmem:[#allocation2 + $0x136] sm:$0xff] }
 0x35d   : > { %2964 = vst.msk [vmem:[#allocation3 + $0x70] sm:$0xf] %vm2935_vm11, %v2884_v32  ;;  %v2633_v38 = vpop.permute.xlu0 %2632  ;;  %v2789_v12 = vpack.c.bf16 %v2753_v17, %v2753_v17 }
 0x35e   : > { %2712 = vst.msk [vmem:[#allocation3 + $0x74] sm:$0xf] %vm2682_vm10, %v2633_v38  ;;  %v1370_v16 = vpop.permute.xlu2 %1369 }
 0x35f   : > { %2965 = vst.msk [vmem:[#allocation3 + $0x74] sm:$0xf] %vm2935_vm11, %v2886_v61 }
 0x362   : > { %2391 = vrot.lane.b32.xlu1 %v2284_v58, %s14606_s4 }
 0x363   : > { %2389 = vrot.lane.b32.xlu0 %v2283_v52, %s14606_s4 }
 0x364   : > { %1883 = vrot.lane.b32.xlu2 %v1777_v18, %s14604_s2  ;;  %v1119_v2 = vpop.permute.xlu1 %1118  ;;  %v3243_v14 = vpop.f32.mrf.mxu0 }
 0x365   : > { %1196 = vst.msk [vmem:[#allocation3 + $0x7c] sm:$0xf] %vm1164_vm2, %v1119_v2  ;;  %v1117_v42 = vpop.permute.xlu0 %1116  ;;  %v3244_v6 = vadd.f32 %v15654_v30, %v3243_v14  ;;  %v872_v30 = vld [vmem:[#allocation2 + $0x108] sm:$0xff]  ;;  %v910_v14 = vpack.c.bf16 %v874_v34, %v874_v34 }
 0x366   : > { %1195 = vst.msk [vmem:[#allocation3 + $0x78] sm:$0xf] %vm1164_vm2, %v1117_v42  ;;  %v13270_v29 = vld [vmem:[#allocation3 + $0x70] sm:$0xff]  ;;  %v1625_v21 = vpop.permute.xlu2 %1624  ;;  %v908_v44 = vpack.c.bf16 %v872_v30, %v872_v30 }
 0x367   : > { %1448 = vst.msk [vmem:[#allocation3 + $0x78] sm:$0xf] %vm1417_vm3, %v1370_v16  ;;  %v3300_v53 = vmax.f32 %v3244_v6, 0.0  ;;  %10620 = vmatmul.msk.bf16.gmra.mxu0 %vm3117_vm12, %v13270_v29  ;;  %v909_v16 = vpack.c.bf16 %v873_v55, %v873_v55 }
 0x368   : > { %945 = vst.msk [vmem:[#allocation3 + $0x84] sm:$0xf] %vm911_vm1, %v908_v44 }
 0x369   : > { %v3394_v13 = vrot.slane %v3300_v53, 1  ;;  %946 = vst.msk [vmem:[#allocation3 + $0x88] sm:$0xf] %vm911_vm1, %v909_v16 }
 0x36a   : > { %2895 = vrot.lane.b32.xlu1 %v2789_v12, %s14609_s21  ;;  %947 = vst.msk [vmem:[#allocation3 + $0x8c] sm:$0xf] %vm911_vm1, %v910_v14  ;;  %vm6566_vm1 = vcmask 1043456  }
 0x36b   : > { %2644 = vrot.lane.b32.xlu0 %v2537_v51, %s14608_s25  ;;  %v3395_v46 = vsel %vm3350_vm13, %v15969_v26, %v3394_v13 }
 0x36c   : > { %2138 = vrot.lane.b32.xlu2 %v15928_v20, %s14607_s27  ;;  %v1623_v28 = vpop.permute.xlu1 %1622  ;;  %v3245_v4 = vpop.f32.mrf.mxu0  ;;  %v16024_v39 = vmax.f32 %v3299_v60, %v3395_v46 }
 0x36d   : > { %1701 = vst.msk [vmem:[#allocation3 + $0x78] sm:$0xf] %vm1670_vm4, %v1623_v28  ;;  %v1372_v25 = vpop.permute.xlu0 %1371  ;;  %v16030_v20 = vadd.f32 %v16027_v27, %v3245_v4 }
 0x36e   : > { %1449 = vst.msk [vmem:[#allocation3 + $0x7c] sm:$0xf] %vm1417_vm3, %v1372_v25  ;;  %v2129_v8 = vpop.permute.xlu2 %2128  ;;  %v3567_v26 = vrot.slane %v16024_v39, 2 }
 0x36f   : > { %1702 = vst.msk [vmem:[#allocation3 + $0x7c] sm:$0xf] %vm1670_vm4, %v1625_v21  ;;  %v3301_v10 = vmax.f32 %v16030_v20, 0.0 }
 0x370   : > { %v3568_v41 = vsel %vm3173_vm6, %v3565_v59, %v3567_v26 }
 0x371   : > { %v3396_v60 = vrot.slane %v3301_v10, 1  ;;  %v3659_v31 = vmax.f32 %v15886_v0, %v3568_v41 }
 0x373   : > { %v3397_v56 = vsel %vm3350_vm13, %v3394_v13, %v3396_v60 }
 0x374   : > { %2642 = vrot.lane.b32.xlu2 %v2536_v24, %s14608_s25  ;;  %v1878_v23 = vpop.permute.xlu1 %1877  ;;  %v16042_v19 = vmax.f32 %v3300_v53, %v3397_v56 }
 0x375   : > { %1955 = vst.msk [vmem:[#allocation3 + $0x7c] sm:$0xf] %vm1923_vm7, %v1878_v23  ;;  %v1876_v15 = vpop.permute.xlu0 %1875 }
 0x376   : > { %1954 = vst.msk [vmem:[#allocation3 + $0x78] sm:$0xf] %vm1923_vm7, %v1876_v15  ;;  %v2384_v22 = vpop.permute.xlu2 %2383  ;;  %v3569_v59 = vrot.slane %v16042_v19, 2 }
 0x377   : > { %2207 = vst.msk [vmem:[#allocation3 + $0x78] sm:$0xf] %vm2176_vm8, %v2129_v8 }
 0x378   : > { %v3570_v43 = vsel %vm3173_vm6, %v3567_v26, %v3569_v59 }
 0x379   : > { %v3660_v48 = vmax.f32 %v15952_v36, %v3570_v43 }
 0x37b   : > { %v16051_v3 = vpack.c.bf16 %v3660_v48, %v3659_v31 }
 0x37c   : > { %2897 = vrot.lane.b32.xlu2 %v2790_v7, %s14609_s21  ;;  %v2382_v47 = vpop.permute.xlu1 %2381 }
 0x37d   : > { %2460 = vst.msk [vmem:[#allocation3 + $0x78] sm:$0xf] %vm2429_vm9, %v2382_v47  ;;  %v2131_v37 = vpop.permute.xlu0 %2130 }
 0x37e   : > { %2208 = vst.msk [vmem:[#allocation3 + $0x7c] sm:$0xf] %vm2176_vm8, %v2131_v37  ;;  %v2888_v61 = vpop.permute.xlu2 %2887 }
 0x37f   : > { %2461 = vst.msk [vmem:[#allocation3 + $0x7c] sm:$0xf] %vm2429_vm9, %v2384_v22 }
 0x384   : > { %v2637_v54 = vpop.permute.xlu1 %2636 }
 0x385   : > { %2714 = vst.msk [vmem:[#allocation3 + $0x7c] sm:$0xf] %vm2682_vm10, %v2637_v54  ;;  %v2635_v40 = vpop.permute.xlu0 %2634 }
 0x386   : > { %2713 = vst.msk [vmem:[#allocation3 + $0x78] sm:$0xf] %vm2682_vm10, %v2635_v40  ;;  %v1123_v0 = vpop.permute.xlu2 %1122 }
 0x387   : > { %2966 = vst.msk [vmem:[#allocation3 + $0x78] sm:$0xf] %vm2935_vm11, %v2888_v61 }
 0x388   : > { %1198 = vst.msk [vmem:[#allocation3 + $0x84] sm:$0xf] %vm1164_vm2, %v1123_v0 }
 0x38c   : > { %v1121_v36 = vpop.permute.xlu1 %1120 }
 0x38d   : > { %1197 = vst.msk [vmem:[#allocation3 + $0x80] sm:$0xf] %vm1164_vm2, %v1121_v36  ;;  %v2890_v32 = vpop.permute.xlu0 %2889 }
 0x38e   : > { %2967 = vst.msk [vmem:[#allocation3 + $0x7c] sm:$0xf] %vm2935_vm11, %v2890_v32  ;;  %v1627_v63 = vpop.permute.xlu2 %1626 }
 0x393   : > { %v3248_v58 = vpop.f32.mrf.mxu0 }
 0x394   : > { %v1376_v38 = vpop.permute.xlu1 %1375  ;;  %v3249_v18 = vadd.f32 %v16027_v27, %v3248_v58 }
 0x395   : > { %1451 = vst.msk [vmem:[#allocation3 + $0x84] sm:$0xf] %vm1417_vm3, %v1376_v38  ;;  %v1374_v52 = vpop.permute.xlu0 %1373  ;;  %v13271_v17 = vld [vmem:[#allocation3 + $0x78] sm:$0xff] }
 0x396   : > { %1450 = vst.msk [vmem:[#allocation3 + $0x80] sm:$0xf] %vm1417_vm3, %v1374_v52  ;;  %v1882_v2 = vpop.permute.xlu2 %1881  ;;  %v3302_v42 = vmax.f32 %v3249_v18, 0.0  ;;  %10621 = vmatmul.msk.bf16.gmra.mxu0 %vm3117_vm12, %v13271_v17 }
 0x397   : > { %1703 = vst.msk [vmem:[#allocation3 + $0x80] sm:$0xf] %vm1670_vm4, %v1627_v63 }
 0x398   : > { %v3398_v6 = vrot.slane %v3302_v42, 1 }
 0x39a   : > { %v3399_v29 = vsel %vm3350_vm13, %v3396_v60, %v3398_v6 }
 0x39b   : > { %v3250_v21 = vpop.f32.mrf.mxu0  ;;  %v16070_v51 = vmax.f32 %v3301_v10, %v3399_v29 }
 0x39c   : > { %v1880_v12 = vpop.permute.xlu1 %1879  ;;  %v3251_v53 = vadd.f32 %v16027_v27, %v3250_v21 }
 0x39d   : > { %1956 = vst.msk [vmem:[#allocation3 + $0x80] sm:$0xf] %vm1923_vm7, %v1880_v12  ;;  %v1629_v49 = vpop.permute.xlu0 %1628  ;;  %v3571_v13 = vrot.slane %v16070_v51, 2 }
 0x39e   : > { %1704 = vst.msk [vmem:[#allocation3 + $0x84] sm:$0xf] %vm1670_vm4, %v1629_v49  ;;  %v2386_v11 = vpop.permute.xlu2 %2385  ;;  %v3303_v30 = vmax.f32 %v3251_v53, 0.0 }
 0x39f   : > { %1957 = vst.msk [vmem:[#allocation3 + $0x84] sm:$0xf] %vm1923_vm7, %v1882_v2  ;;  %v3572_v28 = vsel %vm3173_vm6, %v3569_v59, %v3571_v13 }
 0x3a0   : > { %v3400_v35 = vrot.slane %v3303_v30, 1  ;;  %v3661_v44 = vmax.f32 %v15979_v33, %v3572_v28 }
 0x3a2   : > { %v3401_v46 = vsel %vm3350_vm13, %v3398_v6, %v3400_v35 }
 0x3a3   : > { %v16080_v4 = vmax.f32 %v3302_v42, %v3401_v46 }
 0x3a4   : > { %v2135_v25 = vpop.permute.xlu1 %2134 }
 0x3a5   : > { %2210 = vst.msk [vmem:[#allocation3 + $0x84] sm:$0xf] %vm2176_vm8, %v2135_v25  ;;  %v2133_v20 = vpop.permute.xlu0 %2132  ;;  %v3573_v24 = vrot.slane %v16080_v4, 2 }
 0x3a6   : > { %2209 = vst.msk [vmem:[#allocation3 + $0x80] sm:$0xf] %vm2176_vm8, %v2133_v20  ;;  %v2641_v8 = vpop.permute.xlu2 %2640 }
 0x3a7   : > { %2462 = vst.msk [vmem:[#allocation3 + $0x80] sm:$0xf] %vm2429_vm9, %v2386_v11  ;;  %v3574_v26 = vsel %vm3173_vm6, %v3571_v13, %v3573_v24 }
 0x3a8   : > { %v3662_v10 = vmax.f32 %v16024_v39, %v3574_v26 }
 0x3aa   : > { %v16088_v33 = vpack.c.bf16 %v3662_v10, %v3661_v44 }
 0x3ac   : > { %v2639_v41 = vpop.permute.xlu1 %2638 }
 0x3ad   : > { %2715 = vst.msk [vmem:[#allocation3 + $0x80] sm:$0xf] %vm2682_vm10, %v2639_v41  ;;  %v2388_v60 = vpop.permute.xlu0 %2387 }
 0x3ae   : > { %2463 = vst.msk [vmem:[#allocation3 + $0x84] sm:$0xf] %vm2429_vm9, %v2388_v60  ;;  %v1125_v23 = vpop.permute.xlu2 %1124 }
 0x3af   : > { %2716 = vst.msk [vmem:[#allocation3 + $0x84] sm:$0xf] %vm2682_vm10, %v2641_v8 }
 0x3b0   : > { %1199 = vst.msk [vmem:[#allocation3 + $0x88] sm:$0xf] %vm1164_vm2, %v1125_v23 }
 0x3b4   : > { %v2894_v9 = vpop.permute.xlu1 %2893 }
 0x3b5   : > { %2969 = vst.msk [vmem:[#allocation3 + $0x84] sm:$0xf] %vm2935_vm11, %v2894_v9  ;;  %v2892_v56 = vpop.permute.xlu0 %2891 }
 0x3b6   : > { %2968 = vst.msk [vmem:[#allocation3 + $0x80] sm:$0xf] %vm2935_vm11, %v2892_v56  ;;  %v1380_v39 = vpop.permute.xlu2 %1379 }
 0x3bb   : > { %v3253_v15 = vpop.f32.mrf.mxu0 }
 0x3bc   : > { %v1378_v22 = vpop.permute.xlu1 %1377  ;;  %v3254_v59 = vadd.f32 %v16027_v27, %v3253_v15 }
 0x3bd   : > { %v1127_v7 = vpop.permute.xlu0 %1126  ;;  %1452 = vst.msk [vmem:[#allocation3 + $0x88] sm:$0xf] %vm1417_vm3, %v1378_v22  ;;  %v13272_v43 = vld [vmem:[#allocation3 + $0x80] sm:$0xff] }
 0x3be   : > { %1200 = vst.msk [vmem:[#allocation3 + $0x8c] sm:$0xf] %vm1164_vm2, %v1127_v7  ;;  %v1884_v31 = vpop.permute.xlu2 %1883  ;;  %v3304_v48 = vmax.f32 %v3254_v59, 0.0  ;;  %10622 = vmatmul.msk.bf16.gmra.mxu0 %vm3117_vm12, %v13272_v43  ;;  %vm6559_vm2 = vcmask 195584  }
 0x3bf   : > { %1453 = vst.msk [vmem:[#allocation3 + $0x8c] sm:$0xf] %vm1417_vm3, %v1380_v39  ;;  %vm7774_vm3 = vcmask 64512  }
 0x3c0   : > { %v3402_v47 = vrot.slane %v3304_v48, 1 }
 0x3c2   : > { %v3403_v37 = vsel %vm3350_vm13, %v3400_v35, %v3402_v47 }
 0x3c3   : > { %v3255_v61 = vpop.f32.mrf.mxu0  ;;  %v3485_v40 = vmax.f32 %v3303_v30, %v3403_v37 }
 0x3c4   : > { %v1633_v54 = vpop.permute.xlu1 %1632  ;;  %v3256_v36 = vadd.f32 %v16027_v27, %v3255_v61 }
 0x3c5   : > { %v1631_v0 = vpop.permute.xlu0 %1630  ;;  %1706 = vst.msk [vmem:[#allocation3 + $0x8c] sm:$0xf] %vm1670_vm4, %v1633_v54  ;;  %v3575_v32 = vrot.slane %v3485_v40, 2 }
 0x3c6   : > { %1705 = vst.msk [vmem:[#allocation3 + $0x88] sm:$0xf] %vm1670_vm4, %v1631_v0  ;;  %v3305_v63 = vmax.f32 %v3256_v36, 0.0  ;;  %v2139_v55 = vpop.permute.xlu2 %2138  ;;  %vm7839_vm4 = vsmask.f32 3328 }
 0x3c7   : > { %1958 = vst.msk [vmem:[#allocation3 + $0x88] sm:$0xf] %vm1923_vm7, %v1884_v31  ;;  %v3576_v38 = vsel %vm3173_vm6, %v3573_v24, %v3575_v32 }
 0x3c8   : > { %v3404_v58 = vrot.slane %v3305_v63, 1  ;;  %v3663_v16 = vmax.f32 %v16042_v19, %v3576_v38 }
 0x3ca   : > { %v3405_v52 = vsel %vm3350_vm13, %v3402_v47, %v3404_v58 }
 0x3cb   : > { %v16109_v17 = vmax.f32 %v3304_v48, %v3405_v52 }
 0x3cc   : > { %v2137_v18 = vpop.permute.xlu1 %2136 }
 0x3cd   : > { %v1886_v2 = vpop.permute.xlu0 %1885  ;;  %2211 = vst.msk [vmem:[#allocation3 + $0x88] sm:$0xf] %vm2176_vm8, %v2137_v18  ;;  %v3577_v34 = vrot.slane %v16109_v17, 2 }
 0x3ce   : > { %1959 = vst.msk [vmem:[#allocation3 + $0x8c] sm:$0xf] %vm1923_vm7, %v1886_v2  ;;  %v2643_v6 = vpop.permute.xlu2 %2642  ;;  %vm7867_vm7 = vcmask 1046532  }
 0x3cf   : > { %2212 = vst.msk [vmem:[#allocation3 + $0x8c] sm:$0xf] %vm2176_vm8, %v2139_v55  ;;  %v3578_v42 = vsel %vm3173_vm6, %v3575_v32, %v3577_v34 }
 0x3d0   : > { %v3664_v14 = vmax.f32 %v16070_v51, %v3578_v42 }
 0x3d2   : > { %v16117_v19 = vpack.c.bf16 %v3664_v14, %v3663_v16 }
 0x3d4   : > { %v2392_v29 = vpop.permute.xlu1 %2391 }
 0x3d5   : > { %v2390_v12 = vpop.permute.xlu0 %2389  ;;  %2465 = vst.msk [vmem:[#allocation3 + $0x8c] sm:$0xf] %vm2429_vm9, %v2392_v29 }
 0x3d6   : > { %2464 = vst.msk [vmem:[#allocation3 + $0x88] sm:$0xf] %vm2429_vm9, %v2390_v12  ;;  %v2898_v21 = vpop.permute.xlu2 %2897  ;;  %vm16492_vm9 = vmor %vm7839_vm4, %vm7840_vm5 }
 0x3d7   : > { %2717 = vst.msk [vmem:[#allocation3 + $0x88] sm:$0xf] %vm2682_vm10, %v2643_v6 }
 0x3dc   : > { %v2896_v49 = vpop.permute.xlu1 %2895 }
 0x3dd   : > { %v2645_v53 = vpop.permute.xlu0 %2644  ;;  %2970 = vst.msk [vmem:[#allocation3 + $0x88] sm:$0xf] %vm2935_vm11, %v2896_v49 }
 0x3de   : > { %2718 = vst.msk [vmem:[#allocation3 + $0x8c] sm:$0xf] %vm2682_vm10, %v2645_v53  ;;  %vm7898_vm10 = vsmask.f32 1280 }
 0x3df   : > { %2971 = vst.msk [vmem:[#allocation3 + $0x8c] sm:$0xf] %vm2935_vm11, %v2898_v21  ;;  %vm7899_vm11 = vsmask.f32 5392 }
 0x3e4   : > { %v3258_v51 = vpop.f32.mrf.mxu0 }
 0x3e5   : > { %v3259_v11 = vadd.f32 %v16027_v27, %v3258_v51 }
 0x3e6   : > { %v13273_v13 = vld [vmem:[#allocation3 + $0x88] sm:$0xff] }
 0x3e7   : > { %v3306_v30 = vmax.f32 %v3259_v11, 0.0  ;;  %10623 = vmatmul.msk.bf16.gmra.mxu0 %vm3117_vm12, %v13273_v13  ;;  %vm7884_vm12 = vcmask 1045508  }
 0x3e9   : > { %v3406_v28 = vrot.slane %v3306_v30, 1 }
 0x3eb   : > { %v3407_v35 = vsel %vm3350_vm13, %v3404_v58, %v3406_v28 }
 0x3ec   : > { %v3260_v44 = vpop.f32.mrf.mxu0  ;;  %v16128_v46 = vmax.f32 %v3305_v63, %v3407_v35 }
 0x3ed   : > { %v3261_v25 = vadd.f32 %v16027_v27, %v3260_v44 }
 0x3ee   : > { %v3579_v20 = vrot.slane %v16128_v46, 2 }
 0x3ef   : > { %v3307_v8 = vmax.f32 %v3261_v25, 0.0 }
 0x3f0   : > { %v3580_v24 = vsel %vm3173_vm6, %v3577_v34, %v3579_v20 }
 0x3f1   : > { %v3408_v26 = vrot.slane %v3307_v8, 1  ;;  %v3665_v10 = vmax.f32 %v16080_v4, %v3580_v24 }
 0x3f3   : > { %v3409_v41 = vsel %vm3350_vm13, %v3406_v28, %v3408_v26 }
 0x3f4   : > { %v16135_v60 = vmax.f32 %v3306_v30, %v3409_v41 }
 0x3f6   : > { %v3581_v23 = vrot.slane %v16135_v60, 2 }
 0x3f8   : > { %v3582_v9 = vsel %vm3173_vm6, %v3579_v20, %v3581_v23 }
 0x3f9   : > { %v3666_v56 = vmax.f32 %v3485_v40, %v3582_v9 }
 0x3fb   : > { %v16141_v39 = vpack.c.bf16 %v3666_v56, %v3665_v10 }
 0x413   : > { %v3263_v15 = vpop.f32.mrf.mxu0 }
 0x414   : > { %v3264_v54 = vadd.f32 %v16027_v27, %v3263_v15  ;;  %v10626_v15 = vld [vmem:[#allocation16] sm:$0xf] }
 0x416   : > { %v3308_v55 = vmax.f32 %v3264_v54, 0.0 }
 0x418   : > { %v3410_v34 = vrot.slane %v3308_v55, 1 }
 0x41a   : > { %v3411_v51 = vsel %vm3350_vm13, %v3408_v26, %v3410_v34 }
 0x41b   : > { %v3265_v22 = vpop.f32.mrf.mxu0  ;;  %v3489_v24 = vmax.f32 %v3307_v8, %v3411_v51 }
 0x41c   : > { %v3266_v48 = vadd.f32 %v16027_v27, %v3265_v22  ;;  %v13277_v22 = vld [vmem:[#allocation16 + $0x8] sm:$0xf0] }
 0x41e   : > { %v3309_v36 = vmax.f32 %v3266_v48, 0.0  ;;  %v3583_v48 = vrot.slane %v3489_v24, 2 }
 0x420   : > { %v3412_v16 = vrot.slane %v3309_v36, 1 }
 0x422   : > { %v3413_v29 = vsel %vm3350_vm13, %v3410_v34, %v3412_v16  ;;  %v10646_v34 = vld [vmem:[#allocation16 + $0x20] sm:$0xf] }
 0x423   : > { %v3490_v30 = vmax.f32 %v3308_v55, %v3413_v29 }
 0x425   : > { %v3585_v56 = vrot.slane %v3490_v30, 2 }
 0x43b   : > { %v3268_v7 = vpop.f32.mrf.mxu0 }
 0x43c   : > { %v3269_v4 = vadd.f32 %v16027_v27, %v3268_v7 }
 0x43e   : > { %v3310_v37 = vmax.f32 %v3269_v4, 0.0 }
 0x440   : > { %v3414_v32 = vrot.slane %v3310_v37, 1 }
 0x442   : > { %v3415_v42 = vsel %vm3350_vm13, %v3412_v16, %v3414_v32 }
 0x443   : > { %v3270_v59 = vpop.f32.mrf.mxu0  ;;  %v3491_v49 = vmax.f32 %v3309_v36, %v3415_v42  ;;  %v13276_v42 = vld [vmem:[#allocation16 + $0x4] sm:$0xf] }
 0x444   : > { %v3271_v43 = vadd.f32 %v16027_v27, %v3270_v59 }
 0x445   : > { %v3587_v20 = vrot.slane %v3491_v49, 2 }
 0x446   : > { %v3311_v31 = vmax.f32 %v3271_v43, 0.0 }
 0x448   : > { %v3416_v40 = vrot.slane %v3311_v31, 1 }
 0x44a   : > { %v3417_v38 = vsel %vm3350_vm13, %v3414_v32, %v3416_v40 }
 0x44b   : > { %v3492_v14 = vmax.f32 %v3310_v37, %v3417_v38  ;;  %v13278_v37 = vld [vmem:[#allocation16 + $0x10] sm:$0xf0] }
 0x44d   : > { %v3589_v53 = vrot.slane %v3492_v14, 2 }
 0x464   : > { %v3273_v47 = vpop.f32.mrf.mxu0 }
 0x465   : > { %v3274_v61 = vadd.f32 %v16027_v27, %v3273_v47  ;;  %v10634_v47 = vld [vmem:[#allocation16 + $0x8] sm:$0xf] }
 0x466   : > { %v10635_v32 = vor.u32 %v13278_v37, %v10634_v47  ;;  %v13291_v47 = vld [vmem:[#allocation16 + $0x7c] sm:$0xf]  ;;  %v10688_v37 = vld [vmem:[#allocation16 + $0x84] sm:$0xf0] }
 0x467   : > { %v3312_v0 = vmax.f32 %v3274_v61, 0.0 }
 0x469   : > { %v3418_v63 = vrot.slane %v3312_v0, 1 }
 0x46b   : > { %v3419_v58 = vsel %vm3350_vm13, %v3416_v40, %v3418_v63 }
 0x46c   : > { %v3493_v52 = vmax.f32 %v3311_v31, %v3419_v58  ;;  %v3275_v18 = vpop.f32.mrf.mxu0  ;;  %v10627_v31 = vor.u32 %v13277_v22, %v10626_v15  ;;  %v10694_v15 = vld [vmem:[#allocation16 + $0x80] sm:$0xf]  ;;  %v13293_v22 = vld [vmem:[#allocation16 + $0x88] sm:$0xf0] }
 0x46d   : > { %v3276_v2 = vadd.f32 %v16027_v27, %v3275_v18  ;;  %v3633_v27 = vrot.slane %v15360_v5, 2  ;;  %v3590_v5 = vsel %vm3173_vm6, %v3587_v20, %v3589_v53  ;;  %v13280_v18 = vld [vmem:[#allocation16 + $0x20] sm:$0xf0] }
 0x46e   : > { %v3591_v12 = vrot.slane %v3493_v52, 2  ;;  %v3670_v40 = vmax.f32 %v3489_v24, %v3590_v5  ;;  %3851 = vmatmul.bf16.vlgmr.msra.gmra.mxu1 %v10627_v31  ;;  %v13290_v24 = vld [vmem:[#allocation16 + $0x70] sm:$0xf0] }
 0x46f   : > { %v3313_v6 = vmax.f32 %v3276_v2, 0.0  ;;  %v3635_v25 = vsel %vm3173_vm6, %v3633_v27, %v3634_v57 }
 0x470   : > { %v3592_v44 = vsel %vm3173_vm6, %v3589_v53, %v3591_v12  ;;  %v10640_v53 = vld [vmem:[#allocation16 + $0x24] sm:$0xf0] }
 0x471   : > { %v3420_v21 = vrot.slane %v3313_v6, 1 }
 0x473   : > { %v3421_v11 = vsel %vm3350_vm13, %v3418_v63, %v3420_v21  ;;  %v3459_v13 = vsel %vm3350_vm13, %v3420_v21, %v15343_v50  ;;  %v3671_v50 = vmax.f32 %v3490_v30, %v3592_v44  ;;  %v3584_v63 = vsel %vm3173_vm6, %v3581_v23, %v3583_v48  ;;  %v13286_v21 = vld [vmem:[#allocation16 + $0x50] sm:$0xf0]  ;;  %v13289_v30 = vld [vmem:[#allocation16 + $0x68] sm:$0xf0] }
 0x474   : > { %v3494_v28 = vmax.f32 %v3312_v0, %v3421_v11  ;;  %v3495_v35 = vmax.f32 %v3313_v6, %v3459_v13  ;;  %v3586_v0 = vsel %vm3173_vm6, %v3583_v48, %v3585_v56  ;;  %v3667_v58 = vmax.f32 %v16109_v17, %v3584_v63  ;;  %v10650_v17 = vld [vmem:[#allocation16 + $0x30] sm:$0xf]  ;;  %v13287_v13 = vld [vmem:[#allocation16 + $0x58] sm:$0xf0] }
 0x475   : > { %v3668_v38 = vmax.f32 %v16128_v46, %v3586_v0  ;;  %v13283_v46 = vld [vmem:[#allocation16 + $0x38] sm:$0xf0] }
 0x476   : > { %v3593_v10 = vrot.slane %v3494_v28, 2  ;;  %v3595_v26 = vrot.slane %v3495_v35, 2  ;;  %v3675_v41 = vmax.f32 %v3494_v28, %v3635_v25  ;;  %v3676_v9 = vmax.f32 %v3495_v35, %v15278_v62  ;;  %v13282_v28 = vld [vmem:[#allocation16 + $0x34] sm:$0xf]  ;;  %v10652_v35 = vld [vmem:[#allocation16 + $0x3c] sm:$0xf0] }
 0x477   : > { %v3588_v62 = vsel %vm3173_vm6, %v3585_v56, %v3587_v20  ;;  %v3716_v16 = vpack.c.bf16 %v3668_v38, %v3667_v58  ;;  %v10651_v6 = vor.u32 %v13283_v46, %v10650_v17  ;;  %v10655_v25 = vor.u32 %v13282_v28, %v10652_v35  ;;  %v10682_v20 = vld [vmem:[#allocation16 + $0x68] sm:$0xf]  ;;  %v10664_v56 = vld [vmem:[#allocation16 + $0x54] sm:$0xf0] }
 0x478   : > { %v3720_v7 = vpack.c.bf16 %v3676_v9, %v3675_v41  ;;  %v3594_v59 = vsel %vm3173_vm6, %v3591_v12, %v3593_v10  ;;  %v3596_v45 = vsel %vm3173_vm6, %v3593_v10, %v3595_v26  ;;  %v3640_v57 = vsel %vm3173_vm6, %v3595_v26, %v3633_v27  ;;  %v13284_v12 = vld [vmem:[#allocation16 + $0x40] sm:$0xf0]  ;;  %v10686_v26 = vld [vmem:[#allocation16 + $0x78] sm:$0xf]  ;;  %v13285_v9 = vld [vmem:[#allocation16 + $0x4c] sm:$0xf] }
 0x479   : > { %v3672_v43 = vmax.f32 %v3491_v49, %v3594_v59  ;;  %v3673_v8 = vmax.f32 %v3492_v14, %v3596_v45  ;;  %v3674_v4 = vmax.f32 %v3493_v52, %v3640_v57  ;;  %v3669_v36 = vmax.f32 %v16135_v60, %v3588_v62  ;;  %v10638_v52 = vld [vmem:[#allocation16 + $0x18] sm:$0xf]  ;;  %v13281_v60 = vld [vmem:[#allocation16 + $0x28] sm:$0xf0]  ;;  %v10628_v14 = vld [vmem:[#allocation16 + $0xc] sm:$0xf0] }
 0x47a   : > { %3935 = vmatpush.bf16.msra.mxu3 %v3720_v7  ;;  %v10639_v2 = vor.u32 %v13280_v18, %v10638_v52  ;;  %v10647_v23 = vor.u32 %v13281_v60, %v10646_v34  ;;  %v10631_v29 = vor.u32 %v13276_v42, %v10628_v14  ;;  %v13279_v49 = vld [vmem:[#allocation16 + $0x1c] sm:$0xf]  ;;  %v10683_v10 = vor.u32 %v13290_v24, %v10682_v20  ;;  %v13292_v41 = vld [vmem:[#allocation16 + $0x80] sm:$0xf0]  ;;  %v10676_v45 = vld [vmem:[#allocation16 + $0x6c] sm:$0xf0] }
 0x47b   : > { %v3718_v61 = vpack.c.bf16 %v3672_v43, %v3671_v50  ;;  %v3719_v54 = vpack.c.bf16 %v3674_v4, %v3673_v8  ;;  %v3717_v55 = vpack.c.bf16 %v3670_v40, %v3669_v36  ;;  %v10643_v11 = vor.u32 %v13279_v49, %v10640_v53  ;;  %v13288_v59 = vld [vmem:[#allocation16 + $0x64] sm:$0xf]  ;;  %v3702_v43 = vld [vmem:[#allocation16 + $0x98] sm:$0xf]  ;;  %v3701_v4 = vld [vmem:[#allocation16 + $0x90] sm:$0xff] }
 0x47c   : > { %v10687_v50 = vor.u32 %v13292_v41, %v10686_v26  ;;  %v10667_v5 = vor.u32 %v13285_v9, %v10664_v56  ;;  %v10695_v7 = vor.u32 %v13293_v22, %v10694_v15  ;;  %v10679_v57 = vor.u32 %v13288_v59, %v10676_v45  ;;  %v13346_v40 = vld [vmem:[#allocation17 + $0x38] sm:$0xff]  ;;  %v13345_v36 = vld [vmem:[#allocation17 + $0x30] sm:$0xff]  ;;  %v13352_v17 = vld [vmem:[#allocation17 + $0x68] sm:$0xff] }
 0x47d   : > { %3886 = vmatpush.bf16.msra.mxu2 %v3718_v61  ;;  %v3785_v8 = vunpack.c.l.b16 %v3702_v43  ;;  %v3783_v31 = vunpack.c.l.b16 %v3701_v4  ;;  %v10691_v61 = vor.u32 %v13291_v47, %v10688_v37  ;;  %v13354_v58 = vld [vmem:[#allocation17 + $0x78] sm:$0xff]  ;;  %v13353_v18 = vld [vmem:[#allocation17 + $0x70] sm:$0xff]  ;;  %v13360_v46 = vld [vmem:[#allocation17 + $0xa8] sm:$0xff] }
 0x47e   : > { %3936 = vmatpush.bf16.msra.mxu3 %v3719_v54  ;;  %3856 = vmatmul.bf16.gmra.mxu1 %v10639_v2  ;;  %v3784_v54 = vunpack.c.h.b16 %v3701_v4  ;;  %v13342_v52 = vld [vmem:[#allocation17 + $0x18] sm:$0xff]  ;;  %v13361_v2 = vld [vmem:[#allocation17 + $0xb0] sm:$0xff]  ;;  %v13340_v42 = vld [vmem:[#allocation17 + $0x8] sm:$0xff] }
 0x47f   : > { %v3806_v48 = vpack.c.b16 %v3785_v8, %v3785_v8  ;;  %v3804_v62 = vpack.c.b16 %v3783_v31, %v3783_v31  ;;  %5149 = vmatpush.bf16.msrb.mxu1 %v13354_v58  ;;  %v13402_v14 = vld [vmem:[#allocation17 + $0x1f8] sm:$0xff]  ;;  %v13348_v28 = vld [vmem:[#allocation17 + $0x48] sm:$0xff]  ;;  %v13347_v24 = vld [vmem:[#allocation17 + $0x40] sm:$0xff] }
 0x480   : > { %v3805_v0 = vpack.c.b16 %v3784_v54, %v3784_v54  ;;  %5353 = vmatpush.bf16.msrb.mxu0 %v13402_v14  ;;  %v13356_v35 = vld [vmem:[#allocation17 + $0x88] sm:$0xff]  ;;  %v13399_v26 = vld [vmem:[#allocation17 + $0x1e0] sm:$0xff] }
 0x481   : > { %3887 = vmatpush.bf16.msra.mxu2 %v3717_v55  ;;  %10696 = vmatmul.msk.bf16.vlgmr.msra.gmra.mxu3 %vm3821_vm14, %v10635_v32  ;;  %v13344_v32 = vld [vmem:[#allocation17 + $0x28] sm:$0xff]  ;;  %v13343_v55 = vld [vmem:[#allocation17 + $0x20] sm:$0xff] }
 0x482   : > { %5115 = vmatpush.bf16.msrb.mxu3 %v13346_v40  ;;  %v13396_v31 = vld [vmem:[#allocation17 + $0x1c8] sm:$0xff] }
 0x483   : > { %5150 = vmatpush.bf16.msrb.mxu1 %v13353_v18 }
 0x485   : > { %3888 = vmatpush.bf16.msra.mxu2 %v3716_v16  ;;  %v13362_v16 = vld [vmem:[#allocation17 + $0xb8] sm:$0xff] }
 0x486   : > { %5116 = vmatpush.bf16.msrb.mxu3 %v13345_v36 }
 0x487   : > { %5151 = vmatpush.bf16.msrb.mxu1 %v13352_v17 }
 0x489   : > { %3889 = vmatpush.bf16.msra.mxu2 %v16141_v39  ;;  %v10658_v39 = vld [vmem:[#allocation16 + $0x38] sm:$0xf] }
 0x48a   : > { %5117 = vmatpush.bf16.msrb.mxu3 %v13344_v32 }
 0x48d   : > { %3890 = vmatpush.bf16.msra.mxu2 %v16117_v19  ;;  %v10659_v19 = vor.u32 %v13284_v12, %v10658_v39  ;;  %v13339_v12 = vld [vmem:[#allocation17] sm:$0xff] }
 0x48e   : > { %3861 = vmatmul.bf16.gmra.mxu1 %v10651_v6  ;;  %5118 = vmatpush.bf16.msrb.mxu3 %v13343_v55  ;;  %v13351_v6 = vld [vmem:[#allocation17 + $0x60] sm:$0xff] }
 0x48f   : > { %5152 = vmatpush.bf16.msrb.mxu1 %v13351_v6 }
 0x491   : > { %3891 = vmatpush.bf16.msra.mxu2 %v16088_v33  ;;  %10697 = vmatmul.msk.bf16.gmra.mxu3 %vm3821_vm14, %v10647_v23  ;;  %v10662_v33 = vld [vmem:[#allocation16 + $0x48] sm:$0xf]  ;;  %v13341_v23 = vld [vmem:[#allocation17 + $0x10] sm:$0xff] }
 0x492   : > { %v10663_v51 = vor.u32 %v13286_v21, %v10662_v33  ;;  %5119 = vmatpush.bf16.msrb.mxu3 %v13342_v52  ;;  %v13350_v33 = vld [vmem:[#allocation17 + $0x58] sm:$0xff] }
 0x493   : > { %v13358_v21 = vld [vmem:[#allocation17 + $0x98] sm:$0xff]  ;;  %5153 = vmatpush.bf16.msrb.mxu1 %v13350_v33 }
 0x495   : > { %3892 = vmatpush.bf16.msra.mxu2 %v16051_v3  ;;  %v10670_v3 = vld [vmem:[#allocation16 + $0x50] sm:$0xf] }
 0x496   : > { %v10671_v27 = vor.u32 %v13287_v13, %v10670_v3  ;;  %5120 = vmatpush.bf16.msrb.mxu3 %v13341_v23  ;;  %v13401_v3 = vld [vmem:[#allocation17 + $0x1f0] sm:$0xff] }
 0x497   : > { %5354 = vmatpush.bf16.msrb.mxu0 %v13401_v3 }
 0x499   : > { %3893 = vmatpush.bf16.msra.mxu2 %v15993_v1  ;;  %v10674_v1 = vld [vmem:[#allocation16 + $0x60] sm:$0xf] }
 0x49a   : > { %v10675_v44 = vor.u32 %v13289_v30, %v10674_v1  ;;  %5121 = vmatpush.bf16.msrb.mxu3 %v13340_v42 }
 0x49c   : > { %3894 = vmatmul.bf16.vlgmr.msra.gmra.mxu2 %v10631_v29  ;;  %v13359_v29 = vld [vmem:[#allocation17 + $0xa0] sm:$0xff] }
 0x49d   : > { %5183 = vmatpush.bf16.msrb.mxu2 %v13362_v16 }
 0x49e   : > { %3866 = vmatmul.bf16.gmra.mxu1 %v10663_v51  ;;  %5122 = vmatpush.bf16.msrb.mxu3 %v13339_v12  ;;  %v13349_v51 = vld [vmem:[#allocation17 + $0x50] sm:$0xff] }
 0x49f   : > { %5154 = vmatpush.bf16.msrb.mxu1 %v13349_v51 }
 0x4a1   : > { %10698 = vmatmul.msk.bf16.gmra.mxu3 %vm3821_vm14, %v10659_v19  ;;  %5184 = vmatpush.bf16.msrb.mxu2 %v13361_v2 }
 0x4a3   : > { %5155 = vmatpush.bf16.msrb.mxu1 %v13348_v28 }
 0x4a5   : > { %5185 = vmatpush.bf16.msrb.mxu2 %v13360_v46 }
 0x4a7   : > { %5156 = vmatpush.bf16.msrb.mxu1 %v13347_v24 }
 0x4a9   : > { %5186 = vmatpush.bf16.msrb.mxu2 %v13359_v29 }
 0x4ac   : > { %3899 = vmatmul.bf16.gmra.mxu2 %v10643_v11  ;;  %v13357_v11 = vld [vmem:[#allocation17 + $0x90] sm:$0xff] }
 0x4ad   : > { %5187 = vmatpush.bf16.msrb.mxu2 %v13358_v21 }
 0x4ae   : > { %3871 = vmatmul.bf16.gmra.mxu1 %v10675_v44  ;;  %v13400_v44 = vld [vmem:[#allocation17 + $0x1e8] sm:$0xff] }
 0x4af   : > { %5355 = vmatpush.bf16.msrb.mxu0 %v13400_v44 }
 0x4b1   : > { %10699 = vmatmul.msk.bf16.gmra.mxu3 %vm3821_vm14, %v10671_v27  ;;  %5188 = vmatpush.bf16.msrb.mxu2 %v13357_v11 }
 0x4b3   : > { %5356 = vmatpush.bf16.msrb.mxu0 %v13399_v26 }
 0x4b5   : > { %5189 = vmatpush.bf16.msrb.mxu2 %v13356_v35 }
 0x4bc   : > { %3904 = vmatmul.bf16.gmra.mxu2 %v10655_v25 }
 0x4be   : > { %3876 = vmatmul.bf16.gmra.mxu1 %v10687_v50  ;;  %v13398_v50 = vld [vmem:[#allocation17 + $0x1d8] sm:$0xff] }
 0x4bf   : > { %5357 = vmatpush.bf16.msrb.mxu0 %v13398_v50 }
 0x4c1   : > { %10700 = vmatmul.msk.bf16.gmra.mxu3 %vm3821_vm14, %v10683_v10  ;;  %v13355_v10 = vld [vmem:[#allocation17 + $0x80] sm:$0xff] }
 0x4c2   : > { %5190 = vmatpush.bf16.msrb.mxu2 %v13355_v10 }
 0x4cc   : > { %3909 = vmatmul.bf16.gmra.mxu2 %v10667_v5 }
 0x4ce   : > { %3881 = vmatmul.bf16.gmra.mxu1 %v3804_v62 }
 0x4d1   : > { %10701 = vmatmul.msk.bf16.gmra.mxu3 %vm3821_vm14, %v10695_v7  ;;  %v13397_v7 = vld [vmem:[#allocation17 + $0x1d0] sm:$0xff] }
 0x4d2   : > { %5358 = vmatpush.bf16.msrb.mxu0 %v13397_v7 }
 0x4d6   : > { %5359 = vmatpush.bf16.msrb.mxu0 %v13396_v31 }
 0x4dc   : > { %3914 = vmatmul.bf16.gmra.mxu2 %v10679_v57 }
 0x4e1   : > { %10702 = vmatmul.msk.bf16.gmra.mxu3 %vm3821_vm14, %v3806_v48  ;;  %vm16525_vm14 = vmor %vm6532_vm0, %vm7884_vm12 }
 0x4eb   : > { %v3852_v63 = vpop.f32.mrf.mxu1 }
 0x4ec   : > { %3919 = vmatmul.bf16.gmra.mxu2 %v10691_v61 }
 0x4f3   : > { %v3854_v34 = vpop.f32.mrf.mxu1 }
 0x4fb   : > { %v3857_v39 = vpop.f32.mrf.mxu1 }
 0x4fc   : > { %3924 = vmatmul.bf16.gmra.mxu2 %v3805_v0  ;;  %v13395_v0 = vld [vmem:[#allocation17 + $0x1c0] sm:$0xff] }
 0x4fd   : > { %5360 = vmatpush.bf16.msrb.mxu0 %v13395_v0 }
 0x503   : > { %v3859_v27 = vpop.f32.mrf.mxu1 }
 0x504   : > { %v3938_v38 = vpop.f32.mrf.mxu3 }
 0x50b   : > { %v3862_v56 = vpop.f32.mrf.mxu1 }
 0x50c   : > { %v3940_v60 = vpop.f32.mrf.mxu3 }
 0x513   : > { %v3864_v47 = vpop.f32.mrf.mxu1 }
 0x514   : > { %v3943_v19 = vpop.f32.mrf.mxu3 }
 0x51b   : > { %v3867_v23 = vpop.f32.mrf.mxu1 }
 0x51c   : > { %v3945_v1 = vpop.f32.mrf.mxu3 }
 0x51f   : > { %v3895_v49 = vpop.f32.mrf.mxu2 }
 0x520   : > { %v3896_v53 = vadd.f32 %v3895_v49, %v3852_v63 }
 0x522   : > { %v3939_v13 = vadd.f32 %v3938_v38, %v3896_v53 }
 0x524   : > { %3972 = vst [vmem:[#allocation4] sm:$0xff] %v3939_v13  ;;  %v3995_v30 = vpack.c.bf16 %v3939_v13, %v3939_v13  ;;  %v3948_v5 = vpop.f32.mrf.mxu3 }
 0x526   : > { %4005 = vst [vmem:[#allocation5] sm:$0xf] %v3995_v30 }
 0x527   : > { %v3897_v25 = vpop.f32.mrf.mxu2 }
 0x528   : > { %v3898_v20 = vadd.f32 %v3897_v25, %v3854_v34  ;;  %v3869_v25 = vpop.f32.mrf.mxu1 }
 0x52a   : > { %v3941_v41 = vadd.f32 %v3940_v60, %v3898_v20 }
 0x52c   : > { %3973 = vst [vmem:[#allocation4 + $0x8] sm:$0xff] %v3941_v41  ;;  %v3996_v9 = vpack.c.bf16 %v3941_v41, %v3941_v41  ;;  %v3950_v54 = vpop.f32.mrf.mxu3 }
 0x52d   : > { %v10705_v48 = vld [vmem:[#allocation5] sm:$0xf] }
 0x52e   : > { %4006 = vst [vmem:[#allocation5 + $0x24] sm:$0xf] %v3996_v9 }
 0x52f   : > { %v3900_v15 = vpop.f32.mrf.mxu2 }
 0x530   : > { %v3901_v22 = vadd.f32 %v3900_v15, %v3857_v39 }
 0x532   : > { %v3944_v59 = vadd.f32 %v3943_v19, %v3901_v22 }
 0x533   : > { %v4015_v45 = vld [vmem:[#allocation4 + $0x1] sm:$0xff] }
 0x534   : > { %v4045_v57 = vld [vmem:[#allocation4 + $0x2] sm:$0xff]  ;;  %v4025_v43 = vpack.c.bf16 %v4015_v45, %v4015_v45  ;;  %3974 = vst [vmem:[#allocation4 + $0x10] sm:$0xff] %v3944_v59  ;;  %v3997_v4 = vpack.c.bf16 %v3944_v59, %v3944_v59  ;;  %v3953_v17 = vpop.f32.mrf.mxu3 }
 0x535   : > { %v4055_v8 = vpack.c.bf16 %v4045_v57, %v4045_v57  ;;  %v13298_v62 = vld [vmem:[#allocation5 + $0x20] sm:$0xf0] }
 0x536   : > { %4035 = vst [vmem:[#allocation5 + $0x4] sm:$0xf] %v4025_v43  ;;  %v10706_v37 = vor.u32 %v13298_v62, %v10705_v48 }
 0x537   : > { %4065 = vst [vmem:[#allocation5 + $0x8] sm:$0xf] %v4055_v8  ;;  %v3902_v61 = vpop.f32.mrf.mxu2 }
 0x538   : > { %v3903_v40 = vadd.f32 %v3902_v61, %v3859_v27  ;;  %5123 = vmatmul.bf16.vlgmr.msrb.gmra.mxu3 %v10706_v37  ;;  %4007 = vst [vmem:[#allocation5 + $0x48] sm:$0xf] %v3997_v4 }
 0x53a   : > { %v3946_v36 = vadd.f32 %v3945_v1, %v3903_v40 }
 0x53b   : > { %v4016_v32 = vld [vmem:[#allocation4 + $0x9] sm:$0xff] }
 0x53c   : > { %v4046_v63 = vld [vmem:[#allocation4 + $0xa] sm:$0xff]  ;;  %3975 = vst [vmem:[#allocation4 + $0x18] sm:$0xff] %v3946_v36  ;;  %v4026_v52 = vpack.c.bf16 %v4016_v32, %v4016_v32  ;;  %v3998_v34 = vpack.c.bf16 %v3946_v36, %v3946_v36  ;;  %v3955_v9 = vpop.f32.mrf.mxu3  ;;  %v3872_v36 = vpop.f32.mrf.mxu1 }
 0x53d   : > { %v4105_v55 = vld [vmem:[#allocation4 + $0xb] sm:$0xff]  ;;  %v4056_v38 = vpack.c.bf16 %v4046_v63, %v4046_v63 }
 0x53e   : > { %v4115_v58 = vpack.c.bf16 %v4105_v55, %v4105_v55  ;;  %v4135_v16 = vld [vmem:[#allocation4 + $0xc] sm:$0xff]  ;;  %4036 = vst [vmem:[#allocation5 + $0x28] sm:$0xf] %v4026_v52 }
 0x53f   : > { %v4145_v18 = vpack.c.bf16 %v4135_v16, %v4135_v16  ;;  %4095 = vst [vmem:[#allocation5 + $0xc] sm:$0xf] %v4056_v38  ;;  %v3905_v2 = vpop.f32.mrf.mxu2  ;;  %v13294_v3 = vld [vmem:[#allocation5 + $0x4] sm:$0xf]  ;;  %v10713_v1 = vld [vmem:[#allocation5 + $0x8] sm:$0xf] }
 0x540   : > { %4125 = vst [vmem:[#allocation5 + $0x10] sm:$0xf] %v4115_v58  ;;  %v3906_v60 = vadd.f32 %v3905_v2, %v3862_v56  ;;  %v10741_v20 = vld [vmem:[#allocation5 + $0x48] sm:$0xf] }
 0x541   : > { %4155 = vst [vmem:[#allocation5 + $0x14] sm:$0xf] %v4145_v18 }
 0x542   : > { %4066 = vst [vmem:[#allocation5 + $0x2c] sm:$0xf] %v4056_v38  ;;  %v16187_v46 = vadd.f32 %v3948_v5, %v3906_v60 }
 0x543   : > { %v4076_v42 = vld [vmem:[#allocation4 + $0x12] sm:$0xff]  ;;  %4008 = vst [vmem:[#allocation5 + $0x6c] sm:$0xf] %v3998_v34 }
 0x544   : > { %v4106_v14 = vld [vmem:[#allocation4 + $0x13] sm:$0xff]  ;;  %v16189_v29 = vpack.c.bf16 %v4076_v42, %v4076_v42  ;;  %3976 = vst [vmem:[#allocation4 + $0x20] sm:$0xff] %v16187_v46  ;;  %v3958_v32 = vpop.f32.mrf.mxu3 }
 0x545   : > { %v4136_v6 = vld [vmem:[#allocation4 + $0x14] sm:$0xff]  ;;  %v4116_v39 = vpack.c.bf16 %v4106_v14, %v4106_v14  ;;  %v10707_v13 = vld [vmem:[#allocation5 + $0x24] sm:$0xf0] }
 0x546   : > { %v4146_v12 = vpack.c.bf16 %v4136_v6, %v4136_v6  ;;  %v4195_v19 = vld [vmem:[#allocation4 + $0x15] sm:$0xff]  ;;  %4096 = vst [vmem:[#allocation5 + $0x30] sm:$0xf] %v16189_v29  ;;  %v10710_v27 = vor.u32 %v13294_v3, %v10707_v13 }
 0x547   : > { %v4225_v33 = vld [vmem:[#allocation4 + $0x16] sm:$0xff]  ;;  %v4205_v21 = vpack.c.bf16 %v4195_v19, %v4195_v19  ;;  %4126 = vst [vmem:[#allocation5 + $0x34] sm:$0xf] %v4116_v39  ;;  %v3907_v51 = vpop.f32.mrf.mxu2 }
 0x548   : > { %v4017_v49 = vld [vmem:[#allocation4 + $0x11] sm:$0xff]  ;;  %v4235_v53 = vpack.c.bf16 %v4225_v33, %v4225_v33  ;;  %4156 = vst [vmem:[#allocation5 + $0x38] sm:$0xf] %v4146_v12  ;;  %v3908_v11 = vadd.f32 %v3907_v51, %v3864_v47  ;;  %5157 = vmatmul.bf16.vlgmr.msrb.gmra.mxu1 %v10710_v27 }
 0x549   : > { %4185 = vst [vmem:[#allocation5 + $0x18] sm:$0xf] %v4146_v12  ;;  %v13299_v30 = vld [vmem:[#allocation5 + $0x28] sm:$0xf0]  ;;  %v4027_v28 = vpack.c.bf16 %v4017_v49, %v4017_v49  ;;  %v3874_v49 = vpop.f32.mrf.mxu1 }
 0x54a   : > { %4215 = vst [vmem:[#allocation5 + $0x1c] sm:$0xf] %v4205_v21  ;;  %v16193_v35 = vadd.f32 %v3950_v54, %v3908_v11  ;;  %v10714_v44 = vor.u32 %v13299_v30, %v10713_v1  ;;  %v13307_v24 = vld [vmem:[#allocation5 + $0x68] sm:$0xf0] }
 0x54b   : > { %4245 = vst [vmem:[#allocation5 + $0x20] sm:$0xf] %v4235_v53  ;;  %v4048_v10 = vld [vmem:[#allocation4 + $0x1a] sm:$0xff]  ;;  %v10742_v41 = vor.u32 %v13307_v24, %v10741_v20 }
 0x54c   : > { %v4107_v26 = vld [vmem:[#allocation4 + $0x1b] sm:$0xff]  ;;  %v16195_v56 = vpack.c.bf16 %v4048_v10, %v4048_v10  ;;  %3977 = vst [vmem:[#allocation4 + $0x28] sm:$0xff] %v16193_v35  ;;  %5191 = vmatmul.bf16.vlgmr.msrb.gmra.mxu2 %v10714_v44  ;;  %v3960_v11 = vpop.f32.mrf.mxu3 }
 0x54d   : > { %v4137_v50 = vld [vmem:[#allocation4 + $0x1c] sm:$0xff]  ;;  %5128 = vmatmul.bf16.gmra.mxu3 %v10742_v41  ;;  %4037 = vst [vmem:[#allocation5 + $0x4c] sm:$0xf] %v4027_v28  ;;  %v4117_v57 = vpack.c.bf16 %v4107_v26, %v4107_v26  ;;  %v3999_v41 = vpack.c.bf16 %v16187_v46, %v16187_v46 }
 0x54e   : > { %v4196_v5 = vld [vmem:[#allocation4 + $0x1d] sm:$0xff]  ;;  %v4147_v22 = vpack.c.bf16 %v4137_v50, %v4137_v50  ;;  %4097 = vst [vmem:[#allocation5 + $0x54] sm:$0xf] %v16195_v56 }
 0x54f   : > { %v4226_v15 = vld [vmem:[#allocation4 + $0x1e] sm:$0xff]  ;;  %v4206_v7 = vpack.c.bf16 %v4196_v5, %v4196_v5  ;;  %v3910_v43 = vpop.f32.mrf.mxu2  ;;  %4127 = vst [vmem:[#allocation5 + $0x58] sm:$0xf] %v4117_v57  ;;  %v4000_v5 = vpack.c.bf16 %v16193_v35, %v16193_v35 }
 0x550   : > { %v4236_v59 = vpack.c.bf16 %v4226_v15, %v4226_v15  ;;  %v4018_v45 = vld [vmem:[#allocation4 + $0x19] sm:$0xff]  ;;  %4186 = vst [vmem:[#allocation5 + $0x3c] sm:$0xf] %v4147_v22  ;;  %v3911_v8 = vadd.f32 %v3910_v43, %v3867_v23 }
 0x551   : > { %4216 = vst [vmem:[#allocation5 + $0x40] sm:$0xf] %v4206_v7  ;;  %v4028_v4 = vpack.c.bf16 %v4018_v45, %v4018_v45  ;;  %v13297_v58 = vld [vmem:[#allocation5 + $0x1c] sm:$0xf]  ;;  %v3877_v50 = vpop.f32.mrf.mxu1 }
 0x552   : > { %4246 = vst [vmem:[#allocation5 + $0x44] sm:$0xf] %v4236_v59  ;;  %v16199_v31 = vadd.f32 %v3953_v17, %v3911_v8 }
 0x553   : > { %4157 = vst [vmem:[#allocation5 + $0x5c] sm:$0xf] %v4147_v22  ;;  %v4078_v48 = vld [vmem:[#allocation4 + $0x22] sm:$0xff] }
 0x554   : > { %v4108_v62 = vld [vmem:[#allocation4 + $0x23] sm:$0xff]  ;;  %v16201_v37 = vpack.c.bf16 %v4078_v48, %v4078_v48  ;;  %3978 = vst [vmem:[#allocation4 + $0x30] sm:$0xff] %v16199_v31  ;;  %v13303_v12 = vld [vmem:[#allocation5 + $0x4c] sm:$0xf]  ;;  %v16223_v22 = vpop.f32.mrf.mxu3 }
 0x555   : > { %v4138_v47 = vld [vmem:[#allocation4 + $0x24] sm:$0xff]  ;;  %v4118_v61 = vpack.c.bf16 %v4108_v62, %v4108_v62  ;;  %4038 = vst [vmem:[#allocation5 + $0x70] sm:$0xf] %v4028_v4 }
 0x556   : > { %v4148_v54 = vpack.c.bf16 %v4138_v47, %v4138_v47  ;;  %v4197_v40 = vld [vmem:[#allocation4 + $0x25] sm:$0xff]  ;;  %4098 = vst [vmem:[#allocation5 + $0x78] sm:$0xf] %v16201_v37 }
 0x557   : > { %v4227_v0 = vld [vmem:[#allocation4 + $0x26] sm:$0xff]  ;;  %v4207_v63 = vpack.c.bf16 %v4197_v40, %v4197_v40  ;;  %4128 = vst [vmem:[#allocation5 + $0x7c] sm:$0xf] %v4118_v61  ;;  %v3912_v38 = vpop.f32.mrf.mxu2  ;;  %v13370_v40 = vld [vmem:[#allocation17 + $0xf8] sm:$0xff] }
 0x558   : > { %v4237_v55 = vpack.c.bf16 %v4227_v0, %v4227_v0  ;;  %v10731_v16 = vld [vmem:[#allocation5 + $0x3c] sm:$0xf0]  ;;  %4158 = vst [vmem:[#allocation5 + $0x80] sm:$0xf] %v4148_v54  ;;  %v3913_v52 = vadd.f32 %v3912_v38, %v3869_v25  ;;  %5217 = vmatpush.bf16.msra.mxu3 %v13370_v40  ;;  %v13369_v38 = vld [vmem:[#allocation17 + $0xf0] sm:$0xff]  ;;  %v13383_v40 = vld [vmem:[#allocation17 + $0x160] sm:$0xff] }
 0x559   : > { %v10734_v18 = vor.u32 %v13297_v58, %v10731_v16  ;;  %4187 = vst [vmem:[#allocation5 + $0x60] sm:$0xf] %v4148_v54  ;;  %v4019_v54 = vld [vmem:[#allocation4 + $0x21] sm:$0xff] }
 0x55a   : > { %4217 = vst [vmem:[#allocation5 + $0x64] sm:$0xf] %v4207_v63  ;;  %v16205_v2 = vadd.f32 %v3955_v9, %v3913_v52  ;;  %v4029_v58 = vpack.c.bf16 %v4019_v54, %v4019_v54 }
 0x55b   : > { %5361 = vmatmul.bf16.vlgmr.msrb.gmra.mxu0 %v10734_v18  ;;  %4247 = vst [vmem:[#allocation5 + $0x68] sm:$0xf] %v4237_v55  ;;  %v4050_v34 = vld [vmem:[#allocation4 + $0x2a] sm:$0xff]  ;;  %v3879_v55 = vpop.f32.mrf.mxu1 }
 0x55c   : > { %v4109_v60 = vld [vmem:[#allocation4 + $0x2b] sm:$0xff]  ;;  %v16207_v23 = vpack.c.bf16 %v4050_v34, %v4050_v34  ;;  %3979 = vst [vmem:[#allocation4 + $0x38] sm:$0xff] %v16205_v2  ;;  %v10743_v19 = vld [vmem:[#allocation5 + $0x6c] sm:$0xf0]  ;;  %v3965_v52 = vpop.f32.mrf.mxu3  ;;  %5218 = vmatpush.bf16.msra.mxu3 %v13369_v38 }
 0x55d   : > { %v4119_v17 = vpack.c.bf16 %v4109_v60, %v4109_v60  ;;  %v4139_v42 = vld [vmem:[#allocation4 + $0x2c] sm:$0xff]  ;;  %4067 = vst [vmem:[#allocation5 + $0x50] sm:$0xf] %v16189_v29  ;;  %v10746_v21 = vor.u32 %v13303_v12, %v10743_v19 }
 0x55e   : > { %v4198_v14 = vld [vmem:[#allocation4 + $0x2d] sm:$0xff]  ;;  %v4149_v39 = vpack.c.bf16 %v4139_v42, %v4139_v42  ;;  %4099 = vst [vmem:[#allocation5 + $0x9c] sm:$0xf] %v16207_v23 }
 0x55f   : > { %v4228_v6 = vld [vmem:[#allocation4 + $0x2e] sm:$0xff]  ;;  %v4208_v33 = vpack.c.bf16 %v4198_v14, %v4198_v14  ;;  %4129 = vst [vmem:[#allocation5 + $0xa0] sm:$0xf] %v4119_v17  ;;  %v3915_v51 = vpop.f32.mrf.mxu2  ;;  %5162 = vmatmul.bf16.gmra.mxu1 %v10746_v21 }
 0x560   : > { %v4238_v53 = vpack.c.bf16 %v4228_v6, %v4228_v6  ;;  %4159 = vst [vmem:[#allocation5 + $0xa4] sm:$0xf] %v4149_v39  ;;  %v3916_v3 = vadd.f32 %v3915_v51, %v3872_v36  ;;  %v4020_v0 = vld [vmem:[#allocation4 + $0x29] sm:$0xff] }
 0x561   : > { %4188 = vst [vmem:[#allocation5 + $0x84] sm:$0xf] %v4149_v39  ;;  %v13306_v15 = vld [vmem:[#allocation5 + $0x64] sm:$0xf]  ;;  %v4030_v16 = vpack.c.bf16 %v4020_v0, %v4020_v0 }
 0x562   : > { %4218 = vst [vmem:[#allocation5 + $0x88] sm:$0xf] %v4208_v33  ;;  %v16212_v13 = vadd.f32 %v3958_v32, %v3916_v3  ;;  %v13368_v51 = vld [vmem:[#allocation17 + $0xe8] sm:$0xff] }
 0x563   : > { %4248 = vst [vmem:[#allocation5 + $0x8c] sm:$0xf] %v4238_v53  ;;  %v4080_v27 = vld [vmem:[#allocation4 + $0x32] sm:$0xff]  ;;  %v16235_v3 = vpop.f32.mrf.mxu1  ;;  %5219 = vmatpush.bf16.msra.mxu3 %v13368_v51 }
 0x564   : > { %v4110_v1 = vld [vmem:[#allocation4 + $0x33] sm:$0xff]  ;;  %v16214_v30 = vpack.c.bf16 %v4080_v27, %v4080_v27  ;;  %4068 = vst [vmem:[#allocation5 + $0x74] sm:$0xf] %v16195_v56 }
 0x565   : > { %v4140_v29 = vld [vmem:[#allocation4 + $0x34] sm:$0xff]  ;;  %v4120_v28 = vpack.c.bf16 %v4110_v1, %v4110_v1  ;;  %3980 = vst [vmem:[#allocation4 + $0x40] sm:$0xff] %v16212_v13 }
 0x566   : > { %v4150_v44 = vpack.c.bf16 %v4140_v29, %v4140_v29  ;;  %v4199_v25 = vld [vmem:[#allocation4 + $0x35] sm:$0xff]  ;;  %4100 = vst [vmem:[#allocation5 + $0xc0] sm:$0xf] %v16214_v30 }
 0x567   : > { %v4229_v20 = vld [vmem:[#allocation4 + $0x36] sm:$0xff]  ;;  %v4209_v24 = vpack.c.bf16 %v4199_v25, %v4199_v25  ;;  %4130 = vst [vmem:[#allocation5 + $0xc4] sm:$0xf] %v4120_v28  ;;  %v3917_v26 = vpop.f32.mrf.mxu2  ;;  %v13367_v25 = vld [vmem:[#allocation17 + $0xe0] sm:$0xff] }
 0x568   : > { %v4239_v10 = vpack.c.bf16 %v4229_v20, %v4229_v20  ;;  %4160 = vst [vmem:[#allocation5 + $0xc8] sm:$0xf] %v4150_v44  ;;  %v3918_v9 = vadd.f32 %v3917_v26, %v3874_v49  ;;  %v10749_v45 = vld [vmem:[#allocation5 + $0x50] sm:$0xf]  ;;  %v16238_v26 = vpop.f32.mrf.mxu3  ;;  %5220 = vmatpush.bf16.msra.mxu3 %v13367_v25 }
 0x569   : > { %4189 = vst [vmem:[#allocation5 + $0xa8] sm:$0xf] %v4150_v44  ;;  %v10767_v56 = vld [vmem:[#allocation5 + $0x84] sm:$0xf0]  ;;  %v13386_v29 = vld [vmem:[#allocation17 + $0x178] sm:$0xff] }
 0x56a   : > { %4219 = vst [vmem:[#allocation5 + $0xac] sm:$0xf] %v4209_v24  ;;  %v16225_v7 = vadd.f32 %v3960_v11, %v3918_v9  ;;  %v10770_v59 = vor.u32 %v13306_v15, %v10767_v56  ;;  %v13378_v11 = vld [vmem:[#allocation17 + $0x138] sm:$0xff]  ;;  %5285 = vmatpush.bf16.msra.mxu2 %v13386_v29  ;;  %v4001_v9 = vpack.c.bf16 %v16199_v31, %v16199_v31  ;;  %v13363_v29 = vld [vmem:[#allocation17 + $0xc0] sm:$0xff] }
 0x56b   : > { %4249 = vst [vmem:[#allocation5 + $0xb0] sm:$0xf] %v4239_v10  ;;  %v13308_v57 = vld [vmem:[#allocation5 + $0x70] sm:$0xf0]  ;;  %5251 = vmatpush.bf16.msra.mxu1 %v13378_v11  ;;  %v13385_v10 = vld [vmem:[#allocation17 + $0x170] sm:$0xff]  ;;  %v4002_v56 = vpack.c.bf16 %v16205_v2, %v16205_v2  ;;  %v13384_v2 = vld [vmem:[#allocation17 + $0x168] sm:$0xff] }
 0x56c   : > { %v10750_v43 = vor.u32 %v13308_v57, %v10749_v45  ;;  %v4052_v8 = vld [vmem:[#allocation4 + $0x3a] sm:$0xff]  ;;  %4009 = vst [vmem:[#allocation5 + $0x90] sm:$0xf] %v3999_v41  ;;  %5366 = vmatmul.bf16.gmra.mxu0 %v10770_v59 }
 0x56d   : > { %v4111_v46 = vld [vmem:[#allocation4 + $0x3b] sm:$0xff]  ;;  %v16227_v4 = vpack.c.bf16 %v4052_v8, %v4052_v8  ;;  %4010 = vst [vmem:[#allocation5 + $0xb4] sm:$0xf] %v4000_v5 }
 0x56e   : > { %v4121_v48 = vpack.c.bf16 %v4111_v46, %v4111_v46  ;;  %v4141_v35 = vld [vmem:[#allocation4 + $0x3c] sm:$0xff]  ;;  %5196 = vmatmul.bf16.gmra.mxu2 %v10750_v43  ;;  %3981 = vst [vmem:[#allocation4 + $0x48] sm:$0xff] %v16225_v7  ;;  %v3884_v43 = vpop.f32.mrf.mxu1  ;;  %v13376_v46 = vld [vmem:[#allocation17 + $0x128] sm:$0xff] }
 0x56f   : > { %v4200_v62 = vld [vmem:[#allocation4 + $0x3d] sm:$0xff]  ;;  %v4151_v61 = vpack.c.bf16 %v4141_v35, %v4141_v35  ;;  %4101 = vst [vmem:[#allocation5 + $0xe4] sm:$0xf] %v16227_v4  ;;  %v3920_v32 = vpop.f32.mrf.mxu2  ;;  %5286 = vmatpush.bf16.msra.mxu2 %v13385_v10 }
 0x570   : > { %v4230_v47 = vld [vmem:[#allocation4 + $0x3e] sm:$0xff]  ;;  %v4210_v36 = vpack.c.bf16 %v4200_v62, %v4200_v62  ;;  %4131 = vst [vmem:[#allocation5 + $0xe8] sm:$0xf] %v4121_v48  ;;  %v3921_v21 = vadd.f32 %v3920_v32, %v3877_v50  ;;  %v4021_v50 = vld [vmem:[#allocation4 + $0x31] sm:$0xff]  ;;  %v3970_v62 = vpop.f32.mrf.mxu3 }
 0x571   : > { %v4240_v63 = vpack.c.bf16 %v4230_v47, %v4230_v47  ;;  %4161 = vst [vmem:[#allocation5 + $0xec] sm:$0xf] %v4151_v61  ;;  %v13315_v1 = vld [vmem:[#allocation5 + $0xac] sm:$0xf]  ;;  %v4022_v41 = vld [vmem:[#allocation4 + $0x39] sm:$0xff]  ;;  %v4031_v45 = vpack.c.bf16 %v4021_v50, %v4021_v50  ;;  %v13372_v50 = vld [vmem:[#allocation17 + $0x108] sm:$0xff] }
 0x572   : > { %4190 = vst [vmem:[#allocation5 + $0xcc] sm:$0xf] %v4151_v61  ;;  %v3964_v20 = vadd.f32 %v16223_v22, %v3921_v21  ;;  %v4032_v31 = vpack.c.bf16 %v4022_v41, %v4022_v41  ;;  %v13366_v8 = vld [vmem:[#allocation17 + $0xd8] sm:$0xff]  ;;  %v13365_v48 = vld [vmem:[#allocation17 + $0xd0] sm:$0xff]  ;;  %v13375_v35 = vld [vmem:[#allocation17 + $0x120] sm:$0xff]  ;;  %v4004_v61 = vpack.c.bf16 %v16225_v7, %v16225_v7 }
 0x573   : > { %4220 = vst [vmem:[#allocation5 + $0xd0] sm:$0xf] %v4210_v36  ;;  %v10777_v18 = vld [vmem:[#allocation5 + $0x90] sm:$0xf]  ;;  %5221 = vmatpush.bf16.msra.mxu3 %v13366_v8  ;;  %5287 = vmatpush.bf16.msra.mxu2 %v13384_v2  ;;  %v13379_v8 = vld [vmem:[#allocation17 + $0x140] sm:$0xff] }
 0x574   : > { %4250 = vst [vmem:[#allocation5 + $0xd4] sm:$0xf] %v4240_v63  ;;  %v13316_v34 = vld [vmem:[#allocation5 + $0xb0] sm:$0xf0] }
 0x575   : > { %v10778_v60 = vor.u32 %v13316_v34, %v10777_v18  ;;  %v4082_v17 = vld [vmem:[#allocation4 + $0x42] sm:$0xff]  ;;  %4039 = vst [vmem:[#allocation5 + $0x94] sm:$0xf] %v4029_v58 }
 0x576   : > { %v4112_v42 = vld [vmem:[#allocation4 + $0x43] sm:$0xff]  ;;  %v16231_v6 = vpack.c.bf16 %v4082_v17, %v4082_v17  ;;  %4040 = vst [vmem:[#allocation5 + $0xb8] sm:$0xf] %v4030_v16 }
 0x577   : > { %v4142_v14 = vld [vmem:[#allocation4 + $0x44] sm:$0xff]  ;;  %v4122_v39 = vpack.c.bf16 %v4112_v42, %v4112_v42  ;;  %5133 = vmatmul.bf16.gmra.mxu3 %v10778_v60  ;;  %4069 = vst [vmem:[#allocation5 + $0x98] sm:$0xf] %v16201_v37  ;;  %v3922_v49 = vpop.f32.mrf.mxu2  ;;  %v13377_v37 = vld [vmem:[#allocation17 + $0x130] sm:$0xff]  ;;  %5288 = vmatpush.bf16.msra.mxu2 %v13383_v40 }
 0x578   : > { %v4152_v12 = vpack.c.bf16 %v4142_v14, %v4142_v14  ;;  %v4201_v19 = vld [vmem:[#allocation4 + $0x45] sm:$0xff]  ;;  %4102 = vst [vmem:[#allocation5 + $0x108] sm:$0xf] %v16231_v6  ;;  %v3923_v28 = vadd.f32 %v3922_v49, %v3879_v55  ;;  %5252 = vmatpush.bf16.msra.mxu1 %v13377_v37  ;;  %5222 = vmatpush.bf16.msra.mxu3 %v13365_v48  ;;  %v13381_v37 = vld [vmem:[#allocation17 + $0x150] sm:$0xff] }
 0x579   : > { %v4231_v33 = vld [vmem:[#allocation4 + $0x46] sm:$0xff]  ;;  %v4211_v53 = vpack.c.bf16 %v4201_v19, %v4201_v19  ;;  %4132 = vst [vmem:[#allocation5 + $0x10c] sm:$0xf] %v4122_v39 }
 0x57a   : > { %v4241_v27 = vpack.c.bf16 %v4231_v33, %v4231_v33  ;;  %4162 = vst [vmem:[#allocation5 + $0x110] sm:$0xf] %v4152_v12  ;;  %v10803_v44 = vld [vmem:[#allocation5 + $0xcc] sm:$0xf0]  ;;  %v3966_v22 = vadd.f32 %v3965_v52, %v3923_v28  ;;  %v13364_v49 = vld [vmem:[#allocation17 + $0xc8] sm:$0xff]  ;;  %v13373_v28 = vld [vmem:[#allocation17 + $0x110] sm:$0xff] }
 0x57b   : > { %4191 = vst [vmem:[#allocation5 + $0xf0] sm:$0xf] %v4152_v12  ;;  %v10806_v24 = vor.u32 %v13315_v1, %v10803_v44  ;;  %v13382_v1 = vld [vmem:[#allocation17 + $0x158] sm:$0xff]  ;;  %v4023_v25 = vld [vmem:[#allocation4 + $0x41] sm:$0xff] }
 0x57c   : > { %4221 = vst [vmem:[#allocation5 + $0xf4] sm:$0xf] %v4211_v53  ;;  %v13312_v5 = vld [vmem:[#allocation5 + $0x94] sm:$0xf]  ;;  %5253 = vmatpush.bf16.msra.mxu1 %v13376_v46  ;;  %5223 = vmatpush.bf16.msra.mxu3 %v13364_v49  ;;  %v13305_v49 = vld [vmem:[#allocation5 + $0x5c] sm:$0xf] }
 0x57d   : > { %4251 = vst [vmem:[#allocation5 + $0xf8] sm:$0xf] %v4241_v27  ;;  %v10779_v15 = vld [vmem:[#allocation5 + $0xb4] sm:$0xf0]  ;;  %5371 = vmatmul.bf16.gmra.mxu0 %v10806_v24  ;;  %v13374_v53 = vld [vmem:[#allocation17 + $0x118] sm:$0xff]  ;;  %5289 = vmatpush.bf16.msra.mxu2 %v13382_v1 }
 0x57e   : > { %v10782_v59 = vor.u32 %v13312_v5, %v10779_v15  ;;  %4070 = vst [vmem:[#allocation5 + $0xbc] sm:$0xf] %v16207_v23  ;;  %v4003_v23 = vpack.c.bf16 %v16212_v13, %v16212_v13  ;;  %v10785_v47 = vld [vmem:[#allocation5 + $0x98] sm:$0xf] }
 0x57f   : > { %3982 = vst [vmem:[#allocation4 + $0x50] sm:$0xff] %v3964_v20  ;;  %v16245_v57 = vpop.f32.mrf.mxu2 }
 0x580   : > { %5167 = vmatmul.bf16.gmra.mxu1 %v10782_v59  ;;  %4011 = vst [vmem:[#allocation5 + $0xd8] sm:$0xf] %v4001_v9  ;;  %v3926_v27 = vadd.f32 %v16245_v57, %v16235_v3  ;;  %v4033_v3 = vpack.c.bf16 %v4023_v25, %v4023_v25  ;;  %5224 = vmatpush.bf16.msra.mxu3 %v13363_v29  ;;  %v13392_v29 = vld [vmem:[#allocation17 + $0x1a8] sm:$0xff] }
 0x581   : > { %4012 = vst [vmem:[#allocation5 + $0xfc] sm:$0xf] %v4002_v56  ;;  %5254 = vmatpush.bf16.msra.mxu1 %v13375_v35  ;;  %5290 = vmatpush.bf16.msra.mxu2 %v13381_v37  ;;  %v13380_v56 = vld [vmem:[#allocation17 + $0x148] sm:$0xff]  ;;  %v13391_v37 = vld [vmem:[#allocation17 + $0x1a0] sm:$0xff] }
 0x582   : > { %3983 = vst [vmem:[#allocation4 + $0x58] sm:$0xff] %v3966_v22  ;;  %v3969_v41 = vadd.f32 %v16238_v26, %v3926_v27  ;;  %v13371_v26 = vld [vmem:[#allocation17 + $0x100] sm:$0xff] }
 0x583   : > { %4041 = vst [vmem:[#allocation5 + $0xdc] sm:$0xf] %v4031_v45  ;;  %v13324_v9 = vld [vmem:[#allocation5 + $0xf4] sm:$0xf]  ;;  %v13313_v27 = vld [vmem:[#allocation5 + $0x9c] sm:$0xf] }
 0x584   : > { %4042 = vst [vmem:[#allocation5 + $0x100] sm:$0xf] %v4032_v31 }
 0x585   : > { %v13317_v54 = vld [vmem:[#allocation5 + $0xb8] sm:$0xf0]  ;;  %4071 = vst [vmem:[#allocation5 + $0xe0] sm:$0xf] %v16214_v30  ;;  %5255 = vmatpush.bf16.msra.mxu1 %v13374_v53  ;;  %5291 = vmatpush.bf16.msra.mxu2 %v13380_v56  ;;  %v13389_v56 = vld [vmem:[#allocation17 + $0x190] sm:$0xff] }
 0x586   : > { %v10786_v0 = vor.u32 %v13317_v54, %v10785_v47  ;;  %v4054_v36 = vld [vmem:[#allocation4 + $0x4a] sm:$0xff]  ;;  %4072 = vst [vmem:[#allocation5 + $0x104] sm:$0xf] %v16227_v4 }
 0x587   : > { %v4113_v32 = vld [vmem:[#allocation4 + $0x4b] sm:$0xff]  ;;  %v16253_v13 = vpack.c.bf16 %v4054_v36, %v4054_v36  ;;  %4013 = vst [vmem:[#allocation5 + $0x120] sm:$0xf] %v4003_v23  ;;  %v3927_v7 = vpop.f32.mrf.mxu2  ;;  %v10813_v52 = vld [vmem:[#allocation5 + $0xd8] sm:$0xf] }
 0x588   : > { %v4123_v63 = vpack.c.bf16 %v4113_v32, %v4113_v32  ;;  %v4143_v55 = vld [vmem:[#allocation4 + $0x4c] sm:$0xff]  ;;  %5201 = vmatmul.bf16.gmra.mxu2 %v10786_v0  ;;  %v13325_v30 = vld [vmem:[#allocation5 + $0xf8] sm:$0xf0]  ;;  %4014 = vst [vmem:[#allocation5 + $0x144] sm:$0xf] %v4004_v61 }
 0x589   : > { %v4202_v38 = vld [vmem:[#allocation4 + $0x4d] sm:$0xff]  ;;  %v4153_v16 = vpack.c.bf16 %v4143_v55, %v4143_v55  ;;  %4103 = vst [vmem:[#allocation5 + $0x12c] sm:$0xf] %v16253_v13  ;;  %v10814_v34 = vor.u32 %v13325_v30, %v10813_v52  ;;  %v4203_v33 = vld [vmem:[#allocation4 + $0x55] sm:$0xff]  ;;  %5256 = vmatpush.bf16.msra.mxu1 %v13373_v28  ;;  %5292 = vmatpush.bf16.msra.mxu2 %v13379_v8  ;;  %v10723_v52 = vld [vmem:[#allocation5 + $0x34] sm:$0xf0] }
 0x58a   : > { %v4232_v58 = vld [vmem:[#allocation4 + $0x4e] sm:$0xff]  ;;  %v4212_v18 = vpack.c.bf16 %v4202_v38, %v4202_v38  ;;  %4133 = vst [vmem:[#allocation5 + $0x130] sm:$0xf] %v4123_v63  ;;  %v13321_v39 = vld [vmem:[#allocation5 + $0xdc] sm:$0xf]  ;;  %v4233_v11 = vld [vmem:[#allocation4 + $0x56] sm:$0xff]  ;;  %v4213_v44 = vpack.c.bf16 %v4203_v33, %v4203_v33 }
 0x58b   : > { %v4084_v4 = vld [vmem:[#allocation4 + $0x52] sm:$0xff]  ;;  %v4242_v17 = vpack.c.bf16 %v4232_v58, %v4232_v58  ;;  %4163 = vst [vmem:[#allocation5 + $0x134] sm:$0xf] %v4153_v16  ;;  %5138 = vmatmul.bf16.gmra.mxu3 %v10814_v34  ;;  %v10815_v12 = vld [vmem:[#allocation5 + $0xfc] sm:$0xf0]  ;;  %v4243_v24 = vpack.c.bf16 %v4233_v11, %v4233_v11 }
 0x58c   : > { %v4114_v60 = vld [vmem:[#allocation4 + $0x53] sm:$0xff]  ;;  %v4094_v14 = vpack.c.bf16 %v4084_v4, %v4084_v4  ;;  %4192 = vst [vmem:[#allocation5 + $0x114] sm:$0xf] %v4153_v16  ;;  %v10818_v21 = vor.u32 %v13321_v39, %v10815_v12  ;;  %v4024_v20 = vld [vmem:[#allocation4 + $0x49] sm:$0xff]  ;;  %v13300_v58 = vld [vmem:[#allocation5 + $0x30] sm:$0xf0] }
 0x58d   : > { %v4144_v42 = vld [vmem:[#allocation4 + $0x54] sm:$0xff]  ;;  %v4124_v19 = vpack.c.bf16 %v4114_v60, %v4114_v60  ;;  %4222 = vst [vmem:[#allocation5 + $0x118] sm:$0xf] %v4212_v18  ;;  %v13326_v10 = vld [vmem:[#allocation5 + $0x100] sm:$0xf0]  ;;  %v4034_v15 = vpack.c.bf16 %v4024_v20, %v4024_v20  ;;  %5257 = vmatpush.bf16.msra.mxu1 %v13372_v50 }
 0x58e   : > { %v4154_v51 = vpack.c.bf16 %v4144_v42, %v4144_v42  ;;  %4252 = vst [vmem:[#allocation5 + $0x11c] sm:$0xf] %v4242_v17  ;;  %v10821_v5 = vld [vmem:[#allocation5 + $0xe0] sm:$0xf]  ;;  %v10715_v36 = vld [vmem:[#allocation5 + $0x2c] sm:$0xf0] }
 0x58f   : > { %4104 = vst [vmem:[#allocation5 + $0x150] sm:$0xf] %v4094_v14  ;;  %v10822_v59 = vor.u32 %v13326_v10, %v10821_v5  ;;  %v13334_v22 = vld [vmem:[#allocation5 + $0x140] sm:$0xf0]  ;;  %v10849_v31 = vld [vmem:[#allocation5 + $0x120] sm:$0xf] }
 0x590   : > { %4134 = vst [vmem:[#allocation5 + $0x154] sm:$0xf] %v4124_v19  ;;  %5172 = vmatmul.bf16.gmra.mxu1 %v10818_v21  ;;  %v10850_v43 = vor.u32 %v13334_v22, %v10849_v31  ;;  %v13295_v63 = vld [vmem:[#allocation5 + $0xc] sm:$0xf]  ;;  %v10721_v7 = vld [vmem:[#allocation5 + $0x10] sm:$0xf] }
 0x591   : > { %4164 = vst [vmem:[#allocation5 + $0x158] sm:$0xf] %v4154_v51  ;;  %5258 = vmatpush.bf16.msra.mxu1 %v13371_v26  ;;  %v10718_v38 = vor.u32 %v13295_v63, %v10715_v36  ;;  %v10722_v16 = vor.u32 %v13300_v58, %v10721_v7  ;;  %v13296_v30 = vld [vmem:[#allocation5 + $0x14] sm:$0xf]  ;;  %v10751_v34 = vld [vmem:[#allocation5 + $0x74] sm:$0xf0] }
 0x592   : > { %4193 = vst [vmem:[#allocation5 + $0x138] sm:$0xf] %v4154_v51  ;;  %v10726_v18 = vor.u32 %v13296_v30, %v10723_v52  ;;  %v13304_v4 = vld [vmem:[#allocation5 + $0x54] sm:$0xf]  ;;  %v13309_v42 = vld [vmem:[#allocation5 + $0x78] sm:$0xf0] }
 0x593   : > { %4223 = vst [vmem:[#allocation5 + $0x13c] sm:$0xf] %v4213_v44  ;;  %v10754_v60 = vor.u32 %v13304_v4, %v10751_v34  ;;  %v13394_v17 = vld [vmem:[#allocation17 + $0x1b8] sm:$0xff]  ;;  %v13393_v14 = vld [vmem:[#allocation17 + $0x1b0] sm:$0xff]  ;;  %v10757_v39 = vld [vmem:[#allocation5 + $0x58] sm:$0xf] }
 0x594   : > { %4253 = vst [vmem:[#allocation5 + $0x140] sm:$0xf] %v4243_v24  ;;  %v10839_v45 = vld [vmem:[#allocation5 + $0x114] sm:$0xf0]  ;;  %5319 = vmatpush.bf16.msrb.mxu3 %v13394_v17  ;;  %v10758_v12 = vor.u32 %v13309_v42, %v10757_v39  ;;  %v10759_v19 = vld [vmem:[#allocation5 + $0x7c] sm:$0xf0] }
 0x595   : > { %3984 = vst [vmem:[#allocation4 + $0x60] sm:$0xff] %v3969_v41  ;;  %v10842_v57 = vor.u32 %v13324_v9, %v10839_v45  ;;  %v16261_v33 = vld [vmem:[#allocation19] ss:$0 sm:$0xff]  ;;  %v10762_v53 = vor.u32 %v13305_v49, %v10759_v19  ;;  %v10787_v51 = vld [vmem:[#allocation5 + $0xbc] sm:$0xf0]  ;;  %v13410_v28 = vld [vmem:[#allocation17 + $0x238] sm:$0xff] }
 0x596   : > { %4043 = vst [vmem:[#allocation5 + $0x124] sm:$0xf] %v4033_v3  ;;  %v10790_v44 = vor.u32 %v13313_v27, %v10787_v51  ;;  %5387 = vmatpush.bf16.msrb.mxu1 %v13410_v28  ;;  %v13409_v20 = vld [vmem:[#allocation17 + $0x230] sm:$0xff]  ;;  %v10793_v10 = vld [vmem:[#allocation5 + $0xa0] sm:$0xf]  ;;  %v13390_v41 = vld [vmem:[#allocation17 + $0x198] sm:$0xff] }
 0x597   : > { %4044 = vst [vmem:[#allocation5 + $0x148] sm:$0xf] %v4034_v15  ;;  %5376 = vmatmul.bf16.gmra.mxu0 %v10842_v57  ;;  %v13318_v24 = vld [vmem:[#allocation5 + $0xc0] sm:$0xf0]  ;;  %v10795_v22 = vld [vmem:[#allocation5 + $0xc4] sm:$0xf0] }
 0x598   : > { %5206 = vmatmul.bf16.gmra.mxu2 %v10822_v59  ;;  %4073 = vst [vmem:[#allocation5 + $0x128] sm:$0xf] %v16231_v6  ;;  %5320 = vmatpush.bf16.msrb.mxu3 %v13393_v14  ;;  %v13408_v3 = vld [vmem:[#allocation17 + $0x228] sm:$0xff]  ;;  %v10794_v9 = vor.u32 %v13318_v24, %v10793_v10  ;;  %v13407_v59 = vld [vmem:[#allocation17 + $0x220] sm:$0xff]  ;;  %v10823_v26 = vld [vmem:[#allocation5 + $0x104] sm:$0xf0] }
 0x599   : > { %4074 = vst [vmem:[#allocation5 + $0x14c] sm:$0xf] %v16253_v13  ;;  %v13314_v57 = vld [vmem:[#allocation5 + $0xa4] sm:$0xf]  ;;  %v13403_v36 = vld [vmem:[#allocation17 + $0x200] sm:$0xff] }
 0x59a   : > { %v13333_v32 = vld [vmem:[#allocation5 + $0x13c] sm:$0xf]  ;;  %5388 = vmatpush.bf16.msrb.mxu1 %v13409_v20  ;;  %v10798_v31 = vor.u32 %v13314_v57, %v10795_v22  ;;  %v13331_v58 = vld [vmem:[#allocation5 + $0x12c] sm:$0xf]  ;;  %v10865_v52 = vld [vmem:[#allocation5 + $0x130] sm:$0xf] }
 0x59b   : > { %5143 = vmatmul.bf16.gmra.mxu3 %v10850_v43  ;;  %v13322_v43 = vld [vmem:[#allocation5 + $0xe4] sm:$0xf]  ;;  %v13332_v42 = vld [vmem:[#allocation5 + $0x134] sm:$0xf]  ;;  %v13301_v39 = vld [vmem:[#allocation5 + $0x38] sm:$0xf0] }
 0x59c   : > { %v4174_v46 = vld [vmem:[#allocation4 + $0x5c] sm:$0xff]  ;;  %5321 = vmatpush.bf16.msrb.mxu3 %v13392_v29  ;;  %v13388_v8 = vld [vmem:[#allocation17 + $0x188] sm:$0xff] }
 0x59d   : > { %v4204_v2 = vld [vmem:[#allocation4 + $0x5d] sm:$0xff]  ;;  %v4184_v48 = vpack.c.bf16 %v4174_v46, %v4174_v46  ;;  %v13330_v47 = vld [vmem:[#allocation5 + $0x124] sm:$0xf]  ;;  %v10737_v27 = vld [vmem:[#allocation5 + $0x20] sm:$0xf] }
 0x59e   : > { %v4234_v23 = vld [vmem:[#allocation4 + $0x5e] sm:$0xff]  ;;  %v4214_v35 = vpack.c.bf16 %v4204_v2, %v4204_v2  ;;  %v10851_v61 = vld [vmem:[#allocation5 + $0x144] sm:$0xf0]  ;;  %5389 = vmatpush.bf16.msrb.mxu1 %v13408_v3  ;;  %v13406_v46 = vld [vmem:[#allocation17 + $0x218] sm:$0xff]  ;;  %v10826_v2 = vor.u32 %v13322_v43, %v10823_v26 }
 0x59f   : > { %v4244_v62 = vpack.c.bf16 %v4234_v23, %v4234_v23  ;;  %4194 = vst [vmem:[#allocation5 + $0x15c] sm:$0xf] %v4184_v48  ;;  %v10854_v54 = vor.u32 %v13330_v47, %v10851_v61  ;;  %v10857_v6 = vld [vmem:[#allocation5 + $0x128] sm:$0xf]  ;;  %v13387_v48 = vld [vmem:[#allocation17 + $0x180] sm:$0xff] }
 0x5a0   : > { %4224 = vst [vmem:[#allocation5 + $0x160] sm:$0xf] %v4214_v35  ;;  %v13335_v40 = vld [vmem:[#allocation5 + $0x148] sm:$0xf0]  ;;  %5322 = vmatpush.bf16.msrb.mxu3 %v13391_v37  ;;  %v13310_v20 = vld [vmem:[#allocation5 + $0x80] sm:$0xf0] }
 0x5a1   : > { %4254 = vst [vmem:[#allocation5 + $0x164] sm:$0xf] %v4244_v62  ;;  %5177 = vmatmul.bf16.gmra.mxu1 %v10854_v54  ;;  %v10858_v0 = vor.u32 %v13335_v40, %v10857_v6  ;;  %v13405_v35 = vld [vmem:[#allocation17 + $0x210] sm:$0xff]  ;;  %v13404_v6 = vld [vmem:[#allocation17 + $0x208] sm:$0xff] }
 0x5a2   : > { %5390 = vmatpush.bf16.msrb.mxu1 %v13407_v59  ;;  %v13327_v62 = vld [vmem:[#allocation5 + $0x108] sm:$0xf0]  ;;  %v10829_v54 = vld [vmem:[#allocation5 + $0xe8] sm:$0xf]  ;;  %v10765_v24 = vld [vmem:[#allocation5 + $0x60] sm:$0xf] }
 0x5a3   : > { %v10766_v10 = vor.u32 %v13310_v20, %v10765_v24  ;;  %v10773_v59 = vld [vmem:[#allocation5 + $0x68] sm:$0xf] }
 0x5a4   : > { %5323 = vmatpush.bf16.msrb.mxu3 %v13390_v41 }
 0x5a6   : > { %5391 = vmatpush.bf16.msrb.mxu1 %v13406_v46  ;;  %v13319_v46 = vld [vmem:[#allocation5 + $0xc8] sm:$0xf0] }
 0x5a7   : > { %v10875_v13 = vld [vmem:[#allocation5 + $0x15c] sm:$0xf0] }
 0x5a8   : > { %5211 = vmatmul.bf16.gmra.mxu2 %v10858_v0  ;;  %v10878_v55 = vor.u32 %v13333_v32, %v10875_v13  ;;  %5324 = vmatpush.bf16.msrb.mxu3 %v13389_v56  ;;  %v10830_v0 = vor.u32 %v13327_v62, %v10829_v54  ;;  %v10831_v32 = vld [vmem:[#allocation5 + $0x10c] sm:$0xf0]  ;;  %v13323_v13 = vld [vmem:[#allocation5 + $0xec] sm:$0xf]  ;;  %v13320_v62 = vld [vmem:[#allocation5 + $0xd0] sm:$0xf0] }
 0x5a9   : > { %v10834_v63 = vor.u32 %v13323_v13, %v10831_v32  ;;  %v10809_v54 = vld [vmem:[#allocation5 + $0xb0] sm:$0xf] }
 0x5aa   : > { %5381 = vmatmul.bf16.gmra.mxu0 %v10878_v55  ;;  %5392 = vmatpush.bf16.msrb.mxu1 %v13405_v35  ;;  %v10859_v55 = vld [vmem:[#allocation5 + $0x14c] sm:$0xf0] }
 0x5ab   : > { %5225 = vmatmul.bf16.vlgmr.msra.gmra.mxu3 %v10718_v38  ;;  %v10862_v7 = vor.u32 %v13331_v58, %v10859_v55  ;;  %v10837_v55 = vld [vmem:[#allocation5 + $0xf0] sm:$0xf] }
 0x5ac   : > { %5325 = vmatpush.bf16.msrb.mxu3 %v13388_v8 }
 0x5ae   : > { %5393 = vmatpush.bf16.msrb.mxu1 %v13404_v6  ;;  %v10810_v6 = vor.u32 %v13320_v62, %v10809_v54 }
 0x5b0   : > { %5326 = vmatpush.bf16.msrb.mxu3 %v13387_v48 }
 0x5b1   : > { %5259 = vmatmul.bf16.vlgmr.msra.gmra.mxu1 %v10722_v16  ;;  %v13336_v16 = vld [vmem:[#allocation5 + $0x150] sm:$0xf0] }
 0x5b2   : > { %5394 = vmatpush.bf16.msrb.mxu1 %v13403_v36  ;;  %v10866_v30 = vor.u32 %v13336_v16, %v10865_v52  ;;  %v13329_v52 = vld [vmem:[#allocation5 + $0x118] sm:$0xf0] }
 0x5b8   : > { %5293 = vmatmul.bf16.vlgmr.msra.gmra.mxu2 %v10726_v18 }
 0x5bb   : > { %5230 = vmatmul.bf16.gmra.mxu3 %v10754_v60  ;;  %v5124_v21 = vpop.f32.mrf.mxu3  ;;  %v10867_v60 = vld [vmem:[#allocation5 + $0x154] sm:$0xf0] }
 0x5bc   : > { %v5125_v11 = vadd.f32 %v16261_v33, %v5124_v21  ;;  %v10870_v14 = vor.u32 %v13332_v42, %v10867_v60  ;;  %v10845_v60 = vld [vmem:[#allocation5 + $0xf8] sm:$0xf] }
 0x5c1   : > { %5264 = vmatmul.bf16.gmra.mxu1 %v10758_v12  ;;  %v10729_v12 = vld [vmem:[#allocation5 + $0x18] sm:$0xf] }
 0x5c2   : > { %v10730_v19 = vor.u32 %v13301_v39, %v10729_v12 }
 0x5c3   : > { %v16264_v50 = vpop.f32.mrf.mxu3 }
 0x5c5   : > { %v5158_v1 = vpop.f32.mrf.mxu1 }
 0x5c6   : > { %v5159_v25 = vadd.f32 %v5158_v1, %v5125_v11 }
 0x5c8   : > { %5298 = vmatmul.bf16.gmra.mxu2 %v10762_v53  ;;  %v13302_v53 = vld [vmem:[#allocation5 + $0x40] sm:$0xf0] }
 0x5c9   : > { %v10738_v1 = vor.u32 %v13302_v53, %v10737_v27  ;;  %v10873_v53 = vld [vmem:[#allocation5 + $0x138] sm:$0xf] }
 0x5cb   : > { %5235 = vmatmul.bf16.gmra.mxu3 %v10790_v44 }
 0x5cd   : > { %v16268_v45 = vpop.f32.mrf.mxu1 }
 0x5cf   : > { %v5192_v5 = vpop.f32.mrf.mxu2 }
 0x5d0   : > { %v16266_v15 = vadd.f32 %v5192_v5, %v5159_v25  ;;  %v5129_v23 = vpop.f32.mrf.mxu3 }
 0x5d1   : > { %5269 = vmatmul.bf16.gmra.mxu1 %v10794_v9  ;;  %v5130_v47 = vadd.f32 %v16261_v33, %v5129_v23  ;;  %v13311_v9 = vld [vmem:[#allocation5 + $0x88] sm:$0xf0] }
 0x5d2   : > { %v10774_v57 = vor.u32 %v13311_v9, %v10773_v59 }
 0x5d7   : > { %v16271_v38 = vpop.f32.mrf.mxu2 }
 0x5d8   : > { %5303 = vmatmul.bf16.gmra.mxu2 %v10798_v31  ;;  %v16273_v18 = vpop.f32.mrf.mxu3  ;;  %v5362_v62 = vpop.f32.mrf.mxu0 }
 0x5db   : > { %5240 = vmatmul.bf16.gmra.mxu3 %v10826_v2  ;;  %v10801_v2 = vld [vmem:[#allocation5 + $0xa8] sm:$0xf] }
 0x5dc   : > { %v5163_v61 = vpop.f32.mrf.mxu1  ;;  %v10802_v23 = vor.u32 %v13319_v46, %v10801_v2 }
 0x5dd   : > { %v5164_v40 = vadd.f32 %v5163_v61, %v5130_v47 }
 0x5e1   : > { %5274 = vmatmul.bf16.gmra.mxu1 %v10830_v0 }
 0x5e4   : > { %v16277_v17 = vpop.f32.mrf.mxu1 }
 0x5e8   : > { %5308 = vmatmul.bf16.gmra.mxu2 %v10834_v63  ;;  %v13328_v63 = vld [vmem:[#allocation5 + $0x110] sm:$0xf0] }
 0x5e9   : > { %v10838_v58 = vor.u32 %v13328_v63, %v10837_v55  ;;  %v5364_v63 = vpop.f32.mrf.mxu0 }
 0x5eb   : > { %5245 = vmatmul.bf16.gmra.mxu3 %v10862_v7 }
 0x5f1   : > { %5279 = vmatmul.bf16.gmra.mxu1 %v10866_v30  ;;  %v5197_v34 = vpop.f32.mrf.mxu2 }
 0x5f2   : > { %v16275_v4 = vadd.f32 %v5197_v34, %v5164_v40 }
 0x5f8   : > { %5313 = vmatmul.bf16.gmra.mxu2 %v10870_v14  ;;  %v10846_v14 = vor.u32 %v13329_v52, %v10845_v60 }
 0x5f9   : > { %v16280_v29 = vpop.f32.mrf.mxu2 }
 0x5fa   : > { %v5134_v21 = vpop.f32.mrf.mxu3 }
 0x5fb   : > { %5327 = vmatmul.bf16.vlgmr.msrb.gmra.mxu3 %v10730_v19  ;;  %v5135_v49 = vadd.f32 %v16261_v33, %v5134_v21 }
 0x5fd   : > { %v5168_v51 = vpop.f32.mrf.mxu1 }
 0x5fe   : > { %v5169_v11 = vadd.f32 %v5168_v51, %v5135_v49  ;;  %v13337_v49 = vld [vmem:[#allocation5 + $0x158] sm:$0xf0] }
 0x5ff   : > { %v10874_v51 = vor.u32 %v13337_v49, %v10873_v53 }
 0x601   : > { %5395 = vmatmul.bf16.vlgmr.msrb.gmra.mxu1 %v10738_v1  ;;  %v13338_v1 = vld [vmem:[#allocation5 + $0x160] sm:$0xf0] }
 0x602   : > { %v5136_v28 = vpop.f32.mrf.mxu3 }
 0x603   : > { %v5137_v44 = vadd.f32 %v16261_v33, %v5136_v28 }
 0x605   : > { %v5170_v25 = vpop.f32.mrf.mxu1 }
 0x606   : > { %v16283_v37 = vadd.f32 %v5170_v25, %v5137_v44  ;;  %v10881_v25 = vld [vmem:[#allocation5 + $0x140] sm:$0xf] }
 0x60b   : > { %v5202_v41 = vpop.f32.mrf.mxu2  ;;  %5332 = vmatmul.bf16.gmra.mxu3 %v10766_v10 }
 0x60c   : > { %v16285_v3 = vadd.f32 %v5202_v41, %v5169_v11 }
 0x60d   : > { %v5173_v5 = vpop.f32.mrf.mxu1 }
 0x60e   : > { %v5139_v56 = vpop.f32.mrf.mxu3 }
 0x60f   : > { %v5140_v22 = vadd.f32 %v16261_v33, %v5139_v56 }
 0x611   : > { %v5174_v31 = vadd.f32 %v5173_v5, %v5140_v22  ;;  %5400 = vmatmul.bf16.gmra.mxu1 %v10774_v57 }
 0x613   : > { %v16288_v26 = vpop.f32.mrf.mxu2 }
 0x615   : > { %v16290_v43 = vpop.f32.mrf.mxu1 }
 0x616   : > { %v16292_v8 = vpop.f32.mrf.mxu3 }
 0x61b   : > { %v5207_v48 = vpop.f32.mrf.mxu2  ;;  %5337 = vmatmul.bf16.gmra.mxu3 %v10802_v23 }
 0x61c   : > { %v5208_v35 = vadd.f32 %v5207_v48, %v5174_v31 }
 0x61e   : > { %v5144_v47 = vpop.f32.mrf.mxu3  ;;  %v5178_v61 = vpop.f32.mrf.mxu1 }
 0x61f   : > { %v5145_v40 = vadd.f32 %v16261_v33, %v5144_v47 }
 0x621   : > { %v5179_v0 = vadd.f32 %v5178_v61, %v5145_v40  ;;  %5405 = vmatmul.bf16.gmra.mxu1 %v10810_v6 }
 0x623   : > { %v16295_v36 = vpop.f32.mrf.mxu2 }
 0x626   : > { %v16297_v32 = vpop.f32.mrf.mxu3  ;;  %v16299_v13 = vpop.f32.mrf.mxu1 }
 0x62b   : > { %v5212_v7 = vpop.f32.mrf.mxu2  ;;  %5342 = vmatmul.bf16.gmra.mxu3 %v10838_v58 }
 0x62c   : > { %v5213_v16 = vadd.f32 %v5212_v7, %v5179_v0 }
 0x62e   : > { %v5226_v30 = vpop.f32.mrf.mxu3  ;;  %v5260_v34 = vpop.f32.mrf.mxu1 }
 0x62f   : > { %v5227_v42 = vadd.f32 %v5226_v30, %v16266_v15  ;;  %v10882_v15 = vor.u32 %v13338_v1, %v10881_v25 }
 0x631   : > { %v5261_v39 = vadd.f32 %v5260_v34, %v5227_v42  ;;  %5410 = vmatmul.bf16.gmra.mxu1 %v10846_v14 }
 0x633   : > { %v16302_v12 = vpop.f32.mrf.mxu2 }
 0x636   : > { %v5228_v19 = vpop.f32.mrf.mxu3  ;;  %v5262_v21 = vpop.f32.mrf.mxu1 }
 0x63b   : > { %v5294_v11 = vpop.f32.mrf.mxu2  ;;  %5347 = vmatmul.bf16.gmra.mxu3 %v10874_v51 }
 0x63c   : > { %v5295_v27 = vadd.f32 %v5294_v11, %v5261_v39 }
 0x63e   : > { %v5231_v28 = vpop.f32.mrf.mxu3  ;;  %v5265_v44 = vpop.f32.mrf.mxu1 }
 0x63f   : > { %v5232_v20 = vadd.f32 %v5231_v28, %v16275_v4 }
 0x641   : > { %v5266_v24 = vadd.f32 %v5265_v44, %v5232_v20  ;;  %5415 = vmatmul.bf16.gmra.mxu1 %v10882_v15 }
 0x646   : > { %v5233_v10 = vpop.f32.mrf.mxu3  ;;  %v5267_v41 = vpop.f32.mrf.mxu1 }
 0x64e   : > { %v5236_v9 = vpop.f32.mrf.mxu3  ;;  %v5270_v5 = vpop.f32.mrf.mxu1 }
 0x64f   : > { %v5237_v56 = vadd.f32 %v5236_v9, %v16285_v3  ;;  %v5296_v3 = vpop.f32.mrf.mxu2 }
 0x651   : > { %v16306_v59 = vadd.f32 %v5270_v5, %v5237_v56 }
 0x656   : > { %v16308_v22 = vpop.f32.mrf.mxu3  ;;  %v16310_v57 = vpop.f32.mrf.mxu1 }
 0x657   : > { %v5299_v55 = vpop.f32.mrf.mxu2 }
 0x65e   : > { %v5241_v31 = vpop.f32.mrf.mxu3  ;;  %v5275_v46 = vpop.f32.mrf.mxu1 }
 0x65f   : > { %v5242_v2 = vadd.f32 %v5241_v31, %v5208_v35  ;;  %v5127_v35 = vadd.f32 %v16261_v33, %v16264_v50  ;;  %v5301_v53 = vpop.f32.mrf.mxu2  ;;  %v5132_v50 = vadd.f32 %v16261_v33, %v16273_v18 }
 0x661   : > { %v16312_v23 = vadd.f32 %v5275_v46, %v5242_v2  ;;  %v5161_v58 = vadd.f32 %v16268_v45, %v5127_v35  ;;  %v5166_v25 = vadd.f32 %v16277_v17, %v5132_v50 }
 0x663   : > { %v5195_v30 = vadd.f32 %v16271_v38, %v5161_v58  ;;  %v5300_v38 = vadd.f32 %v5299_v55, %v5266_v24 }
 0x665   : > { %v5229_v60 = vadd.f32 %v5228_v19, %v5195_v30 }
 0x666   : > { %v16314_v4 = vpop.f32.mrf.mxu3  ;;  %v16316_v48 = vpop.f32.mrf.mxu1 }
 0x667   : > { %v5263_v14 = vadd.f32 %v5262_v21, %v5229_v60  ;;  %v5200_v21 = vadd.f32 %v16280_v29, %v5166_v25  ;;  %v5304_v15 = vpop.f32.mrf.mxu2 }
 0x669   : > { %v5297_v49 = vadd.f32 %v5296_v3, %v5263_v14  ;;  %v5234_v56 = vadd.f32 %v5233_v10, %v5200_v21 }
 0x66b   : > { %v5268_v2 = vadd.f32 %v5267_v41, %v5234_v56 }
 0x66e   : > { %v5246_v47 = vpop.f32.mrf.mxu3  ;;  %v5280_v61 = vpop.f32.mrf.mxu1 }
 0x66f   : > { %v5247_v54 = vadd.f32 %v5246_v47, %v5213_v16  ;;  %v5367_v16 = vpop.f32.mrf.mxu0  ;;  %v5306_v55 = vpop.f32.mrf.mxu2 }
 0x671   : > { %v16318_v40 = vadd.f32 %v5280_v61, %v5247_v54  ;;  %v5302_v61 = vadd.f32 %v5301_v53, %v5268_v2 }
 0x676   : > { %v16320_v6 = vpop.f32.mrf.mxu3  ;;  %v16322_v0 = vpop.f32.mrf.mxu1 }
 0x677   : > { %v5369_v45 = vpop.f32.mrf.mxu0 }
 0x67e   : > { %v5328_v7 = vpop.f32.mrf.mxu3  ;;  %v5396_v52 = vpop.f32.mrf.mxu1 }
 0x67f   : > { %v5329_v34 = vadd.f32 %v5328_v7, %v5295_v27  ;;  %v5372_v47 = vpop.f32.mrf.mxu0 }
 0x681   : > { %v5363_v42 = vadd.f32 %v5362_v62, %v5329_v34  ;;  %v5305_v34 = vadd.f32 %v5304_v15, %v16306_v59 }
 0x683   : > { %v5397_v39 = vadd.f32 %v5396_v52, %v5363_v42 }
 0x685   : > { %v5421_v9 = vmax.f32 %v5397_v39, 0.0  ;;  %v5205_v39 = vadd.f32 %v16288_v26, %v16283_v37 }
 0x686   : > { %v5330_v51 = vpop.f32.mrf.mxu3  ;;  %v5398_v11 = vpop.f32.mrf.mxu1 }
 0x687   : > { %v5331_v1 = vadd.f32 %v5330_v51, %v5297_v49  ;;  %v16332_v62 = vrot.slane %v5421_v9, 1  ;;  %v5374_v49 = vpop.f32.mrf.mxu0 }
 0x689   : > { %v5365_v28 = vadd.f32 %v5364_v63, %v5331_v1 }
 0x68b   : > { %v5399_v44 = vadd.f32 %v5398_v11, %v5365_v28  ;;  %v5239_v11 = vadd.f32 %v16308_v22, %v5205_v39 }
 0x68d   : > { %v5422_v27 = vmax.f32 %v5399_v44, 0.0  ;;  %v5273_v50 = vadd.f32 %v16310_v57, %v5239_v11  ;;  %v5142_v57 = vadd.f32 %v16261_v33, %v16292_v8 }
 0x68e   : > { %v5333_v20 = vpop.f32.mrf.mxu3  ;;  %v5401_v19 = vpop.f32.mrf.mxu1 }
 0x68f   : > { %v5334_v5 = vadd.f32 %v5333_v20, %v5300_v38  ;;  %v5442_v31 = vrot.slane %v5422_v27, 1  ;;  %v5307_v38 = vadd.f32 %v5306_v55, %v5273_v50  ;;  %v5377_v15 = vpop.f32.mrf.mxu0  ;;  %v5176_v2 = vadd.f32 %v16290_v43, %v5142_v57 }
 0x691   : > { %v5368_v46 = vadd.f32 %v5367_v16, %v5334_v5  ;;  %v5443_v17 = vsel %vm3350_vm13, %v16332_v62, %v5442_v31 }
 0x692   : > { %v16336_v35 = vmax.f32 %v5421_v9, %v5443_v17 }
 0x693   : > { %v5402_v18 = vadd.f32 %v5401_v19, %v5368_v46 }
 0x694   : > { %v5518_v30 = vrot.slane %v16336_v35, 2 }
 0x695   : > { %v5423_v24 = vmax.f32 %v5402_v18, 0.0 }
 0x696   : > { %v5335_v54 = vpop.f32.mrf.mxu3  ;;  %v5403_v3 = vpop.f32.mrf.mxu1 }
 0x697   : > { %v5444_v63 = vrot.slane %v5423_v24, 1  ;;  %v5336_v29 = vadd.f32 %v5335_v54, %v5302_v61 }
 0x699   : > { %v5445_v10 = vsel %vm3350_vm13, %v5442_v31, %v5444_v63  ;;  %v5370_v58 = vadd.f32 %v5369_v45, %v5336_v29  ;;  %v5309_v45 = vpop.f32.mrf.mxu2 }
 0x69a   : > { %v5473_v41 = vmax.f32 %v5422_v27, %v5445_v10  ;;  %v5310_v18 = vadd.f32 %v5309_v45, %v16312_v23  ;;  %v5379_v23 = vpop.f32.mrf.mxu0 }
 0x69b   : > { %v5404_v7 = vadd.f32 %v5403_v3, %v5370_v58  ;;  %v5210_v3 = vadd.f32 %v16295_v36, %v5176_v2 }
 0x69c   : > { %v5491_v52 = vrot.slane %v5473_v41, 2 }
 0x69d   : > { %v5424_v16 = vmax.f32 %v5404_v7, 0.0  ;;  %v5244_v10 = vadd.f32 %v16314_v4, %v5210_v3 }
 0x69e   : > { %v5338_v60 = vpop.f32.mrf.mxu3  ;;  %v5406_v42 = vpop.f32.mrf.mxu1  ;;  %v16344_v14 = vsel %vm3173_vm6, %v5518_v30, %v5491_v52 }
 0x69f   : > { %v5446_v53 = vrot.slane %v5424_v16, 1  ;;  %v5339_v51 = vadd.f32 %v5338_v60, %v5305_v34 }
 0x6a1   : > { %v5447_v1 = vsel %vm3350_vm13, %v5444_v63, %v5446_v53  ;;  %v5373_v28 = vadd.f32 %v5372_v47, %v5339_v51  ;;  %v5311_v47 = vpop.f32.mrf.mxu2 }
 0x6a2   : > { %v16350_v59 = vmax.f32 %v5423_v24, %v5447_v1 }
 0x6a3   : > { %v5407_v44 = vadd.f32 %v5406_v42, %v5373_v28 }
 0x6a4   : > { %v5492_v25 = vrot.slane %v16350_v59, 2 }
 0x6a5   : > { %v5425_v27 = vmax.f32 %v5407_v44, 0.0 }
 0x6a6   : > { %v5340_v20 = vpop.f32.mrf.mxu3  ;;  %v5408_v37 = vpop.f32.mrf.mxu1  ;;  %v5493_v26 = vsel %vm3173_vm6, %v5491_v52, %v5492_v25  ;;  %v5278_v52 = vadd.f32 %v16316_v48, %v5244_v10  ;;  %v5147_v48 = vadd.f32 %v16261_v33, %v16297_v32 }
 0x6a7   : > { %v5448_v19 = vrot.slane %v5425_v27, 1  ;;  %v5341_v21 = vadd.f32 %v5340_v20, %v5307_v38  ;;  %v5523_v22 = vmax.f32 %v16336_v35, %v5493_v26  ;;  %v13429_v35 = vld [vmem:[#allocation22 + $0x38] sm:$0xff] }
 0x6a8   : > { %v5312_v60 = vadd.f32 %v5311_v47, %v5278_v52  ;;  %v5181_v44 = vadd.f32 %v16299_v13, %v5147_v48  ;;  %v13428_v48 = vld [vmem:[#allocation22 + $0x30] sm:$0xff] }
 0x6a9   : > { %v5449_v9 = vsel %vm3350_vm13, %v5446_v53, %v5448_v19  ;;  %v5375_v5 = vadd.f32 %v5374_v49, %v5341_v21  ;;  %v5314_v51 = vpop.f32.mrf.mxu2 }
 0x6aa   : > { %v5475_v56 = vmax.f32 %v5424_v16, %v5449_v9  ;;  %v5315_v38 = vadd.f32 %v5314_v51, %v16318_v40  ;;  %v5215_v26 = vadd.f32 %v16302_v12, %v5181_v44  ;;  %v13453_v44 = vld [vmem:[#allocation22 + $0xf8] sm:$0xff] }
 0x6ab   : > { %v5409_v31 = vadd.f32 %v5408_v37, %v5375_v5  ;;  %6402 = vmatpush.bf16.msra.mxu1 %v13453_v44 }
 0x6ac   : > { %v5494_v46 = vrot.slane %v5475_v56, 2 }
 0x6ad   : > { %v5426_v61 = vmax.f32 %v5409_v31, 0.0 }
 0x6ae   : > { %v5343_v17 = vpop.f32.mrf.mxu3  ;;  %v5411_v24 = vpop.f32.mrf.mxu1  ;;  %v5495_v54 = vsel %vm3173_vm6, %v5492_v25, %v5494_v46 }
 0x6af   : > { %v5450_v63 = vrot.slane %v5426_v61, 1  ;;  %v5344_v29 = vadd.f32 %v5343_v17, %v5310_v18  ;;  %v5524_v55 = vmax.f32 %v5473_v41, %v5495_v54  ;;  %v5382_v25 = vpop.f32.mrf.mxu0 }
 0x6b1   : > { %v5451_v8 = vsel %vm3350_vm13, %v5448_v19, %v5450_v63  ;;  %v5378_v58 = vadd.f32 %v5377_v15, %v5344_v29  ;;  %v16365_v7 = vpack.c.bf16 %v5524_v55, %v5523_v22  ;;  %v5249_v15 = vadd.f32 %v16320_v6, %v5215_v26  ;;  %v5316_v13 = vpop.f32.mrf.mxu2  ;;  %v13443_v26 = vld [vmem:[#allocation22 + $0xa8] sm:$0xff] }
 0x6b2   : > { %v5476_v43 = vmax.f32 %v5425_v27, %v5451_v8 }
 0x6b3   : > { %v5412_v34 = vadd.f32 %v5411_v24, %v5378_v58  ;;  %v5283_v40 = vadd.f32 %v16322_v0, %v5249_v15  ;;  %v13434_v15 = vld [vmem:[#allocation22 + $0x60] sm:$0xff] }
 0x6b4   : > { %v5496_v16 = vrot.slane %v5476_v43, 2 }
 0x6b5   : > { %v5427_v42 = vmax.f32 %v5412_v34, 0.0 }
 0x6b6   : > { %v5345_v39 = vpop.f32.mrf.mxu3  ;;  %v5413_v36 = vpop.f32.mrf.mxu1  ;;  %v5497_v49 = vsel %vm3173_vm6, %v5494_v46, %v5496_v16  ;;  %v5317_v46 = vadd.f32 %v5316_v13, %v5283_v40  ;;  %v13433_v40 = vld [vmem:[#allocation22 + $0x58] sm:$0xff] }
 0x6b7   : > { %v5452_v41 = vrot.slane %v5427_v42, 1  ;;  %v5346_v53 = vadd.f32 %v5345_v39, %v5312_v60  ;;  %v5525_v4 = vmax.f32 %v16350_v59, %v5497_v49  ;;  %v5384_v17 = vpop.f32.mrf.mxu0 }
 0x6b9   : > { %v5453_v11 = vsel %vm3350_vm13, %v5450_v63, %v5452_v41  ;;  %v5380_v1 = vadd.f32 %v5379_v23, %v5346_v53 }
 0x6ba   : > { %v5477_v28 = vmax.f32 %v5426_v61, %v5453_v11  ;;  %v13411_v11 = vld [vmem:[#allocation20] sm:$0xff] }
 0x6bb   : > { %v5414_v50 = vadd.f32 %v5413_v36, %v5380_v1 }
 0x6bc   : > { %v5498_v45 = vrot.slane %v5477_v28, 2 }
 0x6bd   : > { %v5428_v27 = vmax.f32 %v5414_v50, 0.0  ;;  %v13437_v50 = vld [vmem:[#allocation22 + $0x78] sm:$0xff] }
 0x6be   : > { %v5348_v20 = vpop.f32.mrf.mxu3  ;;  %v5416_v37 = vpop.f32.mrf.mxu1  ;;  %v5499_v59 = vsel %vm3173_vm6, %v5496_v16, %v5498_v45  ;;  %6366 = vmatpush.bf16.msra.mxu3 %v13437_v50 }
 0x6bf   : > { %v5454_v19 = vrot.slane %v5428_v27, 1  ;;  %v5349_v21 = vadd.f32 %v5348_v20, %v5315_v38  ;;  %v5526_v22 = vmax.f32 %v5475_v56, %v5499_v59  ;;  %v13425_v38 = vld [vmem:[#allocation22 + $0x18] sm:$0xff]  ;;  %v13444_v20 = vld [vmem:[#allocation22 + $0xb0] sm:$0xff]  ;;  %v13435_v59 = vld [vmem:[#allocation22 + $0x68] sm:$0xff] }
 0x6c1   : > { %v5455_v33 = vsel %vm3350_vm13, %v5452_v41, %v5454_v19  ;;  %v5383_v32 = vadd.f32 %v5382_v25, %v5349_v21  ;;  %v5539_v9 = vpack.c.bf16 %v5526_v22, %v5525_v4  ;;  %v13427_v25 = vld [vmem:[#allocation22 + $0x28] sm:$0xff] }
 0x6c2   : > { %v5478_v5 = vmax.f32 %v5427_v42, %v5455_v33  ;;  %v13451_v21 = vld [vmem:[#allocation22 + $0xe8] sm:$0xff]  ;;  %v13442_v33 = vld [vmem:[#allocation22 + $0xa0] sm:$0xff] }
 0x6c3   : > { %v5417_v57 = vadd.f32 %v5416_v37, %v5383_v32  ;;  %v13452_v37 = vld [vmem:[#allocation22 + $0xf0] sm:$0xff]  ;;  %v13423_v22 = vld [vmem:[#allocation22 + $0x8] sm:$0xff]  ;;  %v13450_v32 = vld [vmem:[#allocation22 + $0xe0] sm:$0xff] }
 0x6c4   : > { %v5500_v31 = vrot.slane %v5478_v5, 2  ;;  %6403 = vmatpush.bf16.msra.mxu1 %v13452_v37  ;;  %v13457_v37 = vld [vmem:[#allocation22 + $0x118] sm:$0xff] }
 0x6c5   : > { %v5429_v2 = vmax.f32 %v5417_v57, 0.0  ;;  %v13441_v57 = vld [vmem:[#allocation22 + $0x98] sm:$0xff] }
 0x6c6   : > { %v5350_v18 = vpop.f32.mrf.mxu3  ;;  %v5501_v12 = vsel %vm3173_vm6, %v5498_v45, %v5500_v31  ;;  %v5418_v6 = vpop.f32.mrf.mxu1  ;;  %v13445_v45 = vld [vmem:[#allocation22 + $0xb8] sm:$0xff] }
 0x6c7   : > { %v5456_v47 = vrot.slane %v5429_v2, 1  ;;  %v5351_v61 = vadd.f32 %v5350_v18, %v5317_v46  ;;  %v5527_v56 = vmax.f32 %v5476_v43, %v5501_v12  ;;  %6384 = vmatpush.bf16.msra.mxu0 %v13445_v45  ;;  %v13432_v46 = vld [vmem:[#allocation22 + $0x50] sm:$0xff] }
 0x6c8   : > { %6404 = vmatpush.bf16.msra.mxu1 %v13451_v21  ;;  %v13448_v18 = vld [vmem:[#allocation22 + $0xd0] sm:$0xff] }
 0x6c9   : > { %v5457_v24 = vsel %vm3350_vm13, %v5454_v19, %v5456_v47  ;;  %v5385_v54 = vadd.f32 %v5384_v17, %v5351_v61  ;;  %v13424_v19 = vld [vmem:[#allocation22 + $0x10] sm:$0xff]  ;;  %v13431_v61 = vld [vmem:[#allocation22 + $0x48] sm:$0xff] }
 0x6ca   : > { %v5479_v3 = vmax.f32 %v5428_v27, %v5457_v24  ;;  %v13436_v27 = vld [vmem:[#allocation22 + $0x70] sm:$0xff]  ;;  %v13447_v17 = vld [vmem:[#allocation22 + $0xc8] sm:$0xff]  ;;  %v13430_v24 = vld [vmem:[#allocation22 + $0x40] sm:$0xff] }
 0x6cb   : > { %v5419_v63 = vadd.f32 %v5418_v6, %v5385_v54  ;;  %6367 = vmatpush.bf16.msra.mxu3 %v13436_v27  ;;  %6385 = vmatpush.bf16.msra.mxu0 %v13444_v20  ;;  %v13461_v6 = vld [vmem:[#allocation22 + $0x138] sm:$0xff]  ;;  %v13438_v54 = vld [vmem:[#allocation22 + $0x80] sm:$0xff]  ;;  %v13483_v27 = vld [vmem:[#allocation22 + $0x1e8] sm:$0xff] }
 0x6cc   : > { %v5502_v29 = vrot.slane %v5479_v3, 2  ;;  %6405 = vmatpush.bf16.msra.mxu1 %v13450_v32  ;;  %v13473_v32 = vld [vmem:[#allocation22 + $0x198] sm:$0xff] }
 0x6cd   : > { %v5430_v55 = vmax.f32 %v5419_v63, 0.0 }
 0x6ce   : > { %v5503_v0 = vsel %vm3173_vm6, %v5500_v31, %v5502_v29  ;;  %v13449_v31 = vld [vmem:[#allocation22 + $0xd8] sm:$0xff] }
 0x6cf   : > { %v5458_v10 = vrot.slane %v5430_v55, 1  ;;  %v5528_v8 = vmax.f32 %v5477_v28, %v5503_v0  ;;  %6368 = vmatpush.bf16.msra.mxu3 %v13435_v59  ;;  %6386 = vmatpush.bf16.msra.mxu0 %v13443_v26  ;;  %v13466_v26 = vld [vmem:[#allocation22 + $0x160] sm:$0xff] }
 0x6d0   : > { %6406 = vmatpush.bf16.msra.mxu1 %v13449_v31 }
 0x6d1   : > { %v5459_v58 = vsel %vm3350_vm13, %v5456_v47, %v5458_v10  ;;  %v5471_v23 = vsel %vm3350_vm13, %v5458_v10, %v16332_v62  ;;  %v5540_v52 = vpack.c.bf16 %v5528_v8, %v5527_v56  ;;  %v13439_v56 = vld [vmem:[#allocation22 + $0x88] sm:$0xff] }
 0x6d2   : > { %v5480_v43 = vmax.f32 %v5429_v2, %v5459_v58  ;;  %v5481_v34 = vmax.f32 %v5430_v55, %v5471_v23  ;;  %v13440_v2 = vld [vmem:[#allocation22 + $0x90] sm:$0xff] }
 0x6d3   : > { %6369 = vmatpush.bf16.msra.mxu3 %v13434_v15  ;;  %6387 = vmatpush.bf16.msra.mxu0 %v13442_v33  ;;  %v13456_v15 = vld [vmem:[#allocation22 + $0x110] sm:$0xff]  ;;  %v13465_v33 = vld [vmem:[#allocation22 + $0x158] sm:$0xff] }
 0x6d4   : > { %v5506_v16 = vrot.slane %v5481_v34, 2  ;;  %v5532_v60 = vmax.f32 %v5481_v34, %v16344_v14  ;;  %v5504_v42 = vrot.slane %v5480_v43, 2  ;;  %v5537_v14 = vld [vmem:[#allocation20 + $0x10] sm:$0xf]  ;;  %6407 = vmatpush.bf16.msra.mxu1 %v13448_v18 }
 0x6d5   : > { %v5552_v1 = vunpack.c.l.b16 %v5537_v14 }
 0x6d6   : > { %v5522_v39 = vsel %vm3173_vm6, %v5506_v16, %v5518_v30  ;;  %v5505_v36 = vsel %vm3173_vm6, %v5502_v29, %v5504_v42  ;;  %v5507_v49 = vsel %vm3173_vm6, %v5504_v42, %v5506_v16  ;;  %v13412_v30 = vld [vmem:[#allocation20 + $0x8] sm:$0xff]  ;;  %vm7866_vm6 = vcmask 1042432  }
 0x6d7   : > { %v5531_v41 = vmax.f32 %v5480_v43, %v5522_v39  ;;  %v5529_v53 = vmax.f32 %v5478_v5, %v5505_v36  ;;  %v5530_v4 = vmax.f32 %v5479_v3, %v5507_v49  ;;  %v5555_v28 = vpack.c.b16 %v5552_v1, %v5552_v1  ;;  %6370 = vmatpush.bf16.msra.mxu3 %v13433_v40  ;;  %v13446_v3 = vld [vmem:[#allocation22 + $0xc0] sm:$0xff]  ;;  %v13460_v43 = vld [vmem:[#allocation22 + $0x130] sm:$0xff]  ;;  %v13477_v42 = vld [vmem:[#allocation22 + $0x1b8] sm:$0xff] }
 0x6d8   : > { %6388 = vmatpush.bf16.msra.mxu0 %v13441_v57  ;;  %6408 = vmatpush.bf16.msra.mxu1 %v13447_v17  ;;  %v13485_v49 = vld [vmem:[#allocation22 + $0x1f8] sm:$0xff]  ;;  %vm16484_vm8 = vmor %vm7866_vm6, %vm7867_vm7 }
 0x6d9   : > { %v5542_v51 = vpack.c.bf16 %v5532_v60, %v5531_v41  ;;  %v5541_v62 = vpack.c.bf16 %v5530_v4, %v5529_v53  ;;  %v13469_v60 = vld [vmem:[#allocation22 + $0x178] sm:$0xff]  ;;  %v13459_v41 = vld [vmem:[#allocation22 + $0x128] sm:$0xff]  ;;  %v13468_v53 = vld [vmem:[#allocation22 + $0x170] sm:$0xff] }
 0x6da   : > { %v13476_v4 = vld [vmem:[#allocation22 + $0x1b0] sm:$0xff] }
 0x6db   : > { %5569 = vmatpush.bf16.msrb.mxu2 %v5542_v51  ;;  %6371 = vmatpush.bf16.msra.mxu3 %v13432_v46  ;;  %v13484_v51 = vld [vmem:[#allocation22 + $0x1f0] sm:$0xff] }
 0x6dc   : > { %6389 = vmatpush.bf16.msra.mxu0 %v13440_v2  ;;  %6409 = vmatpush.bf16.msra.mxu1 %v13446_v3 }
 0x6df   : > { %5570 = vmatpush.bf16.msrb.mxu2 %v5541_v62  ;;  %6372 = vmatpush.bf16.msra.mxu3 %v13431_v61  ;;  %v13458_v62 = vld [vmem:[#allocation22 + $0x120] sm:$0xff] }
 0x6e0   : > { %6390 = vmatpush.bf16.msra.mxu0 %v13439_v56  ;;  %6474 = vmatpush.bf16.msrb.mxu1 %v13485_v49 }
 0x6e3   : > { %5571 = vmatpush.bf16.msrb.mxu2 %v5540_v52  ;;  %6373 = vmatpush.bf16.msra.mxu3 %v13430_v24  ;;  %v13481_v24 = vld [vmem:[#allocation22 + $0x1d8] sm:$0xff] }
 0x6e4   : > { %6391 = vmatpush.bf16.msra.mxu0 %v13438_v54  ;;  %6475 = vmatpush.bf16.msrb.mxu1 %v13484_v51 }
 0x6e7   : > { %5572 = vmatpush.bf16.msrb.mxu2 %v5539_v9  ;;  %v13422_v9 = vld [vmem:[#allocation22] sm:$0xff]  ;;  %6438 = vmatpush.bf16.msrb.mxu3 %v13469_v60 }
 0x6e8   : > { %6456 = vmatpush.bf16.msrb.mxu0 %v13477_v42  ;;  %6476 = vmatpush.bf16.msrb.mxu1 %v13483_v27  ;;  %v13493_v42 = vld [vmem:[#allocation22 + $0x238] sm:$0xff] }
 0x6eb   : > { %5573 = vmatpush.bf16.msrb.mxu2 %v16365_v7  ;;  %v13426_v7 = vld [vmem:[#allocation22 + $0x20] sm:$0xff]  ;;  %6439 = vmatpush.bf16.msrb.mxu3 %v13468_v53 }
 0x6ec   : > { %6457 = vmatpush.bf16.msrb.mxu0 %v13476_v4  ;;  %v13470_v53 = vld [vmem:[#allocation22 + $0x180] sm:$0xff] }
 0x6ee   : > { %11179 = vmatmul.msk.bf16.vlgmr.msrb.gmra.mxu2 %vm5556_vm15, %v13411_v11  ;;  %v13467_v11 = vld [vmem:[#allocation22 + $0x168] sm:$0xff] }
 0x6ef   : > { %6348 = vmatpush.bf16.msra.mxu2 %v13429_v35  ;;  %v13475_v35 = vld [vmem:[#allocation22 + $0x1a8] sm:$0xff]  ;;  %6440 = vmatpush.bf16.msrb.mxu3 %v13467_v11  ;;  %v13478_v11 = vld [vmem:[#allocation22 + $0x1c0] sm:$0xff] }
 0x6f0   : > { %6458 = vmatpush.bf16.msrb.mxu0 %v13475_v35 }
 0x6f3   : > { %6349 = vmatpush.bf16.msra.mxu2 %v13428_v48  ;;  %6441 = vmatpush.bf16.msrb.mxu3 %v13466_v26 }
 0x6f7   : > { %6350 = vmatpush.bf16.msra.mxu2 %v13427_v25  ;;  %6442 = vmatpush.bf16.msrb.mxu3 %v13465_v33  ;;  %v13487_v33 = vld [vmem:[#allocation22 + $0x208] sm:$0xff] }
 0x6fb   : > { %6351 = vmatpush.bf16.msra.mxu2 %v13426_v7 }
 0x6fe   : > { %11180 = vmatmul.msk.bf16.gmra.mxu2 %vm5556_vm15, %v13412_v30 }
 0x6ff   : > { %6352 = vmatpush.bf16.msra.mxu2 %v13425_v38 }
 0x703   : > { %6353 = vmatpush.bf16.msra.mxu2 %v13424_v19  ;;  %v13474_v19 = vld [vmem:[#allocation22 + $0x1a0] sm:$0xff] }
 0x704   : > { %6459 = vmatpush.bf16.msrb.mxu0 %v13474_v19 }
 0x707   : > { %6354 = vmatpush.bf16.msra.mxu2 %v13423_v22  ;;  %v13482_v22 = vld [vmem:[#allocation22 + $0x1e0] sm:$0xff] }
 0x708   : > { %6477 = vmatpush.bf16.msrb.mxu1 %v13482_v22  ;;  %6460 = vmatpush.bf16.msrb.mxu0 %v13473_v32 }
 0x70b   : > { %6355 = vmatpush.bf16.msra.mxu2 %v13422_v9 }
 0x70c   : > { %6478 = vmatpush.bf16.msrb.mxu1 %v13481_v24 }
 0x70e   : > { %11181 = vmatmul.msk.bf16.gmra.mxu2 %vm5556_vm15, %v5555_v28  ;;  %vm7929_vm15 = vcmask 1040384  }
 0x70f   : > { %6420 = vmatpush.bf16.msrb.mxu2 %v13461_v6 }
 0x713   : > { %6421 = vmatpush.bf16.msrb.mxu2 %v13460_v43  ;;  %v13454_v43 = vld [vmem:[#allocation22 + $0x100] sm:$0xff] }
 0x717   : > { %6422 = vmatpush.bf16.msrb.mxu2 %v13459_v41  ;;  %v13462_v41 = vld [vmem:[#allocation22 + $0x140] sm:$0xff] }
 0x71b   : > { %6423 = vmatpush.bf16.msrb.mxu2 %v13458_v62  ;;  %v13492_v62 = vld [vmem:[#allocation22 + $0x230] sm:$0xff] }
 0x71f   : > { %6424 = vmatpush.bf16.msrb.mxu2 %v13457_v37  ;;  %v13489_v37 = vld [vmem:[#allocation22 + $0x218] sm:$0xff] }
 0x723   : > { %6425 = vmatpush.bf16.msrb.mxu2 %v13456_v15 }
 0x771   : > { %v5575_v13 = vpop.f32.mrf.mxu2 }
 0x772   : > { %5589 = vst [vmem:[#allocation6] sm:$0xff] %v5575_v13  ;;  %v5597_v5 = vpack.c.bf16 %v5575_v13, %v5575_v13 }
 0x774   : > { %5600 = vst [vmem:[#allocation7] sm:$0xf] %v5597_v5 }
 0x779   : > { %v5577_v12 = vpop.f32.mrf.mxu2 }
 0x77a   : > { %5590 = vst [vmem:[#allocation6 + $0x8] sm:$0xff] %v5577_v12  ;;  %v5598_v47 = vpack.c.bf16 %v5577_v12, %v5577_v12 }
 0x77b   : > { %v11184_v52 = vld [vmem:[#allocation7] sm:$0xf] }
 0x77c   : > { %5601 = vst [vmem:[#allocation7 + $0x24] sm:$0xf] %v5598_v47 }
 0x77d   : > { %5645 = vst [vmem:[#allocation7 + $0x14] sm:$0xf] %v5598_v47 }
 0x781   : > { %v5603_v63 = vld [vmem:[#allocation6 + $0x1] sm:$0xff]  ;;  %v5580_v0 = vpop.f32.mrf.mxu2 }
 0x782   : > { %v5612_v29 = vld [vmem:[#allocation6 + $0x2] sm:$0xff]  ;;  %v5606_v10 = vpack.c.bf16 %v5603_v63, %v5603_v63  ;;  %5591 = vst [vmem:[#allocation6 + $0x10] sm:$0xff] %v5580_v0  ;;  %v5599_v39 = vpack.c.bf16 %v5580_v0, %v5580_v0 }
 0x783   : > { %v5621_v55 = vld [vmem:[#allocation6 + $0x6] sm:$0xff]  ;;  %v5615_v8 = vpack.c.bf16 %v5612_v29, %v5612_v29 }
 0x784   : > { %v5624_v58 = vpack.c.bf16 %v5621_v55, %v5621_v55  ;;  %v5630_v23 = vld [vmem:[#allocation6 + $0x7] sm:$0xff]  ;;  %5609 = vst [vmem:[#allocation7 + $0x4] sm:$0xf] %v5606_v10  ;;  %v13415_v32 = vld [vmem:[#allocation7 + $0x14] sm:$0xf] }
 0x785   : > { %v5633_v34 = vpack.c.bf16 %v5630_v23, %v5630_v23  ;;  %v13417_v16 = vld [vmem:[#allocation7 + $0x20] sm:$0xf0]  ;;  %5618 = vst [vmem:[#allocation7 + $0x8] sm:$0xf] %v5615_v8  ;;  %v13464_v8 = vld [vmem:[#allocation22 + $0x150] sm:$0xff] }
 0x786   : > { %v11185_v36 = vor.u32 %v13417_v16, %v11184_v52  ;;  %5627 = vst [vmem:[#allocation7 + $0xc] sm:$0xf] %v5624_v58  ;;  %v13455_v29 = vld [vmem:[#allocation22 + $0x108] sm:$0xff]  ;;  %v13472_v58 = vld [vmem:[#allocation22 + $0x190] sm:$0xff]  ;;  %6443 = vmatpush.bf16.msrb.mxu3 %v13464_v8 }
 0x787   : > { %5636 = vst [vmem:[#allocation7 + $0x10] sm:$0xf] %v5633_v34  ;;  %v13480_v52 = vld [vmem:[#allocation22 + $0x1d0] sm:$0xff]  ;;  %6426 = vmatpush.bf16.msrb.mxu2 %v13455_v29  ;;  %6461 = vmatpush.bf16.msrb.mxu0 %v13472_v58  ;;  %v13463_v34 = vld [vmem:[#allocation22 + $0x148] sm:$0xff]  ;;  %v14118_v58 = vld [vmem:[#allocation23] ss:$0 sm:$0xff] }
 0x788   : > { %6356 = vmatmul.bf16.vlgmr.msra.gmra.mxu2 %v11185_v36  ;;  %5602 = vst [vmem:[#allocation7 + $0x48] sm:$0xf] %v5599_v39  ;;  %v13471_v16 = vld [vmem:[#allocation22 + $0x188] sm:$0xff]  ;;  %6479 = vmatpush.bf16.msrb.mxu1 %v13480_v52 }
 0x789   : > { %v5604_v30 = vld [vmem:[#allocation6 + $0x9] sm:$0xff]  ;;  %5646 = vst [vmem:[#allocation7 + $0x38] sm:$0xf] %v5599_v39  ;;  %v5582_v28 = vpop.f32.mrf.mxu2 }
 0x78a   : > { %v5613_v14 = vld [vmem:[#allocation6 + $0xa] sm:$0xff]  ;;  %v5607_v48 = vpack.c.bf16 %v5604_v30, %v5604_v30  ;;  %5592 = vst [vmem:[#allocation6 + $0x18] sm:$0xff] %v5582_v28  ;;  %v5644_v21 = vpack.c.bf16 %v5582_v28, %v5582_v28  ;;  %6444 = vmatpush.bf16.msrb.mxu3 %v13463_v34 }
 0x78b   : > { %v5622_v1 = vld [vmem:[#allocation6 + $0xe] sm:$0xff]  ;;  %v5616_v50 = vpack.c.bf16 %v5613_v14, %v5613_v14  ;;  %6427 = vmatpush.bf16.msrb.mxu2 %v13454_v43  ;;  %6462 = vmatpush.bf16.msrb.mxu0 %v13471_v16 }
 0x78c   : > { %v5625_v45 = vpack.c.bf16 %v5622_v1, %v5622_v1  ;;  %v5631_v44 = vld [vmem:[#allocation6 + $0xf] sm:$0xff]  ;;  %5610 = vst [vmem:[#allocation7 + $0x28] sm:$0xf] %v5607_v48 }
 0x78d   : > { %v5648_v25 = vld [vmem:[#allocation6 + $0xc] sm:$0xff]  ;;  %v5634_v38 = vpack.c.bf16 %v5631_v44, %v5631_v44  ;;  %5619 = vst [vmem:[#allocation7 + $0x2c] sm:$0xf] %v5616_v50  ;;  %v13414_v6 = vld [vmem:[#allocation7 + $0xc] sm:$0xf] }
 0x78e   : > { %v5657_v7 = vld [vmem:[#allocation6 + $0xd] sm:$0xff]  ;;  %v5651_v20 = vpack.c.bf16 %v5648_v25, %v5648_v25  ;;  %5628 = vst [vmem:[#allocation7 + $0x30] sm:$0xf] %v5625_v45  ;;  %6445 = vmatpush.bf16.msrb.mxu3 %v13462_v41  ;;  %v11200_v26 = vld [vmem:[#allocation7 + $0x10] sm:$0xf] }
 0x78f   : > { %v5660_v59 = vpack.c.bf16 %v5657_v7, %v5657_v7  ;;  %5637 = vst [vmem:[#allocation7 + $0x34] sm:$0xf] %v5634_v38  ;;  %v13413_v57 = vld [vmem:[#allocation7 + $0x4] sm:$0xf]  ;;  %v11192_v61 = vld [vmem:[#allocation7 + $0x8] sm:$0xf]  ;;  %6492 = vmatpush.bf16.msra.mxu2 %v13493_v42  ;;  %6463 = vmatpush.bf16.msrb.mxu0 %v13470_v53 }
 0x790   : > { %5654 = vst [vmem:[#allocation7 + $0x18] sm:$0xf] %v5651_v20  ;;  %v13479_v36 = vld [vmem:[#allocation22 + $0x1c8] sm:$0xff]  ;;  %v13490_v20 = vld [vmem:[#allocation22 + $0x220] sm:$0xff]  ;;  %v11202_v22 = vld [vmem:[#allocation7 + $0x34] sm:$0xf0] }
 0x791   : > { %5663 = vst [vmem:[#allocation7 + $0x1c] sm:$0xf] %v5660_v59  ;;  %v5605_v9 = vld [vmem:[#allocation6 + $0x11] sm:$0xff]  ;;  %v5585_v40 = vpop.f32.mrf.mxu2  ;;  %6480 = vmatpush.bf16.msrb.mxu1 %v13479_v36 }
 0x792   : > { %v5614_v13 = vld [vmem:[#allocation6 + $0x12] sm:$0xff]  ;;  %5672 = vst [vmem:[#allocation7 + $0x20] sm:$0xf] %v5625_v45  ;;  %v5608_v31 = vpack.c.bf16 %v5605_v9, %v5605_v9 }
 0x793   : > { %v5623_v5 = vld [vmem:[#allocation6 + $0x16] sm:$0xff]  ;;  %v5617_v46 = vpack.c.bf16 %v5614_v13, %v5614_v13  ;;  %5647 = vst [vmem:[#allocation7 + $0x5c] sm:$0xf] %v5644_v21  ;;  %v11186_v17 = vld [vmem:[#allocation7 + $0x24] sm:$0xf0]  ;;  %6493 = vmatpush.bf16.msra.mxu2 %v13492_v62  ;;  %v11205_v13 = vor.u32 %v13415_v32, %v11202_v22 }
 0x794   : > { %v5626_v2 = vpack.c.bf16 %v5623_v5, %v5623_v5  ;;  %v5632_v18 = vld [vmem:[#allocation6 + $0x17] sm:$0xff]  ;;  %5611 = vst [vmem:[#allocation7 + $0x4c] sm:$0xf] %v5608_v31  ;;  %v11189_v3 = vor.u32 %v13413_v57, %v11186_v17  ;;  %v13491_v14 = vld [vmem:[#allocation22 + $0x228] sm:$0xff] }
 0x795   : > { %v5649_v12 = vld [vmem:[#allocation6 + $0x14] sm:$0xff]  ;;  %v5635_v56 = vpack.c.bf16 %v5632_v18, %v5632_v18  ;;  %5620 = vst [vmem:[#allocation7 + $0x50] sm:$0xf] %v5617_v46  ;;  %6481 = vmatpush.bf16.msrb.mxu1 %v13478_v11  ;;  %v13486_v46 = vld [vmem:[#allocation22 + $0x200] sm:$0xff] }
 0x796   : > { %v5658_v47 = vld [vmem:[#allocation6 + $0x15] sm:$0xff]  ;;  %v5652_v54 = vpack.c.bf16 %v5649_v12, %v5649_v12  ;;  %5629 = vst [vmem:[#allocation7 + $0x54] sm:$0xf] %v5626_v2  ;;  %6374 = vmatmul.bf16.vlgmr.msra.gmra.mxu3 %v11189_v3 }
 0x797   : > { %v13418_v63 = vld [vmem:[#allocation7 + $0x28] sm:$0xf0]  ;;  %v5661_v55 = vpack.c.bf16 %v5658_v47, %v5658_v47  ;;  %v11194_v10 = vld [vmem:[#allocation7 + $0x2c] sm:$0xf0]  ;;  %5638 = vst [vmem:[#allocation7 + $0x58] sm:$0xf] %v5635_v56  ;;  %6494 = vmatpush.bf16.msra.mxu2 %v13491_v14 }
 0x798   : > { %v11193_v0 = vor.u32 %v13418_v63, %v11192_v61  ;;  %v11197_v23 = vor.u32 %v13414_v6, %v11194_v10  ;;  %5655 = vst [vmem:[#allocation7 + $0x3c] sm:$0xf] %v5652_v54  ;;  %v13419_v59 = vld [vmem:[#allocation7 + $0x30] sm:$0xf0]  ;;  %v13488_v21 = vld [vmem:[#allocation22 + $0x210] sm:$0xff] }
 0x799   : > { %5664 = vst [vmem:[#allocation7 + $0x40] sm:$0xf] %v5661_v55  ;;  %v5587_v60 = vpop.f32.mrf.mxu2  ;;  %v11201_v19 = vor.u32 %v13419_v59, %v11200_v26  ;;  %v11208_v5 = vld [vmem:[#allocation7 + $0x18] sm:$0xf]  ;;  %v13416_v57 = vld [vmem:[#allocation7 + $0x1c] sm:$0xf] }
 0x79a   : > { %6392 = vmatmul.bf16.vlgmr.msra.gmra.mxu0 %v11193_v0  ;;  %6410 = vmatmul.bf16.vlgmr.msra.gmra.mxu1 %v11197_v23  ;;  %5673 = vst [vmem:[#allocation7 + $0x44] sm:$0xf] %v5626_v2  ;;  %v11216_v63 = vld [vmem:[#allocation7 + $0x20] sm:$0xf] }
 0x79b   : > { %5593 = vst [vmem:[#allocation6 + $0x20] sm:$0xff] %v5585_v40  ;;  %v5685_v39 = vld [vmem:[#allocation7 + $0x48] sm:$0xff]  ;;  %6495 = vmatpush.bf16.msra.mxu2 %v13490_v20 }
 0x79c   : > { %v5871_v49 = vunpack.c.l.b16 %v5685_v39  ;;  %v5872_v35 = vunpack.c.h.b16 %v5685_v39 }
 0x79d   : > { %v5686_v51 = vld [vmem:[#allocation7 + $0x50] sm:$0xff] }
 0x79e   : > { %v5889_v4 = vpack.c.b16 %v5871_v49, %v5871_v49  ;;  %v5873_v30 = vunpack.c.l.b16 %v5686_v51  ;;  %v5874_v50 = vunpack.c.h.b16 %v5686_v51  ;;  %v5890_v7 = vpack.c.b16 %v5872_v35, %v5872_v35  ;;  %v5687_v2 = vld [vmem:[#allocation7 + $0x58] sm:$0xff] }
 0x79f   : > { %6496 = vmatpush.bf16.msra.mxu2 %v13489_v37  ;;  %v13420_v15 = vld [vmem:[#allocation7 + $0x38] sm:$0xf0]  ;;  %v5875_v18 = vunpack.c.l.b16 %v5687_v2  ;;  %v5876_v61 = vunpack.c.h.b16 %v5687_v2 }
 0x7a0   : > { %6361 = vmatmul.bf16.gmra.mxu2 %v5889_v4  ;;  %v5891_v38 = vpack.c.b16 %v5873_v30, %v5873_v30  ;;  %v5892_v27 = vpack.c.b16 %v5874_v50, %v5874_v50  ;;  %v11210_v9 = vld [vmem:[#allocation7 + $0x3c] sm:$0xf0]  ;;  %v11209_v40 = vor.u32 %v13420_v15, %v11208_v5 }
 0x7a1   : > { %v11213_v31 = vor.u32 %v13416_v57, %v11210_v9  ;;  %v5893_v12 = vpack.c.b16 %v5875_v18, %v5875_v18  ;;  %v5894_v6 = vpack.c.b16 %v5876_v61, %v5876_v61  ;;  %v13421_v3 = vld [vmem:[#allocation7 + $0x40] sm:$0xf0] }
 0x7a2   : > { %v5650_v1 = vld [vmem:[#allocation6 + $0x1c] sm:$0xff]  ;;  %v11217_v29 = vor.u32 %v13421_v3, %v11216_v63 }
 0x7a3   : > { %v5659_v28 = vld [vmem:[#allocation6 + $0x1d] sm:$0xff]  ;;  %v5653_v45 = vpack.c.bf16 %v5650_v1, %v5650_v1  ;;  %6497 = vmatpush.bf16.msra.mxu2 %v13488_v21 }
 0x7a4   : > { %v5668_v48 = vld [vmem:[#allocation6 + $0x1e] sm:$0xff]  ;;  %v5662_v44 = vpack.c.bf16 %v5659_v28, %v5659_v28 }
 0x7a5   : > { %v5671_v25 = vpack.c.bf16 %v5668_v48, %v5668_v48  ;;  %5656 = vst [vmem:[#allocation7 + $0x60] sm:$0xf] %v5653_v45 }
 0x7a6   : > { %5665 = vst [vmem:[#allocation7 + $0x64] sm:$0xf] %v5662_v44  ;;  %6379 = vmatmul.bf16.gmra.mxu3 %v5890_v7 }
 0x7a7   : > { %5674 = vst [vmem:[#allocation7 + $0x68] sm:$0xf] %v5671_v25  ;;  %6498 = vmatpush.bf16.msra.mxu2 %v13487_v33 }
 0x7aa   : > { %6397 = vmatmul.bf16.gmra.mxu0 %v5891_v38  ;;  %6415 = vmatmul.bf16.gmra.mxu1 %v5892_v27 }
 0x7ab   : > { %6499 = vmatpush.bf16.msra.mxu2 %v13486_v46 }
 0x7ad   : > { %v5688_v47 = vld [vmem:[#allocation7 + $0x60] sm:$0xff] }
 0x7ae   : > { %v5877_v56 = vunpack.c.l.b16 %v5688_v47  ;;  %v5878_v17 = vunpack.c.h.b16 %v5688_v47  ;;  %v5689_v55 = vld [vmem:[#allocation7 + $0x68] sm:$0xf] }
 0x7af   : > { %v5879_v0 = vunpack.c.l.b16 %v5689_v55 }
 0x7b0   : > { %6428 = vmatmul.bf16.vlgmr.msrb.gmra.mxu2 %v11201_v19  ;;  %v5895_v24 = vpack.c.b16 %v5877_v56, %v5877_v56  ;;  %v5896_v54 = vpack.c.b16 %v5878_v17, %v5878_v17 }
 0x7b1   : > { %v5897_v10 = vpack.c.b16 %v5879_v0, %v5879_v0 }
 0x7b6   : > { %6446 = vmatmul.bf16.vlgmr.msrb.gmra.mxu3 %v11205_v13 }
 0x7ba   : > { %6464 = vmatmul.bf16.vlgmr.msrb.gmra.mxu0 %v11209_v40  ;;  %6482 = vmatmul.bf16.vlgmr.msrb.gmra.mxu1 %v11213_v31 }
 0x7c0   : > { %6433 = vmatmul.bf16.gmra.mxu2 %v5893_v12 }
 0x7c6   : > { %6451 = vmatmul.bf16.gmra.mxu3 %v5894_v6 }
 0x7ca   : > { %6469 = vmatmul.bf16.gmra.mxu0 %v5895_v24  ;;  %6487 = vmatmul.bf16.gmra.mxu1 %v5896_v54 }
 0x7d0   : > { %6500 = vmatmul.bf16.vlgmr.msra.gmra.mxu2 %v11217_v29 }
 0x7e0   : > { %6505 = vmatmul.bf16.gmra.mxu2 %v5897_v10 }
 0x80b   : > { %v6357_v8 = vpop.f32.mrf.mxu2 }
 0x80c   : > { %v6358_v43 = vadd.f32 %v14118_v58, %v6357_v8 }
 0x813   : > { %v6359_v60 = vpop.f32.mrf.mxu2 }
 0x814   : > { %v6360_v27 = vadd.f32 %v14118_v58, %v6359_v60 }
 0x817   : > { %v6393_v23 = vpop.f32.mrf.mxu0  ;;  %v6411_v52 = vpop.f32.mrf.mxu1 }
 0x819   : > { %v6375_v34 = vpop.f32.mrf.mxu3 }
 0x81a   : > { %v6376_v16 = vadd.f32 %v6375_v34, %v6358_v43 }
 0x81c   : > { %v6394_v42 = vadd.f32 %v6393_v23, %v6376_v16 }
 0x81e   : > { %v6412_v49 = vadd.f32 %v6411_v52, %v6394_v42 }
 0x81f   : > { %v6395_v39 = vpop.f32.mrf.mxu0  ;;  %v6413_v36 = vpop.f32.mrf.mxu1 }
 0x821   : > { %v6377_v41 = vpop.f32.mrf.mxu3 }
 0x822   : > { %v6378_v59 = vadd.f32 %v6377_v41, %v6360_v27 }
 0x823   : > { %v6362_v53 = vpop.f32.mrf.mxu2 }
 0x824   : > { %v6396_v19 = vadd.f32 %v6395_v39, %v6378_v59  ;;  %v6363_v22 = vadd.f32 %v14118_v58, %v6362_v53  ;;  %v11570_v53 = vld [vmem:[#allocation26 + $0x70] sm:$0xf]  ;;  %v13540_v59 = vld [vmem:[#allocation26 + $0x164] sm:$0xf0] }
 0x826   : > { %v6414_v13 = vadd.f32 %v6413_v36, %v6396_v19 }
 0x827   : > { %v6398_v4 = vpop.f32.mrf.mxu0  ;;  %v6416_v51 = vpop.f32.mrf.mxu1 }
 0x829   : > { %v6380_v62 = vpop.f32.mrf.mxu3 }
 0x82a   : > { %v6381_v32 = vadd.f32 %v6380_v62, %v6363_v22 }
 0x82b   : > { %v6364_v11 = vpop.f32.mrf.mxu2 }
 0x82c   : > { %v6399_v31 = vadd.f32 %v6398_v4, %v6381_v32  ;;  %v13510_v4 = vld [vmem:[#allocation26 + $0x74] sm:$0xf0] }
 0x82d   : > { %v13506_v32 = vld [vmem:[#allocation26 + $0x54] sm:$0xf0] }
 0x82e   : > { %v6417_v47 = vadd.f32 %v6416_v51, %v6399_v31  ;;  %v11634_v51 = vld [vmem:[#allocation26 + $0xf0] sm:$0xf] }
 0x82f   : > { %v6400_v35 = vpop.f32.mrf.mxu0  ;;  %v6418_v30 = vpop.f32.mrf.mxu1 }
 0x830   : > { %v11571_v35 = vor.u32 %v13510_v4, %v11570_v53  ;;  %v13526_v30 = vld [vmem:[#allocation26 + $0xf4] sm:$0xf0]  ;;  %v11530_v53 = vld [vmem:[#allocation26 + $0x20] sm:$0xf]  ;;  %v13500_v4 = vld [vmem:[#allocation26 + $0x24] sm:$0xf0] }
 0x831   : > { %v6382_v14 = vpop.f32.mrf.mxu3 }
 0x832   : > { %v11698_v14 = vld [vmem:[#allocation26 + $0x170] sm:$0xf]  ;;  %7525 = vmatpush.bf16.msra.mxu0 %v11571_v35 }
 0x833   : > { %v6429_v1 = vpop.f32.mrf.mxu2 }
 0x834   : > { %v6430_v9 = vadd.f32 %v6429_v1, %v6412_v49  ;;  %v11635_v1 = vor.u32 %v13526_v30, %v11634_v51  ;;  %v11658_v30 = vld [vmem:[#allocation26 + $0x120] sm:$0xf] }
 0x836   : > { %7538 = vmatpush.bf16.msra.mxu1 %v11635_v1  ;;  %v11738_v1 = vld [vmem:[#allocation26 + $0x1c0] sm:$0xf] }
 0x837   : > { %v6465_v28 = vpop.f32.mrf.mxu0  ;;  %v6483_v48 = vpop.f32.mrf.mxu1 }
 0x839   : > { %v6447_v50 = vpop.f32.mrf.mxu3 }
 0x83a   : > { %v6448_v5 = vadd.f32 %v6447_v50, %v6430_v9  ;;  %v11618_v9 = vld [vmem:[#allocation26 + $0xd0] sm:$0xf] }
 0x83b   : > { %v6431_v45 = vpop.f32.mrf.mxu2 }
 0x83c   : > { %v6432_v40 = vadd.f32 %v6431_v45, %v6414_v13  ;;  %v6466_v18 = vadd.f32 %v6465_v28, %v6448_v5  ;;  %v13542_v28 = vld [vmem:[#allocation26 + $0x174] sm:$0xf0]  ;;  %v11562_v45 = vld [vmem:[#allocation26 + $0x60] sm:$0xf] }
 0x83d   : > { %v11699_v50 = vor.u32 %v13542_v28, %v11698_v14  ;;  %v13522_v13 = vld [vmem:[#allocation26 + $0xd4] sm:$0xf0]  ;;  %v13532_v14 = vld [vmem:[#allocation26 + $0x124] sm:$0xf0] }
 0x83e   : > { %v6484_v56 = vadd.f32 %v6483_v48, %v6466_v18  ;;  %v13552_v28 = vld [vmem:[#allocation26 + $0x1c4] sm:$0xf0] }
 0x83f   : > { %v6467_v44 = vpop.f32.mrf.mxu0  ;;  %v6485_v25 = vpop.f32.mrf.mxu1  ;;  %7551 = vmatpush.bf16.msrb.mxu2 %v11699_v50 }
 0x841   : > { %v6449_v7 = vpop.f32.mrf.mxu3 }
 0x842   : > { %v6450_v46 = vadd.f32 %v6449_v7, %v6432_v40 }
 0x843   : > { %v6434_v38 = vpop.f32.mrf.mxu2 }
 0x844   : > { %v6468_v12 = vadd.f32 %v6467_v44, %v6450_v46  ;;  %v6435_v61 = vadd.f32 %v6434_v38, %v6417_v47  ;;  %v13508_v44 = vld [vmem:[#allocation26 + $0x64] sm:$0xf0]  ;;  %v11682_v46 = vld [vmem:[#allocation26 + $0x150] sm:$0xf]  ;;  %v11546_v47 = vld [vmem:[#allocation26 + $0x40] sm:$0xf] }
 0x845   : > { %v11563_v19 = vor.u32 %v13508_v44, %v11562_v45  ;;  %v11522_v45 = vld [vmem:[#allocation26 + $0x10] sm:$0xf]  ;;  %v13498_v44 = vld [vmem:[#allocation26 + $0x14] sm:$0xf0] }
 0x846   : > { %v6486_v24 = vadd.f32 %v6485_v25, %v6468_v12  ;;  %v11626_v25 = vld [vmem:[#allocation26 + $0xe0] sm:$0xf]  ;;  %v11619_v12 = vor.u32 %v13522_v13, %v11618_v9  ;;  %v13548_v13 = vld [vmem:[#allocation26 + $0x1a4] sm:$0xf0] }
 0x847   : > { %v6470_v20 = vpop.f32.mrf.mxu0  ;;  %v6488_v37 = vpop.f32.mrf.mxu1  ;;  %7526 = vmatpush.bf16.msra.mxu0 %v11563_v19  ;;  %v13550_v19 = vld [vmem:[#allocation26 + $0x1b4] sm:$0xf0]  ;;  %v11722_v9 = vld [vmem:[#allocation26 + $0x1a0] sm:$0xf] }
 0x849   : > { %v6452_v26 = vpop.f32.mrf.mxu3 }
 0x84a   : > { %v6453_v17 = vadd.f32 %v6452_v26, %v6435_v61  ;;  %v11762_v26 = vld [vmem:[#allocation26 + $0x1f0] sm:$0xf] }
 0x84b   : > { %v6436_v21 = vpop.f32.mrf.mxu2 }
 0x84c   : > { %v6471_v63 = vadd.f32 %v6470_v20, %v6453_v17  ;;  %v13524_v20 = vld [vmem:[#allocation26 + $0xe4] sm:$0xf0]  ;;  %v11610_v17 = vld [vmem:[#allocation26 + $0xc0] sm:$0xf] }
 0x84d   : > { %v11627_v21 = vor.u32 %v13524_v20, %v11626_v25  ;;  %v6548_v25 = vld [vmem:[#allocation25 + $0x8] sm:$0xf]  ;;  %v11739_v20 = vor.u32 %v13552_v28, %v11738_v1  ;;  %v13570_v1 = vld [vmem:[#allocation26 + $0x254] sm:$0xf0]  ;;  %v11874_v28 = vld [vmem:[#allocation26 + $0x2d0] sm:$0xf] }
 0x84e   : > { %v6489_v8 = vadd.f32 %v6488_v37, %v6471_v63  ;;  %v11690_v37 = vld [vmem:[#allocation26 + $0x160] sm:$0xf] }
 0x84f   : > { %v6472_v15 = vpop.f32.mrf.mxu0  ;;  %v6490_v33 = vpop.f32.mrf.mxu1  ;;  %v11691_v22 = vor.u32 %v13540_v59, %v11690_v37  ;;  %7539 = vmatpush.bf16.msra.mxu1 %v11627_v21  ;;  %v11650_v37 = vld [vmem:[#allocation26 + $0x110] sm:$0xf]  ;;  %v13530_v59 = vld [vmem:[#allocation26 + $0x114] sm:$0xf0]  ;;  %v11523_v21 = vor.u32 %v13498_v44, %v11522_v45 }
 0x850   : > { %v11554_v15 = vld [vmem:[#allocation26 + $0x50] sm:$0xf]  ;;  %v13602_v44 = vld [vmem:[#allocation26 + $0x354] sm:$0xf0] }
 0x851   : > { %v6454_v57 = vpop.f32.mrf.mxu3  ;;  %v11555_v31 = vor.u32 %v13506_v32, %v11554_v15  ;;  %7552 = vmatpush.bf16.msrb.mxu2 %v11691_v22  ;;  %v6556_v22 = vunpack.c.l.b16 %v6548_v25  ;;  %v11938_v45 = vld [vmem:[#allocation26 + $0x350] sm:$0xf] }
 0x852   : > { %v13558_v57 = vld [vmem:[#allocation26 + $0x1f4] sm:$0xf0] }
 0x853   : > { %v6501_v2 = vpop.f32.mrf.mxu2  ;;  %7527 = vmatpush.bf16.msra.mxu0 %v11555_v31  ;;  %7540 = vmatpush.bf16.msra.mxu1 %v11619_v12  ;;  %v13546_v31 = vld [vmem:[#allocation26 + $0x194] sm:$0xf0]  ;;  %v11578_v12 = vld [vmem:[#allocation26 + $0x80] sm:$0xf] }
 0x854   : > { %v6502_v6 = vadd.f32 %v6501_v2, %v6484_v56  ;;  %v13538_v2 = vld [vmem:[#allocation26 + $0x154] sm:$0xf0]  ;;  %v13504_v56 = vld [vmem:[#allocation26 + $0x44] sm:$0xf0] }
 0x855   : > { %v11683_v61 = vor.u32 %v13538_v2, %v11682_v46  ;;  %v11514_v2 = vld [vmem:[#allocation26] sm:$0xf] }
 0x856   : > { %v6510_v29 = vmax.f32 %v6502_v6, 0.0  ;;  %v13520_v6 = vld [vmem:[#allocation26 + $0xc4] sm:$0xf0] }
 0x857   : > { %7553 = vmatpush.bf16.msrb.mxu2 %v11683_v61  ;;  %v13512_v61 = vld [vmem:[#allocation26 + $0x84] sm:$0xf0] }
 0x858   : > { %v6516_v10 = vrot.slane %v6510_v29, 1 }
 0x85b   : > { %v6503_v54 = vpop.f32.mrf.mxu2 }
 0x85c   : > { %v6504_v3 = vadd.f32 %v6503_v54, %v6486_v24  ;;  %v11763_v24 = vor.u32 %v13558_v57, %v11762_v26  ;;  %v11674_v54 = vld [vmem:[#allocation26 + $0x140] sm:$0xf]  ;;  %v11730_v26 = vld [vmem:[#allocation26 + $0x1b0] sm:$0xf] }
 0x85d   : > { %v11731_v32 = vor.u32 %v13550_v19, %v11730_v26  ;;  %v11714_v57 = vld [vmem:[#allocation26 + $0x190] sm:$0xf]  ;;  %v11866_v26 = vld [vmem:[#allocation26 + $0x2c0] sm:$0xf] }
 0x85e   : > { %v6511_v55 = vmax.f32 %v6504_v3, 0.0  ;;  %v13536_v3 = vld [vmem:[#allocation26 + $0x144] sm:$0xf0]  ;;  %v11715_v46 = vor.u32 %v13546_v31, %v11714_v57  ;;  %v13566_v57 = vld [vmem:[#allocation26 + $0x234] sm:$0xf0] }
 0x85f   : > { %v11858_v31 = vld [vmem:[#allocation26 + $0x2b0] sm:$0xf] }
 0x860   : > { %v6517_v0 = vrot.slane %v6511_v55, 1 }
 0x862   : > { %v6518_v23 = vsel %vm3350_vm13, %v6516_v10, %v6517_v0 }
 0x863   : > { %v6506_v58 = vpop.f32.mrf.mxu2  ;;  %v16394_v34 = vmax.f32 %v6510_v29, %v6518_v23  ;;  %v11754_v29 = vld [vmem:[#allocation26 + $0x1e0] sm:$0xf]  ;;  %v13502_v23 = vld [vmem:[#allocation26 + $0x34] sm:$0xf0] }
 0x864   : > { %v6507_v52 = vadd.f32 %v6506_v58, %v6489_v8  ;;  %v11611_v8 = vor.u32 %v13520_v6, %v11610_v17  ;;  %v11538_v58 = vld [vmem:[#allocation26 + $0x30] sm:$0xf]  ;;  %v13528_v17 = vld [vmem:[#allocation26 + $0x104] sm:$0xf0]  ;;  %v11579_v6 = vor.u32 %v13512_v61, %v11578_v12  ;;  %v13598_v12 = vld [vmem:[#allocation26 + $0x334] sm:$0xf0] }
 0x865   : > { %v6533_v36 = vrot.slane %v16394_v34, 6 }
 0x866   : > { %v6512_v43 = vmax.f32 %v6507_v52, 0.0  ;;  %v11675_v52 = vor.u32 %v13536_v3, %v11674_v54  ;;  %7541 = vmatpush.bf16.msra.mxu1 %v11611_v8  ;;  %v11706_v54 = vld [vmem:[#allocation26 + $0x180] sm:$0xf]  ;;  %v13544_v3 = vld [vmem:[#allocation26 + $0x184] sm:$0xf0] }
 0x868   : > { %v6519_v16 = vrot.slane %v6512_v43, 1  ;;  %7554 = vmatpush.bf16.msrb.mxu2 %v11675_v52  ;;  %v13606_v52 = vld [vmem:[#allocation26 + $0x374] sm:$0xf0] }
 0x86a   : > { %v6520_v60 = vsel %vm3350_vm13, %v6517_v0, %v6519_v16  ;;  %v6525_v42 = vsel %vm3350_vm13, %v6519_v16, %v6516_v10  ;;  %v11547_v0 = vor.u32 %v13504_v56, %v11546_v47  ;;  %v13494_v10 = vld [vmem:[#allocation25] sm:$0xff]  ;;  %v11642_v56 = vld [vmem:[#allocation26 + $0x100] sm:$0xf]  ;;  %vm16519_vm13 = vmor %vm7898_vm10, %vm7899_vm11 }
 0x86b   : > { %v6528_v39 = vmax.f32 %v6512_v43, %v6525_v42  ;;  %v6508_v49 = vpop.f32.mrf.mxu2  ;;  %v6527_v41 = vmax.f32 %v6511_v55, %v6520_v60  ;;  %v13556_v55 = vld [vmem:[#allocation26 + $0x1e4] sm:$0xf0]  ;;  %v11602_v43 = vld [vmem:[#allocation26 + $0xb0] sm:$0xf]  ;;  %v13534_v42 = vld [vmem:[#allocation26 + $0x134] sm:$0xf0] }
 0x86c   : > { %v11755_v16 = vor.u32 %v13556_v55, %v11754_v29  ;;  %v11666_v60 = vld [vmem:[#allocation26 + $0x130] sm:$0xf]  ;;  %7528 = vmatpush.bf16.msra.mxu0 %v11547_v0  ;;  %v11539_v49 = vor.u32 %v13502_v23, %v11538_v58  ;;  %v11707_v29 = vor.u32 %v13544_v3, %v11706_v54  ;;  %v13574_v55 = vld [vmem:[#allocation26 + $0x274] sm:$0xf0]  ;;  %v13564_v54 = vld [vmem:[#allocation26 + $0x224] sm:$0xf0] }
 0x86d   : > { %v6536_v62 = vrot.slane %v6528_v39, 6  ;;  %v6534_v11 = vrot.slane %v6527_v41, 6  ;;  %v11667_v51 = vor.u32 %v13534_v42, %v11666_v60  ;;  %v11890_v0 = vld [vmem:[#allocation26 + $0x2f0] sm:$0xf]  ;;  %v11818_v60 = vld [vmem:[#allocation26 + $0x260] sm:$0xf] }
 0x86e   : > { %v11954_v23 = vld [vmem:[#allocation26 + $0x370] sm:$0xf]  ;;  %v13572_v42 = vld [vmem:[#allocation26 + $0x264] sm:$0xf0]  ;;  %v11850_v3 = vld [vmem:[#allocation26 + $0x2a0] sm:$0xf] }
 0x86f   : > { %v6542_v48 = vsel %vm6532_vm0, %v6536_v62, %v6533_v36  ;;  %v6535_v38 = vsel %vm6532_vm0, %v6533_v36, %v6534_v11  ;;  %v6537_v27 = vsel %vm6532_vm0, %v6534_v11, %v6536_v62  ;;  %v13554_v36 = vld [vmem:[#allocation26 + $0x1d4] sm:$0xf0]  ;;  %v11594_v62 = vld [vmem:[#allocation26 + $0xa0] sm:$0xf]  ;;  %v13516_v11 = vld [vmem:[#allocation26 + $0xa4] sm:$0xf0]  ;;  %7555 = vmatpush.bf16.msrb.mxu2 %v11667_v51 }
 0x870   : > { %v6545_v7 = vmax.f32 %v6528_v39, %v6542_v48  ;;  %v6543_v5 = vmax.f32 %v16394_v34, %v6535_v38  ;;  %v6544_v40 = vmax.f32 %v6527_v41, %v6537_v27  ;;  %v13518_v34 = vld [vmem:[#allocation26 + $0xb4] sm:$0xf0]  ;;  %v11746_v39 = vld [vmem:[#allocation26 + $0x1d0] sm:$0xf]  ;;  %7529 = vmatpush.bf16.msra.mxu0 %v11539_v49  ;;  %v11531_v48 = vor.u32 %v13500_v4, %v11530_v53  ;;  %v11882_v49 = vld [vmem:[#allocation26 + $0x2e0] sm:$0xf] }
 0x871   : > { %v11603_v41 = vor.u32 %v13518_v34, %v11602_v43  ;;  %v11747_v35 = vor.u32 %v13554_v36, %v11746_v39  ;;  %v11595_v50 = vor.u32 %v13516_v11, %v11594_v62  ;;  %v11586_v38 = vld [vmem:[#allocation26 + $0x90] sm:$0xf]  ;;  %v13514_v27 = vld [vmem:[#allocation26 + $0x94] sm:$0xf0]  ;;  %v11955_v34 = vor.u32 %v13606_v52, %v11954_v23  ;;  %v11946_v53 = vld [vmem:[#allocation26 + $0x360] sm:$0xf] }
 0x872   : > { %v6550_v33 = vpack.c.bf16 %v6545_v7, %v6545_v7  ;;  %v6549_v63 = vpack.c.bf16 %v6544_v40, %v6543_v5  ;;  %v11659_v7 = vor.u32 %v13532_v14, %v11658_v30  ;;  %v11587_v15 = vor.u32 %v13514_v27, %v11586_v38  ;;  %v12018_v43 = vld [vmem:[#allocation26 + $0x3f0] sm:$0xf]  ;;  %v13604_v51 = vld [vmem:[#allocation26 + $0x364] sm:$0xf0]  ;;  %v12010_v62 = vld [vmem:[#allocation26 + $0x3e0] sm:$0xf] }
 0x873   : > { %7542 = vmatpush.bf16.msra.mxu1 %v11603_v41  ;;  %v6558_v5 = vpack.c.b16 %v6556_v22, %v6556_v22  ;;  %v11723_v40 = vor.u32 %v13548_v13, %v11722_v9  ;;  %v11819_v36 = vor.u32 %v13572_v42, %v11818_v60  ;;  %v13588_v41 = vld [vmem:[#allocation26 + $0x2e4] sm:$0xf0]  ;;  %v11810_v14 = vld [vmem:[#allocation26 + $0x250] sm:$0xf]  ;;  %v13618_v27 = vld [vmem:[#allocation26 + $0x3d4] sm:$0xf0] }
 0x874   : > { %v6568_v18 = vsel %vm6566_vm1, %v6550_v33, 0  ;;  %7530 = vmatpush.bf16.msra.mxu0 %v11531_v48  ;;  %7556 = vmatpush.bf16.msrb.mxu2 %v11659_v7  ;;  %v11651_v33 = vor.u32 %v13530_v59, %v11650_v37  ;;  %v11883_v4 = vor.u32 %v13588_v41, %v11882_v49  ;;  %v13620_v11 = vld [vmem:[#allocation26 + $0x3e4] sm:$0xf0]  ;;  %v11811_v48 = vor.u32 %v13570_v1, %v11810_v14  ;;  %v12002_v38 = vld [vmem:[#allocation26 + $0x3d0] sm:$0xf] }
 0x875   : > { %6576 = vmatpush.bf16.msra.mxu3 %v6568_v18  ;;  %v13496_v18 = vld [vmem:[#allocation26 + $0x4] sm:$0xf0]  ;;  %v12011_v30 = vor.u32 %v13620_v11, %v12010_v62  ;;  %v11939_v7 = vor.u32 %v13602_v44, %v11938_v45  ;;  %v11802_v37 = vld [vmem:[#allocation26 + $0x240] sm:$0xf]  ;;  %v13578_v42 = vld [vmem:[#allocation26 + $0x294] sm:$0xf0] }
 0x876   : > { %v11515_v47 = vor.u32 %v13496_v18, %v11514_v2  ;;  %v13568_v59 = vld [vmem:[#allocation26 + $0x244] sm:$0xf0]  ;;  %v11930_v22 = vld [vmem:[#allocation26 + $0x340] sm:$0xf]  ;;  %v13582_v2 = vld [vmem:[#allocation26 + $0x2b4] sm:$0xf0] }
 0x877   : > { %7543 = vmatpush.bf16.msra.mxu1 %v11595_v50  ;;  %v13586_v50 = vld [vmem:[#allocation26 + $0x2d4] sm:$0xf0]  ;;  %v11803_v19 = vor.u32 %v13568_v59, %v11802_v37  ;;  %v11994_v9 = vld [vmem:[#allocation26 + $0x3c0] sm:$0xf]  ;;  %v13616_v13 = vld [vmem:[#allocation26 + $0x3c4] sm:$0xf0] }
 0x878   : > { %7531 = vmatpush.bf16.msra.mxu0 %v11523_v21  ;;  %7557 = vmatpush.bf16.msrb.mxu2 %v11651_v33  ;;  %v11875_v25 = vor.u32 %v13586_v50, %v11874_v28  ;;  %v13584_v21 = vld [vmem:[#allocation26 + $0x2c4] sm:$0xf0]  ;;  %v11922_v18 = vld [vmem:[#allocation26 + $0x330] sm:$0xf]  ;;  %v11898_v28 = vld [vmem:[#allocation26 + $0x300] sm:$0xf] }
 0x879   : > { %6577 = vmatpush.bf16.msra.mxu3 %v6549_v63  ;;  %v11826_v63 = vld [vmem:[#allocation26 + $0x270] sm:$0xf]  ;;  %v11867_v33 = vor.u32 %v13584_v21, %v11866_v26  ;;  %v11923_v61 = vor.u32 %v13598_v12, %v11922_v18  ;;  %v13612_v23 = vld [vmem:[#allocation26 + $0x3a4] sm:$0xf0]  ;;  %v11962_v50 = vld [vmem:[#allocation26 + $0x380] sm:$0xf] }
 0x87a   : > { %v11827_v8 = vor.u32 %v13574_v55, %v11826_v63  ;;  %v11914_v55 = vld [vmem:[#allocation26 + $0x320] sm:$0xf]  ;;  %v13560_v11 = vld [vmem:[#allocation26 + $0x204] sm:$0xf0]  ;;  %v13509_v37 = vld [vmem:[#allocation26 + $0x74] sm:$0xf] }
 0x87b   : > { %7544 = vmatpush.bf16.msra.mxu1 %v11587_v15  ;;  %v13600_v15 = vld [vmem:[#allocation26 + $0x344] sm:$0xf0]  ;;  %v13541_v18 = vld [vmem:[#allocation26 + $0x174] sm:$0xf]  ;;  %v11700_v12 = vld [vmem:[#allocation26 + $0x178] sm:$0xf0] }
 0x87c   : > { %11510 = vmatmul.msk.bf16.vlgmr.msra.gmra.mxu3 %vm6559_vm2, %v13494_v10  ;;  %7532 = vmatpush.bf16.msra.mxu0 %v11515_v47  ;;  %v13590_v10 = vld [vmem:[#allocation26 + $0x2f4] sm:$0xf0]  ;;  %v11859_v47 = vor.u32 %v13582_v2, %v11858_v31 }
 0x87d   : > { %7564 = vmatpush.bf16.msrb.mxu3 %v11763_v24  ;;  %v11643_v24 = vor.u32 %v13528_v17, %v11642_v56  ;;  %v11891_v58 = vor.u32 %v13590_v10, %v11890_v0  ;;  %v11986_v56 = vld [vmem:[#allocation26 + $0x3b0] sm:$0xf]  ;;  %v13614_v17 = vld [vmem:[#allocation26 + $0x3b4] sm:$0xf0]  ;;  %v13596_v0 = vld [vmem:[#allocation26 + $0x324] sm:$0xf0] }
 0x87f   : > { %7545 = vmatpush.bf16.msra.mxu1 %v11579_v6  ;;  %7558 = vmatpush.bf16.msrb.mxu2 %v11643_v24  ;;  %v11987_v6 = vor.u32 %v13614_v17, %v11986_v56  ;;  %v11786_v24 = vld [vmem:[#allocation26 + $0x220] sm:$0xf] }
 0x880   : > { %7577 = vmatpush.bf16.msrb.mxu0 %v11827_v8  ;;  %v11787_v63 = vor.u32 %v13564_v54, %v11786_v24  ;;  %v11915_v8 = vor.u32 %v13596_v0, %v11914_v55  ;;  %v12074_v54 = vld [vmem:[#allocation26 + $0x460] sm:$0xf]  ;;  %v13507_v55 = vld [vmem:[#allocation26 + $0x64] sm:$0xf]  ;;  %v11564_v0 = vld [vmem:[#allocation26 + $0x68] sm:$0xf0] }
 0x881   : > { %7565 = vmatpush.bf16.msrb.mxu3 %v11755_v16  ;;  %v13622_v16 = vld [vmem:[#allocation26 + $0x3f4] sm:$0xf0] }
 0x882   : > { %v12019_v39 = vor.u32 %v13622_v16, %v12018_v43  ;;  %v11778_v43 = vld [vmem:[#allocation26 + $0x210] sm:$0xf] }
 0x883   : > { %7590 = vmatpush.bf16.msrb.mxu1 %v11891_v58  ;;  %7603 = vmatpush.bf16.msra.mxu2 %v11955_v34  ;;  %v11978_v58 = vld [vmem:[#allocation26 + $0x3a0] sm:$0xf]  ;;  %v13562_v34 = vld [vmem:[#allocation26 + $0x214] sm:$0xf0]  ;;  %v11842_v16 = vld [vmem:[#allocation26 + $0x290] sm:$0xf] }
 0x884   : > { %7578 = vmatpush.bf16.msrb.mxu0 %v11819_v36  ;;  %v11979_v52 = vor.u32 %v13612_v23, %v11978_v58  ;;  %v11779_v60 = vor.u32 %v13562_v34, %v11778_v43  ;;  %v13594_v36 = vld [vmem:[#allocation26 + $0x314] sm:$0xf0]  ;;  %v11843_v49 = vor.u32 %v13578_v42, %v11842_v16  ;;  %v13539_v58 = vld [vmem:[#allocation26 + $0x164] sm:$0xf]  ;;  %v11692_v23 = vld [vmem:[#allocation26 + $0x168] sm:$0xf0] }
 0x885   : > { %7566 = vmatpush.bf16.msrb.mxu3 %v11747_v35  ;;  %v11947_v35 = vor.u32 %v13604_v51, %v11946_v53  ;;  %v11970_v53 = vld [vmem:[#allocation26 + $0x390] sm:$0xf]  ;;  %v11770_v51 = vld [vmem:[#allocation26 + $0x200] sm:$0xf] }
 0x886   : > { %v11771_v1 = vor.u32 %v13560_v11, %v11770_v51  ;;  %v11556_v51 = vld [vmem:[#allocation26 + $0x58] sm:$0xf0] }
 0x887   : > { %7591 = vmatpush.bf16.msrb.mxu1 %v11883_v4  ;;  %7604 = vmatpush.bf16.msra.mxu2 %v11947_v35  ;;  %v13610_v4 = vld [vmem:[#allocation26 + $0x394] sm:$0xf0]  ;;  %v11834_v35 = vld [vmem:[#allocation26 + $0x280] sm:$0xf]  ;;  %v11620_v11 = vld [vmem:[#allocation26 + $0xd8] sm:$0xf0] }
 0x888   : > { %7579 = vmatpush.bf16.msrb.mxu0 %v11811_v48  ;;  %v11971_v62 = vor.u32 %v13610_v4, %v11970_v53  ;;  %v13592_v48 = vld [vmem:[#allocation26 + $0x304] sm:$0xf0]  ;;  %v11695_v4 = vor.u32 %v13539_v58, %v11692_v23  ;;  %v11596_v58 = vld [vmem:[#allocation26 + $0xa8] sm:$0xf0]  ;;  %v13531_v23 = vld [vmem:[#allocation26 + $0x124] sm:$0xf] }
 0x889   : > { %7567 = vmatpush.bf16.msrb.mxu3 %v11739_v20  ;;  %v12003_v20 = vor.u32 %v13618_v27, %v12002_v38  ;;  %v11899_v44 = vor.u32 %v13592_v48, %v11898_v28  ;;  %v12082_v27 = vld [vmem:[#allocation26 + $0x470] sm:$0xf]  ;;  %v12058_v28 = vld [vmem:[#allocation26 + $0x440] sm:$0xf]  ;;  %v13632_v48 = vld [vmem:[#allocation26 + $0x444] sm:$0xf0] }
 0x88b   : > { %7592 = vmatpush.bf16.msrb.mxu1 %v11875_v25  ;;  %7605 = vmatpush.bf16.msra.mxu2 %v11939_v7  ;;  %v13608_v25 = vld [vmem:[#allocation26 + $0x384] sm:$0xf0] }
 0x88c   : > { %11511 = vmatmul.msk.bf16.gmra.mxu3 %vm6559_vm2, %v6558_v5  ;;  %7580 = vmatpush.bf16.msrb.mxu0 %v11803_v19  ;;  %v11995_v5 = vor.u32 %v13616_v13, %v11994_v9  ;;  %v11963_v7 = vor.u32 %v13608_v25, %v11962_v50  ;;  %v11572_v9 = vld [vmem:[#allocation26 + $0x78] sm:$0xf0]  ;;  %v11548_v25 = vld [vmem:[#allocation26 + $0x48] sm:$0xf0]  ;;  %vm7930_vm2 = vcmask 1044484  }
 0x88d   : > { %7568 = vmatpush.bf16.msrb.mxu3 %v11731_v32  ;;  %v11931_v32 = vor.u32 %v13600_v15, %v11930_v22 }
 0x88f   : > { %7593 = vmatpush.bf16.msrb.mxu1 %v11867_v33  ;;  %7606 = vmatpush.bf16.msra.mxu2 %v11931_v32 }
 0x891   : > { %7569 = vmatpush.bf16.msrb.mxu3 %v11723_v40  ;;  %v11794_v40 = vld [vmem:[#allocation26 + $0x230] sm:$0xf] }
 0x893   : > { %7594 = vmatpush.bf16.msrb.mxu1 %v11859_v47  ;;  %7607 = vmatpush.bf16.msra.mxu2 %v11923_v61  ;;  %v11575_v61 = vor.u32 %v13509_v37, %v11572_v9  ;;  %v12050_v37 = vld [vmem:[#allocation26 + $0x430] sm:$0xf] }
 0x895   : > { %7570 = vmatpush.bf16.msrb.mxu3 %v11715_v46  ;;  %v11795_v46 = vor.u32 %v13566_v57, %v11794_v40  ;;  %v11636_v40 = vld [vmem:[#allocation26 + $0xf8] sm:$0xf0] }
 0x897   : > { %7581 = vmatpush.bf16.msrb.mxu0 %v11795_v46  ;;  %7608 = vmatpush.bf16.msra.mxu2 %v11915_v8  ;;  %v11628_v8 = vld [vmem:[#allocation26 + $0xe8] sm:$0xf0] }
 0x899   : > { %7571 = vmatpush.bf16.msrb.mxu3 %v11707_v29  ;;  %v13580_v29 = vld [vmem:[#allocation26 + $0x2a4] sm:$0xf0] }
 0x89a   : > { %v11851_v10 = vor.u32 %v13580_v29, %v11850_v3  ;;  %v13636_v3 = vld [vmem:[#allocation26 + $0x464] sm:$0xf0]  ;;  %v11703_v29 = vor.u32 %v13541_v18, %v11700_v12 }
 0x89b   : > { %7582 = vmatpush.bf16.msrb.mxu0 %v11787_v63  ;;  %v12075_v34 = vor.u32 %v13636_v3, %v12074_v54  ;;  %v12042_v54 = vld [vmem:[#allocation26 + $0x420] sm:$0xf]  ;;  %v13628_v3 = vld [vmem:[#allocation26 + $0x424] sm:$0xf0] }
 0x89c   : > { %7595 = vmatpush.bf16.msrb.mxu1 %v11851_v10  ;;  %v13523_v10 = vld [vmem:[#allocation26 + $0xe4] sm:$0xf] }
 0x89d   : > { %7616 = vmatpush.bf16.msra.mxu3 %v12019_v39  ;;  %v11906_v39 = vld [vmem:[#allocation26 + $0x310] sm:$0xf]  ;;  %v11631_v53 = vor.u32 %v13523_v10, %v11628_v8  ;;  %v11532_v10 = vld [vmem:[#allocation26 + $0x28] sm:$0xf0]  ;;  %v13515_v8 = vld [vmem:[#allocation26 + $0xa4] sm:$0xf] }
 0x89e   : > { %v11907_v41 = vor.u32 %v13594_v36, %v11906_v39  ;;  %v11567_v39 = vor.u32 %v13507_v55, %v11564_v0  ;;  %v12066_v36 = vld [vmem:[#allocation26 + $0x450] sm:$0xf]  ;;  %v13499_v0 = vld [vmem:[#allocation26 + $0x24] sm:$0xf] }
 0x89f   : > { %7583 = vmatpush.bf16.msrb.mxu0 %v11779_v60 }
 0x8a0   : > { %7596 = vmatpush.bf16.msrb.mxu1 %v11843_v49  ;;  %7609 = vmatpush.bf16.msra.mxu2 %v11907_v41  ;;  %v13634_v49 = vld [vmem:[#allocation26 + $0x454] sm:$0xf0]  ;;  %v13505_v41 = vld [vmem:[#allocation26 + $0x54] sm:$0xf] }
 0x8a1   : > { %7617 = vmatpush.bf16.msra.mxu3 %v12011_v30  ;;  %v13576_v30 = vld [vmem:[#allocation26 + $0x284] sm:$0xf0] }
 0x8a2   : > { %v11835_v45 = vor.u32 %v13576_v30, %v11834_v35  ;;  %v13537_v35 = vld [vmem:[#allocation26 + $0x154] sm:$0xf]  ;;  %v11684_v30 = vld [vmem:[#allocation26 + $0x158] sm:$0xf0] }
 0x8a3   : > { %7584 = vmatpush.bf16.msrb.mxu0 %v11771_v1  ;;  %v11559_v1 = vor.u32 %v13505_v41, %v11556_v51  ;;  %v13513_v41 = vld [vmem:[#allocation26 + $0x94] sm:$0xf]  ;;  %v11652_v51 = vld [vmem:[#allocation26 + $0x118] sm:$0xf0] }
 0x8a4   : > { %7597 = vmatpush.bf16.msrb.mxu1 %v11835_v45  ;;  %7610 = vmatpush.bf16.msra.mxu2 %v11899_v44  ;;  %v11687_v45 = vor.u32 %v13537_v35, %v11684_v30  ;;  %v13503_v44 = vld [vmem:[#allocation26 + $0x44] sm:$0xf] }
 0x8a5   : > { %7618 = vmatpush.bf16.msra.mxu3 %v12003_v20  ;;  %v13638_v20 = vld [vmem:[#allocation26 + $0x474] sm:$0xf0] }
 0x8a6   : > { %v12083_v47 = vor.u32 %v13638_v20, %v12082_v27  ;;  %v13535_v27 = vld [vmem:[#allocation26 + $0x144] sm:$0xf]  ;;  %v11676_v20 = vld [vmem:[#allocation26 + $0x148] sm:$0xf0] }
 0x8a7   : > { %v11679_v9 = vor.u32 %v13535_v27, %v11676_v20  ;;  %v13573_v27 = vld [vmem:[#allocation26 + $0x274] sm:$0xf]  ;;  %v11828_v20 = vld [vmem:[#allocation26 + $0x278] sm:$0xf0] }
 0x8a9   : > { %7619 = vmatpush.bf16.msra.mxu3 %v11995_v5  ;;  %v13525_v5 = vld [vmem:[#allocation26 + $0xf4] sm:$0xf] }
 0x8aa   : > { %v11639_v63 = vor.u32 %v13525_v5, %v11636_v40 }
 0x8ad   : > { %7620 = vmatpush.bf16.msra.mxu3 %v11987_v6 }
 0x8b1   : > { %7621 = vmatpush.bf16.msra.mxu3 %v11979_v52 }
 0x8b5   : > { %7622 = vmatpush.bf16.msra.mxu3 %v11971_v62  ;;  %v13521_v62 = vld [vmem:[#allocation26 + $0xd4] sm:$0xf] }
 0x8b6   : > { %v11623_v50 = vor.u32 %v13521_v62, %v11620_v11  ;;  %v12026_v62 = vld [vmem:[#allocation26 + $0x400] sm:$0xf]  ;;  %v13624_v11 = vld [vmem:[#allocation26 + $0x404] sm:$0xf0] }
 0x8b9   : > { %7623 = vmatpush.bf16.msra.mxu3 %v11963_v7  ;;  %v13519_v7 = vld [vmem:[#allocation26 + $0xc4] sm:$0xf] }
 0x8ff   : > { %v6579_v14 = vpop.f32.mrf.mxu3 }
 0x900   : > { %6588 = vst [vmem:[#allocation8] sm:$0xff] %v6579_v14 }
 0x907   : > { %v6581_v38 = vpop.f32.mrf.mxu3 }
 0x908   : > { %6589 = vst [vmem:[#allocation8 + $0x8] sm:$0xff] %v6581_v38 }
 0x90f   : > { %v6594_v59 = vld [vmem:[#allocation8 + $0x1] sm:$0xff]  ;;  %v6584_v21 = vpop.f32.mrf.mxu3 }
 0x910   : > { %v6597_v26 = vld [vmem:[#allocation8 + $0x2] sm:$0xff]  ;;  %v13931_v22 = vpack.c.bf16 %v6594_v59, %v6579_v14  ;;  %6590 = vst [vmem:[#allocation8 + $0x10] sm:$0xff] %v6584_v21  ;;  %v12067_v14 = vor.u32 %v13634_v49, %v12066_v36  ;;  %v12059_v59 = vor.u32 %v13632_v48, %v12058_v28  ;;  %v13497_v36 = vld [vmem:[#allocation26 + $0x14] sm:$0xf]  ;;  %v11524_v49 = vld [vmem:[#allocation26 + $0x18] sm:$0xf0] }
 0x911   : > { %v6600_v19 = vld [vmem:[#allocation8 + $0x4] sm:$0xff]  ;;  %v11527_v30 = vor.u32 %v13497_v36, %v11524_v49  ;;  %v11940_v36 = vld [vmem:[#allocation26 + $0x358] sm:$0xf0] }
 0x912   : > { %v13936_v15 = vpack.c.bf16 %v6600_v19, %v6597_v26  ;;  %v6603_v33 = vld [vmem:[#allocation8 + $0x5] sm:$0xff]  ;;  %v6778_v57 = vunpack.c.l.b16 %v13931_v22  ;;  %v6779_v31 = vunpack.c.h.b16 %v13931_v22  ;;  %v11551_v26 = vor.u32 %v13503_v44, %v11548_v25  ;;  %v13630_v22 = vld [vmem:[#allocation26 + $0x434] sm:$0xf0] }
 0x913   : > { %v6606_v32 = vld [vmem:[#allocation8 + $0x6] sm:$0xff]  ;;  %v12051_v18 = vor.u32 %v13630_v22, %v12050_v37  ;;  %v13511_v28 = vld [vmem:[#allocation26 + $0x84] sm:$0xf]  ;;  %v13589_v37 = vld [vmem:[#allocation26 + $0x2f4] sm:$0xf] }
 0x914   : > { %v16406_v13 = vpack.c.bf16 %v6606_v32, %v6603_v33  ;;  %v6780_v46 = vunpack.c.l.b16 %v13936_v15  ;;  %v6781_v2 = vunpack.c.h.b16 %v13936_v15  ;;  %v16408_v56 = vpack.c.b16 %v6778_v57, %v6778_v57  ;;  %v13501_v15 = vld [vmem:[#allocation26 + $0x34] sm:$0xf]  ;;  %v11540_v33 = vld [vmem:[#allocation26 + $0x38] sm:$0xf0]  ;;  %v13527_v44 = vld [vmem:[#allocation26 + $0x104] sm:$0xf] }
 0x915   : > { %v16410_v17 = vpack.c.b16 %v6779_v31, %v6779_v31  ;;  %v13517_v57 = vld [vmem:[#allocation26 + $0xb4] sm:$0xf]  ;;  %v11604_v31 = vld [vmem:[#allocation26 + $0xb8] sm:$0xf0]  ;;  %v11543_v12 = vor.u32 %v13501_v15, %v11540_v33  ;;  %v11644_v25 = vld [vmem:[#allocation26 + $0x108] sm:$0xf0] }
 0x916   : > { %v16412_v6 = vpack.c.b16 %v6780_v46, %v6780_v46  ;;  %v16414_v24 = vpack.c.b16 %v6781_v2, %v6781_v2  ;;  %7533 = vmatmul.bf16.vlgmr.msra.gmra.mxu0 %v16408_v56  ;;  %v6782_v19 = vunpack.c.l.b16 %v16406_v13  ;;  %v6783_v21 = vunpack.c.h.b16 %v16406_v13  ;;  %v13533_v46 = vld [vmem:[#allocation26 + $0x134] sm:$0xf]  ;;  %v11668_v2 = vld [vmem:[#allocation26 + $0x138] sm:$0xf0] }
 0x917   : > { %7546 = vmatmul.bf16.vlgmr.msra.gmra.mxu1 %v16410_v17  ;;  %v6612_v52 = vld [vmem:[#allocation8 + $0x9] sm:$0xff]  ;;  %v6586_v16 = vpop.f32.mrf.mxu3  ;;  %7629 = vmatpush.bf16.msra.mxu0 %v12083_v47  ;;  %v11671_v55 = vor.u32 %v13533_v46, %v11668_v2  ;;  %v13605_v22 = vld [vmem:[#allocation26 + $0x374] sm:$0xf]  ;;  %v11956_v15 = vld [vmem:[#allocation26 + $0x378] sm:$0xf0] }
 0x918   : > { %v6615_v43 = vld [vmem:[#allocation8 + $0xa] sm:$0xff]  ;;  %7559 = vmatmul.bf16.vlgmr.msrb.gmra.mxu2 %v16412_v6  ;;  %7572 = vmatmul.bf16.vlgmr.msrb.gmra.mxu3 %v16414_v24  ;;  %v16420_v60 = vpack.c.bf16 %v6612_v52, %v6581_v38  ;;  %v16426_v13 = vpack.c.b16 %v6782_v19, %v6782_v19  ;;  %v16428_v47 = vpack.c.b16 %v6783_v21, %v6783_v21  ;;  %v11892_v21 = vld [vmem:[#allocation26 + $0x2f8] sm:$0xf0] }
 0x919   : > { %v6616_v42 = vpack.c.bf16 %v6615_v43, %v6615_v43  ;;  %7642 = vmatpush.bf16.msra.mxu1 %v11575_v61  ;;  %7655 = vmatpush.bf16.msrb.mxu2 %v11639_v63  ;;  %v11612_v38 = vld [vmem:[#allocation26 + $0xc8] sm:$0xf0]  ;;  %v11607_v61 = vor.u32 %v13517_v57, %v11604_v31  ;;  %v12043_v43 = vor.u32 %v13628_v3, %v12042_v54  ;;  %v12034_v16 = vld [vmem:[#allocation26 + $0x410] sm:$0xf]  ;;  %v13555_v57 = vld [vmem:[#allocation26 + $0x1e4] sm:$0xf] }
 0x91a   : > { %7668 = vmatpush.bf16.msrb.mxu3 %v11703_v29  ;;  %v11615_v32 = vor.u32 %v13519_v7, %v11612_v38  ;;  %v6784_v5 = vunpack.c.l.b16 %v16420_v60  ;;  %v6785_v40 = vunpack.c.h.b16 %v16420_v60  ;;  %v11660_v52 = vld [vmem:[#allocation26 + $0x128] sm:$0xf0]  ;;  %v13626_v60 = vld [vmem:[#allocation26 + $0x414] sm:$0xf0]  ;;  %v13557_v7 = vld [vmem:[#allocation26 + $0x1f4] sm:$0xf]  ;;  %v11895_v46 = vor.u32 %v13589_v37, %v11892_v21 }
 0x91b   : > { %6617 = vst [vmem:[#allocation9 + $0x20] sm:$0xf] %v6616_v42  ;;  %7630 = vmatpush.bf16.msra.mxu0 %v12075_v34  ;;  %v11535_v34 = vor.u32 %v13499_v0, %v11532_v10  ;;  %v11599_v42 = vor.u32 %v13515_v8, %v11596_v58  ;;  %v12035_v35 = vor.u32 %v13626_v60, %v12034_v16  ;;  %v11764_v38 = vld [vmem:[#allocation26 + $0x1f8] sm:$0xf0]  ;;  %v11756_v31 = vld [vmem:[#allocation26 + $0x1e8] sm:$0xf0] }
 0x91c   : > { %v16430_v63 = vpack.c.b16 %v6784_v5, %v6784_v5  ;;  %v16432_v29 = vpack.c.b16 %v6785_v40, %v6785_v40  ;;  %v11831_v5 = vor.u32 %v13573_v27, %v11828_v20  ;;  %v11959_v2 = vor.u32 %v13605_v22, %v11956_v15  ;;  %v11884_v54 = vld [vmem:[#allocation26 + $0x2e8] sm:$0xf0]  ;;  %v13603_v3 = vld [vmem:[#allocation26 + $0x364] sm:$0xf]  ;;  %v13553_v58 = vld [vmem:[#allocation26 + $0x1d4] sm:$0xf] }
 0x91d   : > { %7643 = vmatpush.bf16.msra.mxu1 %v11567_v39  ;;  %7656 = vmatpush.bf16.msrb.mxu2 %v11631_v53  ;;  %v11663_v39 = vor.u32 %v13531_v23, %v11660_v52  ;;  %v11588_v53 = vld [vmem:[#allocation26 + $0x98] sm:$0xf0]  ;;  %v11759_v10 = vor.u32 %v13555_v57, %v11756_v31  ;;  %v13585_v60 = vld [vmem:[#allocation26 + $0x2d4] sm:$0xf]  ;;  %v13563_v15 = vld [vmem:[#allocation26 + $0x224] sm:$0xf] }
 0x91e   : > { %7669 = vmatpush.bf16.msrb.mxu3 %v11695_v4  ;;  %v13529_v4 = vld [vmem:[#allocation26 + $0x114] sm:$0xf]  ;;  %v11591_v48 = vor.u32 %v13513_v41, %v11588_v53  ;;  %v11748_v23 = vld [vmem:[#allocation26 + $0x1d8] sm:$0xf0]  ;;  %v13551_v53 = vld [vmem:[#allocation26 + $0x1c4] sm:$0xf] }
 0x91f   : > { %7631 = vmatpush.bf16.msra.mxu0 %v12067_v14  ;;  %v13495_v14 = vld [vmem:[#allocation26 + $0x4] sm:$0xf]  ;;  %v11812_v16 = vld [vmem:[#allocation26 + $0x258] sm:$0xf0]  ;;  %v11751_v49 = vor.u32 %v13553_v58, %v11748_v23  ;;  %v13597_v27 = vld [vmem:[#allocation26 + $0x334] sm:$0xf] }
 0x920   : > { %v11924_v20 = vld [vmem:[#allocation26 + $0x338] sm:$0xf0] }
 0x921   : > { %7644 = vmatpush.bf16.msra.mxu1 %v11559_v1  ;;  %7657 = vmatpush.bf16.msrb.mxu2 %v11623_v50  ;;  %v11516_v1 = vld [vmem:[#allocation26 + $0x8] sm:$0xf0]  ;;  %v11655_v50 = vor.u32 %v13529_v4, %v11652_v51  ;;  %v11927_v22 = vor.u32 %v13597_v27, %v11924_v20 }
 0x922   : > { %7670 = vmatpush.bf16.msrb.mxu3 %v11687_v45  ;;  %v11580_v45 = vld [vmem:[#allocation26 + $0x88] sm:$0xf0]  ;;  %v11519_v19 = vor.u32 %v13495_v14, %v11516_v1  ;;  %v13599_v14 = vld [vmem:[#allocation26 + $0x344] sm:$0xf] }
 0x923   : > { %7632 = vmatpush.bf16.msra.mxu0 %v12059_v59  ;;  %v6622_v59 = vld [vmem:[#allocation9 + $0x20] sm:$0xf]  ;;  %v11583_v33 = vor.u32 %v13511_v28, %v11580_v45  ;;  %v11740_v4 = vld [vmem:[#allocation26 + $0x1c8] sm:$0xf0]  ;;  %v13549_v28 = vld [vmem:[#allocation26 + $0x1b4] sm:$0xf] }
 0x924   : > { %v6786_v40 = vunpack.c.l.b16 %v6622_v59  ;;  %v11932_v1 = vld [vmem:[#allocation26 + $0x348] sm:$0xf0] }
 0x925   : > { %7645 = vmatpush.bf16.msra.mxu1 %v11551_v26  ;;  %7658 = vmatpush.bf16.msrb.mxu2 %v11615_v32  ;;  %v12027_v26 = vor.u32 %v13624_v11, %v12026_v62  ;;  %v11647_v32 = vor.u32 %v13527_v44, %v11644_v25  ;;  %v13567_v11 = vld [vmem:[#allocation26 + $0x244] sm:$0xf]  ;;  %v11935_v45 = vor.u32 %v13599_v14, %v11932_v1  ;;  %v13565_v44 = vld [vmem:[#allocation26 + $0x234] sm:$0xf]  ;;  %v11796_v25 = vld [vmem:[#allocation26 + $0x238] sm:$0xf0] }
 0x926   : > { %7671 = vmatpush.bf16.msrb.mxu3 %v11679_v9  ;;  %7585 = vmatmul.bf16.vlgmr.msrb.gmra.mxu0 %v16426_v13  ;;  %v11767_v9 = vor.u32 %v13557_v7, %v11764_v38  ;;  %v16438_v0 = vpack.c.b16 %v6786_v40, %v6786_v40  ;;  %v13581_v7 = vld [vmem:[#allocation26 + $0x2b4] sm:$0xf]  ;;  %v11860_v38 = vld [vmem:[#allocation26 + $0x2b8] sm:$0xf0]  ;;  %v11799_v59 = vor.u32 %v13565_v44, %v11796_v25  ;;  %v11916_v40 = vld [vmem:[#allocation26 + $0x328] sm:$0xf0] }
 0x927   : > { %7598 = vmatmul.bf16.vlgmr.msrb.gmra.mxu1 %v16428_v47  ;;  %7633 = vmatpush.bf16.msra.mxu0 %v12051_v18  ;;  %v13571_v18 = vld [vmem:[#allocation26 + $0x264] sm:$0xf]  ;;  %v11863_v21 = vor.u32 %v13581_v7, %v11860_v38  ;;  %v13617_v44 = vld [vmem:[#allocation26 + $0x3d4] sm:$0xf]  ;;  %v12004_v25 = vld [vmem:[#allocation26 + $0x3d8] sm:$0xf0] }
 0x928   : > { %7611 = vmatmul.bf16.vlgmr.msra.gmra.mxu2 %v16430_v63  ;;  %7624 = vmatmul.bf16.vlgmr.msra.gmra.mxu3 %v16432_v29  ;;  %v13633_v7 = vld [vmem:[#allocation26 + $0x454] sm:$0xf]  ;;  %v12068_v38 = vld [vmem:[#allocation26 + $0x458] sm:$0xf0]  ;;  %v12007_v27 = vor.u32 %v13617_v44, %v12004_v25 }
 0x929   : > { %7646 = vmatpush.bf16.msra.mxu1 %v11543_v12  ;;  %7659 = vmatpush.bf16.msrb.mxu2 %v11607_v61  ;;  %v11820_v12 = vld [vmem:[#allocation26 + $0x268] sm:$0xf0]  ;;  %v13587_v61 = vld [vmem:[#allocation26 + $0x2e4] sm:$0xf]  ;;  %v12071_v20 = vor.u32 %v13633_v7, %v12068_v38 }
 0x92a   : > { %7672 = vmatpush.bf16.msrb.mxu3 %v11671_v55  ;;  %v11948_v55 = vld [vmem:[#allocation26 + $0x368] sm:$0xf0]  ;;  %v11823_v8 = vor.u32 %v13571_v18, %v11820_v12  ;;  %v11887_v52 = vor.u32 %v13587_v61, %v11884_v54  ;;  %v13561_v61 = vld [vmem:[#allocation26 + $0x214] sm:$0xf]  ;;  %v11780_v54 = vld [vmem:[#allocation26 + $0x218] sm:$0xf0] }
 0x92b   : > { %7634 = vmatpush.bf16.msra.mxu0 %v12043_v43  ;;  %v11951_v43 = vor.u32 %v13603_v3, %v11948_v55  ;;  %v13577_v3 = vld [vmem:[#allocation26 + $0x294] sm:$0xf]  ;;  %v11844_v55 = vld [vmem:[#allocation26 + $0x298] sm:$0xf0]  ;;  %v11783_v23 = vor.u32 %v13561_v61, %v11780_v54 }
 0x92d   : > { %7647 = vmatpush.bf16.msra.mxu1 %v11535_v34  ;;  %7660 = vmatpush.bf16.msrb.mxu2 %v11599_v42  ;;  %v13569_v34 = vld [vmem:[#allocation26 + $0x254] sm:$0xf]  ;;  %v11876_v42 = vld [vmem:[#allocation26 + $0x2d8] sm:$0xf0] }
 0x92e   : > { %7673 = vmatpush.bf16.msrb.mxu3 %v11663_v39  ;;  %v13601_v39 = vld [vmem:[#allocation26 + $0x354] sm:$0xf]  ;;  %v11815_v41 = vor.u32 %v13569_v34, %v11812_v16  ;;  %v11879_v51 = vor.u32 %v13585_v60, %v11876_v42  ;;  %v13559_v34 = vld [vmem:[#allocation26 + $0x204] sm:$0xf]  ;;  %v11847_v16 = vor.u32 %v13577_v3, %v11844_v55  ;;  %v11772_v42 = vld [vmem:[#allocation26 + $0x208] sm:$0xf0] }
 0x92f   : > { %7635 = vmatpush.bf16.msra.mxu0 %v12035_v35  ;;  %v11943_v62 = vor.u32 %v13601_v39, %v11940_v36  ;;  %v11804_v35 = vld [vmem:[#allocation26 + $0x248] sm:$0xf0]  ;;  %v13575_v39 = vld [vmem:[#allocation26 + $0x284] sm:$0xf] }
 0x930   : > { %v11836_v36 = vld [vmem:[#allocation26 + $0x288] sm:$0xf0]  ;;  %v13607_v3 = vld [vmem:[#allocation26 + $0x384] sm:$0xf] }
 0x931   : > { %7648 = vmatpush.bf16.msra.mxu1 %v11527_v30  ;;  %7661 = vmatpush.bf16.msrb.mxu2 %v11591_v48  ;;  %v11868_v30 = vld [vmem:[#allocation26 + $0x2c8] sm:$0xf0]  ;;  %v11732_v48 = vld [vmem:[#allocation26 + $0x1b8] sm:$0xf0] }
 0x932   : > { %7674 = vmatpush.bf16.msrb.mxu3 %v11655_v50  ;;  %v11735_v37 = vor.u32 %v13549_v28, %v11732_v48  ;;  %v13635_v28 = vld [vmem:[#allocation26 + $0x464] sm:$0xf]  ;;  %v12076_v48 = vld [vmem:[#allocation26 + $0x468] sm:$0xf0] }
 0x933   : > { %7636 = vmatpush.bf16.msra.mxu0 %v12027_v26  ;;  %v13547_v26 = vld [vmem:[#allocation26 + $0x1a4] sm:$0xf]  ;;  %v11964_v55 = vld [vmem:[#allocation26 + $0x388] sm:$0xf0] }
 0x935   : > { %7649 = vmatpush.bf16.msra.mxu1 %v11519_v19  ;;  %7662 = vmatpush.bf16.msrb.mxu2 %v11583_v33  ;;  %v11724_v19 = vld [vmem:[#allocation26 + $0x1a8] sm:$0xf0] }
 0x936   : > { %7675 = vmatpush.bf16.msrb.mxu3 %v11647_v32  ;;  %7637 = vmatmul.bf16.vlgmr.msra.gmra.mxu0 %v16438_v0  ;;  %v11788_v33 = vld [vmem:[#allocation26 + $0x228] sm:$0xf0]  ;;  %v13579_v32 = vld [vmem:[#allocation26 + $0x2a4] sm:$0xf]  ;;  %v11727_v57 = vor.u32 %v13547_v26, %v11724_v19 }
 0x937   : > { %7681 = vmatpush.bf16.msrb.mxu0 %v11767_v9  ;;  %v11852_v9 = vld [vmem:[#allocation26 + $0x2a8] sm:$0xf0]  ;;  %v11791_v31 = vor.u32 %v13563_v15, %v11788_v33  ;;  %v13631_v26 = vld [vmem:[#allocation26 + $0x444] sm:$0xf]  ;;  %v13629_v15 = vld [vmem:[#allocation26 + $0x434] sm:$0xf] }
 0x938   : > { %7650 = vmatmul.bf16.vlgmr.msra.gmra.mxu1 %v16408_v56  ;;  %7663 = vmatmul.bf16.vlgmr.msrb.gmra.mxu2 %v16410_v17  ;;  %v13583_v56 = vld [vmem:[#allocation26 + $0x2c4] sm:$0xf]  ;;  %v11743_v17 = vor.u32 %v13551_v53, %v11740_v4  ;;  %v11855_v18 = vor.u32 %v13579_v32, %v11852_v9  ;;  %v13621_v53 = vld [vmem:[#allocation26 + $0x3f4] sm:$0xf]  ;;  %v12020_v4 = vld [vmem:[#allocation26 + $0x3f8] sm:$0xf0] }
 0x939   : > { %7694 = vmatpush.bf16.msrb.mxu1 %v11831_v5  ;;  %7707 = vmatpush.bf16.msra.mxu2 %v11895_v46  ;;  %v11871_v50 = vor.u32 %v13583_v56, %v11868_v30  ;;  %v13595_v5 = vld [vmem:[#allocation26 + $0x324] sm:$0xf]  ;;  %v13545_v46 = vld [vmem:[#allocation26 + $0x194] sm:$0xf]  ;;  %v11839_v56 = vor.u32 %v13575_v39, %v11836_v36  ;;  %v12023_v14 = vor.u32 %v13621_v53, %v12020_v4  ;;  %v12060_v19 = vld [vmem:[#allocation26 + $0x448] sm:$0xf0] }
 0x93a   : > { %7720 = vmatpush.bf16.msra.mxu3 %v11959_v2  ;;  %v11716_v2 = vld [vmem:[#allocation26 + $0x198] sm:$0xf0]  ;;  %v11919_v12 = vor.u32 %v13595_v5, %v11916_v40  ;;  %v13611_v32 = vld [vmem:[#allocation26 + $0x3a4] sm:$0xf]  ;;  %v11980_v9 = vld [vmem:[#allocation26 + $0x3a8] sm:$0xf0] }
 0x93b   : > { %7676 = vmatmul.bf16.vlgmr.msrb.gmra.mxu3 %v16412_v6  ;;  %7682 = vmatpush.bf16.msrb.mxu0 %v11759_v10  ;;  %v11807_v6 = vor.u32 %v13567_v11, %v11804_v35  ;;  %v13593_v10 = vld [vmem:[#allocation26 + $0x314] sm:$0xf]  ;;  %v11719_v58 = vor.u32 %v13545_v46, %v11716_v2  ;;  %v11775_v35 = vor.u32 %v13559_v34, %v11772_v42  ;;  %v12052_v33 = vld [vmem:[#allocation26 + $0x438] sm:$0xf0]  ;;  %v13627_v5 = vld [vmem:[#allocation26 + $0x424] sm:$0xf] }
 0x93c   : > { %v12044_v40 = vld [vmem:[#allocation26 + $0x428] sm:$0xf0]  ;;  %v13609_v46 = vld [vmem:[#allocation26 + $0x394] sm:$0xf]  ;;  %v11972_v2 = vld [vmem:[#allocation26 + $0x398] sm:$0xf0] }
 0x93d   : > { %7695 = vmatpush.bf16.msrb.mxu1 %v11823_v8  ;;  %7708 = vmatpush.bf16.msra.mxu2 %v11887_v52  ;;  %v11908_v8 = vld [vmem:[#allocation26 + $0x318] sm:$0xf0]  ;;  %v13543_v52 = vld [vmem:[#allocation26 + $0x184] sm:$0xf]  ;;  %v11975_v61 = vor.u32 %v13609_v46, %v11972_v2  ;;  %v6767_v34 = vld [vmem:[#allocation28] sm:$0x3] }
 0x93e   : > { %7721 = vmatpush.bf16.msra.mxu3 %v11951_v43  ;;  %v11708_v43 = vld [vmem:[#allocation26 + $0x188] sm:$0xf0]  ;;  %v11911_v60 = vor.u32 %v13593_v10, %v11908_v8  ;;  %v13623_v10 = vld [vmem:[#allocation26 + $0x404] sm:$0xf] }
 0x93f   : > { %7683 = vmatpush.bf16.msrb.mxu0 %v11751_v49  ;;  %v13591_v49 = vld [vmem:[#allocation26 + $0x304] sm:$0xf]  ;;  %v11711_v11 = vor.u32 %v13543_v52, %v11708_v43  ;;  %v12028_v8 = vld [vmem:[#allocation26 + $0x408] sm:$0xf0] }
 0x941   : > { %7696 = vmatpush.bf16.msrb.mxu1 %v11815_v41  ;;  %7709 = vmatpush.bf16.msra.mxu2 %v11879_v51  ;;  %v11900_v41 = vld [vmem:[#allocation26 + $0x308] sm:$0xf0]  ;;  %v13637_v51 = vld [vmem:[#allocation26 + $0x474] sm:$0xf] }
 0x942   : > { %7722 = vmatpush.bf16.msra.mxu3 %v11943_v62  ;;  %v12084_v62 = vld [vmem:[#allocation26 + $0x478] sm:$0xf0]  ;;  %v11903_v30 = vor.u32 %v13591_v49, %v11900_v41 }
 0x943   : > { %7684 = vmatpush.bf16.msrb.mxu0 %v11743_v17  ;;  %v12087_v1 = vor.u32 %v13637_v51, %v12084_v62  ;;  %v13619_v17 = vld [vmem:[#allocation26 + $0x3e4] sm:$0xf] }
 0x945   : > { %7697 = vmatpush.bf16.msrb.mxu1 %v11807_v6  ;;  %7710 = vmatpush.bf16.msra.mxu2 %v11871_v50  ;;  %v12012_v6 = vld [vmem:[#allocation26 + $0x3e8] sm:$0xf0] }
 0x946   : > { %7723 = vmatpush.bf16.msra.mxu3 %v11935_v45  ;;  %v12015_v50 = vor.u32 %v13619_v17, %v12012_v6  ;;  %v12079_v45 = vor.u32 %v13635_v28, %v12076_v48 }
 0x947   : > { %7685 = vmatpush.bf16.msrb.mxu0 %v11735_v37  ;;  %v13615_v37 = vld [vmem:[#allocation26 + $0x3c4] sm:$0xf] }
 0x949   : > { %7698 = vmatpush.bf16.msrb.mxu1 %v11799_v59  ;;  %7711 = vmatpush.bf16.msra.mxu2 %v11863_v21  ;;  %v11996_v59 = vld [vmem:[#allocation26 + $0x3c8] sm:$0xf0]  ;;  %v12063_v21 = vor.u32 %v13631_v26, %v12060_v19 }
 0x94a   : > { %7724 = vmatpush.bf16.msra.mxu3 %v11927_v22  ;;  %v11988_v22 = vld [vmem:[#allocation26 + $0x3b8] sm:$0xf0] }
 0x94b   : > { %7686 = vmatpush.bf16.msrb.mxu0 %v11727_v57  ;;  %v11983_v57 = vor.u32 %v13611_v32, %v11980_v9  ;;  %v7763_v9 = vld [vmem:[#allocation29 + $0x8] sm:$0xf] }
 0x94d   : > { %7699 = vmatpush.bf16.msrb.mxu1 %v11791_v31  ;;  %7712 = vmatpush.bf16.msra.mxu2 %v11855_v18  ;;  %v12047_v31 = vor.u32 %v13627_v5, %v12044_v40  ;;  %v13625_v18 = vld [vmem:[#allocation26 + $0x414] sm:$0xf] }
 0x94e   : > { %7725 = vmatpush.bf16.msra.mxu3 %v11919_v12  ;;  %v12036_v12 = vld [vmem:[#allocation26 + $0x418] sm:$0xf0] }
 0x94f   : > { %7687 = vmatpush.bf16.msrb.mxu0 %v11719_v58  ;;  %v12039_v54 = vor.u32 %v13625_v18, %v12036_v12  ;;  %v11967_v58 = vor.u32 %v13607_v3, %v11964_v55  ;;  %v13655_v3 = vld [vmem:[#allocation31 + $0x74] sm:$0xf0]  ;;  %v12222_v55 = vld [vmem:[#allocation31 + $0xf0] sm:$0xf] }
 0x951   : > { %7700 = vmatpush.bf16.msrb.mxu1 %v11783_v23  ;;  %7713 = vmatpush.bf16.msra.mxu2 %v11847_v16  ;;  %v12031_v23 = vor.u32 %v13623_v10, %v12028_v8  ;;  %v6769_v16 = vperm.slane %v6767_v34, 0  ;;  %v13671_v8 = vld [vmem:[#allocation31 + $0xf4] sm:$0xf0] }
 0x952   : > { %7726 = vmatpush.bf16.msra.mxu3 %v11911_v60 }
 0x953   : > { %7688 = vmatpush.bf16.msrb.mxu0 %v11711_v11 }
 0x955   : > { %7701 = vmatpush.bf16.msrb.mxu1 %v11775_v35  ;;  %7714 = vmatpush.bf16.msra.mxu2 %v11839_v56 }
 0x956   : > { %7727 = vmatpush.bf16.msra.mxu3 %v11903_v30  ;;  %7689 = vmatmul.bf16.vlgmr.msrb.gmra.mxu0 %v16414_v24  ;;  %v11999_v24 = vor.u32 %v13615_v37, %v11996_v59 }
 0x957   : > { %7733 = vmatpush.bf16.msra.mxu0 %v12023_v14 }
 0x958   : > { %7702 = vmatmul.bf16.vlgmr.msrb.gmra.mxu1 %v16426_v13  ;;  %7715 = vmatmul.bf16.vlgmr.msra.gmra.mxu2 %v16428_v47  ;;  %v13613_v13 = vld [vmem:[#allocation26 + $0x3b4] sm:$0xf] }
 0x959   : > { %7746 = vmatpush.bf16.msra.mxu1 %v12087_v1  ;;  %7728 = vmatmul.bf16.vlgmr.msra.gmra.mxu3 %v16430_v63  ;;  %v11991_v47 = vor.u32 %v13613_v13, %v11988_v22  ;;  %v12055_v63 = vor.u32 %v13629_v15, %v12052_v33  ;;  %v16451_v13 = vld [vmem:[#allocation29] sm:$0xff]  ;;  %v6770_v22 = vperm.slane %v6767_v34, 1  ;;  %v12214_v34 = vld [vmem:[#allocation31 + $0xe0] sm:$0xf] }
 0x95b   : > { %7734 = vmatpush.bf16.msra.mxu0 %v12015_v50 }
 0x95d   : > { %7747 = vmatpush.bf16.msra.mxu1 %v12079_v45 }
 0x95f   : > { %7735 = vmatpush.bf16.msra.mxu0 %v12007_v27 }
 0x961   : > { %7748 = vmatpush.bf16.msra.mxu1 %v12071_v20 }
 0x963   : > { %7736 = vmatpush.bf16.msra.mxu0 %v11999_v24 }
 0x965   : > { %7749 = vmatpush.bf16.msra.mxu1 %v12063_v21 }
 0x967   : > { %7737 = vmatpush.bf16.msra.mxu0 %v11991_v47 }
 0x969   : > { %7750 = vmatpush.bf16.msra.mxu1 %v12055_v63 }
 0x96b   : > { %7738 = vmatpush.bf16.msra.mxu0 %v11983_v57 }
 0x96d   : > { %7751 = vmatpush.bf16.msra.mxu1 %v12047_v31  ;;  %v7771_v31 = vunpack.c.l.b16 %v7763_v9  ;;  %v12326_v9 = vld [vmem:[#allocation31 + $0x1c0] sm:$0xf] }
 0x96f   : > { %7739 = vmatpush.bf16.msra.mxu0 %v11975_v61  ;;  %v16455_v18 = vpack.c.b16 %v7771_v31, %v7771_v31  ;;  %v13697_v31 = vld [vmem:[#allocation31 + $0x1c4] sm:$0xf0] }
 0x971   : > { %7752 = vmatpush.bf16.msra.mxu1 %v12039_v54  ;;  %v12158_v54 = vld [vmem:[#allocation31 + $0x70] sm:$0xf] }
 0x972   : > { %v12159_v10 = vor.u32 %v13655_v3, %v12158_v54  ;;  %v13661_v54 = vld [vmem:[#allocation31 + $0xa4] sm:$0xf0]  ;;  %v12327_v3 = vor.u32 %v13697_v31, %v12326_v9  ;;  %v13731_v9 = vld [vmem:[#allocation31 + $0x2d4] sm:$0xf0] }
 0x973   : > { %7740 = vmatpush.bf16.msra.mxu0 %v11967_v58  ;;  %v12150_v58 = vld [vmem:[#allocation31 + $0x60] sm:$0xf]  ;;  %v13689_v31 = vld [vmem:[#allocation31 + $0x184] sm:$0xf0] }
 0x975   : > { %7753 = vmatpush.bf16.msra.mxu1 %v12031_v23  ;;  %v13653_v23 = vld [vmem:[#allocation31 + $0x64] sm:$0xf0] }
 0x976   : > { %7741 = vmatmul.bf16.vlgmr.msra.gmra.mxu0 %v16432_v29 }
 0x978   : > { %7754 = vmatmul.bf16.vlgmr.msra.gmra.mxu1 %v16438_v0 }
 0x993   : > { %v7534_v52 = vpop.f32.mrf.mxu0 }
 0x994   : > { %v7547_v43 = vpop.f32.mrf.mxu1  ;;  %v7535_v49 = vadd.f32 %v7534_v52, %v6769_v16  ;;  %v13669_v16 = vld [vmem:[#allocation31 + $0xe4] sm:$0xf0] }
 0x996   : > { %v7548_v41 = vadd.f32 %v7547_v43, %v7535_v49  ;;  %v12223_v43 = vor.u32 %v13671_v8, %v12222_v55  ;;  %v12215_v49 = vor.u32 %v13669_v16, %v12214_v34  ;;  %v13695_v8 = vld [vmem:[#allocation31 + $0x1b4] sm:$0xf0]  ;;  %v12110_v34 = vld [vmem:[#allocation31 + $0x10] sm:$0xf] }
 0x997   : > { %v12174_v16 = vld [vmem:[#allocation31 + $0x90] sm:$0xf] }
 0x998   : > { %9797 = vmatpush.bf16.msrb.mxu0 %v12223_v43 }
 0x99b   : > { %v7560_v60 = vpop.f32.mrf.mxu2  ;;  %v7573_v42 = vpop.f32.mrf.mxu3 }
 0x99c   : > { %v7536_v39 = vpop.f32.mrf.mxu0  ;;  %v7549_v36 = vpop.f32.mrf.mxu1  ;;  %v7561_v11 = vadd.f32 %v7560_v60, %v7548_v41  ;;  %v12142_v41 = vld [vmem:[#allocation31 + $0x50] sm:$0xf]  ;;  %9798 = vmatpush.bf16.msrb.mxu0 %v12215_v49  ;;  %v13693_v49 = vld [vmem:[#allocation31 + $0x1a4] sm:$0xf0] }
 0x99d   : > { %v12151_v39 = vor.u32 %v13653_v23, %v12150_v58  ;;  %v12262_v23 = vld [vmem:[#allocation31 + $0x140] sm:$0xf] }
 0x99e   : > { %v7574_v35 = vadd.f32 %v7573_v42, %v7561_v11  ;;  %v12350_v11 = vld [vmem:[#allocation31 + $0x1f0] sm:$0xf] }
 0x9a3   : > { %v7562_v53 = vpop.f32.mrf.mxu2  ;;  %v7575_v4 = vpop.f32.mrf.mxu3 }
 0x9a4   : > { %v7586_v51 = vpop.f32.mrf.mxu0  ;;  %v7599_v62 = vpop.f32.mrf.mxu1  ;;  %v13651_v53 = vld [vmem:[#allocation31 + $0x54] sm:$0xf0]  ;;  %v12206_v4 = vld [vmem:[#allocation31 + $0xd0] sm:$0xf] }
 0x9a5   : > { %v7587_v56 = vadd.f32 %v7586_v51, %v7574_v35  ;;  %v13667_v51 = vld [vmem:[#allocation31 + $0xd4] sm:$0xf0] }
 0x9a6   : > { %v13703_v35 = vld [vmem:[#allocation31 + $0x1f4] sm:$0xf0] }
 0x9a7   : > { %v7600_v1 = vadd.f32 %v7599_v62, %v7587_v56  ;;  %v12143_v56 = vor.u32 %v13651_v53, %v12142_v41  ;;  %v12254_v53 = vld [vmem:[#allocation31 + $0x130] sm:$0xf] }
 0x9ab   : > { %v7612_v29 = vpop.f32.mrf.mxu2  ;;  %v7625_v30 = vpop.f32.mrf.mxu3 }
 0x9ac   : > { %v7588_v0 = vpop.f32.mrf.mxu0  ;;  %v7601_v14 = vpop.f32.mrf.mxu1  ;;  %v7613_v17 = vadd.f32 %v7612_v29, %v7600_v1  ;;  %v12134_v29 = vld [vmem:[#allocation31 + $0x40] sm:$0xf] }
 0x9ad   : > { %v13687_v0 = vld [vmem:[#allocation31 + $0x174] sm:$0xf0]  ;;  %v12351_v14 = vor.u32 %v13703_v35, %v12350_v11  ;;  %v13641_v11 = vld [vmem:[#allocation31 + $0x4] sm:$0xf0]  ;;  %v12166_v35 = vld [vmem:[#allocation31 + $0x80] sm:$0xf] }
 0x9ae   : > { %v7626_v48 = vadd.f32 %v7625_v30, %v7613_v17  ;;  %v12286_v30 = vld [vmem:[#allocation31 + $0x170] sm:$0xf]  ;;  %v12207_v17 = vor.u32 %v13667_v51, %v12206_v4  ;;  %v13679_v4 = vld [vmem:[#allocation31 + $0x134] sm:$0xf0] }
 0x9af   : > { %9823 = vmatpush.bf16.msrb.mxu1 %v12351_v14  ;;  %v13719_v14 = vld [vmem:[#allocation31 + $0x274] sm:$0xf0] }
 0x9b0   : > { %9799 = vmatpush.bf16.msrb.mxu0 %v12207_v17  ;;  %v13735_v17 = vld [vmem:[#allocation31 + $0x2f4] sm:$0xf0] }
 0x9b3   : > { %v7614_v6 = vpop.f32.mrf.mxu2  ;;  %v7627_v28 = vpop.f32.mrf.mxu3 }
 0x9b4   : > { %v7638_v50 = vpop.f32.mrf.mxu0  ;;  %v13649_v6 = vld [vmem:[#allocation31 + $0x44] sm:$0xf0]  ;;  %v12198_v28 = vld [vmem:[#allocation31 + $0xc0] sm:$0xf] }
 0x9b5   : > { %v7651_v45 = vpop.f32.mrf.mxu1  ;;  %v7639_v44 = vadd.f32 %v7638_v50, %v7626_v48  ;;  %v13665_v48 = vld [vmem:[#allocation31 + $0xc4] sm:$0xf0]  ;;  %v12342_v50 = vld [vmem:[#allocation31 + $0x1e0] sm:$0xf] }
 0x9b6   : > { %v7652_v32 = vadd.f32 %v7651_v45, %v6770_v22  ;;  %v13701_v45 = vld [vmem:[#allocation31 + $0x1e4] sm:$0xf0]  ;;  %v13647_v22 = vld [vmem:[#allocation31 + $0x34] sm:$0xf0] }
 0x9b7   : > { %v7759_v25 = vmax.f32 %v7639_v44, 0.0 }
 0x9b9   : > { %v7764_v7 = vpack.c.bf16 %v7759_v25, %v7759_v25  ;;  %v12287_v25 = vor.u32 %v13687_v0, %v12286_v30  ;;  %v12255_v0 = vor.u32 %v13679_v4, %v12254_v53 }
 0x9bb   : > { %v7664_v38 = vpop.f32.mrf.mxu2  ;;  %v7782_v20 = vsel %vm6566_vm1, %v7764_v7, 0  ;;  %v12126_v7 = vld [vmem:[#allocation31 + $0x30] sm:$0xf] }
 0x9bc   : > { %v7640_v37 = vpop.f32.mrf.mxu0  ;;  %7794 = vmatpush.bf16.msrb.mxu2 %v7782_v20  ;;  %v7665_v5 = vadd.f32 %v7664_v38, %v7652_v32  ;;  %v12343_v38 = vor.u32 %v13701_v45, %v12342_v50 }
 0x9bd   : > { %v7653_v59 = vpop.f32.mrf.mxu1  ;;  %v12135_v37 = vor.u32 %v13649_v6, %v12134_v29  ;;  %v12414_v29 = vld [vmem:[#allocation31 + $0x270] sm:$0xf] }
 0x9be   : > { %v7677_v27 = vpop.f32.mrf.mxu3  ;;  %v12278_v59 = vld [vmem:[#allocation31 + $0x160] sm:$0xf]  ;;  %9824 = vmatpush.bf16.msrb.mxu1 %v12343_v38  ;;  %v12415_v45 = vor.u32 %v13719_v14, %v12414_v29  ;;  %v13717_v38 = vld [vmem:[#allocation31 + $0x264] sm:$0xf0] }
 0x9bf   : > { %12092 = vmatmul.msk.bf16.vlgmr.msrb.gmra.mxu2 %vm7774_vm3, %v16451_v13  ;;  %v7678_v46 = vadd.f32 %v7677_v27, %v7665_v5  ;;  %v12127_v5 = vor.u32 %v13647_v22, %v12126_v7  ;;  %v13691_v22 = vld [vmem:[#allocation31 + $0x194] sm:$0xf0]  ;;  %v13709_v29 = vld [vmem:[#allocation31 + $0x224] sm:$0xf0] }
 0x9c0   : > { %9784 = vmatpush.bf16.msra.mxu2 %v12159_v10  ;;  %v12318_v10 = vld [vmem:[#allocation31 + $0x1b0] sm:$0xf] }
 0x9c3   : > { %v7666_v26 = vpop.f32.mrf.mxu2 }
 0x9c4   : > { %9785 = vmatpush.bf16.msra.mxu2 %v12151_v39  ;;  %v13685_v26 = vld [vmem:[#allocation31 + $0x164] sm:$0xf0] }
 0x9c5   : > { %v12279_v32 = vor.u32 %v13685_v26, %v12278_v59  ;;  %v12238_v26 = vld [vmem:[#allocation31 + $0x110] sm:$0xf] }
 0x9c6   : > { %v7679_v19 = vpop.f32.mrf.mxu3 }
 0x9c7   : > { %v12334_v19 = vld [vmem:[#allocation31 + $0x1d0] sm:$0xf] }
 0x9c8   : > { %9786 = vmatpush.bf16.msra.mxu2 %v12143_v56  ;;  %v13657_v56 = vld [vmem:[#allocation31 + $0x84] sm:$0xf0] }
 0x9c9   : > { %v12167_v50 = vor.u32 %v13657_v56, %v12166_v35 }
 0x9cc   : > { %9787 = vmatpush.bf16.msra.mxu2 %v12135_v37 }
 0x9cf   : > { %12093 = vmatmul.msk.bf16.gmra.mxu2 %vm7774_vm3, %v16455_v18 }
 0x9d0   : > { %9788 = vmatpush.bf16.msra.mxu2 %v12127_v5 }
 0x9d3   : > { %v7690_v24 = vpop.f32.mrf.mxu0 }
 0x9d4   : > { %v7691_v2 = vadd.f32 %v7690_v24, %v7678_v46 }
 0x9d5   : > { %v7703_v21 = vpop.f32.mrf.mxu1 }
 0x9d6   : > { %v7704_v12 = vadd.f32 %v7703_v21, %v7691_v2  ;;  %v12199_v21 = vor.u32 %v13665_v48, %v12198_v28  ;;  %v12118_v2 = vld [vmem:[#allocation31 + $0x20] sm:$0xf]  ;;  %v13677_v48 = vld [vmem:[#allocation31 + $0x124] sm:$0xf0] }
 0x9d7   : > { %v12246_v28 = vld [vmem:[#allocation31 + $0x120] sm:$0xf] }
 0x9d8   : > { %9800 = vmatpush.bf16.msrb.mxu0 %v12199_v21  ;;  %v12247_v7 = vor.u32 %v13677_v48, %v12246_v28  ;;  %v12590_v48 = vld [vmem:[#allocation31 + $0x3d0] sm:$0xf] }
 0x9db   : > { %v7716_v15 = vpop.f32.mrf.mxu2  ;;  %v7692_v47 = vpop.f32.mrf.mxu0 }
 0x9dc   : > { %v7729_v33 = vpop.f32.mrf.mxu3  ;;  %v7717_v61 = vadd.f32 %v7716_v15, %v7704_v12  ;;  %v13699_v15 = vld [vmem:[#allocation31 + $0x1d4] sm:$0xf0]  ;;  %v13645_v12 = vld [vmem:[#allocation31 + $0x24] sm:$0xf0] }
 0x9dd   : > { %v7705_v63 = vpop.f32.mrf.mxu1  ;;  %v13663_v47 = vld [vmem:[#allocation31 + $0xb4] sm:$0xf0]  ;;  %v12119_v58 = vor.u32 %v13645_v12, %v12118_v2  ;;  %v12390_v12 = vld [vmem:[#allocation31 + $0x240] sm:$0xf] }
 0x9de   : > { %v7730_v52 = vadd.f32 %v7729_v33, %v7717_v61  ;;  %v12190_v33 = vld [vmem:[#allocation31 + $0xb0] sm:$0xf]  ;;  %v12335_v63 = vor.u32 %v13699_v15, %v12334_v19  ;;  %v12182_v61 = vld [vmem:[#allocation31 + $0xa0] sm:$0xf]  ;;  %v13675_v19 = vld [vmem:[#allocation31 + $0x114] sm:$0xf0] }
 0x9df   : > { %v12191_v46 = vor.u32 %v13663_v47, %v12190_v33  ;;  %v12183_v43 = vor.u32 %v13661_v54, %v12182_v61  ;;  %9789 = vmatpush.bf16.msra.mxu2 %v12119_v58  ;;  %v12239_v21 = vor.u32 %v13675_v19, %v12238_v26  ;;  %v12398_v15 = vld [vmem:[#allocation31 + $0x250] sm:$0xf]  ;;  %v13715_v33 = vld [vmem:[#allocation31 + $0x254] sm:$0xf0]  ;;  %v13713_v61 = vld [vmem:[#allocation31 + $0x244] sm:$0xf0] }
 0x9e0   : > { %9825 = vmatpush.bf16.msrb.mxu1 %v12335_v63  ;;  %v12399_v63 = vor.u32 %v13715_v33, %v12398_v15  ;;  %v12454_v54 = vld [vmem:[#allocation31 + $0x2c0] sm:$0xf]  ;;  %v13705_v15 = vld [vmem:[#allocation31 + $0x204] sm:$0xf0] }
 0x9e1   : > { %9801 = vmatpush.bf16.msrb.mxu0 %v12191_v46  ;;  %v12582_v19 = vld [vmem:[#allocation31 + $0x3c0] sm:$0xf] }
 0x9e2   : > { %v12422_v33 = vld [vmem:[#allocation31 + $0x280] sm:$0xf] }
 0x9e3   : > { %v7718_v40 = vpop.f32.mrf.mxu2 }
 0x9e4   : > { %v7731_v57 = vpop.f32.mrf.mxu3  ;;  %v12270_v40 = vld [vmem:[#allocation31 + $0x150] sm:$0xf]  ;;  %9826 = vmatpush.bf16.msrb.mxu1 %v12327_v3  ;;  %v12391_v3 = vor.u32 %v13713_v61, %v12390_v12  ;;  %v13741_v12 = vld [vmem:[#allocation31 + $0x324] sm:$0xf0]  ;;  %v12566_v61 = vld [vmem:[#allocation31 + $0x3a0] sm:$0xf] }
 0x9e5   : > { %v13683_v57 = vld [vmem:[#allocation31 + $0x154] sm:$0xf0]  ;;  %9802 = vmatpush.bf16.msrb.mxu0 %v12183_v43 }
 0x9e6   : > { %v12271_v55 = vor.u32 %v13683_v57, %v12270_v40  ;;  %v13673_v40 = vld [vmem:[#allocation31 + $0x104] sm:$0xf0]  ;;  %v12294_v57 = vld [vmem:[#allocation31 + $0x180] sm:$0xf]  ;;  %v13767_v43 = vld [vmem:[#allocation31 + $0x3f4] sm:$0xf0] }
 0x9e7   : > { %v12295_v2 = vor.u32 %v13689_v31, %v12294_v57  ;;  %v13759_v31 = vld [vmem:[#allocation31 + $0x3b4] sm:$0xf0] }
 0x9f3   : > { %v7742_v60 = vpop.f32.mrf.mxu0 }
 0x9f4   : > { %v7743_v36 = vadd.f32 %v7742_v60, %v7730_v52  ;;  %v13681_v52 = vld [vmem:[#allocation31 + $0x144] sm:$0xf0]  ;;  %v13659_v60 = vld [vmem:[#allocation31 + $0x94] sm:$0xf0] }
 0x9f5   : > { %v7755_v42 = vpop.f32.mrf.mxu1  ;;  %v12263_v39 = vor.u32 %v13681_v52, %v12262_v23  ;;  %v12175_v51 = vor.u32 %v13659_v60, %v12174_v16  ;;  %v12606_v52 = vld [vmem:[#allocation31 + $0x3f0] sm:$0xf]  ;;  %v13711_v60 = vld [vmem:[#allocation31 + $0x234] sm:$0xf0] }
 0x9f6   : > { %v7756_v62 = vadd.f32 %v7755_v42, %v7743_v36  ;;  %v12319_v42 = vor.u32 %v13695_v8, %v12318_v10  ;;  %v12310_v36 = vld [vmem:[#allocation31 + $0x1a0] sm:$0xf]  ;;  %v12542_v10 = vld [vmem:[#allocation31 + $0x370] sm:$0xf]  ;;  %v13751_v8 = vld [vmem:[#allocation31 + $0x374] sm:$0xf0] }
 0x9f7   : > { %v12311_v30 = vor.u32 %v13693_v49, %v12310_v36  ;;  %9803 = vmatpush.bf16.msrb.mxu0 %v12175_v51  ;;  %v12543_v23 = vor.u32 %v13751_v8, %v12542_v10  ;;  %v12382_v16 = vld [vmem:[#allocation31 + $0x230] sm:$0xf]  ;;  %v13727_v36 = vld [vmem:[#allocation31 + $0x2b4] sm:$0xf0]  ;;  %v12534_v49 = vld [vmem:[#allocation31 + $0x360] sm:$0xf] }
 0x9f8   : > { %v7760_v1 = vmax.f32 %v7756_v62, 0.0  ;;  %v12102_v62 = vld [vmem:[#allocation31] sm:$0xf]  ;;  %9827 = vmatpush.bf16.msrb.mxu1 %v12319_v42  ;;  %v12446_v42 = vld [vmem:[#allocation31 + $0x2b0] sm:$0xf] }
 0x9f9   : > { %v12103_v6 = vor.u32 %v13641_v11, %v12102_v62  ;;  %v12447_v53 = vor.u32 %v13727_v36, %v12446_v42  ;;  %v12598_v51 = vld [vmem:[#allocation31 + $0x3e0] sm:$0xf]  ;;  %v13765_v62 = vld [vmem:[#allocation31 + $0x3e4] sm:$0xf0]  ;;  %v12494_v10 = vld [vmem:[#allocation31 + $0x310] sm:$0xf] }
 0x9fa   : > { %v7765_v44 = vpack.c.bf16 %v7760_v1, %v7760_v1  ;;  %v12478_v1 = vld [vmem:[#allocation31 + $0x2f0] sm:$0xf]  ;;  %v12374_v11 = vld [vmem:[#allocation31 + $0x220] sm:$0xf]  ;;  %v12599_v56 = vor.u32 %v13765_v62, %v12598_v51  ;;  %v13739_v8 = vld [vmem:[#allocation31 + $0x314] sm:$0xf0] }
 0x9fb   : > { %v7744_v27 = vpop.f32.mrf.mxu0  ;;  %9804 = vmatpush.bf16.msrb.mxu0 %v12167_v50  ;;  %v12375_v14 = vor.u32 %v13709_v29, %v12374_v11  ;;  %v13763_v50 = vld [vmem:[#allocation31 + $0x3d4] sm:$0xf0]  ;;  %v12550_v42 = vld [vmem:[#allocation31 + $0x380] sm:$0xf]  ;;  %v12734_v62 = vld [vmem:[#allocation31 + $0x4f0] sm:$0xf] }
 0x9fc   : > { %v7785_v24 = vsel %vm6566_vm1, %v7765_v44, 0  ;;  %v12479_v44 = vor.u32 %v13735_v17, %v12478_v1  ;;  %9828 = vmatpush.bf16.msrb.mxu1 %v12311_v30  ;;  %v12470_v27 = vld [vmem:[#allocation31 + $0x2e0] sm:$0xf]  ;;  %v12526_v17 = vld [vmem:[#allocation31 + $0x350] sm:$0xf] }
 0x9fd   : > { %v7757_v20 = vpop.f32.mrf.mxu1  ;;  %7812 = vmatpush.bf16.msrb.mxu3 %v7785_v24  ;;  %v12302_v24 = vld [vmem:[#allocation31 + $0x190] sm:$0xf]  ;;  %v12438_v30 = vld [vmem:[#allocation31 + $0x2a0] sm:$0xf]  ;;  %v13799_v11 = vld [vmem:[#allocation31 + $0x4f4] sm:$0xf0] }
 0x9fe   : > { %v13733_v20 = vld [vmem:[#allocation31 + $0x2e4] sm:$0xf0]  ;;  %v12303_v47 = vor.u32 %v13691_v22, %v12302_v24 }
 0x9ff   : > { %9849 = vmatpush.bf16.msra.mxu0 %v12479_v44  ;;  %v12471_v59 = vor.u32 %v13733_v20, %v12470_v27  ;;  %v12366_v44 = vld [vmem:[#allocation31 + $0x210] sm:$0xf]  ;;  %v13723_v27 = vld [vmem:[#allocation31 + $0x294] sm:$0xf0]  ;;  %v12518_v20 = vld [vmem:[#allocation31 + $0x340] sm:$0xf] }
 0xa00   : > { %12094 = vmatmul.msk.bf16.vlgmr.msrb.gmra.mxu3 %vm7774_vm3, %v16451_v13  ;;  %v13643_v13 = vld [vmem:[#allocation31 + $0x14] sm:$0xf0]  ;;  %9829 = vmatpush.bf16.msrb.mxu1 %v12303_v47  ;;  %v13761_v24 = vld [vmem:[#allocation31 + $0x3c4] sm:$0xf0] }
 0xa01   : > { %9810 = vmatpush.bf16.msra.mxu3 %v12287_v25  ;;  %v12111_v41 = vor.u32 %v13643_v13, %v12110_v34  ;;  %v12406_v25 = vld [vmem:[#allocation31 + $0x260] sm:$0xf]  ;;  %v12607_v34 = vor.u32 %v13767_v43, %v12606_v52  ;;  %v12583_v22 = vor.u32 %v13761_v24, %v12582_v19  ;;  %v13721_v47 = vld [vmem:[#allocation31 + $0x284] sm:$0xf0]  ;;  %v12495_v43 = vor.u32 %v13739_v8, %v12494_v10 }
 0xa02   : > { %v12407_v37 = vor.u32 %v13717_v38, %v12406_v25  ;;  %v13707_v25 = vld [vmem:[#allocation31 + $0x214] sm:$0xf0] }
 0xa03   : > { %9790 = vmatpush.bf16.msra.mxu2 %v12111_v41  ;;  %9850 = vmatpush.bf16.msra.mxu0 %v12471_v59  ;;  %v13749_v41 = vld [vmem:[#allocation31 + $0x364] sm:$0xf0]  ;;  %v12367_v38 = vor.u32 %v13707_v25, %v12366_v44  ;;  %v12654_v25 = vld [vmem:[#allocation31 + $0x450] sm:$0xf] }
 0xa04   : > { %9830 = vmatpush.bf16.msrb.mxu1 %v12295_v2  ;;  %v12535_v4 = vor.u32 %v13749_v41, %v12534_v49  ;;  %v12502_v2 = vld [vmem:[#allocation31 + $0x320] sm:$0xf] }
 0xa05   : > { %9811 = vmatpush.bf16.msra.mxu3 %v12279_v32  ;;  %v12462_v32 = vld [vmem:[#allocation31 + $0x2d0] sm:$0xf] }
 0xa06   : > { %v12463_v5 = vor.u32 %v13731_v9, %v12462_v32  ;;  %v12423_v9 = vor.u32 %v13721_v47, %v12422_v33  ;;  %v13777_v33 = vld [vmem:[#allocation31 + $0x444] sm:$0xf0]  ;;  %v12710_v47 = vld [vmem:[#allocation31 + $0x4c0] sm:$0xf] }
 0xa07   : > { %9791 = vmatpush.bf16.msra.mxu2 %v12103_v6  ;;  %v13747_v6 = vld [vmem:[#allocation31 + $0x354] sm:$0xf0] }
 0xa08   : > { %9851 = vmatpush.bf16.msra.mxu0 %v12463_v5  ;;  %9875 = vmatpush.bf16.msra.mxu1 %v12607_v34  ;;  %v12527_v28 = vor.u32 %v13747_v6, %v12526_v17  ;;  %v13743_v5 = vld [vmem:[#allocation31 + $0x334] sm:$0xf0]  ;;  %v13781_v6 = vld [vmem:[#allocation31 + $0x464] sm:$0xf0] }
 0xa09   : > { %9812 = vmatpush.bf16.msra.mxu3 %v12271_v55  ;;  %v13729_v55 = vld [vmem:[#allocation31 + $0x2c4] sm:$0xf0] }
 0xa0a   : > { %v12455_v58 = vor.u32 %v13729_v55, %v12454_v54  ;;  %v12503_v54 = vor.u32 %v13741_v12, %v12502_v2  ;;  %v13775_v2 = vld [vmem:[#allocation31 + $0x434] sm:$0xf0]  ;;  %v12702_v12 = vld [vmem:[#allocation31 + $0x4b0] sm:$0xf] }
 0xa0b   : > { %9836 = vmatpush.bf16.msrb.mxu2 %v12415_v45  ;;  %v12591_v45 = vor.u32 %v13763_v50, %v12590_v48  ;;  %v13797_v48 = vld [vmem:[#allocation31 + $0x4e4] sm:$0xf0] }
 0xa0c   : > { %9852 = vmatpush.bf16.msra.mxu0 %v12455_v58  ;;  %9876 = vmatpush.bf16.msra.mxu1 %v12599_v56  ;;  %v12558_v58 = vld [vmem:[#allocation31 + $0x390] sm:$0xf] }
 0xa0d   : > { %9813 = vmatpush.bf16.msra.mxu3 %v12263_v39  ;;  %v12383_v39 = vor.u32 %v13711_v60, %v12382_v16  ;;  %v12486_v16 = vld [vmem:[#allocation31 + $0x300] sm:$0xf]  ;;  %v13737_v60 = vld [vmem:[#allocation31 + $0x304] sm:$0xf0] }
 0xa0e   : > { %v12487_v36 = vor.u32 %v13737_v60, %v12486_v16  ;;  %v16480_v60 = vld [vmem:[#allocation31 + $0x570] sm:$0xf] }
 0xa0f   : > { %9837 = vmatpush.bf16.msrb.mxu2 %v12407_v37  ;;  %v13745_v37 = vld [vmem:[#allocation31 + $0x344] sm:$0xf0] }
 0xa10   : > { %12095 = vmatmul.msk.bf16.gmra.mxu3 %vm7774_vm3, %v16455_v18  ;;  %v12230_v18 = vld [vmem:[#allocation31 + $0x100] sm:$0xf]  ;;  %9853 = vmatpush.bf16.msra.mxu0 %v12447_v53  ;;  %v12519_v26 = vor.u32 %v13745_v37, %v12518_v20  ;;  %v12670_v53 = vld [vmem:[#allocation31 + $0x470] sm:$0xf]  ;;  %v13795_v20 = vld [vmem:[#allocation31 + $0x4d4] sm:$0xf0] }
 0xa11   : > { %9814 = vmatpush.bf16.msra.mxu3 %v12255_v0  ;;  %v12231_v46 = vor.u32 %v13673_v40, %v12230_v18  ;;  %v13725_v0 = vld [vmem:[#allocation31 + $0x2a4] sm:$0xf0]  ;;  %9877 = vmatpush.bf16.msra.mxu1 %v12591_v45  ;;  %v12510_v18 = vld [vmem:[#allocation31 + $0x330] sm:$0xf]  ;;  %vm16547_vm3 = vmor %vm7929_vm15, %vm7930_vm2 }
 0xa12   : > { %v12439_v1 = vor.u32 %v13725_v0, %v12438_v30  ;;  %v12574_v40 = vld [vmem:[#allocation31 + $0x3b0] sm:$0xf]  ;;  %v12511_v57 = vor.u32 %v13743_v5, %v12510_v18  ;;  %v12735_v0 = vor.u32 %v13799_v11, %v12734_v62 }
 0xa13   : > { %9838 = vmatpush.bf16.msrb.mxu2 %v12399_v63 }
 0xa14   : > { %9854 = vmatpush.bf16.msra.mxu0 %v12439_v1 }
 0xa15   : > { %9815 = vmatpush.bf16.msra.mxu3 %v12247_v7  ;;  %v12430_v7 = vld [vmem:[#allocation31 + $0x290] sm:$0xf]  ;;  %9878 = vmatpush.bf16.msra.mxu1 %v12583_v22 }
 0xa16   : > { %v12431_v59 = vor.u32 %v13723_v27, %v12430_v7  ;;  %v13779_v7 = vld [vmem:[#allocation31 + $0x454] sm:$0xf0]  ;;  %v12718_v27 = vld [vmem:[#allocation31 + $0x4d0] sm:$0xf] }
 0xa17   : > { %9839 = vmatpush.bf16.msrb.mxu2 %v12391_v3  ;;  %v13757_v3 = vld [vmem:[#allocation31 + $0x3a4] sm:$0xf0]  ;;  %v12655_v22 = vor.u32 %v13779_v7, %v12654_v25  ;;  %v12630_v25 = vld [vmem:[#allocation31 + $0x420] sm:$0xf] }
 0xa18   : > { %9855 = vmatpush.bf16.msra.mxu0 %v12431_v59  ;;  %v12567_v55 = vor.u32 %v13757_v3, %v12566_v61  ;;  %v12646_v59 = vld [vmem:[#allocation31 + $0x440] sm:$0xf]  ;;  %v13773_v7 = vld [vmem:[#allocation31 + $0x424] sm:$0xf0] }
 0xa19   : > { %9816 = vmatpush.bf16.msra.mxu3 %v12239_v21  ;;  %v12358_v21 = vld [vmem:[#allocation31 + $0x200] sm:$0xf] }
 0xa1a   : > { %v12359_v32 = vor.u32 %v13705_v15, %v12358_v21  ;;  %v12719_v15 = vor.u32 %v13795_v20, %v12718_v27  ;;  %v16502_v20 = vld [vmem:[#allocation31 + $0x560] sm:$0xf] }
 0xa1b   : > { %9840 = vmatpush.bf16.msrb.mxu2 %v12383_v39  ;;  %v13753_v39 = vld [vmem:[#allocation31 + $0x384] sm:$0xf0] }
 0xa1c   : > { %9856 = vmatpush.bf16.msra.mxu0 %v12423_v9  ;;  %v12551_v49 = vor.u32 %v13753_v39, %v12550_v42 }
 0xa1d   : > { %9817 = vmatpush.bf16.msra.mxu3 %v12231_v46  ;;  %v12575_v46 = vor.u32 %v13759_v31, %v12574_v40  ;;  %v12647_v31 = vor.u32 %v13777_v33, %v12646_v59  ;;  %v13789_v59 = vld [vmem:[#allocation31 + $0x4a4] sm:$0xf0] }
 0xa1e   : > { %v13813_v33 = vld [vmem:[#allocation31 + $0x564] sm:$0xf0] }
 0xa1f   : > { %9841 = vmatpush.bf16.msrb.mxu2 %v12375_v14  ;;  %9879 = vmatpush.bf16.msra.mxu1 %v12575_v46  ;;  %v12662_v14 = vld [vmem:[#allocation31 + $0x460] sm:$0xf]  ;;  %v12638_v46 = vld [vmem:[#allocation31 + $0x430] sm:$0xf] }
 0xa20   : > { %v12663_v45 = vor.u32 %v13781_v6, %v12662_v14 }
 0xa21   : > { %9862 = vmatpush.bf16.msrb.mxu3 %v12543_v23  ;;  %v13755_v23 = vld [vmem:[#allocation31 + $0x394] sm:$0xf0] }
 0xa22   : > { %v12559_v34 = vor.u32 %v13755_v23, %v12558_v58  ;;  %v13791_v58 = vld [vmem:[#allocation31 + $0x4b4] sm:$0xf0] }
 0xa23   : > { %9842 = vmatpush.bf16.msrb.mxu2 %v12367_v38  ;;  %9880 = vmatpush.bf16.msra.mxu1 %v12567_v55 }
 0xa25   : > { %9863 = vmatpush.bf16.msrb.mxu3 %v12535_v4  ;;  %v13783_v4 = vld [vmem:[#allocation31 + $0x474] sm:$0xf0] }
 0xa26   : > { %v12671_v30 = vor.u32 %v13783_v4, %v12670_v53 }
 0xa27   : > { %9843 = vmatpush.bf16.msrb.mxu2 %v12359_v32  ;;  %9881 = vmatpush.bf16.msra.mxu1 %v12559_v34 }
 0xa29   : > { %9864 = vmatpush.bf16.msrb.mxu3 %v12527_v28  ;;  %v12726_v28 = vld [vmem:[#allocation31 + $0x4e0] sm:$0xf] }
 0xa2a   : > { %v12727_v44 = vor.u32 %v13797_v48, %v12726_v28 }
 0xa2b   : > { %9882 = vmatpush.bf16.msra.mxu1 %v12551_v49 }
 0xa2d   : > { %9865 = vmatpush.bf16.msrb.mxu3 %v12519_v26 }
 0xa31   : > { %9866 = vmatpush.bf16.msrb.mxu3 %v12511_v57 }
 0xa35   : > { %9867 = vmatpush.bf16.msrb.mxu3 %v12503_v54 }
 0xa39   : > { %9868 = vmatpush.bf16.msrb.mxu3 %v12495_v43 }
 0xa3d   : > { %9869 = vmatpush.bf16.msrb.mxu3 %v12487_v36 }
 0xa42   : > { %v16464_v13 = vpop.f32.mrf.mxu2 }
 0xa43   : > { %7823 = vst [vmem:[#allocation10 + $0x28] sm:$0xff] %v16464_v13 }
 0xa4a   : > { %v16467_v35 = vpop.f32.mrf.mxu2  ;;  %v7833_v50 = vld [vmem:[#allocation10 + $0x28] sm:$0xfe] }
 0xa4b   : > { %7825 = vst [vmem:[#allocation10 + $0x8] sm:$0xff] %v16467_v35  ;;  %v7858_v24 = vld [vmem:[#allocation10 + $0x28] sm:$0xfc] }
 0xa4c   : > { %v7892_v18 = vld [vmem:[#allocation10 + $0x28] sm:$0xe0] }
 0xa52   : > { %v7801_v63 = vpop.f32.mrf.mxu2  ;;  %v7835_v5 = vld [vmem:[#allocation10 + $0x8] sm:$0x1] }
 0xa53   : > { %7827 = vst [vmem:[#allocation10 + $0x18] sm:$0xff] %v7801_v63  ;;  %v13793_v63 = vld [vmem:[#allocation31 + $0x4c4] sm:$0xf0]  ;;  %v7860_v40 = vld [vmem:[#allocation10 + $0x8] sm:$0x3] }
 0xa54   : > { %v12711_v3 = vor.u32 %v13793_v63, %v12710_v47  ;;  %v7894_v34 = vld [vmem:[#allocation10 + $0x8] sm:$0x1f]  ;;  %v12854_v47 = vld [vmem:[#allocation31 + $0x5e0] sm:$0xf] }
 0xa55   : > { %v7875_v63 = vld [vmem:[#allocation10 + $0x28] sm:$0xf0] }
 0xa5a   : > { %v7803_v52 = vpop.f32.mrf.mxu2 }
 0xa83   : > { %v7814_v41 = vpop.f32.mrf.mxu3 }
 0xa84   : > { %7824 = vst [vmem:[#allocation10 + $0x10] sm:$0xff] %v7814_v41  ;;  %v7831_v51 = vpack.c.bf16 %v7814_v41, %v16464_v13  ;;  %v16488_v41 = vld [vmem:[#allocation31 + $0x574] sm:$0xf0] }
 0xa86   : > { %v8290_v56 = vunpack.c.l.b16 %v7831_v51  ;;  %v8291_v29 = vunpack.c.h.b16 %v7831_v51 }
 0xa88   : > { %v16471_v1 = vpack.c.b16 %v8290_v56, %v8290_v56  ;;  %v16473_v17 = vpack.c.b16 %v8291_v29, %v8291_v29  ;;  %v12862_v56 = vld [vmem:[#allocation31 + $0x5f0] sm:$0xf]  ;;  %v13831_v29 = vld [vmem:[#allocation31 + $0x5f4] sm:$0xf0] }
 0xa89   : > { %v12863_v27 = vor.u32 %v13831_v29, %v12862_v56  ;;  %v13785_v56 = vld [vmem:[#allocation31 + $0x484] sm:$0xf0] }
 0xa8a   : > { %9792 = vmatmul.bf16.vlgmr.msra.gmra.mxu2 %v16471_v1  ;;  %9805 = vmatmul.bf16.vlgmr.msrb.gmra.mxu0 %v16473_v17 }
 0xa8b   : > { %v16477_v13 = vpop.f32.mrf.mxu3  ;;  %9888 = vmatpush.bf16.msra.mxu2 %v12671_v30  ;;  %9901 = vmatpush.bf16.msrb.mxu0 %v12735_v0  ;;  %v7834_v38 = vld [vmem:[#allocation10 + $0x10] sm:$0xfe]  ;;  %v12639_v30 = vor.u32 %v13775_v2, %v12638_v46  ;;  %v12703_v0 = vor.u32 %v13791_v58, %v12702_v12 }
 0xa8c   : > { %7826 = vst [vmem:[#allocation10] sm:$0xff] %v16477_v13  ;;  %v7837_v37 = vpack.c.bf16 %v7834_v38, %v7833_v50  ;;  %v7859_v21 = vld [vmem:[#allocation10 + $0x10] sm:$0xfc]  ;;  %v12799_v50 = vor.u32 %v16488_v41, %v16480_v60  ;;  %v13827_v60 = vld [vmem:[#allocation31 + $0x5d4] sm:$0xf0] }
 0xa8d   : > { %v7862_v57 = vpack.c.bf16 %v7859_v21, %v7858_v24  ;;  %v7893_v61 = vld [vmem:[#allocation10 + $0x10] sm:$0xe0] }
 0xa8e   : > { %v7843_v26 = vshrl.u32 %v7837_v37, 16  ;;  %v7846_v19 = vshll.u32 %v7837_v37, 16  ;;  %v7896_v23 = vpack.c.bf16 %v7893_v61, %v7892_v18  ;;  %v12694_v37 = vld [vmem:[#allocation31 + $0x4a0] sm:$0xf]  ;;  %v12622_v61 = vld [vmem:[#allocation31 + $0x410] sm:$0xf] }
 0xa8f   : > { %9889 = vmatpush.bf16.msra.mxu2 %v12663_v45  ;;  %9902 = vmatpush.bf16.msrb.mxu0 %v12727_v44  ;;  %v12096_v39 = vrot.slane %v7862_v57, 9  ;;  %v12695_v12 = vor.u32 %v13789_v59, %v12694_v37 }
 0xa90   : > { %v7845_v32 = vrot.slane %v7843_v26, 4  ;;  %v7848_v9 = vrot.slane %v7846_v19, 5  ;;  %v7902_v4 = vshrl.u32 %v7896_v23, 16  ;;  %v7905_v51 = vshll.u32 %v7896_v23, 16 }
 0xa91   : > { %v12791_v23 = vor.u32 %v13813_v33, %v16502_v20  ;;  %v13825_v20 = vld [vmem:[#allocation31 + $0x5c4] sm:$0xf0] }
 0xa92   : > { %v7849_v10 = vor.u32 %v7848_v9, %v7845_v32  ;;  %v7904_v26 = vrot.slane %v7902_v4, 6  ;;  %v7907_v19 = vrot.slane %v7905_v51, 7  ;;  %v7877_v32 = vld [vmem:[#allocation10 + $0x8] sm:$0xf]  ;;  %v12614_v4 = vld [vmem:[#allocation31 + $0x400] sm:$0xf] }
 0xa93   : > { %v7819_v54 = vpop.f32.mrf.mxu3  ;;  %9890 = vmatpush.bf16.msra.mxu2 %v12655_v22  ;;  %9903 = vmatpush.bf16.msrb.mxu0 %v12719_v15  ;;  %v7836_v55 = vld [vmem:[#allocation10] sm:$0x1]  ;;  %v13769_v51 = vld [vmem:[#allocation31 + $0x404] sm:$0xf0] }
 0xa94   : > { %v7861_v8 = vld [vmem:[#allocation10] sm:$0x3]  ;;  %7828 = vst [vmem:[#allocation10 + $0x20] sm:$0xff] %v7819_v54  ;;  %v7838_v52 = vpack.c.bf16 %v7836_v55, %v7835_v5  ;;  %v7850_v11 = vrot.slane %v7849_v10, 4  ;;  %v13829_v5 = vld [vmem:[#allocation31 + $0x5e4] sm:$0xf0]  ;;  %v7908_v58 = vor.u32 %v7907_v19, %v7904_v26  ;;  %v12615_v37 = vor.u32 %v13769_v51, %v12614_v4 }
 0xa95   : > { %v7863_v43 = vpack.c.bf16 %v7861_v8, %v7860_v40  ;;  %v7895_v16 = vld [vmem:[#allocation10] sm:$0x1f]  ;;  %v12631_v40 = vor.u32 %v13773_v7, %v12630_v25  ;;  %v7876_v54 = vld [vmem:[#allocation10 + $0x10] sm:$0xf0]  ;;  %v13787_v10 = vld [vmem:[#allocation31 + $0x494] sm:$0xf0] }
 0xa96   : > { %v7897_v36 = vpack.c.bf16 %v7895_v16, %v7894_v34  ;;  %v7852_v49 = vshll.u32 %v7838_v52, 16  ;;  %v7878_v9 = vld [vmem:[#allocation10] sm:$0xf]  ;;  %v12855_v34 = vor.u32 %v13829_v5, %v12854_v47  ;;  %v13821_v51 = vld [vmem:[#allocation31 + $0x5a4] sm:$0xf0] }
 0xa97   : > { %v7871_v53 = vrot.slane %v7863_v43, 5  ;;  %9891 = vmatpush.bf16.msra.mxu2 %v12647_v31  ;;  %9904 = vmatpush.bf16.msrb.mxu0 %v12711_v3  ;;  %v13771_v3 = vld [vmem:[#allocation31 + $0x414] sm:$0xf0]  ;;  %v12686_v55 = vld [vmem:[#allocation31 + $0x490] sm:$0xf]  ;;  %v7880_v8 = vpack.c.bf16 %v7878_v9, %v7877_v32 }
 0xa98   : > { %v7854_v14 = vrot.slane %v7852_v49, 5  ;;  %v7911_v28 = vshrl.u32 %v7897_v36, 16  ;;  %v7914_v48 = vshll.u32 %v7897_v36, 16  ;;  %v12782_v52 = vld [vmem:[#allocation31 + $0x550] sm:$0xf]  ;;  %v12623_v41 = vor.u32 %v13771_v3, %v12622_v61 }
 0xa99   : > { %v7872_v6 = vsel %vm16484_vm8, %v12096_v39, %v7871_v53  ;;  %v13811_v43 = vld [vmem:[#allocation31 + $0x554] sm:$0xf0]  ;;  %v12846_v16 = vld [vmem:[#allocation31 + $0x5d0] sm:$0xf]  ;;  %v7879_v39 = vpack.c.bf16 %v7876_v54, %v7875_v63  ;;  %v12687_v53 = vor.u32 %v13787_v10, %v12686_v55  ;;  %v13845_v63 = vld [vmem:[#allocation31 + $0x664] sm:$0xf0] }
 0xa9a   : > { %v8294_v45 = vunpack.c.l.b16 %v7872_v6  ;;  %v8295_v44 = vunpack.c.h.b16 %v7872_v6  ;;  %v7855_v38 = vsel %vm16492_vm9, %v7850_v11, %v7854_v14  ;;  %v7913_v57 = vrot.slane %v7911_v28, 6  ;;  %v12678_v11 = vld [vmem:[#allocation31 + $0x480] sm:$0xf]  ;;  %v13847_v6 = vld [vmem:[#allocation31 + $0x674] sm:$0xf0] }
 0xa9b   : > { %v8292_v24 = vunpack.c.l.b16 %v7855_v38  ;;  %v8293_v21 = vunpack.c.h.b16 %v7855_v38  ;;  %9892 = vmatpush.bf16.msra.mxu2 %v12639_v30  ;;  %9905 = vmatpush.bf16.msrb.mxu0 %v12703_v0  ;;  %v7821_v18 = vpop.f32.mrf.mxu3  ;;  %v7916_v31 = vrot.slane %v7914_v48, 7  ;;  %v7888_v30 = vrot.slane %v7880_v8, 6  ;;  %v12926_v0 = vld [vmem:[#allocation31 + $0x670] sm:$0xf]  ;;  %v13863_v48 = vld [vmem:[#allocation31 + $0x6f4] sm:$0xf0] }
 0xa9c   : > { %v16504_v22 = vpack.c.b16 %v8294_v45, %v8294_v45  ;;  %v16506_v15 = vpack.c.b16 %v8295_v44, %v8295_v44  ;;  %v7909_v14 = vrot.slane %v7908_v58, 4  ;;  %v12990_v28 = vld [vmem:[#allocation31 + $0x6f0] sm:$0xf]  ;;  %v12847_v45 = vor.u32 %v13827_v60, %v12846_v16  ;;  %v12774_v44 = vld [vmem:[#allocation31 + $0x540] sm:$0xf] }
 0xa9d   : > { %v16508_v46 = vpack.c.b16 %v8292_v24, %v8292_v24  ;;  %v16510_v2 = vpack.c.b16 %v8293_v21, %v8293_v21  ;;  %v7917_v49 = vor.u32 %v7916_v31, %v7913_v57  ;;  %v12097_v25 = vrot.slane %v7879_v39, 10  ;;  %v13809_v38 = vld [vmem:[#allocation31 + $0x544] sm:$0xf0]  ;;  %v12918_v21 = vld [vmem:[#allocation31 + $0x660] sm:$0xf] }
 0xa9e   : > { %9844 = vmatmul.bf16.vlgmr.msrb.gmra.mxu2 %v16504_v22  ;;  %9857 = vmatmul.bf16.vlgmr.msra.gmra.mxu0 %v16506_v15  ;;  %v12679_v59 = vor.u32 %v13785_v56, %v12678_v11  ;;  %v12927_v19 = vor.u32 %v13847_v6, %v12926_v0  ;;  %v12991_v24 = vor.u32 %v13863_v48, %v12990_v28  ;;  %v12982_v32 = vld [vmem:[#allocation31 + $0x6e0] sm:$0xf]  ;;  %v13861_v9 = vld [vmem:[#allocation31 + $0x6e4] sm:$0xf0]  ;;  %v12830_v61 = vld [vmem:[#allocation31 + $0x5b0] sm:$0xf] }
 0xa9f   : > { %9818 = vmatmul.bf16.vlgmr.msra.gmra.mxu3 %v16508_v46  ;;  %9831 = vmatmul.bf16.vlgmr.msrb.gmra.mxu1 %v16510_v2  ;;  %v7918_v7 = vsel %vm16519_vm13, %v7909_v14, %v7917_v49  ;;  %v7889_v26 = vsel %vm16525_vm14, %v12097_v25, %v7888_v30  ;;  %v12775_v18 = vor.u32 %v13809_v38, %v12774_v44  ;;  %v13823_v54 = vld [vmem:[#allocation31 + $0x5b4] sm:$0xf0]  ;;  %v12910_v10 = vld [vmem:[#allocation31 + $0x650] sm:$0xf]  ;;  %v12758_v36 = vld [vmem:[#allocation31 + $0x520] sm:$0xf] }
 0xaa0   : > { %9914 = vmatpush.bf16.msra.mxu3 %v12799_v50  ;;  %9927 = vmatpush.bf16.msrb.mxu1 %v12863_v27  ;;  %v12783_v50 = vor.u32 %v13811_v43, %v12782_v52  ;;  %v12838_v27 = vld [vmem:[#allocation31 + $0x5c0] sm:$0xf]  ;;  %v8298_v33 = vunpack.c.l.b16 %v7918_v7  ;;  %v8299_v47 = vunpack.c.h.b16 %v7918_v7  ;;  %v8296_v57 = vunpack.c.l.b16 %v7889_v26  ;;  %v13843_v8 = vld [vmem:[#allocation31 + $0x654] sm:$0xf0]  ;;  %v12974_v52 = vld [vmem:[#allocation31 + $0x6d0] sm:$0xf] }
 0xaa1   : > { %9893 = vmatpush.bf16.msra.mxu2 %v12631_v40  ;;  %9906 = vmatpush.bf16.msrb.mxu0 %v12695_v12  ;;  %v12839_v5 = vor.u32 %v13825_v20, %v12838_v27  ;;  %v12766_v40 = vld [vmem:[#allocation31 + $0x530] sm:$0xf]  ;;  %v8297_v31 = vunpack.c.h.b16 %v7889_v26  ;;  %v13807_v12 = vld [vmem:[#allocation31 + $0x534] sm:$0xf0]  ;;  %v12919_v3 = vor.u32 %v13845_v63, %v12918_v21  ;;  %v12983_v55 = vor.u32 %v13861_v9, %v12982_v32  ;;  %v13805_v49 = vld [vmem:[#allocation31 + $0x524] sm:$0xf0] }
 0xaa2   : > { %v16533_v58 = vpack.c.b16 %v8298_v33, %v8298_v33  ;;  %v13859_v43 = vld [vmem:[#allocation31 + $0x6d4] sm:$0xf0]  ;;  %v7924_v16 = vld [vmem:[#allocation10] sm:$0x3f]  ;;  %v12767_v60 = vor.u32 %v13807_v12, %v12766_v40  ;;  %v12831_v39 = vor.u32 %v13823_v54, %v12830_v61  ;;  %v7922_v11 = vld [vmem:[#allocation10 + $0x10] sm:$0xc0]  ;;  %v12911_v29 = vor.u32 %v13843_v8, %v12910_v10 }
 0xaa3   : > { %v16539_v4 = vpack.c.b16 %v8297_v31, %v8297_v31  ;;  %v7923_v56 = vld [vmem:[#allocation10 + $0x8] sm:$0x3f]  ;;  %v12975_v30 = vor.u32 %v13859_v43, %v12974_v52  ;;  %v12902_v0 = vld [vmem:[#allocation31 + $0x640] sm:$0xf]  ;;  %v13841_v6 = vld [vmem:[#allocation31 + $0x644] sm:$0xf0] }
 0xaa4   : > { %9915 = vmatpush.bf16.msra.mxu3 %v12791_v23  ;;  %9928 = vmatpush.bf16.msrb.mxu1 %v12855_v34  ;;  %v16535_v23 = vpack.c.b16 %v8299_v47, %v8299_v47  ;;  %v7921_v34 = vld [vmem:[#allocation10 + $0x28] sm:$0xc0]  ;;  %v7926_v14 = vpack.c.bf16 %v7924_v16, %v7923_v56  ;;  %v12966_v28 = vld [vmem:[#allocation31 + $0x6c0] sm:$0xf]  ;;  %v13857_v48 = vld [vmem:[#allocation31 + $0x6c4] sm:$0xf0]  ;;  %v12903_v20 = vor.u32 %v13841_v6, %v12902_v0 }
 0xaa5   : > { %9894 = vmatpush.bf16.msra.mxu2 %v12623_v41  ;;  %9907 = vmatpush.bf16.msrb.mxu0 %v12687_v53  ;;  %v12822_v41 = vld [vmem:[#allocation31 + $0x5a0] sm:$0xf]  ;;  %v16537_v53 = vpack.c.b16 %v8296_v57, %v8296_v57  ;;  %v12750_v44 = vld [vmem:[#allocation31 + $0x510] sm:$0xf]  ;;  %v7925_v25 = vpack.c.bf16 %v7922_v11, %v7921_v34  ;;  %v13803_v7 = vld [vmem:[#allocation31 + $0x514] sm:$0xf0] }
 0xaa6   : > { %v12814_v38 = vld [vmem:[#allocation31 + $0x590] sm:$0xf]  ;;  %v13819_v27 = vld [vmem:[#allocation31 + $0x594] sm:$0xf0]  ;;  %v7934_v26 = vrot.slane %v7926_v14, 7  ;;  %v12751_v63 = vor.u32 %v13803_v7, %v12750_v44 }
 0xaa7   : > { %v13839_v21 = vld [vmem:[#allocation31 + $0x634] sm:$0xf0]  ;;  %v12958_v33 = vld [vmem:[#allocation31 + $0x6b0] sm:$0xf]  ;;  %v12815_v32 = vor.u32 %v13819_v27, %v12814_v38  ;;  %v13801_v9 = vld [vmem:[#allocation31 + $0x504] sm:$0xf0] }
 0xaa8   : > { %9916 = vmatpush.bf16.msra.mxu3 %v12783_v50  ;;  %9929 = vmatpush.bf16.msrb.mxu1 %v12847_v45  ;;  %v12759_v50 = vor.u32 %v13805_v49, %v12758_v36  ;;  %v12823_v45 = vor.u32 %v13821_v51, %v12822_v41  ;;  %v13855_v47 = vld [vmem:[#allocation31 + $0x6b4] sm:$0xf0]  ;;  %v13817_v40 = vld [vmem:[#allocation31 + $0x584] sm:$0xf0]  ;;  %v13054_v57 = vld [vmem:[#allocation31 + $0x770] sm:$0xf] }
 0xaa9   : > { %9895 = vmatpush.bf16.msra.mxu2 %v12615_v37  ;;  %9908 = vmatpush.bf16.msrb.mxu0 %v12679_v59  ;;  %v12967_v37 = vor.u32 %v13857_v48, %v12966_v28  ;;  %v13879_v31 = vld [vmem:[#allocation31 + $0x774] sm:$0xf0]  ;;  %v13118_v12 = vld [vmem:[#allocation31 + $0x7f0] sm:$0xf]  ;;  %v12886_v10 = vld [vmem:[#allocation31 + $0x620] sm:$0xf] }
 0xaaa   : > { %v13895_v61 = vld [vmem:[#allocation31 + $0x7f4] sm:$0xf0]  ;;  %v13837_v8 = vld [vmem:[#allocation31 + $0x624] sm:$0xf0]  ;;  %v12950_v52 = vld [vmem:[#allocation31 + $0x6a0] sm:$0xf] }
 0xaab   : > { %v13853_v43 = vld [vmem:[#allocation31 + $0x6a4] sm:$0xf0]  ;;  %v13046_v41 = vld [vmem:[#allocation31 + $0x760] sm:$0xf]  ;;  %v12878_v0 = vld [vmem:[#allocation31 + $0x610] sm:$0xf] }
 0xaac   : > { %9917 = vmatpush.bf16.msra.mxu3 %v12775_v18  ;;  %9930 = vmatpush.bf16.msrb.mxu1 %v12839_v5  ;;  %v12806_v18 = vld [vmem:[#allocation31 + $0x580] sm:$0xf]  ;;  %v12098_v5 = vrot.slane %v7925_v25, 11  ;;  %v13877_v51 = vld [vmem:[#allocation31 + $0x764] sm:$0xf0] }
 0xaad   : > { %9940 = vmatpush.bf16.msrb.mxu2 %v12927_v19  ;;  %9953 = vmatpush.bf16.msra.mxu0 %v12991_v24  ;;  %v12894_v19 = vld [vmem:[#allocation31 + $0x630] sm:$0xf]  ;;  %v12742_v24 = vld [vmem:[#allocation31 + $0x500] sm:$0xf]  ;;  %v12807_v16 = vor.u32 %v13817_v40, %v12806_v18  ;;  %v13893_v56 = vld [vmem:[#allocation31 + $0x7e4] sm:$0xf0]  ;;  %v13047_v48 = vor.u32 %v13877_v51, %v13046_v41 }
 0xaae   : > { %9896 = vmatmul.bf16.vlgmr.msra.gmra.mxu2 %v16533_v58  ;;  %9909 = vmatmul.bf16.vlgmr.msrb.gmra.mxu0 %v16535_v23  ;;  %v7935_v54 = vsel %vm16547_vm3, %v12098_v5, %v7934_v26  ;;  %v12743_v34 = vor.u32 %v13801_v9, %v12742_v24  ;;  %v13110_v11 = vld [vmem:[#allocation31 + $0x7e0] sm:$0xf]  ;;  %v13835_v14 = vld [vmem:[#allocation31 + $0x614] sm:$0xf0]  ;;  %v12942_v6 = vld [vmem:[#allocation31 + $0x690] sm:$0xf]  ;;  %v7940_v5 = vpack.c.bf16 %v16477_v13, %v16467_v35 }
 0xaaf   : > { %9870 = vmatmul.bf16.vlgmr.msrb.gmra.mxu3 %v16537_v53  ;;  %9883 = vmatmul.bf16.vlgmr.msra.gmra.mxu1 %v16539_v4  ;;  %v8300_v36 = vunpack.c.l.b16 %v7935_v54  ;;  %v8301_v49 = vunpack.c.h.b16 %v7935_v54  ;;  %v13851_v28 = vld [vmem:[#allocation31 + $0x694] sm:$0xf0]  ;;  %v13111_v7 = vor.u32 %v13893_v56, %v13110_v11  ;;  %v13102_v27 = vld [vmem:[#allocation31 + $0x7d0] sm:$0xf]  ;;  %v12870_v26 = vld [vmem:[#allocation31 + $0x600] sm:$0xf] }
 0xab0   : > { %9918 = vmatpush.bf16.msra.mxu3 %v12767_v60  ;;  %9931 = vmatpush.bf16.msrb.mxu1 %v12831_v39  ;;  %v13055_v60 = vor.u32 %v13879_v31, %v13054_v57  ;;  %v13119_v39 = vor.u32 %v13895_v61, %v13118_v12  ;;  %v13875_v38 = vld [vmem:[#allocation31 + $0x754] sm:$0xf0]  ;;  %v12943_v59 = vor.u32 %v13851_v28, %v12942_v6  ;;  %v13246_v9 = vld [vmem:[#allocation31 + $0x8f0] sm:$0xf]  ;;  %v13030_v31 = vld [vmem:[#allocation31 + $0x740] sm:$0xf]  ;;  %v8302_v35 = vunpack.c.l.b16 %v7940_v5 }
 0xab1   : > { %9941 = vmatpush.bf16.msrb.mxu2 %v12919_v3  ;;  %9954 = vmatpush.bf16.msra.mxu0 %v12983_v55  ;;  %v12895_v3 = vor.u32 %v13839_v21, %v12894_v19  ;;  %v12959_v55 = vor.u32 %v13855_v47, %v12958_v33  ;;  %v16553_v44 = vpack.c.b16 %v8300_v36, %v8300_v36  ;;  %v13833_v19 = vld [vmem:[#allocation31 + $0x604] sm:$0xf0]  ;;  %v7942_v24 = vld [vmem:[#allocation10 + $0x8] sm:$0xfe]  ;;  %v12934_v21 = vld [vmem:[#allocation31 + $0x680] sm:$0xf]  ;;  %v8303_v13 = vunpack.c.h.b16 %v7940_v5 }
 0xab2   : > { %v16555_v25 = vpack.c.b16 %v8301_v49, %v8301_v49  ;;  %v13849_v33 = vld [vmem:[#allocation31 + $0x684] sm:$0xf0]  ;;  %v13182_v47 = vld [vmem:[#allocation31 + $0x870] sm:$0xf]  ;;  %v13927_v18 = vld [vmem:[#allocation31 + $0x8f4] sm:$0xf0] }
 0xab3   : > { %v13873_v12 = vld [vmem:[#allocation31 + $0x744] sm:$0xf0]  ;;  %v13094_v61 = vld [vmem:[#allocation31 + $0x7c0] sm:$0xf]  ;;  %v13022_v11 = vld [vmem:[#allocation31 + $0x730] sm:$0xf] }
 0xab4   : > { %9919 = vmatpush.bf16.msra.mxu3 %v12759_v50  ;;  %9932 = vmatpush.bf16.msrb.mxu1 %v12823_v45  ;;  %v13038_v50 = vld [vmem:[#allocation31 + $0x750] sm:$0xf]  ;;  %v13889_v54 = vld [vmem:[#allocation31 + $0x7c4] sm:$0xf0]  ;;  %v13238_v36 = vld [vmem:[#allocation31 + $0x8e0] sm:$0xf]  ;;  %v13031_v41 = vor.u32 %v13873_v12, %v13030_v31 }
 0xab5   : > { %9942 = vmatpush.bf16.msrb.mxu2 %v12911_v29  ;;  %9955 = vmatpush.bf16.msra.mxu0 %v12975_v30  ;;  %v12887_v29 = vor.u32 %v13837_v8, %v12886_v10  ;;  %v12951_v30 = vor.u32 %v13853_v43, %v12950_v52  ;;  %v7943_v45 = vld [vmem:[#allocation10] sm:$0xfe]  ;;  %v13039_v40 = vor.u32 %v13875_v38, %v13038_v50  ;;  %v7944_v10 = vld [vmem:[#allocation10 + $0x18] sm:$0x1]  ;;  %v13174_v43 = vld [vmem:[#allocation31 + $0x860] sm:$0xf] }
 0xab6   : > { %v13247_v52 = vor.u32 %v13927_v18, %v13246_v9  ;;  %v13925_v49 = vld [vmem:[#allocation31 + $0x8e4] sm:$0xf0]  ;;  %v13095_v51 = vor.u32 %v13889_v54, %v13094_v61  ;;  %v13871_v56 = vld [vmem:[#allocation31 + $0x734] sm:$0xf0]  ;;  %v13166_v28 = vld [vmem:[#allocation31 + $0x850] sm:$0xf] }
 0xab7   : > { %v13239_v6 = vor.u32 %v13925_v49, %v13238_v36  ;;  %v13907_v38 = vld [vmem:[#allocation31 + $0x854] sm:$0xf0]  ;;  %v13905_v18 = vld [vmem:[#allocation31 + $0x844] sm:$0xf0]  ;;  %v13222_v5 = vld [vmem:[#allocation31 + $0x8c0] sm:$0xf] }
 0xab8   : > { %9920 = vmatpush.bf16.msra.mxu3 %v12751_v63  ;;  %9933 = vmatpush.bf16.msrb.mxu1 %v12815_v32  ;;  %v7946_v63 = vpack.c.bf16 %v7943_v45, %v7942_v24  ;;  %v13911_v32 = vld [vmem:[#allocation31 + $0x874] sm:$0xf0]  ;;  %v16561_v45 = vpack.c.b16 %v8302_v35, %v8302_v35  ;;  %v13078_v24 = vld [vmem:[#allocation31 + $0x7a0] sm:$0xf]  ;;  %v13006_v12 = vld [vmem:[#allocation31 + $0x710] sm:$0xf] }
 0xab9   : > { %9943 = vmatpush.bf16.msrb.mxu2 %v12903_v20  ;;  %9956 = vmatpush.bf16.msra.mxu0 %v12967_v37  ;;  %v13891_v20 = vld [vmem:[#allocation31 + $0x7d4] sm:$0xf0]  ;;  %v12879_v37 = vor.u32 %v13835_v14, %v12878_v0  ;;  %v13183_v8 = vor.u32 %v13911_v32, %v13182_v47  ;;  %v13167_v47 = vor.u32 %v13907_v38, %v13166_v28  ;;  %v13158_v32 = vld [vmem:[#allocation31 + $0x840] sm:$0xf]  ;;  %v13070_v54 = vld [vmem:[#allocation31 + $0x790] sm:$0xf] }
 0xaba   : > { %v13103_v57 = vor.u32 %v13891_v20, %v13102_v27  ;;  %v13230_v27 = vld [vmem:[#allocation31 + $0x8d0] sm:$0xf]  ;;  %v13923_v20 = vld [vmem:[#allocation31 + $0x8d4] sm:$0xf0]  ;;  %v12224_v28 = vld [vmem:[#allocation31 + $0xf8] sm:$0xf0] }
 0xabb   : > { %v13867_v61 = vld [vmem:[#allocation31 + $0x714] sm:$0xf0]  ;;  %v13142_v38 = vld [vmem:[#allocation31 + $0x820] sm:$0xf] }
 0xabc   : > { %9921 = vmatpush.bf16.msra.mxu3 %v12743_v34  ;;  %9934 = vmatpush.bf16.msrb.mxu1 %v12807_v16  ;;  %v7945_v34 = vld [vmem:[#allocation10 + $0x20] sm:$0x1]  ;;  %v7949_v16 = vshrl.u32 %v7946_v63, 16  ;;  %v13919_v35 = vld [vmem:[#allocation31 + $0x8b4] sm:$0xf0]  ;;  %v13007_v36 = vor.u32 %v13867_v61, %v13006_v12 }
 0xabd   : > { %9944 = vmatpush.bf16.msrb.mxu2 %v12895_v3  ;;  %9957 = vmatpush.bf16.msra.mxu0 %v12959_v55  ;;  %v12871_v3 = vor.u32 %v13833_v19, %v12870_v26  ;;  %v12935_v55 = vor.u32 %v13849_v33, %v12934_v21  ;;  %v7947_v0 = vpack.c.bf16 %v7945_v34, %v7944_v10  ;;  %v13014_v26 = vld [vmem:[#allocation31 + $0x720] sm:$0xf]  ;;  %v13869_v19 = vld [vmem:[#allocation31 + $0x724] sm:$0xf0]  ;;  %v7965_v34 = vld [vmem:[#allocation10] sm:$0xfc] }
 0xabe   : > { %v13885_v21 = vld [vmem:[#allocation31 + $0x7a4] sm:$0xf0]  ;;  %v13159_v10 = vor.u32 %v13905_v18, %v13158_v32  ;;  %v12152_v32 = vld [vmem:[#allocation31 + $0x68] sm:$0xf0]  ;;  %v13198_v12 = vld [vmem:[#allocation31 + $0x890] sm:$0xf] }
 0xabf   : > { %9922 = vmatmul.bf16.vlgmr.msra.gmra.mxu3 %v16553_v44  ;;  %9935 = vmatmul.bf16.vlgmr.msrb.gmra.mxu1 %v16555_v25  ;;  %v7958_v33 = vshll.u32 %v7947_v0, 16  ;;  %v13079_v31 = vor.u32 %v13885_v21, %v13078_v24  ;;  %v12160_v0 = vld [vmem:[#allocation31 + $0x78] sm:$0xf0]  ;;  %v12216_v18 = vld [vmem:[#allocation31 + $0xe8] sm:$0xf0] }
 0xac0   : > { %9966 = vmatpush.bf16.msrb.mxu3 %v13055_v60  ;;  %9979 = vmatpush.bf16.msra.mxu1 %v13119_v39  ;;  %v7952_v60 = vshll.u32 %v7946_v63, 16  ;;  %v13909_v39 = vld [vmem:[#allocation31 + $0x864] sm:$0xf0]  ;;  %v13231_v63 = vor.u32 %v13923_v20, %v13230_v27  ;;  %v13206_v20 = vld [vmem:[#allocation31 + $0x8a0] sm:$0xf] }
 0xac1   : > { %9945 = vmatpush.bf16.msrb.mxu2 %v12887_v29  ;;  %9958 = vmatpush.bf16.msra.mxu0 %v12951_v30  ;;  %v13086_v29 = vld [vmem:[#allocation31 + $0x7b0] sm:$0xf]  ;;  %v13887_v30 = vld [vmem:[#allocation31 + $0x7b4] sm:$0xf0]  ;;  %v13175_v14 = vor.u32 %v13909_v39, %v13174_v43  ;;  %v13901_v27 = vld [vmem:[#allocation31 + $0x824] sm:$0xf0] }
 0xac2   : > { %v7954_v50 = vrot.slane %v7952_v60, 5  ;;  %v13150_v43 = vld [vmem:[#allocation31 + $0x830] sm:$0xf]  ;;  %v13915_v61 = vld [vmem:[#allocation31 + $0x894] sm:$0xf0] }
 0xac3   : > { %v13214_v60 = vld [vmem:[#allocation31 + $0x8b0] sm:$0xf] }
 0xac4   : > { %9967 = vmatpush.bf16.msrb.mxu3 %v13047_v48  ;;  %9980 = vmatpush.bf16.msra.mxu1 %v13111_v7  ;;  %v7951_v48 = vrot.slane %v7949_v16, 4  ;;  %v16563_v7 = vpack.c.b16 %v8303_v13, %v8303_v13  ;;  %v13903_v16 = vld [vmem:[#allocation31 + $0x834] sm:$0xf0]  ;;  %v7966_v13 = vld [vmem:[#allocation10 + $0x18] sm:$0x3] }
 0xac5   : > { %9946 = vmatpush.bf16.msrb.mxu2 %v12879_v37  ;;  %9959 = vmatpush.bf16.msra.mxu0 %v12943_v59  ;;  %v13023_v37 = vor.u32 %v13871_v56, %v13022_v11  ;;  %v13087_v59 = vor.u32 %v13887_v30, %v13086_v29  ;;  %v7967_v39 = vld [vmem:[#allocation10 + $0x20] sm:$0x3]  ;;  %v13062_v11 = vld [vmem:[#allocation31 + $0x780] sm:$0xf]  ;;  %v7964_v56 = vld [vmem:[#allocation10 + $0x8] sm:$0xfc] }
 0xac6   : > { %v7955_v9 = vor.u32 %v7954_v50, %v7951_v48  ;;  %v13881_v29 = vld [vmem:[#allocation31 + $0x784] sm:$0xf0]  ;;  %v13654_v30 = vld [vmem:[#allocation31 + $0x74] sm:$0xf]  ;;  %v13151_v48 = vor.u32 %v13903_v16, %v13150_v43  ;;  %v13215_v50 = vor.u32 %v13919_v35, %v13214_v60  ;;  %v7969_v21 = vpack.c.bf16 %v7967_v39, %v7966_v13  ;;  %v12208_v60 = vld [vmem:[#allocation31 + $0xd8] sm:$0xf0] }
 0xac7   : > { %v13650_v43 = vld [vmem:[#allocation31 + $0x54] sm:$0xf]  ;;  %v13199_v13 = vor.u32 %v13915_v61, %v13198_v12  ;;  %v13126_v39 = vld [vmem:[#allocation31 + $0x800] sm:$0xf]  ;;  %v12272_v12 = vld [vmem:[#allocation31 + $0x158] sm:$0xf0] }
 0xac8   : > { %9968 = vmatpush.bf16.msrb.mxu3 %v13039_v40  ;;  %9981 = vmatpush.bf16.msra.mxu1 %v13103_v57  ;;  %v13921_v40 = vld [vmem:[#allocation31 + $0x8c4] sm:$0xf0]  ;;  %v13015_v57 = vor.u32 %v13869_v19, %v13014_v26  ;;  %v13063_v19 = vor.u32 %v13881_v29, %v13062_v11  ;;  %v13666_v16 = vld [vmem:[#allocation31 + $0xd4] sm:$0xf]  ;;  %v12288_v11 = vld [vmem:[#allocation31 + $0x178] sm:$0xf0] }
 0xac9   : > { %9947 = vmatpush.bf16.msrb.mxu2 %v12871_v3  ;;  %9960 = vmatpush.bf16.msra.mxu0 %v12935_v55  ;;  %v13883_v3 = vld [vmem:[#allocation31 + $0x794] sm:$0xf0]  ;;  %v7960_v55 = vrot.slane %v7958_v33, 5  ;;  %v12163_v33 = vor.u32 %v13654_v30, %v12160_v0  ;;  %v12352_v29 = vld [vmem:[#allocation31 + $0x1f8] sm:$0xf0]  ;;  %v12211_v0 = vor.u32 %v13666_v16, %v12208_v60 }
 0xaca   : > { %v13071_v49 = vor.u32 %v13883_v3, %v13070_v54  ;;  %v13698_v61 = vld [vmem:[#allocation31 + $0x1d4] sm:$0xf]  ;;  %v12184_v16 = vld [vmem:[#allocation31 + $0xa8] sm:$0xf0] }
 0xacc   : > { %9969 = vmatpush.bf16.msrb.mxu3 %v13031_v41  ;;  %9982 = vmatpush.bf16.msra.mxu1 %v13095_v51  ;;  %v12998_v41 = vld [vmem:[#allocation31 + $0x700] sm:$0xf]  ;;  %v13865_v51 = vld [vmem:[#allocation31 + $0x704] sm:$0xf0] }
 0xacd   : > { %9992 = vmatpush.bf16.msra.mxu2 %v13183_v8  ;;  %10005 = vmatpush.bf16.msrb.mxu0 %v13247_v52  ;;  %v13223_v8 = vor.u32 %v13921_v40, %v13222_v5  ;;  %v7956_v52 = vrot.slane %v7955_v9, 4  ;;  %v12999_v26 = vor.u32 %v13865_v51, %v12998_v41  ;;  %v13668_v9 = vld [vmem:[#allocation31 + $0xe4] sm:$0xf]  ;;  %v13143_v5 = vor.u32 %v13901_v27, %v13142_v38  ;;  %v13913_v41 = vld [vmem:[#allocation31 + $0x884] sm:$0xf0] }
 0xace   : > { %9948 = vmatmul.bf16.vlgmr.msrb.gmra.mxu2 %v16561_v45  ;;  %9961 = vmatmul.bf16.vlgmr.msra.gmra.mxu0 %v16563_v7  ;;  %v13686_v51 = vld [vmem:[#allocation31 + $0x174] sm:$0xf] }
 0xad0   : > { %9970 = vmatpush.bf16.msrb.mxu3 %v13023_v37  ;;  %9983 = vmatpush.bf16.msra.mxu1 %v13087_v59  ;;  %v13917_v37 = vld [vmem:[#allocation31 + $0x8a4] sm:$0xf0]  ;;  %v7968_v59 = vpack.c.bf16 %v7965_v34, %v7964_v56  ;;  %v12144_v34 = vld [vmem:[#allocation31 + $0x58] sm:$0xf0]  ;;  %v13702_v56 = vld [vmem:[#allocation31 + $0x1f4] sm:$0xf] }
 0xad1   : > { %9993 = vmatpush.bf16.msra.mxu2 %v13175_v14  ;;  %10006 = vmatpush.bf16.msrb.mxu0 %v13239_v6  ;;  %v7961_v14 = vsel %vm16492_vm9, %v7956_v52, %v7960_v55  ;;  %v13670_v6 = vld [vmem:[#allocation31 + $0xf4] sm:$0xf]  ;;  %v13207_v40 = vor.u32 %v13917_v37, %v13206_v20  ;;  %v7974_v55 = vrot.slane %v7969_v21, 5  ;;  %v12219_v52 = vor.u32 %v13668_v9, %v12216_v18  ;;  %v13700_v21 = vld [vmem:[#allocation31 + $0x1e4] sm:$0xf] }
 0xad2   : > { %v8304_v24 = vunpack.c.l.b16 %v7961_v14  ;;  %v12227_v62 = vor.u32 %v13670_v6, %v12224_v28  ;;  %v12099_v3 = vrot.slane %v7968_v59, 9  ;;  %v12147_v30 = vor.u32 %v13650_v43, %v12144_v34  ;;  %v12136_v28 = vld [vmem:[#allocation31 + $0x48] sm:$0xf0]  ;;  %v13684_v59 = vld [vmem:[#allocation31 + $0x164] sm:$0xf] }
 0xad3   : > { %v12291_v20 = vor.u32 %v13686_v51, %v12288_v11  ;;  %v12355_v37 = vor.u32 %v13702_v56, %v12352_v29  ;;  %v12192_v9 = vld [vmem:[#allocation31 + $0xb8] sm:$0xf0]  ;;  %v12120_v43 = vld [vmem:[#allocation31 + $0x28] sm:$0xf0]  ;;  %v13660_v34 = vld [vmem:[#allocation31 + $0xa4] sm:$0xf] }
 0xad4   : > { %9971 = vmatpush.bf16.msrb.mxu3 %v13015_v57  ;;  %9984 = vmatpush.bf16.msra.mxu1 %v13079_v31  ;;  %v13134_v57 = vld [vmem:[#allocation31 + $0x810] sm:$0xf]  ;;  %v13899_v31 = vld [vmem:[#allocation31 + $0x814] sm:$0xf0]  ;;  %v16569_v54 = vpack.c.b16 %v8304_v24, %v8304_v24  ;;  %v7975_v6 = vsel %vm16484_vm8, %v12099_v3, %v7974_v55  ;;  %v12280_v24 = vld [vmem:[#allocation31 + $0x168] sm:$0xf0]  ;;  %v12187_v51 = vor.u32 %v13660_v34, %v12184_v16 }
 0xad5   : > { %9994 = vmatpush.bf16.msra.mxu2 %v13167_v47  ;;  %10007 = vmatpush.bf16.msrb.mxu0 %v13231_v63  ;;  %v8305_v47 = vunpack.c.h.b16 %v7961_v14  ;;  %v13652_v63 = vld [vmem:[#allocation31 + $0x64] sm:$0xf]  ;;  %v13135_v35 = vor.u32 %v13899_v31, %v13134_v57  ;;  %v12283_v18 = vor.u32 %v13684_v59, %v12280_v24  ;;  %v12336_v3 = vld [vmem:[#allocation31 + $0x1d8] sm:$0xf0]  ;;  %v13642_v11 = vld [vmem:[#allocation31 + $0x14] sm:$0xf] }
 0xad6   : > { %v13648_v14 = vld [vmem:[#allocation31 + $0x44] sm:$0xf]  ;;  %v12112_v56 = vld [vmem:[#allocation31 + $0x18] sm:$0xf0]  ;;  %v13658_v29 = vld [vmem:[#allocation31 + $0x94] sm:$0xf] }
 0xad7   : > { %v13656_v59 = vld [vmem:[#allocation31 + $0x84] sm:$0xf]  ;;  %v12416_v24 = vld [vmem:[#allocation31 + $0x278] sm:$0xf0]  ;;  %v13674_v34 = vld [vmem:[#allocation31 + $0x114] sm:$0xf] }
 0xad8   : > { %9972 = vmatpush.bf16.msrb.mxu3 %v13007_v36  ;;  %9985 = vmatpush.bf16.msra.mxu1 %v13071_v49  ;;  %v13897_v36 = vld [vmem:[#allocation31 + $0x804] sm:$0xf0]  ;;  %v13190_v49 = vld [vmem:[#allocation31 + $0x880] sm:$0xf]  ;;  %v12240_v16 = vld [vmem:[#allocation31 + $0x118] sm:$0xf0] }
 0xad9   : > { %9995 = vmatpush.bf16.msra.mxu2 %v13159_v10  ;;  %10008 = vmatpush.bf16.msrb.mxu0 %v13223_v8  ;;  %v16571_v10 = vpack.c.b16 %v8305_v47, %v8305_v47  ;;  %v12155_v8 = vor.u32 %v13652_v63, %v12152_v32  ;;  %v13127_v38 = vor.u32 %v13897_v36, %v13126_v39  ;;  %v13646_v47 = vld [vmem:[#allocation31 + $0x34] sm:$0xf]  ;;  %v12128_v63 = vld [vmem:[#allocation31 + $0x38] sm:$0xf0]  ;;  %v12264_v39 = vld [vmem:[#allocation31 + $0x148] sm:$0xf0] }
 0xada   : > { %v13191_v27 = vor.u32 %v13913_v41, %v13190_v49  ;;  %v13662_v32 = vld [vmem:[#allocation31 + $0xb4] sm:$0xf]  ;;  %v12131_v55 = vor.u32 %v13646_v47, %v12128_v63  ;;  %v13696_v36 = vld [vmem:[#allocation31 + $0x1c4] sm:$0xf]  ;;  %v12328_v49 = vld [vmem:[#allocation31 + $0x1c8] sm:$0xf0] }
 0xadb   : > { %v13676_v47 = vld [vmem:[#allocation31 + $0x124] sm:$0xf]  ;;  %v12248_v63 = vld [vmem:[#allocation31 + $0x128] sm:$0xf0] }
 0xadc   : > { %9973 = vmatpush.bf16.msrb.mxu3 %v12999_v26  ;;  %9986 = vmatpush.bf16.msra.mxu1 %v13063_v19  ;;  %v8306_v26 = vunpack.c.l.b16 %v7975_v6  ;;  %v8307_v19 = vunpack.c.h.b16 %v7975_v6  ;;  %v13678_v6 = vld [vmem:[#allocation31 + $0x134] sm:$0xf] }
 0xadd   : > { %9996 = vmatpush.bf16.msra.mxu2 %v13151_v48  ;;  %10009 = vmatpush.bf16.msrb.mxu0 %v13215_v50  ;;  %v13664_v48 = vld [vmem:[#allocation31 + $0xc4] sm:$0xf]  ;;  %v12200_v50 = vld [vmem:[#allocation31 + $0xc8] sm:$0xf0] }
 0xade   : > { %v12203_v42 = vor.u32 %v13664_v48, %v12200_v50  ;;  %v16577_v57 = vpack.c.b16 %v8306_v26, %v8306_v26  ;;  %v16579_v31 = vpack.c.b16 %v8307_v19, %v8307_v19  ;;  %v13694_v48 = vld [vmem:[#allocation31 + $0x1b4] sm:$0xf]  ;;  %v12320_v50 = vld [vmem:[#allocation31 + $0x1b8] sm:$0xf0]  ;;  %v12168_v26 = vld [vmem:[#allocation31 + $0x88] sm:$0xf0] }
 0xadf   : > { %9974 = vmatmul.bf16.vlgmr.msrb.gmra.mxu3 %v16569_v54  ;;  %9987 = vmatmul.bf16.vlgmr.msra.gmra.mxu1 %v16571_v10  ;;  %v13718_v19 = vld [vmem:[#allocation31 + $0x274] sm:$0xf] }
 0xae0   : > { %10018 = vmatpush.bf16.msra.mxu3 %v12163_v33  ;;  %10031 = vmatpush.bf16.msrb.mxu1 %v12227_v62  ;;  %v12344_v33 = vld [vmem:[#allocation31 + $0x1e8] sm:$0xf0]  ;;  %v12139_v62 = vor.u32 %v13648_v14, %v12136_v28  ;;  %v12331_v14 = vor.u32 %v13696_v36, %v12328_v49  ;;  %v12256_v28 = vld [vmem:[#allocation31 + $0x138] sm:$0xf0]  ;;  %v13714_v36 = vld [vmem:[#allocation31 + $0x254] sm:$0xf] }
 0xae1   : > { %9997 = vmatpush.bf16.msra.mxu2 %v13143_v5  ;;  %10010 = vmatpush.bf16.msrb.mxu0 %v13207_v40  ;;  %v12347_v5 = vor.u32 %v13700_v21, %v12344_v33  ;;  %v13682_v40 = vld [vmem:[#allocation31 + $0x154] sm:$0xf]  ;;  %v12480_v33 = vld [vmem:[#allocation31 + $0x2f8] sm:$0xf0] }
 0xae2   : > { %v12275_v60 = vor.u32 %v13682_v40, %v12272_v12  ;;  %v13734_v21 = vld [vmem:[#allocation31 + $0x2f4] sm:$0xf]  ;;  %v12419_v40 = vor.u32 %v13718_v19, %v12416_v24  ;;  %v12400_v49 = vld [vmem:[#allocation31 + $0x258] sm:$0xf0] }
 0xae3   : > { %v12483_v12 = vor.u32 %v13734_v21, %v12480_v33  ;;  %v13748_v21 = vld [vmem:[#allocation31 + $0x364] sm:$0xf]  ;;  %v12536_v33 = vld [vmem:[#allocation31 + $0x368] sm:$0xf0] }
 0xae4   : > { %10019 = vmatpush.bf16.msra.mxu3 %v12155_v8  ;;  %10032 = vmatpush.bf16.msrb.mxu1 %v12219_v52  ;;  %v12195_v8 = vor.u32 %v13662_v32, %v12192_v9  ;;  %v13644_v52 = vld [vmem:[#allocation31 + $0x24] sm:$0xf]  ;;  %v12312_v9 = vld [vmem:[#allocation31 + $0x1a8] sm:$0xf0] }
 0xae5   : > { %9998 = vmatpush.bf16.msra.mxu2 %v13135_v35  ;;  %10011 = vmatpush.bf16.msrb.mxu0 %v13199_v13  ;;  %v12339_v35 = vor.u32 %v13698_v61, %v12336_v3  ;;  %v13680_v13 = vld [vmem:[#allocation31 + $0x144] sm:$0xf]  ;;  %v12123_v41 = vor.u32 %v13644_v52, %v12120_v43  ;;  %v12408_v3 = vld [vmem:[#allocation31 + $0x268] sm:$0xf0]  ;;  %v12251_v52 = vor.u32 %v13676_v47, %v12248_v63 }
 0xae6   : > { %v13692_v32 = vld [vmem:[#allocation31 + $0x1a4] sm:$0xf] }
 0xae7   : > { %v13716_v61 = vld [vmem:[#allocation31 + $0x264] sm:$0xf]  ;;  %v12315_v43 = vor.u32 %v13692_v32, %v12312_v9  ;;  %v13710_v32 = vld [vmem:[#allocation31 + $0x234] sm:$0xf]  ;;  %v12384_v9 = vld [vmem:[#allocation31 + $0x238] sm:$0xf0] }
 0xae8   : > { %10020 = vmatpush.bf16.msra.mxu3 %v12147_v30  ;;  %10033 = vmatpush.bf16.msrb.mxu1 %v12211_v0  ;;  %v12176_v30 = vld [vmem:[#allocation31 + $0x98] sm:$0xf0]  ;;  %v12267_v0 = vor.u32 %v13680_v13, %v12264_v39  ;;  %v12411_v13 = vor.u32 %v13716_v61, %v12408_v3  ;;  %v13746_v61 = vld [vmem:[#allocation31 + $0x354] sm:$0xf] }
 0xae9   : > { %9999 = vmatpush.bf16.msra.mxu2 %v13127_v38  ;;  %10012 = vmatpush.bf16.msrb.mxu0 %v13191_v27  ;;  %v12115_v38 = vor.u32 %v13642_v11, %v12112_v56  ;;  %v12179_v27 = vor.u32 %v13658_v29, %v12176_v30  ;;  %v12243_v11 = vor.u32 %v13674_v34, %v12240_v16  ;;  %v13672_v29 = vld [vmem:[#allocation31 + $0x104] sm:$0xf]  ;;  %v12232_v30 = vld [vmem:[#allocation31 + $0x108] sm:$0xf0]  ;;  %v12528_v3 = vld [vmem:[#allocation31 + $0x358] sm:$0xf0] }
 0xaea   : > { %v12235_v19 = vor.u32 %v13672_v29, %v12232_v30  ;;  %v13708_v34 = vld [vmem:[#allocation31 + $0x224] sm:$0xf]  ;;  %v12376_v16 = vld [vmem:[#allocation31 + $0x228] sm:$0xf0] }
 0xaec   : > { %10021 = vmatpush.bf16.msra.mxu3 %v12139_v62  ;;  %10034 = vmatpush.bf16.msrb.mxu1 %v12203_v42  ;;  %v12259_v62 = vor.u32 %v13678_v6, %v12256_v28  ;;  %v12323_v42 = vor.u32 %v13694_v48, %v12320_v50  ;;  %v13750_v6 = vld [vmem:[#allocation31 + $0x374] sm:$0xf]  ;;  %v12544_v28 = vld [vmem:[#allocation31 + $0x378] sm:$0xf0] }
 0xaed   : > { %10044 = vmatpush.bf16.msrb.mxu2 %v12291_v20  ;;  %10057 = vmatpush.bf16.msra.mxu0 %v12355_v37  ;;  %v13640_v20 = vld [vmem:[#allocation31 + $0x4] sm:$0xf]  ;;  %v12104_v37 = vld [vmem:[#allocation31 + $0x8] sm:$0xf0]  ;;  %v13766_v48 = vld [vmem:[#allocation31 + $0x3f4] sm:$0xf]  ;;  %v12547_v24 = vor.u32 %v13750_v6, %v12544_v28 }
 0xaee   : > { %10000 = vmatmul.bf16.vlgmr.msra.gmra.mxu2 %v16577_v57  ;;  %10013 = vmatmul.bf16.vlgmr.msrb.gmra.mxu0 %v16579_v31  ;;  %v12608_v50 = vld [vmem:[#allocation31 + $0x3f8] sm:$0xf0] }
 0xaf0   : > { %10022 = vmatpush.bf16.msra.mxu3 %v12131_v55  ;;  %10035 = vmatpush.bf16.msrb.mxu1 %v12195_v8  ;;  %v13732_v55 = vld [vmem:[#allocation31 + $0x2e4] sm:$0xf]  ;;  %v12472_v8 = vld [vmem:[#allocation31 + $0x2e8] sm:$0xf0] }
 0xaf1   : > { %10045 = vmatpush.bf16.msrb.mxu2 %v12283_v18  ;;  %10058 = vmatpush.bf16.msra.mxu0 %v12347_v5  ;;  %v12107_v18 = vor.u32 %v13640_v20, %v12104_v37  ;;  %v12171_v5 = vor.u32 %v13656_v59, %v12168_v26  ;;  %v12475_v39 = vor.u32 %v13732_v55, %v12472_v8  ;;  %v13712_v20 = vld [vmem:[#allocation31 + $0x244] sm:$0xf]  ;;  %v12392_v37 = vld [vmem:[#allocation31 + $0x248] sm:$0xf0]  ;;  %v13762_v55 = vld [vmem:[#allocation31 + $0x3d4] sm:$0xf] }
 0xaf2   : > { %v13728_v59 = vld [vmem:[#allocation31 + $0x2c4] sm:$0xf]  ;;  %v12456_v26 = vld [vmem:[#allocation31 + $0x2c8] sm:$0xf0]  ;;  %v12395_v47 = vor.u32 %v13712_v20, %v12392_v37  ;;  %v12592_v8 = vld [vmem:[#allocation31 + $0x3d8] sm:$0xf0] }
 0xaf3   : > { %v12459_v63 = vor.u32 %v13728_v59, %v12456_v26  ;;  %v12576_v20 = vld [vmem:[#allocation31 + $0x3b8] sm:$0xf0]  ;;  %v13704_v26 = vld [vmem:[#allocation31 + $0x204] sm:$0xf] }
 0xaf4   : > { %10023 = vmatpush.bf16.msra.mxu3 %v12123_v41  ;;  %10036 = vmatpush.bf16.msrb.mxu1 %v12187_v51  ;;  %v13730_v41 = vld [vmem:[#allocation31 + $0x2d4] sm:$0xf]  ;;  %v12464_v51 = vld [vmem:[#allocation31 + $0x2d8] sm:$0xf0] }
 0xaf5   : > { %10046 = vmatpush.bf16.msrb.mxu2 %v12275_v60  ;;  %10059 = vmatpush.bf16.msra.mxu0 %v12339_v35  ;;  %v13690_v60 = vld [vmem:[#allocation31 + $0x194] sm:$0xf]  ;;  %v12304_v35 = vld [vmem:[#allocation31 + $0x198] sm:$0xf0] }
 0xaf6   : > { %v12307_v56 = vor.u32 %v13690_v60, %v12304_v35  ;;  %v13724_v60 = vld [vmem:[#allocation31 + $0x2a4] sm:$0xf]  ;;  %v12440_v35 = vld [vmem:[#allocation31 + $0x2a8] sm:$0xf0] }
 0xaf7   : > { %v12443_v29 = vor.u32 %v13724_v60, %v12440_v35  ;;  %v12728_v60 = vld [vmem:[#allocation31 + $0x4e8] sm:$0xf0] }
 0xaf8   : > { %10024 = vmatpush.bf16.msra.mxu3 %v12115_v38  ;;  %10037 = vmatpush.bf16.msrb.mxu1 %v12179_v27  ;;  %v12403_v38 = vor.u32 %v13714_v36, %v12400_v49  ;;  %v12467_v27 = vor.u32 %v13730_v41, %v12464_v51  ;;  %v13744_v36 = vld [vmem:[#allocation31 + $0x344] sm:$0xf]  ;;  %v12520_v49 = vld [vmem:[#allocation31 + $0x348] sm:$0xf0] }
 0xaf9   : > { %10047 = vmatpush.bf16.msrb.mxu2 %v12267_v0  ;;  %10060 = vmatpush.bf16.msra.mxu0 %v12331_v14  ;;  %v13688_v0 = vld [vmem:[#allocation31 + $0x184] sm:$0xf]  ;;  %v12296_v14 = vld [vmem:[#allocation31 + $0x188] sm:$0xf0]  ;;  %v12523_v6 = vor.u32 %v13744_v36, %v12520_v49  ;;  %v12496_v36 = vld [vmem:[#allocation31 + $0x318] sm:$0xf0] }
 0xafa   : > { %v13760_v41 = vld [vmem:[#allocation31 + $0x3c4] sm:$0xf]  ;;  %v12584_v51 = vld [vmem:[#allocation31 + $0x3c8] sm:$0xf0]  ;;  %v13754_v49 = vld [vmem:[#allocation31 + $0x394] sm:$0xf] }
 0xafb   : > { %v12587_v28 = vor.u32 %v13760_v41, %v12584_v51  ;;  %v12560_v41 = vld [vmem:[#allocation31 + $0x398] sm:$0xf0] }
 0xafc   : > { %10025 = vmatpush.bf16.msra.mxu3 %v12107_v18  ;;  %10038 = vmatpush.bf16.msrb.mxu1 %v12171_v5  ;;  %v13726_v18 = vld [vmem:[#allocation31 + $0x2b4] sm:$0xf]  ;;  %v12448_v5 = vld [vmem:[#allocation31 + $0x2b8] sm:$0xf0] }
 0xafd   : > { %10048 = vmatpush.bf16.msrb.mxu2 %v12259_v62  ;;  %10061 = vmatpush.bf16.msra.mxu0 %v12323_v42  ;;  %v13764_v62 = vld [vmem:[#allocation31 + $0x3e4] sm:$0xf]  ;;  %v12600_v42 = vld [vmem:[#allocation31 + $0x3e8] sm:$0xf0] }
 0xaff   : > { %10026 = vmatmul.bf16.vlgmr.msra.gmra.mxu3 %v16471_v1  ;;  %10039 = vmatmul.bf16.vlgmr.msrb.gmra.mxu1 %v16473_v17  ;;  %v12299_v1 = vor.u32 %v13688_v0, %v12296_v14  ;;  %v12611_v17 = vor.u32 %v13766_v48, %v12608_v50  ;;  %v13722_v0 = vld [vmem:[#allocation31 + $0x294] sm:$0xf]  ;;  %v12432_v14 = vld [vmem:[#allocation31 + $0x298] sm:$0xf0] }
 0xb00   : > { %10070 = vmatpush.bf16.msrb.mxu3 %v12419_v40  ;;  %10083 = vmatpush.bf16.msra.mxu1 %v12483_v12  ;;  %v12539_v40 = vor.u32 %v13748_v21, %v12536_v33  ;;  %v12603_v12 = vor.u32 %v13764_v62, %v12600_v42  ;;  %v13742_v50 = vld [vmem:[#allocation31 + $0x334] sm:$0xf]  ;;  %v12435_v59 = vor.u32 %v13722_v0, %v12432_v14  ;;  %v12672_v21 = vld [vmem:[#allocation31 + $0x478] sm:$0xf0] }
 0xb01   : > { %10049 = vmatpush.bf16.msrb.mxu2 %v12251_v52  ;;  %10062 = vmatpush.bf16.msra.mxu0 %v12315_v43  ;;  %v12387_v52 = vor.u32 %v13710_v32, %v12384_v9  ;;  %v12451_v43 = vor.u32 %v13726_v18, %v12448_v5  ;;  %v13798_v33 = vld [vmem:[#allocation31 + $0x4f4] sm:$0xf]  ;;  %v12736_v62 = vld [vmem:[#allocation31 + $0x4f8] sm:$0xf0]  ;;  %v13740_v32 = vld [vmem:[#allocation31 + $0x324] sm:$0xf] }
 0xb02   : > { %v12504_v18 = vld [vmem:[#allocation31 + $0x328] sm:$0xf0]  ;;  %v13756_v5 = vld [vmem:[#allocation31 + $0x3a4] sm:$0xf] }
 0xb03   : > { %v12507_v35 = vor.u32 %v13740_v32, %v12504_v18  ;;  %v13828_v32 = vld [vmem:[#allocation31 + $0x5e4] sm:$0xf] }
 0xb04   : > { %10071 = vmatpush.bf16.msrb.mxu3 %v12411_v13  ;;  %10084 = vmatpush.bf16.msra.mxu1 %v12475_v39  ;;  %v12531_v13 = vor.u32 %v13746_v61, %v12528_v3  ;;  %v12595_v39 = vor.u32 %v13762_v55, %v12592_v8  ;;  %v12739_v8 = vor.u32 %v13798_v33, %v12736_v62 }
 0xb05   : > { %10050 = vmatpush.bf16.msrb.mxu2 %v12243_v11  ;;  %10063 = vmatpush.bf16.msra.mxu0 %v12307_v56  ;;  %v16587_v11 = vld [vmem:[#allocation32] sm:$0x3]  ;;  %v12379_v56 = vor.u32 %v13708_v34, %v12376_v16  ;;  %v13796_v16 = vld [vmem:[#allocation31 + $0x4e4] sm:$0xf] }
 0xb06   : > { %v8277_v48 = vperm.slane %v16587_v11, 0 }
 0xb07   : > { %v9806_v30 = vpop.f32.mrf.mxu0 }
 0xb08   : > { %10072 = vmatpush.bf16.msrb.mxu3 %v12403_v38  ;;  %10085 = vmatpush.bf16.msra.mxu1 %v12467_v27  ;;  %v12512_v38 = vld [vmem:[#allocation31 + $0x338] sm:$0xf0]  ;;  %v13758_v27 = vld [vmem:[#allocation31 + $0x3b4] sm:$0xf] }
 0xb09   : > { %10051 = vmatpush.bf16.msrb.mxu2 %v12235_v19  ;;  %10064 = vmatpush.bf16.msra.mxu0 %v12299_v1  ;;  %v12360_v19 = vld [vmem:[#allocation31 + $0x208] sm:$0xf0]  ;;  %v13720_v1 = vld [vmem:[#allocation31 + $0x284] sm:$0xf] }
 0xb0c   : > { %10073 = vmatpush.bf16.msrb.mxu3 %v12395_v47  ;;  %10086 = vmatpush.bf16.msra.mxu1 %v12459_v63  ;;  %v12515_v47 = vor.u32 %v13742_v50, %v12512_v38  ;;  %v12579_v63 = vor.u32 %v13758_v27, %v12576_v20  ;;  %v13752_v50 = vld [vmem:[#allocation31 + $0x384] sm:$0xf]  ;;  %v12552_v38 = vld [vmem:[#allocation31 + $0x388] sm:$0xf0]  ;;  %v13814_v27 = vld [vmem:[#allocation31 + $0x574] sm:$0xf] }
 0xb0d   : > { %10096 = vmatpush.bf16.msra.mxu2 %v12547_v24  ;;  %10109 = vmatpush.bf16.msrb.mxu0 %v12611_v17  ;;  %v12424_v24 = vld [vmem:[#allocation31 + $0x288] sm:$0xf0]  ;;  %v13782_v17 = vld [vmem:[#allocation31 + $0x474] sm:$0xf]  ;;  %v9793_v42 = vpop.f32.mrf.mxu2  ;;  %v12800_v20 = vld [vmem:[#allocation31 + $0x578] sm:$0xf0] }
 0xb0e   : > { %10052 = vmatmul.bf16.vlgmr.msrb.gmra.mxu2 %v16508_v46  ;;  %10065 = vmatmul.bf16.vlgmr.msra.gmra.mxu0 %v16510_v2  ;;  %v13706_v46 = vld [vmem:[#allocation31 + $0x214] sm:$0xf]  ;;  %v12368_v2 = vld [vmem:[#allocation31 + $0x218] sm:$0xf0]  ;;  %v9794_v9 = vadd.f32 %v9793_v42, %v8277_v48  ;;  %v12427_v61 = vor.u32 %v13720_v1, %v12424_v24  ;;  %v12675_v55 = vor.u32 %v13782_v17, %v12672_v21  ;;  %v12488_v48 = vld [vmem:[#allocation31 + $0x308] sm:$0xf0] }
 0xb0f   : > { %v12371_v37 = vor.u32 %v13706_v46, %v12368_v2  ;;  %v9808_v3 = vpop.f32.mrf.mxu0  ;;  %v12656_v46 = vld [vmem:[#allocation31 + $0x458] sm:$0xf0]  ;;  %v13776_v1 = vld [vmem:[#allocation31 + $0x444] sm:$0xf]  ;;  %v12648_v24 = vld [vmem:[#allocation31 + $0x448] sm:$0xf0] }
 0xb10   : > { %10074 = vmatpush.bf16.msrb.mxu3 %v12387_v52  ;;  %10087 = vmatpush.bf16.msra.mxu1 %v12451_v43  ;;  %v13780_v52 = vld [vmem:[#allocation31 + $0x464] sm:$0xf]  ;;  %v12664_v43 = vld [vmem:[#allocation31 + $0x468] sm:$0xf0]  ;;  %v16590_v34 = vadd.f32 %v9806_v30, %v9794_v9  ;;  %v13794_v30 = vld [vmem:[#allocation31 + $0x4d4] sm:$0xf] }
 0xb11   : > { %10097 = vmatpush.bf16.msra.mxu2 %v12539_v40  ;;  %10110 = vmatpush.bf16.msrb.mxu0 %v12603_v12  ;;  %v12568_v40 = vld [vmem:[#allocation31 + $0x3a8] sm:$0xf0]  ;;  %v12363_v12 = vor.u32 %v13704_v26, %v12360_v19  ;;  %v12667_v51 = vor.u32 %v13780_v52, %v12664_v43  ;;  %v12720_v2 = vld [vmem:[#allocation31 + $0x4d8] sm:$0xf0]  ;;  %v13792_v17 = vld [vmem:[#allocation31 + $0x4c4] sm:$0xf] }
 0xb12   : > { %v12723_v19 = vor.u32 %v13794_v30, %v12720_v2  ;;  %v12712_v21 = vld [vmem:[#allocation31 + $0x4c8] sm:$0xf0]  ;;  %v13790_v3 = vld [vmem:[#allocation31 + $0x4b4] sm:$0xf] }
 0xb13   : > { %v12856_v9 = vld [vmem:[#allocation31 + $0x5e8] sm:$0xf0]  ;;  %v13810_v43 = vld [vmem:[#allocation31 + $0x554] sm:$0xf] }
 0xb14   : > { %10075 = vmatpush.bf16.msrb.mxu3 %v12379_v56  ;;  %10088 = vmatpush.bf16.msra.mxu1 %v12443_v29  ;;  %v12731_v56 = vor.u32 %v13796_v16, %v12728_v60  ;;  %v13778_v29 = vld [vmem:[#allocation31 + $0x454] sm:$0xf]  ;;  %v12859_v52 = vor.u32 %v13828_v32, %v12856_v9  ;;  %v12784_v16 = vld [vmem:[#allocation31 + $0x558] sm:$0xf0]  ;;  %v12680_v32 = vld [vmem:[#allocation31 + $0x488] sm:$0xf0] }
 0xb15   : > { %10098 = vmatpush.bf16.msra.mxu2 %v12531_v13  ;;  %10111 = vmatpush.bf16.msrb.mxu0 %v12595_v39  ;;  %v12571_v13 = vor.u32 %v13756_v5, %v12568_v40  ;;  %v13738_v39 = vld [vmem:[#allocation31 + $0x314] sm:$0xf]  ;;  %v9795_v0 = vpop.f32.mrf.mxu2  ;;  %v12659_v26 = vor.u32 %v13778_v29, %v12656_v46  ;;  %v12651_v5 = vor.u32 %v13776_v1, %v12648_v24 }
 0xb16   : > { %v12499_v14 = vor.u32 %v13738_v39, %v12496_v36  ;;  %v12715_v40 = vor.u32 %v13792_v17, %v12712_v21  ;;  %v13826_v60 = vld [vmem:[#allocation31 + $0x5d4] sm:$0xf]  ;;  %v12787_v30 = vor.u32 %v13810_v43, %v12784_v16  ;;  %v13808_v0 = vld [vmem:[#allocation31 + $0x544] sm:$0xf]  ;;  %v12832_v21 = vld [vmem:[#allocation31 + $0x5b8] sm:$0xf0] }
 0xb17   : > { %v13806_v1 = vld [vmem:[#allocation31 + $0x534] sm:$0xf]  ;;  %v12760_v43 = vld [vmem:[#allocation31 + $0x528] sm:$0xf0]  ;;  %v13820_v16 = vld [vmem:[#allocation31 + $0x5a4] sm:$0xf] }
 0xb18   : > { %10076 = vmatpush.bf16.msrb.mxu3 %v12371_v37  ;;  %10089 = vmatpush.bf16.msra.mxu1 %v12435_v59  ;;  %v13830_v37 = vld [vmem:[#allocation31 + $0x5f4] sm:$0xf]  ;;  %v12864_v59 = vld [vmem:[#allocation31 + $0x5f8] sm:$0xf0] }
 0xb19   : > { %10099 = vmatpush.bf16.msra.mxu2 %v12523_v6  ;;  %10112 = vmatpush.bf16.msrb.mxu0 %v12587_v28  ;;  %v12563_v6 = vor.u32 %v13754_v49, %v12560_v41  ;;  %v13736_v28 = vld [vmem:[#allocation31 + $0x304] sm:$0xf]  ;;  %v12867_v42 = vor.u32 %v13830_v37, %v12864_v59  ;;  %v12632_v41 = vld [vmem:[#allocation31 + $0x428] sm:$0xf0]  ;;  %v13786_v37 = vld [vmem:[#allocation31 + $0x494] sm:$0xf] }
 0xb1a   : > { %v12491_v33 = vor.u32 %v13736_v28, %v12488_v48  ;;  %v13772_v49 = vld [vmem:[#allocation31 + $0x424] sm:$0xf]  ;;  %v12840_v48 = vld [vmem:[#allocation31 + $0x5c8] sm:$0xf0]  ;;  %v12688_v59 = vld [vmem:[#allocation31 + $0x498] sm:$0xf0] }
 0xb1b   : > { %v16594_v62 = vpop.f32.mrf.mxu0  ;;  %v13824_v28 = vld [vmem:[#allocation31 + $0x5c4] sm:$0xf]  ;;  %v13822_v17 = vld [vmem:[#allocation31 + $0x5b4] sm:$0xf] }
 0xb1c   : > { %10077 = vmatpush.bf16.msrb.mxu3 %v12363_v12  ;;  %10090 = vmatpush.bf16.msra.mxu1 %v12427_v61  ;;  %v9832_v18 = vpop.f32.mrf.mxu1  ;;  %v13774_v12 = vld [vmem:[#allocation31 + $0x434] sm:$0xf]  ;;  %v12640_v61 = vld [vmem:[#allocation31 + $0x438] sm:$0xf0] }
 0xb1d   : > { %10100 = vmatpush.bf16.msra.mxu2 %v12515_v47  ;;  %10113 = vmatpush.bf16.msrb.mxu0 %v12579_v63  ;;  %v13812_v47 = vld [vmem:[#allocation31 + $0x564] sm:$0xf]  ;;  %v12792_v63 = vld [vmem:[#allocation31 + $0x568] sm:$0xf0]  ;;  %v13846_v9 = vld [vmem:[#allocation31 + $0x674] sm:$0xf] }
 0xb1f   : > { %10078 = vmatmul.bf16.vlgmr.msrb.gmra.mxu3 %v16504_v22  ;;  %10091 = vmatmul.bf16.vlgmr.msra.gmra.mxu1 %v16506_v15  ;;  %v12555_v22 = vor.u32 %v13752_v50, %v12552_v38  ;;  %v12803_v15 = vor.u32 %v13814_v27, %v12800_v20  ;;  %v12635_v50 = vor.u32 %v13772_v49, %v12632_v41  ;;  %v13770_v38 = vld [vmem:[#allocation31 + $0x414] sm:$0xf]  ;;  %v12624_v20 = vld [vmem:[#allocation31 + $0x418] sm:$0xf0]  ;;  %v13844_v49 = vld [vmem:[#allocation31 + $0x664] sm:$0xf] }
 0xb20   : > { %10122 = vmatpush.bf16.msra.mxu3 %v12675_v55  ;;  %10135 = vmatpush.bf16.msrb.mxu1 %v12739_v8  ;;  %v12704_v55 = vld [vmem:[#allocation31 + $0x4b8] sm:$0xf0]  ;;  %v12795_v8 = vor.u32 %v13812_v47, %v12792_v63  ;;  %v12616_v47 = vld [vmem:[#allocation31 + $0x408] sm:$0xf0]  ;;  %v13784_v63 = vld [vmem:[#allocation31 + $0x484] sm:$0xf] }
 0xb21   : > { %10101 = vmatpush.bf16.msra.mxu2 %v12507_v35  ;;  %10114 = vmatpush.bf16.msrb.mxu0 %v12571_v13  ;;  %v12848_v35 = vld [vmem:[#allocation31 + $0x5d8] sm:$0xf0]  ;;  %v12643_v13 = vor.u32 %v13774_v12, %v12640_v61  ;;  %v12707_v39 = vor.u32 %v13790_v3, %v12704_v55  ;;  %v9845_v36 = vpop.f32.mrf.mxu2  ;;  %v13862_v61 = vld [vmem:[#allocation31 + $0x6f4] sm:$0xf]  ;;  %v12920_v41 = vld [vmem:[#allocation31 + $0x668] sm:$0xf0] }
 0xb22   : > { %v9819_v29 = vpop.f32.mrf.mxu3  ;;  %v12851_v2 = vor.u32 %v13826_v60, %v12848_v35  ;;  %v12992_v3 = vld [vmem:[#allocation31 + $0x6f8] sm:$0xf0]  ;;  %v12824_v60 = vld [vmem:[#allocation31 + $0x5a8] sm:$0xf0] }
 0xb23   : > { %v9860_v46 = vpop.f32.mrf.mxu0 }
 0xb24   : > { %10123 = vmatpush.bf16.msra.mxu3 %v12667_v51  ;;  %10136 = vmatpush.bf16.msrb.mxu1 %v12731_v56  ;;  %v13788_v51 = vld [vmem:[#allocation31 + $0x4a4] sm:$0xf]  ;;  %v12696_v56 = vld [vmem:[#allocation31 + $0x4a8] sm:$0xf0]  ;;  %v12827_v46 = vor.u32 %v13820_v16, %v12824_v60 }
 0xb25   : > { %10102 = vmatpush.bf16.msra.mxu2 %v12499_v14  ;;  %10115 = vmatpush.bf16.msrb.mxu0 %v12563_v6  ;;  %v9820_v14 = vadd.f32 %v9819_v29, %v16590_v34  ;;  %v12776_v6 = vld [vmem:[#allocation31 + $0x548] sm:$0xf0]  ;;  %v12768_v34 = vld [vmem:[#allocation31 + $0x538] sm:$0xf0] }
 0xb26   : > { %v12771_v55 = vor.u32 %v13806_v1, %v12768_v34  ;;  %v12808_v34 = vld [vmem:[#allocation31 + $0x588] sm:$0xf0] }
 0xb27   : > { %v9833_v27 = vadd.f32 %v9832_v18, %v9820_v14  ;;  %v12928_v18 = vld [vmem:[#allocation31 + $0x678] sm:$0xf0]  ;;  %v13112_v16 = vld [vmem:[#allocation31 + $0x7e8] sm:$0xf0] }
 0xb28   : > { %10124 = vmatpush.bf16.msra.mxu3 %v12659_v26  ;;  %10137 = vmatpush.bf16.msrb.mxu1 %v12723_v19  ;;  %v12779_v26 = vor.u32 %v13808_v0, %v12776_v6  ;;  %v12843_v19 = vor.u32 %v13824_v28, %v12840_v48  ;;  %v13818_v0 = vld [vmem:[#allocation31 + $0x594] sm:$0xf]  ;;  %v12816_v14 = vld [vmem:[#allocation31 + $0x598] sm:$0xf0]  ;;  %v12923_v28 = vor.u32 %v13844_v49, %v12920_v41 }
 0xb29   : > { %10103 = vmatpush.bf16.msra.mxu2 %v12491_v33  ;;  %10116 = vmatpush.bf16.msrb.mxu0 %v12555_v22  ;;  %v9846_v24 = vadd.f32 %v9845_v36, %v9833_v27  ;;  %v12627_v33 = vor.u32 %v13770_v38, %v12624_v20  ;;  %v12691_v22 = vor.u32 %v13786_v37, %v12688_v59  ;;  %v12976_v20 = vld [vmem:[#allocation31 + $0x6d8] sm:$0xf0]  ;;  %v13854_v49 = vld [vmem:[#allocation31 + $0x6b4] sm:$0xf] }
 0xb2a   : > { %v12931_v36 = vor.u32 %v13846_v9, %v12928_v18  ;;  %v12819_v59 = vor.u32 %v13818_v0, %v12816_v14  ;;  %v12904_v9 = vld [vmem:[#allocation31 + $0x648] sm:$0xf0]  ;;  %v13856_v18 = vld [vmem:[#allocation31 + $0x6c4] sm:$0xf]  ;;  %v12960_v41 = vld [vmem:[#allocation31 + $0x6b8] sm:$0xf0] }
 0xb2b   : > { %v16600_v12 = vpop.f32.mrf.mxu0  ;;  %v13104_v0 = vld [vmem:[#allocation31 + $0x7d8] sm:$0xf0] }
 0xb2c   : > { %10125 = vmatpush.bf16.msra.mxu3 %v12651_v5  ;;  %10138 = vmatpush.bf16.msrb.mxu1 %v12715_v40  ;;  %v9859_v5 = vadd.f32 %v16594_v62, %v9846_v24  ;;  %v9821_v40 = vpop.f32.mrf.mxu3  ;;  %v12995_v62 = vor.u32 %v13862_v61, %v12992_v3  ;;  %v13816_v24 = vld [vmem:[#allocation31 + $0x584] sm:$0xf] }
 0xb2d   : > { %10148 = vmatpush.bf16.msrb.mxu2 %v12803_v15  ;;  %10161 = vmatpush.bf16.msra.mxu0 %v12867_v42  ;;  %v9847_v15 = vpop.f32.mrf.mxu2  ;;  %v13768_v42 = vld [vmem:[#allocation31 + $0x404] sm:$0xf] }
 0xb2e   : > { %10104 = vmatmul.bf16.vlgmr.msra.gmra.mxu2 %v16537_v53  ;;  %10117 = vmatmul.bf16.vlgmr.msrb.gmra.mxu0 %v16539_v4  ;;  %v9834_v53 = vpop.f32.mrf.mxu1  ;;  %v12699_v4 = vor.u32 %v13788_v51, %v12696_v56  ;;  %v13860_v51 = vld [vmem:[#allocation31 + $0x6e4] sm:$0xf]  ;;  %v12984_v56 = vld [vmem:[#allocation31 + $0x6e8] sm:$0xf0]  ;;  %v13120_v15 = vld [vmem:[#allocation31 + $0x7f8] sm:$0xf0] }
 0xb2f   : > { %v12987_v48 = vor.u32 %v13860_v51, %v12984_v56  ;;  %v13842_v53 = vld [vmem:[#allocation31 + $0x654] sm:$0xf] }
 0xb30   : > { %10126 = vmatpush.bf16.msra.mxu3 %v12643_v13  ;;  %10139 = vmatpush.bf16.msrb.mxu1 %v12707_v39  ;;  %v12619_v13 = vor.u32 %v13768_v42, %v12616_v47  ;;  %v12683_v39 = vor.u32 %v13784_v63, %v12680_v32  ;;  %v13840_v32 = vld [vmem:[#allocation31 + $0x644] sm:$0xf] }
 0xb31   : > { %10149 = vmatpush.bf16.msrb.mxu2 %v12795_v8  ;;  %10162 = vmatpush.bf16.msra.mxu0 %v12859_v52  ;;  %v12835_v8 = vor.u32 %v13822_v17, %v12832_v21  ;;  %v13804_v52 = vld [vmem:[#allocation31 + $0x524] sm:$0xf]  ;;  %v13878_v17 = vld [vmem:[#allocation31 + $0x774] sm:$0xf]  ;;  %v12907_v60 = vor.u32 %v13840_v32, %v12904_v9 }
 0xb32   : > { %v12763_v29 = vor.u32 %v13804_v52, %v12760_v43  ;;  %v13048_v52 = vld [vmem:[#allocation31 + $0x768] sm:$0xf0]  ;;  %v13892_v43 = vld [vmem:[#allocation31 + $0x7e4] sm:$0xf] }
 0xb33   : > { %v9912_v27 = vpop.f32.mrf.mxu0  ;;  %v13115_v56 = vor.u32 %v13892_v43, %v13112_v16  ;;  %v13832_v9 = vld [vmem:[#allocation31 + $0x604] sm:$0xf] }
 0xb34   : > { %10127 = vmatpush.bf16.msra.mxu3 %v12635_v50  ;;  %10140 = vmatpush.bf16.msrb.mxu1 %v12699_v4  ;;  %v12912_v50 = vld [vmem:[#allocation31 + $0x658] sm:$0xf0]  ;;  %v13858_v4 = vld [vmem:[#allocation31 + $0x6d4] sm:$0xf]  ;;  %v9871_v38 = vpop.f32.mrf.mxu3  ;;  %v13032_v27 = vld [vmem:[#allocation31 + $0x748] sm:$0xf0] }
 0xb35   : > { %10150 = vmatpush.bf16.msrb.mxu2 %v12787_v30  ;;  %10163 = vmatpush.bf16.msra.mxu0 %v12851_v2  ;;  %v13802_v30 = vld [vmem:[#allocation31 + $0x514] sm:$0xf]  ;;  %v12752_v2 = vld [vmem:[#allocation31 + $0x518] sm:$0xf0]  ;;  %v9897_v6 = vpop.f32.mrf.mxu2  ;;  %v9872_v1 = vadd.f32 %v9871_v38, %v9859_v5  ;;  %v12915_v47 = vor.u32 %v13842_v53, %v12912_v50  ;;  %v12979_v63 = vor.u32 %v13858_v4, %v12976_v20  ;;  %v12952_v53 = vld [vmem:[#allocation31 + $0x6a8] sm:$0xf0] }
 0xb36   : > { %v9884_v35 = vpop.f32.mrf.mxu1  ;;  %v12755_v37 = vor.u32 %v13802_v30, %v12752_v2  ;;  %v13040_v30 = vld [vmem:[#allocation31 + $0x758] sm:$0xf0]  ;;  %v13890_v2 = vld [vmem:[#allocation31 + $0x7d4] sm:$0xf]  ;;  %v13872_v38 = vld [vmem:[#allocation31 + $0x744] sm:$0xf] }
 0xb37   : > { %v9885_v42 = vadd.f32 %v9884_v35, %v9872_v1  ;;  %v13107_v4 = vor.u32 %v13890_v2, %v13104_v0  ;;  %v13888_v20 = vld [vmem:[#allocation31 + $0x7c4] sm:$0xf]  ;;  %v13866_v0 = vld [vmem:[#allocation31 + $0x714] sm:$0xf] }
 0xb38   : > { %10128 = vmatpush.bf16.msra.mxu3 %v12627_v33  ;;  %10141 = vmatpush.bf16.msrb.mxu1 %v12691_v22  ;;  %v13056_v33 = vld [vmem:[#allocation31 + $0x778] sm:$0xf0]  ;;  %v13894_v22 = vld [vmem:[#allocation31 + $0x7f4] sm:$0xf]  ;;  %v13868_v16 = vld [vmem:[#allocation31 + $0x724] sm:$0xf] }
 0xb39   : > { %10151 = vmatpush.bf16.msrb.mxu2 %v12779_v26  ;;  %10164 = vmatpush.bf16.msra.mxu0 %v12843_v19  ;;  %v13800_v26 = vld [vmem:[#allocation31 + $0x504] sm:$0xf]  ;;  %v12744_v19 = vld [vmem:[#allocation31 + $0x508] sm:$0xf0]  ;;  %v9898_v40 = vadd.f32 %v9897_v6, %v9885_v42  ;;  %v13059_v61 = vor.u32 %v13878_v17, %v13056_v33  ;;  %v13123_v3 = vor.u32 %v13894_v22, %v13120_v15  ;;  %v13870_v33 = vld [vmem:[#allocation31 + $0x734] sm:$0xf] }
 0xb3a   : > { %v12747_v5 = vor.u32 %v13800_v26, %v12744_v19  ;;  %v12963_v6 = vor.u32 %v13854_v49, %v12960_v41  ;;  %v13834_v19 = vld [vmem:[#allocation31 + $0x614] sm:$0xf]  ;;  %v13035_v17 = vor.u32 %v13872_v38, %v13032_v27  ;;  %v13024_v15 = vld [vmem:[#allocation31 + $0x738] sm:$0xf0] }
 0xb3b   : > { %v13886_v42 = vld [vmem:[#allocation31 + $0x7b4] sm:$0xf]  ;;  %v13168_v38 = vld [vmem:[#allocation31 + $0x858] sm:$0xf0] }
 0xb3c   : > { %10129 = vmatpush.bf16.msra.mxu3 %v12619_v13  ;;  %10142 = vmatpush.bf16.msrb.mxu1 %v12683_v39  ;;  %v13838_v13 = vld [vmem:[#allocation31 + $0x634] sm:$0xf]  ;;  %v9911_v39 = vadd.f32 %v16600_v12, %v9898_v40  ;;  %v13836_v12 = vld [vmem:[#allocation31 + $0x624] sm:$0xf] }
 0xb3d   : > { %10152 = vmatpush.bf16.msrb.mxu2 %v12771_v55  ;;  %10165 = vmatpush.bf16.msra.mxu0 %v12835_v8  ;;  %v13876_v55 = vld [vmem:[#allocation31 + $0x764] sm:$0xf]  ;;  %v9899_v8 = vpop.f32.mrf.mxu2  ;;  %v13910_v40 = vld [vmem:[#allocation31 + $0x874] sm:$0xf] }
 0xb3e   : > { %v9886_v21 = vpop.f32.mrf.mxu1  ;;  %v13051_v51 = vor.u32 %v13876_v55, %v13048_v52  ;;  %v13926_v55 = vld [vmem:[#allocation31 + $0x8f4] sm:$0xf]  ;;  %v13248_v8 = vld [vmem:[#allocation31 + $0x8f8] sm:$0xf0]  ;;  %v13027_v52 = vor.u32 %v13870_v33, %v13024_v15  ;;  %v13160_v33 = vld [vmem:[#allocation31 + $0x848] sm:$0xf0] }
 0xb3f   : > { %10130 = vmatmul.bf16.vlgmr.msra.gmra.mxu3 %v16533_v58  ;;  %10143 = vmatmul.bf16.vlgmr.msrb.gmra.mxu1 %v16535_v23  ;;  %v12968_v58 = vld [vmem:[#allocation31 + $0x6c8] sm:$0xf0]  ;;  %v12811_v23 = vor.u32 %v13816_v24, %v12808_v34  ;;  %v13850_v24 = vld [vmem:[#allocation31 + $0x694] sm:$0xf]  ;;  %v13251_v41 = vor.u32 %v13926_v55, %v13248_v8  ;;  %v13916_v55 = vld [vmem:[#allocation31 + $0x8a4] sm:$0xf] }
 0xb40   : > { %10174 = vmatpush.bf16.msrb.mxu3 %v12931_v36  ;;  %10187 = vmatpush.bf16.msra.mxu1 %v12995_v62  ;;  %v12971_v35 = vor.u32 %v13856_v18, %v12968_v58  ;;  %v9873_v36 = vpop.f32.mrf.mxu3  ;;  %v12896_v62 = vld [vmem:[#allocation31 + $0x638] sm:$0xf0]  ;;  %v12872_v18 = vld [vmem:[#allocation31 + $0x608] sm:$0xf0]  ;;  %v13848_v58 = vld [vmem:[#allocation31 + $0x684] sm:$0xf] }
 0xb41   : > { %10153 = vmatpush.bf16.msrb.mxu2 %v12763_v29  ;;  %10166 = vmatpush.bf16.msra.mxu0 %v12827_v46  ;;  %v13874_v29 = vld [vmem:[#allocation31 + $0x754] sm:$0xf]  ;;  %v12899_v14 = vor.u32 %v13838_v13, %v12896_v62  ;;  %v13080_v13 = vld [vmem:[#allocation31 + $0x7a8] sm:$0xf0] }
 0xb42   : > { %v13043_v50 = vor.u32 %v13874_v29, %v13040_v30  ;;  %v13924_v29 = vld [vmem:[#allocation31 + $0x8e4] sm:$0xf]  ;;  %v13224_v15 = vld [vmem:[#allocation31 + $0x8c8] sm:$0xf0] }
 0xb43   : > { %v13208_v8 = vld [vmem:[#allocation31 + $0x8a8] sm:$0xf0] }
 0xb44   : > { %10175 = vmatpush.bf16.msrb.mxu3 %v12923_v28  ;;  %10188 = vmatpush.bf16.msra.mxu1 %v12987_v48  ;;  %v12888_v28 = vld [vmem:[#allocation31 + $0x628] sm:$0xf0]  ;;  %v13852_v48 = vld [vmem:[#allocation31 + $0x6a4] sm:$0xf] }
 0xb45   : > { %10154 = vmatpush.bf16.msrb.mxu2 %v12755_v37  ;;  %10167 = vmatpush.bf16.msra.mxu0 %v12819_v59  ;;  %v13096_v37 = vld [vmem:[#allocation31 + $0x7c8] sm:$0xf0]  ;;  %v12891_v59 = vor.u32 %v13836_v12, %v12888_v28  ;;  %v12955_v26 = vor.u32 %v13852_v48, %v12952_v53  ;;  %v13072_v12 = vld [vmem:[#allocation31 + $0x798] sm:$0xf0] }
 0xb46   : > { %v9936_v46 = vpop.f32.mrf.mxu1  ;;  %v13099_v21 = vor.u32 %v13888_v20, %v13096_v37  ;;  %v13922_v20 = vld [vmem:[#allocation31 + $0x8d4] sm:$0xf]  ;;  %v13232_v37 = vld [vmem:[#allocation31 + $0x8d8] sm:$0xf0] }
 0xb48   : > { %10176 = vmatpush.bf16.msrb.mxu3 %v12915_v47  ;;  %10189 = vmatpush.bf16.msra.mxu1 %v12979_v63  ;;  %v9923_v1 = vpop.f32.mrf.mxu3  ;;  %v13088_v47 = vld [vmem:[#allocation31 + $0x7b8] sm:$0xf0] }
 0xb49   : > { %10155 = vmatpush.bf16.msrb.mxu2 %v12747_v5  ;;  %10168 = vmatpush.bf16.msra.mxu0 %v12811_v23  ;;  %v9924_v34 = vadd.f32 %v9923_v1, %v9911_v39  ;;  %v12936_v23 = vld [vmem:[#allocation31 + $0x688] sm:$0xf0]  ;;  %v13091_v43 = vor.u32 %v13886_v42, %v13088_v47  ;;  %v12875_v39 = vor.u32 %v13832_v9, %v12872_v18  ;;  %v13152_v9 = vld [vmem:[#allocation31 + $0x838] sm:$0xf0]  ;;  %v13918_v18 = vld [vmem:[#allocation31 + $0x8b4] sm:$0xf] }
 0xb4a   : > { %v12939_v36 = vor.u32 %v13848_v58, %v12936_v23  ;;  %v13000_v1 = vld [vmem:[#allocation31 + $0x708] sm:$0xf0]  ;;  %v13216_v58 = vld [vmem:[#allocation31 + $0x8b8] sm:$0xf0] }
 0xb4b   : > { %v9937_v5 = vadd.f32 %v9936_v46, %v9924_v34  ;;  %v13240_v46 = vld [vmem:[#allocation31 + $0x8e8] sm:$0xf0] }
 0xb4c   : > { %10177 = vmatpush.bf16.msrb.mxu3 %v12907_v60  ;;  %10190 = vmatpush.bf16.msra.mxu1 %v12971_v35  ;;  %v13016_v60 = vld [vmem:[#allocation31 + $0x728] sm:$0xf0]  ;;  %v13884_v35 = vld [vmem:[#allocation31 + $0x7a4] sm:$0xf] }
 0xb4d   : > { %10200 = vmatpush.bf16.msra.mxu2 %v13059_v61  ;;  %10213 = vmatpush.bf16.msrb.mxu0 %v13123_v3  ;;  %v13184_v61 = vld [vmem:[#allocation31 + $0x878] sm:$0xf0]  ;;  %v9962_v3 = vpop.f32.mrf.mxu0  ;;  %v13019_v30 = vor.u32 %v13868_v16, %v13016_v60  ;;  %v13083_v2 = vor.u32 %v13884_v35, %v13080_v13  ;;  %v13898_v16 = vld [vmem:[#allocation31 + $0x814] sm:$0xf] }
 0xb4e   : > { %10156 = vmatmul.bf16.vlgmr.msrb.gmra.mxu2 %v16553_v44  ;;  %10169 = vmatmul.bf16.vlgmr.msra.gmra.mxu0 %v16555_v25  ;;  %v12880_v44 = vld [vmem:[#allocation31 + $0x618] sm:$0xf0]  ;;  %v9938_v22 = vpop.f32.mrf.mxu1  ;;  %v13187_v49 = vor.u32 %v13910_v40, %v13184_v61  ;;  %v13219_v40 = vor.u32 %v13918_v18, %v13216_v58  ;;  %v13900_v61 = vld [vmem:[#allocation31 + $0x824] sm:$0xf]  ;;  %v13914_v13 = vld [vmem:[#allocation31 + $0x894] sm:$0xf] }
 0xb4f   : > { %v12944_v25 = vld [vmem:[#allocation31 + $0x698] sm:$0xf0]  ;;  %v12883_v63 = vor.u32 %v13834_v19, %v12880_v44  ;;  %v13864_v19 = vld [vmem:[#allocation31 + $0x704] sm:$0xf] }
 0xb50   : > { %10178 = vmatpush.bf16.msrb.mxu3 %v12899_v14  ;;  %10191 = vmatpush.bf16.msra.mxu1 %v12963_v6  ;;  %v12947_v32 = vor.u32 %v13850_v24, %v12944_v25  ;;  %v9925_v62 = vpop.f32.mrf.mxu3  ;;  %v13008_v14 = vld [vmem:[#allocation31 + $0x718] sm:$0xf0]  ;;  %v13882_v6 = vld [vmem:[#allocation31 + $0x794] sm:$0xf]  ;;  %v13880_v44 = vld [vmem:[#allocation31 + $0x784] sm:$0xf]  ;;  %v13003_v42 = vor.u32 %v13864_v19, %v13000_v1 }
 0xb51   : > { %10201 = vmatpush.bf16.msra.mxu2 %v13051_v51  ;;  %10214 = vmatpush.bf16.msrb.mxu0 %v13115_v56  ;;  %v13908_v51 = vld [vmem:[#allocation31 + $0x864] sm:$0xf]  ;;  %v13176_v56 = vld [vmem:[#allocation31 + $0x868] sm:$0xf0]  ;;  %v9949_v28 = vpop.f32.mrf.mxu2  ;;  %v13136_v35 = vld [vmem:[#allocation31 + $0x818] sm:$0xf0] }
 0xb52   : > { %v9950_v48 = vadd.f32 %v9949_v28, %v9937_v5  ;;  %v13179_v53 = vor.u32 %v13908_v51, %v13176_v56  ;;  %v13064_v24 = vld [vmem:[#allocation31 + $0x788] sm:$0xf0]  ;;  %v13920_v22 = vld [vmem:[#allocation31 + $0x8c4] sm:$0xf] }
 0xb53   : > { %v13067_v47 = vor.u32 %v13880_v44, %v13064_v24  ;;  %v13128_v51 = vld [vmem:[#allocation31 + $0x808] sm:$0xf0]  ;;  %v13912_v56 = vld [vmem:[#allocation31 + $0x884] sm:$0xf] }
 0xb54   : > { %10179 = vmatpush.bf16.msrb.mxu3 %v12891_v59  ;;  %10192 = vmatpush.bf16.msra.mxu1 %v12955_v26  ;;  %v13011_v59 = vor.u32 %v13866_v0, %v13008_v14  ;;  %v13075_v26 = vor.u32 %v13882_v6, %v13072_v12  ;;  %v9963_v25 = vadd.f32 %v9962_v3, %v9950_v48  ;;  %v13144_v3 = vld [vmem:[#allocation31 + $0x828] sm:$0xf0] }
 0xb55   : > { %10202 = vmatpush.bf16.msra.mxu2 %v13043_v50  ;;  %10215 = vmatpush.bf16.msrb.mxu0 %v13107_v4  ;;  %v13243_v50 = vor.u32 %v13924_v29, %v13240_v46  ;;  %v13906_v4 = vld [vmem:[#allocation31 + $0x854] sm:$0xf]  ;;  %v9964_v27 = vpop.f32.mrf.mxu0  ;;  %v13192_v29 = vld [vmem:[#allocation31 + $0x888] sm:$0xf0] }
 0xb56   : > { %v13171_v34 = vor.u32 %v13906_v4, %v13168_v38 }
 0xb58   : > { %10180 = vmatpush.bf16.msrb.mxu3 %v12883_v63  ;;  %10193 = vmatpush.bf16.msra.mxu1 %v12947_v32  ;;  %v13902_v32 = vld [vmem:[#allocation31 + $0x834] sm:$0xf] }
 0xb59   : > { %10203 = vmatpush.bf16.msra.mxu2 %v13035_v17  ;;  %10216 = vmatpush.bf16.msrb.mxu0 %v13099_v21  ;;  %v13235_v17 = vor.u32 %v13922_v20, %v13232_v37  ;;  %v13904_v21 = vld [vmem:[#allocation31 + $0x844] sm:$0xf]  ;;  %v9951_v63 = vpop.f32.mrf.mxu2  ;;  %v13155_v23 = vor.u32 %v13902_v32, %v13152_v9 }
 0xb5c   : > { %10181 = vmatpush.bf16.msrb.mxu3 %v12875_v39  ;;  %10194 = vmatpush.bf16.msra.mxu1 %v12939_v36  ;;  %v9988_v5 = vpop.f32.mrf.mxu1  ;;  %v13200_v39 = vld [vmem:[#allocation31 + $0x898] sm:$0xf0] }
 0xb5d   : > { %10204 = vmatpush.bf16.msra.mxu2 %v13027_v52  ;;  %10217 = vmatpush.bf16.msrb.mxu0 %v13091_v43  ;;  %v13147_v52 = vor.u32 %v13900_v61, %v13144_v3  ;;  %v13211_v43 = vor.u32 %v13916_v55, %v13208_v8 }
 0xb5f   : > { %10182 = vmatmul.bf16.vlgmr.msrb.gmra.mxu3 %v16561_v45  ;;  %10195 = vmatmul.bf16.vlgmr.msra.gmra.mxu1 %v16563_v7  ;;  %v13163_v45 = vor.u32 %v13904_v21, %v13160_v33  ;;  %v13227_v7 = vor.u32 %v13920_v22, %v13224_v15 }
 0xb60   : > { %10226 = vmatpush.bf16.msra.mxu3 %v13187_v49  ;;  %10239 = vmatpush.bf16.msrb.mxu1 %v13251_v41  ;;  %v13139_v49 = vor.u32 %v13898_v16, %v13136_v35  ;;  %v13896_v41 = vld [vmem:[#allocation31 + $0x804] sm:$0xf] }
 0xb61   : > { %10205 = vmatpush.bf16.msra.mxu2 %v13019_v30  ;;  %10218 = vmatpush.bf16.msrb.mxu0 %v13083_v2  ;;  %v13131_v30 = vor.u32 %v13896_v41, %v13128_v51  ;;  %v13195_v2 = vor.u32 %v13912_v56, %v13192_v29 }
 0xb62   : > { %v9975_v60 = vpop.f32.mrf.mxu3 }
 0xb63   : > { %v9976_v36 = vadd.f32 %v9975_v60, %v9963_v25 }
 0xb64   : > { %10227 = vmatpush.bf16.msra.mxu3 %v13179_v53  ;;  %10240 = vmatpush.bf16.msrb.mxu1 %v13243_v50  ;;  %v9990_v62 = vpop.f32.mrf.mxu1  ;;  %v8278_v50 = vperm.slane %v16587_v11, 1 }
 0xb65   : > { %10206 = vmatpush.bf16.msra.mxu2 %v13011_v59  ;;  %10219 = vmatpush.bf16.msrb.mxu0 %v13075_v26 }
 0xb68   : > { %10228 = vmatpush.bf16.msra.mxu3 %v13171_v34  ;;  %10241 = vmatpush.bf16.msrb.mxu1 %v13235_v17 }
 0xb69   : > { %10207 = vmatpush.bf16.msra.mxu2 %v13003_v42  ;;  %10220 = vmatpush.bf16.msrb.mxu0 %v13067_v47 }
 0xb6a   : > { %v9977_v0 = vpop.f32.mrf.mxu3 }
 0xb6b   : > { %v10014_v46 = vpop.f32.mrf.mxu0 }
 0xb6c   : > { %10229 = vmatpush.bf16.msra.mxu3 %v13163_v45  ;;  %10242 = vmatpush.bf16.msrb.mxu1 %v13227_v7 }
 0xb6d   : > { %10208 = vmatmul.bf16.vlgmr.msra.gmra.mxu2 %v16569_v54  ;;  %10221 = vmatmul.bf16.vlgmr.msrb.gmra.mxu0 %v16571_v10  ;;  %v13203_v54 = vor.u32 %v13914_v13, %v13200_v39  ;;  %v9989_v10 = vadd.f32 %v9988_v5, %v9976_v36 }
 0xb70   : > { %10230 = vmatpush.bf16.msra.mxu3 %v13155_v23  ;;  %10243 = vmatpush.bf16.msrb.mxu1 %v13219_v40 }
 0xb71   : > { %v10001_v14 = vpop.f32.mrf.mxu2 }
 0xb72   : > { %v10002_v6 = vadd.f32 %v10001_v14, %v9989_v10 }
 0xb73   : > { %v10016_v12 = vpop.f32.mrf.mxu0 }
 0xb74   : > { %10231 = vmatpush.bf16.msra.mxu3 %v13147_v52  ;;  %10244 = vmatpush.bf16.msrb.mxu1 %v13211_v43  ;;  %v16613_v28 = vadd.f32 %v10014_v46, %v10002_v6 }
 0xb76   : > { %v10252_v56 = vmax.f32 %v16613_v28, 0.0 }
 0xb78   : > { %10232 = vmatpush.bf16.msra.mxu3 %v13139_v49  ;;  %10245 = vmatpush.bf16.msrb.mxu1 %v13203_v54 }
 0xb79   : > { %v10003_v48 = vpop.f32.mrf.mxu2 }
 0xb7c   : > { %10233 = vmatpush.bf16.msra.mxu3 %v13131_v30  ;;  %10246 = vmatpush.bf16.msrb.mxu1 %v13195_v2  ;;  %v10040_v53 = vpop.f32.mrf.mxu1  ;;  %v10256_v30 = vrot.slane %v10252_v56, 2 }
 0xb7e   : > { %v10260_v12 = vsel %vm6532_vm0, %v10252_v56, %v10256_v30 }
 0xb7f   : > { %10234 = vmatmul.bf16.vlgmr.msra.gmra.mxu3 %v16577_v57  ;;  %10247 = vmatmul.bf16.vlgmr.msrb.gmra.mxu1 %v16579_v31 }
 0xb82   : > { %v10027_v4 = vpop.f32.mrf.mxu3 }
 0xb83   : > { %v10028_v38 = vadd.f32 %v10027_v4, %v8278_v50 }
 0xb84   : > { %v10042_v27 = vpop.f32.mrf.mxu1 }
 0xb85   : > { %v10041_v20 = vadd.f32 %v10040_v53, %v10028_v38 }
 0xb8a   : > { %v10029_v59 = vpop.f32.mrf.mxu3 }
 0xb8b   : > { %v10066_v37 = vpop.f32.mrf.mxu0 }
 0xb91   : > { %v10053_v26 = vpop.f32.mrf.mxu2 }
 0xb92   : > { %v10054_v19 = vadd.f32 %v10053_v26, %v10041_v20 }
 0xb93   : > { %v10068_v1 = vpop.f32.mrf.mxu0 }
 0xb94   : > { %v10067_v44 = vadd.f32 %v10066_v37, %v10054_v19 }
 0xb99   : > { %v10055_v24 = vpop.f32.mrf.mxu2 }
 0xb9c   : > { %v10092_v57 = vpop.f32.mrf.mxu1 }
 0xba2   : > { %v10079_v25 = vpop.f32.mrf.mxu3 }
 0xba3   : > { %v10080_v31 = vadd.f32 %v10079_v25, %v10067_v44 }
 0xba4   : > { %v10094_v34 = vpop.f32.mrf.mxu1 }
 0xba5   : > { %v10093_v17 = vadd.f32 %v10092_v57, %v10080_v31 }
 0xbaa   : > { %v10081_v33 = vpop.f32.mrf.mxu3 }
 0xbab   : > { %v10118_v21 = vpop.f32.mrf.mxu0 }
 0xbb1   : > { %v10105_v22 = vpop.f32.mrf.mxu2 }
 0xbb2   : > { %v10106_v11 = vadd.f32 %v10105_v22, %v10093_v17 }
 0xbb3   : > { %v10120_v15 = vpop.f32.mrf.mxu0 }
 0xbb4   : > { %v10119_v42 = vadd.f32 %v10118_v21, %v10106_v11 }
 0xbb9   : > { %v10107_v47 = vpop.f32.mrf.mxu2 }
 0xbbc   : > { %v10144_v63 = vpop.f32.mrf.mxu1 }
 0xbc2   : > { %v10131_v45 = vpop.f32.mrf.mxu3 }
 0xbc3   : > { %v10132_v55 = vadd.f32 %v10131_v45, %v10119_v42 }
 0xbc4   : > { %v10146_v7 = vpop.f32.mrf.mxu1 }
 0xbc5   : > { %v10145_v52 = vadd.f32 %v10144_v63, %v10132_v55 }
 0xbca   : > { %v10133_v9 = vpop.f32.mrf.mxu3 }
 0xbcb   : > { %v10170_v32 = vpop.f32.mrf.mxu0 }
 0xbd1   : > { %v10157_v18 = vpop.f32.mrf.mxu2 }
 0xbd2   : > { %v10158_v16 = vadd.f32 %v10157_v18, %v10145_v52 }
 0xbd3   : > { %v10172_v58 = vpop.f32.mrf.mxu0 }
 0xbd4   : > { %v10171_v35 = vadd.f32 %v10170_v32, %v10158_v16 }
 0xbd9   : > { %v10159_v5 = vpop.f32.mrf.mxu2 }
 0xbdc   : > { %v10196_v23 = vpop.f32.mrf.mxu1 }
 0xbe2   : > { %v10183_v40 = vpop.f32.mrf.mxu3 }
 0xbe3   : > { %v10184_v13 = vadd.f32 %v10183_v40, %v10171_v35 }
 0xbe4   : > { %v10198_v61 = vpop.f32.mrf.mxu1 }
 0xbe5   : > { %v10197_v36 = vadd.f32 %v10196_v23, %v10184_v13 }
 0xbea   : > { %v10222_v3 = vpop.f32.mrf.mxu0  ;;  %v10185_v8 = vpop.f32.mrf.mxu3 }
 0xbf0   : > { %v10209_v43 = vpop.f32.mrf.mxu2 }
 0xbf1   : > { %v10210_v49 = vadd.f32 %v10209_v43, %v10197_v36 }
 0xbf2   : > { %v10224_v60 = vpop.f32.mrf.mxu0 }
 0xbf3   : > { %v10223_v54 = vadd.f32 %v10222_v3, %v10210_v49 }
 0xbf8   : > { %v10211_v39 = vpop.f32.mrf.mxu2 }
 0xbfc   : > { %v10248_v62 = vpop.f32.mrf.mxu1 }
 0xc02   : > { %v10235_v41 = vpop.f32.mrf.mxu3 }
 0xc03   : > { %v10236_v10 = vadd.f32 %v10235_v41, %v10223_v54 }
 0xc04   : > { %v10250_v51 = vpop.f32.mrf.mxu1 }
 0xc05   : > { %v10249_v29 = vadd.f32 %v10248_v62, %v10236_v10 }
 0xc07   : > { %v10253_v46 = vmax.f32 %v10249_v29, 0.0 }
 0xc09   : > { %v10257_v2 = vrot.slane %v10253_v46, 2 }
 0xc0a   : > { %v10237_v0 = vpop.f32.mrf.mxu3 }
 0xc0b   : > { %v10261_v14 = vsel %vm6532_vm0, %v10253_v46, %v10257_v2 }
 0xc0c   : > { %v10264_v6 = vrot.slane %v10261_v14, 4 }
 0xc0e   : > { %v10265_v48 = vsel %vm6566_vm1, %v10260_v12, %v10264_v6 }
 0xc0f   : > { %10267 = vst [vmem:[%s716_s16] sm:$0xff] %v10265_v48 }
 0xc10 PF: > { %s33_s18 = sadd.s32 1, %s14579_s18  }
 0xc11   : > { %p30_p7 = scmp.ge.s32.totalorder %s33_s18, 4  }
 0xc13   :  { %32 = sbr.rel (!%p30_p7) target bundleno = 14 (0xe), region = 182 }
 0xc18   :  { %10289 = vsyncpa [#allocation13], 1 }
 0xc19   :  { %10291 = vsyncpa [#allocation13 + $0x1], 1 }
 0xc1a   :  { %10292 = vsyncpa [#allocation15], 1 }
 0xc1b   :  { %10293 = vsyncpa [#allocation18], 1 }
 0xc1c   :  { %10294 = vsyncpa [#allocation21], 1 }
 0xc1d   :  { %10295 = vsyncpa [#allocation24], 1 }
 0xc1e   :  { %10296 = vsyncpa [#allocation27], 1 }
 0xc1f   :  { %10297 = vsyncpa [#allocation30], 1 }
 0xc20   :  { %10298 = vsyncpa [#allocation33], 1 }

</bundles_post_ra>
